<compile_context>
chip_gen: v7x
topology: tpu7x:2x2x1
jax: 0.10.0
libtpu: 0.0.40
codegen_flags: <defaults>
</compile_context>

<pallas_src>
import functools

import jax
import jax.numpy as jnp
import numpy as np
from jax import lax
from jax.experimental import pallas as pl
from jax.experimental.pallas import tpu as pltpu


# ------------------------------ fused kernel --------------------------------

def _ds_layer_kernel(x_ref, w1_ref, b1_ref, w2_ref, b2_ref, o_ref, y1_ref, *,
                     H, W, c_in, c_mid, n_class):
    """One batch element: conv1(T,stride2)+BN+ReLU -> conv2(T,stride1).

    x_ref : (1, c_in, HW + PADW)     flattened input, zero guard tail (VMEM)
    w1_ref: (c_mid, 9*c_in)          conv1 weight columns, col=(kh*3+kw)*c_in+ci
    b1_ref: (c_mid, 1)               BN-folded conv1 bias column
    w2_ref: (4*n_class, 16*c_mid)    conv2 weight columns, col=(wi*4+wj)*c_mid+ci
    b2_ref: (4*n_class, 1)           conv2 bias column (tiled over phases)
    o_ref : (1, 4*n_class, HW)       output phases (pixel-shuffled in wrapper)
    y1_ref: (2, 2, c_mid, PLANE)     VMEM scratch: y1 sub-pixel phase planes,
                                     data at lanes [OFF, OFF+HW), zero guards.
    """
    HW = H * W
    OFF = 128                               # lane-aligned data offset
    PLANE = y1_ref.shape[-1]
    f32 = jnp.float32

    col = lax.broadcasted_iota(jnp.int32, (1, HW), 1) % W
    mask_l = (col != 0).astype(f32)         # kill contributions wrapped to col -1
    mask_r = (col != (W - 1)).astype(f32)   # kill contributions wrapped to col W

    # Zero only the guard-lane tiles; the data region [OFF, OFF+HW) is fully
    # overwritten below.  Aligned (c_mid, 128) stores, every grid step (safe
    # under a "parallel" batch axis / per-core scratch).
    zeros_head = jnp.zeros((c_mid, OFF), f32)
    zeros_tail = jnp.zeros((c_mid, PLANE - OFF - HW), f32)
    for rh in range(2):
        for rw in range(2):
            y1_ref[rh, rw, :, :OFF] = zeros_head
            y1_ref[rh, rw, :, OFF + HW:] = zeros_tail

    # ---- conv1: ConvTranspose2d(k=3, p=1, stride=2, op=1) + BN + ReLU -------
    # Deduplicated shifted (+ masked) input rows: one load per (dh, dw, ci).
    src1 = {}
    for dh, dw in ((0, 0), (0, 1), (1, 0), (1, 1)):
        for ci in range(c_in):
            shift = dh * W + dw                                   # static lane shift
            s = x_ref[0, ci:ci + 1, shift:shift + HW]             # (1, HW)
            if dw == 1:
                s = s * mask_r
            src1[(dh, dw, ci)] = s

    # Sub-pixel decomposition: y1[2q+rh, 2s+rw] = sum_taps w1[kh,kw] . x[q+dh, s+dw]
    conv1_taps = {
        (0, 0): [(0, 0, 1, 1)],
        (0, 1): [(0, 0, 1, 0), (0, 1, 1, 2)],
        (1, 0): [(0, 0, 0, 1), (1, 0, 2, 1)],
        (1, 1): [(0, 0, 0, 0), (0, 1, 0, 2), (1, 0, 2, 0), (1, 1, 2, 2)],
    }
    for (rh, rw), taps in conv1_taps.items():
        acc = jnp.zeros((c_mid, HW), f32)
        for dh, dw, kh, kw in taps:
            for ci in range(c_in):
                c = (kh * 3 + kw) * c_in + ci
                acc = acc + w1_ref[:, c:c + 1] * src1[(dh, dw, ci)]   # (8,1)*(1,HW)
        # BN folded into weights/bias; ReLU; dense lane-aligned (8, HW) store.
        y1_ref[rh, rw, :, OFF:OFF + HW] = jnp.maximum(acc + b1_ref[...], 0.0)
    # TODO(synk): Dropout2d(p=0.2) is identity in eval mode; training-mode
    # stochastic channel dropout is not implemented.

    # ---- conv2: ConvTranspose2d(k=3, p=1, stride=1), phase-aware ------------
    # 16 distinct (vertical window) x (horizontal window) sources; the single
    # accumulator's sublanes are the (sh, sw, co) output rows = o_ref layout.
    windows = ((1, -1), (0, 0), (1, 0), (0, 1))     # distinct (phase, offset)
    acc2 = jnp.zeros((4 * n_class, HW), f32)
    for wi, (ph, dh) in enumerate(windows):
        for wj, (pw, dw) in enumerate(windows):
            start = OFF + dh * W + dw
            for ci in range(c_mid):
                s = y1_ref[ph, pw, ci:ci + 1, start:start + HW]    # (1, HW)
                if dw == 1:
                    s = s * mask_r
                elif dw == -1:
                    s = s * mask_l
                c = (wi * 4 + wj) * c_mid + ci
                acc2 = acc2 + w2_ref[:, c:c + 1] * s               # (8,1)*(1,HW)
    # Single fully dense (8, HW) store: sublanes=8, lanes=2 full tiles.
    o_ref[0] = acc2 + b2_ref[...]


# ------------------------------ wrapper --------------------------------------

def ds_layer_forward(x_nchw, params, *, stride, output_padding, eps=1e-5):
    # TODO(synk): the fused kernel is specialised to stride=2, output_padding=1
    # (the DSAMNet DS_layer configuration exercised here) and to an H*W that
    # fits on the lane axis of a single op; other configs need a phase table /
    # spatial tiling generalisation.
    assert stride == 2 and output_padding == 1
    N, c_in, H, W = x_nchw.shape
    c_mid = params["w1"].shape[1]
    n_class = params["w2"].shape[1]
    HW = H * W
    OFF = 128
    assert W + 1 <= OFF, "guard region too small for this W"

    # Pad flattened input to whole 128-lane tiles (guard >= W+1 lanes for the
    # (dh,dw)=+1 taps).  Phase-plane scratch: 128 guard + HW data + 128 guard.
    PADW = ((HW + W + 1 + 127) // 128) * 128 - HW
    PLANE = OFF + HW + 128

    # Fold eval-mode BatchNorm into conv1; pre-flip ConvTranspose weights so the
    # kernel does plain correlations.  w1f/w2f layout: (kh, kw, ci, co).
    scale = params["bn_gamma"] / jnp.sqrt(params["bn_var"] + eps)
    shift = params["bn_beta"] - scale * params["bn_mean"]
    w1f = jnp.transpose(jnp.flip(params["w1"], (2, 3)), (2, 3, 0, 1)) * scale
    b1f = params["b1"] * scale + shift
    w2f = jnp.transpose(jnp.flip(params["w2"], (2, 3)), (2, 3, 0, 1))
    b2f = params["b2"]

    # conv1 weight columns: (c_mid, 9*c_in); column index = (kh*3+kw)*c_in + ci.
    w1v = w1f.reshape(9 * c_in, c_mid).T

    # conv2 weight columns: (4*n_class, 16*c_mid).
    #   row    = (sh*2 + sw)*n_class + co          (== output phase/channel row)
    #   column = (wi*4 + wj)*c_mid + ci            (wi/wj index distinct windows)
    pmap = {(0, 0): (1, -1), (0, 1): (0, 0), (0, 2): (1, 0),
            (1, 0): (0, 0), (1, 1): (1, 0), (1, 2): (0, 1)}
    windows = [(1, -1), (0, 0), (1, 0), (0, 1)]
    w2v = jnp.zeros((4 * n_class, 16 * c_mid), jnp.float32)
    for sh in range(2):
        for kh in range(3):
            wi = windows.index(pmap[(sh, kh)])
            for sw in range(2):
                for kw in range(3):
                    wj = windows.index(pmap[(sw, kw)])
                    r0 = (sh * 2 + sw) * n_class
                    c0 = (wi * 4 + wj) * c_mid
                    w2v = w2v.at[r0:r0 + n_class, c0:c0 + c_mid].add(w2f[kh, kw].T)

    b1v = b1f.reshape(c_mid, 1)
    b2v = jnp.tile(b2f, 4).reshape(4 * n_class, 1)

    # Flatten spatial into the lane axis (+ zero guard).  No dilated tensor is
    # ever materialized anywhere.
    x_flat = jnp.pad(x_nchw.reshape(N, c_in, HW), ((0, 0), (0, 0), (0, PADW)))

    kern = functools.partial(_ds_layer_kernel, H=H, W=W, c_in=c_in,
                             c_mid=c_mid, n_class=n_class)
    flops = 2 * N * 9 * HW * (c_in * c_mid + 4 * c_mid * n_class)
    bytes_accessed = 4 * (int(x_flat.size) + N * 4 * n_class * HW
                          + int(w1v.size) + int(w2v.size)
                          + int(b1v.size) + int(b2v.size))

    out_phases = pl.pallas_call(
        kern,
        out_shape=jax.ShapeDtypeStruct((N, 4 * n_class, HW), jnp.float32),
        grid=(N,),
        in_specs=[
            pl.BlockSpec((1, c_in, HW + PADW), lambda n: (n, 0, 0)),
            pl.BlockSpec((c_mid, 9 * c_in), lambda n: (0, 0)),
            pl.BlockSpec((c_mid, 1), lambda n: (0, 0)),
            pl.BlockSpec((4 * n_class, 16 * c_mid), lambda n: (0, 0)),
            pl.BlockSpec((4 * n_class, 1), lambda n: (0, 0)),
        ],
        out_specs=pl.BlockSpec((1, 4 * n_class, HW), lambda n: (n, 0, 0)),
        scratch_shapes=[pltpu.VMEM((2, 2, c_mid, PLANE), jnp.float32)],
        compiler_params=pltpu.CompilerParams(
            dimension_semantics=("parallel",)),   # batch split across v7x TCs
        cost_estimate=pl.CostEstimate(flops=flops, transcendentals=0,
                                      bytes_accessed=bytes_accessed),
    )(x_flat, w1v, b1v, w2v, b2v)

    # Pixel-shuffle the 4 sub-pixel output phases back to (N, n_class, 2H, 2W).
    y = out_phases.reshape(N, 2, 2, n_class, H, W)
    y = jnp.transpose(y, (0, 3, 4, 1, 5, 2))
    return y.reshape(N, n_class, 2 * H, 2 * W)


# ------------------------- pure-JAX reference --------------------------------

def _ref_convt(x, w_t, b, stride, output_padding):
    # x NCHW, w_t (Cin, Cout, kh, kw)
    w_conv = jnp.transpose(jnp.flip(w_t, (2, 3)), (1, 0, 2, 3))   # OIHW
    y = jax.lax.conv_general_dilated(
        x, w_conv, window_strides=(1, 1),
        padding=((1, 1 + output_padding), (1, 1 + output_padding)),
        lhs_dilation=(stride, stride),
        dimension_numbers=("NCHW", "OIHW", "NCHW"))
    return y + b[None, :, None, None]


def ref_forward(x, p, *, stride, output_padding, eps=1e-5):
    y = _ref_convt(x, p["w1"], p["b1"], stride, output_padding)
    scale = p["bn_gamma"] / jnp.sqrt(p["bn_var"] + eps)
    y = (scale[None, :, None, None] * (y - p["bn_mean"][None, :, None, None])
         + p["bn_beta"][None, :, None, None])
    y = jnp.maximum(y, 0.0)
    y = _ref_convt(y, p["w2"], p["b2"], 1, 0)
    return y


# --------------------------------- main ---------------------------------------

if __name__ == "__main__":
    in_d, out_d, n_class = 4, 8, 2
    stride, output_padding = 2, 1
    N, H, W = 2, 16, 16

    key = jax.random.PRNGKey(0)
    ks = jax.random.split(key, 9)
    params = {
        "w1": 0.1 * jax.random.normal(ks[0], (in_d, out_d, 3, 3), jnp.float32),
        "b1": 0.1 * jax.random.normal(ks[1], (out_d,), jnp.float32),
        "bn_gamma": 1.0 + 0.1 * jax.random.normal(ks[2], (out_d,), jnp.float32),
        "bn_beta": 0.1 * jax.random.normal(ks[3], (out_d,), jnp.float32),
        "bn_mean": 0.1 * jax.random.normal(ks[4], (out_d,), jnp.float32),
        "bn_var": 1.0 + 0.1 * jax.nn.softplus(
            jax.random.normal(ks[5], (out_d,))).astype(jnp.float32),
        "w2": 0.1 * jax.random.normal(ks[6], (out_d, n_class, 3, 3), jnp.float32),
        "b2": 0.1 * jax.random.normal(ks[7], (n_class,), jnp.float32),
    }
    x = jax.random.normal(ks[8], (N, in_d, H, W), jnp.float32)

    out = ds_layer_forward(x, params, stride=stride,
                           output_padding=output_padding)
    out = jax.block_until_ready(out)

    ref = ref_forward(x, params, stride=stride, output_padding=output_padding)
    assert out.shape == (N, n_class, 2 * H, 2 * W), out.shape
    np.testing.assert_allclose(np.asarray(out), np.asarray(ref),
                               rtol=1e-3, atol=1e-3)
    print("KERNEL_OK")
</pallas_src>

<mosaic_0001>
module attributes {stable_mosaic.version = 11 : i64} {
  func.func @_ds_layer_kernel(%arg0: i32, %arg1: memref<1x4x384xf32, #tpu.memory_space<vmem>>, %arg2: memref<8x36xf32, #tpu.memory_space<vmem>>, %arg3: memref<8x1xf32, #tpu.memory_space<vmem>>, %arg4: memref<8x128xf32, #tpu.memory_space<vmem>>, %arg5: memref<8x1xf32, #tpu.memory_space<vmem>>, %arg6: memref<1x8x256xf32, #tpu.memory_space<vmem>>, %arg7: memref<2x2x8x512xf32, #tpu.memory_space<vmem>>) attributes {dimension_semantics = [#tpu.dimension_semantics<parallel>], iteration_bounds = array<i64: 2>, scalar_prefetch = 0 : i64, scratch_operands = 1 : i64, tpu.core_type = #tpu.core_type<tc>, window_params = [{transform_indices = @transform_0, window_bounds = array<i64: 1, 4, 384>}, {pipeline_mode = #tpu.pipeline_mode<synchronous>, transform_indices = @transform_1, window_bounds = array<i64: 8, 36>}, {pipeline_mode = #tpu.pipeline_mode<synchronous>, transform_indices = @transform_2, window_bounds = array<i64: 8, 1>}, {pipeline_mode = #tpu.pipeline_mode<synchronous>, transform_indices = @transform_3, window_bounds = array<i64: 8, 128>}, {pipeline_mode = #tpu.pipeline_mode<synchronous>, transform_indices = @transform_4, window_bounds = array<i64: 8, 1>}, {transform_indices = @transform_5, window_bounds = array<i64: 1, 8, 256>}]} {
    %0 = tpu.iota {dimensions = array<i32: 1>} : vector<1x256xi32>
    %c16_i32 = arith.constant 16 : i32
    %c0_i32 = arith.constant 0 : i32
    %1 = arith.cmpi eq, %c16_i32, %c0_i32 : i32
    %c1_i32 = arith.constant 1 : i32
    %2 = arith.select %1, %c1_i32, %c16_i32 : i32
    %3 = vector.broadcast %2 : i32 to vector<1x256xi32>
    %4 = arith.remsi %0, %3 : vector<1x256xi32>
    %c0_i32_0 = arith.constant 0 : i32
    %5 = vector.broadcast %c0_i32_0 : i32 to vector<1x256xi32>
    %6 = arith.cmpi ne, %4, %5 : vector<1x256xi32>
    %c0_i32_1 = arith.constant 0 : i32
    %7 = vector.broadcast %c0_i32_1 : i32 to vector<1x256xi32>
    %8 = arith.cmpi slt, %4, %7 : vector<1x256xi32>
    %c0_i32_2 = arith.constant 0 : i32
    %9 = arith.cmpi slt, %2, %c0_i32_2 : i32
    %10 = vector.broadcast %9 : i1 to vector<1x256xi1>
    %11 = vector.broadcast %10 : vector<1x256xi1> to vector<1x256xi1>
    %12 = arith.xori %8, %11 : vector<1x256xi1>
    %13 = arith.andi %12, %6 : vector<1x256xi1>
    %14 = vector.broadcast %2 : i32 to vector<1x256xi32>
    %15 = arith.addi %4, %14 : vector<1x256xi32>
    %16 = arith.select %13, %15, %4 : vector<1x256xi1>, vector<1x256xi32>
    %c0_i32_3 = arith.constant 0 : i32
    %17 = vector.broadcast %c0_i32_3 : i32 to vector<1x256xi32>
    %18 = arith.cmpi ne, %16, %17 : vector<1x256xi32>
    %19 = arith.extui %18 : vector<1x256xi1> to vector<1x256xi32>
    %20 = arith.sitofp %19 : vector<1x256xi32> to vector<1x256xf32>
    %c15_i32 = arith.constant 15 : i32
    %21 = vector.broadcast %c15_i32 : i32 to vector<1x256xi32>
    %22 = arith.cmpi ne, %16, %21 : vector<1x256xi32>
    %23 = arith.extui %22 : vector<1x256xi1> to vector<1x256xi32>
    %24 = arith.sitofp %23 : vector<1x256xi32> to vector<1x256xf32>
    %cst = arith.constant 0.000000e+00 : f32
    %25 = vector.broadcast %cst : f32 to vector<8x128xf32>
    %cst_4 = arith.constant 0.000000e+00 : f32
    %26 = vector.broadcast %cst_4 : f32 to vector<8x128xf32>
    %c0 = arith.constant 0 : index
    %c0_5 = arith.constant 0 : index
    %c0_6 = arith.constant 0 : index
    %c0_7 = arith.constant 0 : index
    %27 = vector.load %arg7[%c0, %c0_5, %c0_6, %c0_7] : memref<2x2x8x512xf32, #tpu.memory_space<vmem>>, vector<1x1x8x128xf32>
    %28 = vector.shape_cast %27 : vector<1x1x8x128xf32> to vector<8x128xf32>
    %29 = vector.shape_cast %25 : vector<8x128xf32> to vector<1x1x8x128xf32>
    tpu.vector_store %arg7[%c0, %c0_5, %c0_6, %c0_7], %29 {strides = array<i32>} : memref<2x2x8x512xf32, #tpu.memory_space<vmem>>, vector<1x1x8x128xf32>,
    %c0_8 = arith.constant 0 : index
    %c0_9 = arith.constant 0 : index
    %c0_10 = arith.constant 0 : index
    %c384 = arith.constant 384 : index
    %30 = vector.load %arg7[%c0_8, %c0_9, %c0_10, %c384] : memref<2x2x8x512xf32, #tpu.memory_space<vmem>>, vector<1x1x8x128xf32>
    %31 = vector.shape_cast %30 : vector<1x1x8x128xf32> to vector<8x128xf32>
    %32 = vector.shape_cast %26 : vector<8x128xf32> to vector<1x1x8x128xf32>
    tpu.vector_store %arg7[%c0_8, %c0_9, %c0_10, %c384], %32 {strides = array<i32>} : memref<2x2x8x512xf32, #tpu.memory_space<vmem>>, vector<1x1x8x128xf32>,
    %c0_11 = arith.constant 0 : index
    %c1 = arith.constant 1 : index
    %c0_12 = arith.constant 0 : index
    %c0_13 = arith.constant 0 : index
    %33 = vector.load %arg7[%c0_11, %c1, %c0_12, %c0_13] : memref<2x2x8x512xf32, #tpu.memory_space<vmem>>, vector<1x1x8x128xf32>
    %34 = vector.shape_cast %33 : vector<1x1x8x128xf32> to vector<8x128xf32>
    %35 = vector.shape_cast %25 : vector<8x128xf32> to vector<1x1x8x128xf32>
    tpu.vector_store %arg7[%c0_11, %c1, %c0_12, %c0_13], %35 {strides = array<i32>} : memref<2x2x8x512xf32, #tpu.memory_space<vmem>>, vector<1x1x8x128xf32>,
    %c0_14 = arith.constant 0 : index
    %c1_15 = arith.constant 1 : index
    %c0_16 = arith.constant 0 : index
    %c384_17 = arith.constant 384 : index
    %36 = vector.load %arg7[%c0_14, %c1_15, %c0_16, %c384_17] : memref<2x2x8x512xf32, #tpu.memory_space<vmem>>, vector<1x1x8x128xf32>
    %37 = vector.shape_cast %36 : vector<1x1x8x128xf32> to vector<8x128xf32>
    %38 = vector.shape_cast %26 : vector<8x128xf32> to vector<1x1x8x128xf32>
    tpu.vector_store %arg7[%c0_14, %c1_15, %c0_16, %c384_17], %38 {strides = array<i32>} : memref<2x2x8x512xf32, #tpu.memory_space<vmem>>, vector<1x1x8x128xf32>,
    %c1_18 = arith.constant 1 : index
    %c0_19 = arith.constant 0 : index
    %c0_20 = arith.constant 0 : index
    %c0_21 = arith.constant 0 : index
    %39 = vector.load %arg7[%c1_18, %c0_19, %c0_20, %c0_21] : memref<2x2x8x512xf32, #tpu.memory_space<vmem>>, vector<1x1x8x128xf32>
    %40 = vector.shape_cast %39 : vector<1x1x8x128xf32> to vector<8x128xf32>
    %41 = vector.shape_cast %25 : vector<8x128xf32> to vector<1x1x8x128xf32>
    tpu.vector_store %arg7[%c1_18, %c0_19, %c0_20, %c0_21], %41 {strides = array<i32>} : memref<2x2x8x512xf32, #tpu.memory_space<vmem>>, vector<1x1x8x128xf32>,
    %c1_22 = arith.constant 1 : index
    %c0_23 = arith.constant 0 : index
    %c0_24 = arith.constant 0 : index
    %c384_25 = arith.constant 384 : index
    %42 = vector.load %arg7[%c1_22, %c0_23, %c0_24, %c384_25] : memref<2x2x8x512xf32, #tpu.memory_space<vmem>>, vector<1x1x8x128xf32>
    %43 = vector.shape_cast %42 : vector<1x1x8x128xf32> to vector<8x128xf32>
    %44 = vector.shape_cast %26 : vector<8x128xf32> to vector<1x1x8x128xf32>
    tpu.vector_store %arg7[%c1_22, %c0_23, %c0_24, %c384_25], %44 {strides = array<i32>} : memref<2x2x8x512xf32, #tpu.memory_space<vmem>>, vector<1x1x8x128xf32>,
    %c1_26 = arith.constant 1 : index
    %c1_27 = arith.constant 1 : index
    %c0_28 = arith.constant 0 : index
    %c0_29 = arith.constant 0 : index
    %45 = vector.load %arg7[%c1_26, %c1_27, %c0_28, %c0_29] : memref<2x2x8x512xf32, #tpu.memory_space<vmem>>, vector<1x1x8x128xf32>
    %46 = vector.shape_cast %45 : vector<1x1x8x128xf32> to vector<8x128xf32>
    %47 = vector.shape_cast %25 : vector<8x128xf32> to vector<1x1x8x128xf32>
    tpu.vector_store %arg7[%c1_26, %c1_27, %c0_28, %c0_29], %47 {strides = array<i32>} : memref<2x2x8x512xf32, #tpu.memory_space<vmem>>, vector<1x1x8x128xf32>,
    %c1_30 = arith.constant 1 : index
    %c1_31 = arith.constant 1 : index
    %c0_32 = arith.constant 0 : index
    %c384_33 = arith.constant 384 : index
    %48 = vector.load %arg7[%c1_30, %c1_31, %c0_32, %c384_33] : memref<2x2x8x512xf32, #tpu.memory_space<vmem>>, vector<1x1x8x128xf32>
    %49 = vector.shape_cast %48 : vector<1x1x8x128xf32> to vector<8x128xf32>
    %50 = vector.shape_cast %26 : vector<8x128xf32> to vector<1x1x8x128xf32>
    tpu.vector_store %arg7[%c1_30, %c1_31, %c0_32, %c384_33], %50 {strides = array<i32>} : memref<2x2x8x512xf32, #tpu.memory_space<vmem>>, vector<1x1x8x128xf32>,
    %c0_34 = arith.constant 0 : index
    %c0_35 = arith.constant 0 : index
    %c0_36 = arith.constant 0 : index
    %51 = vector.load %arg1[%c0_34, %c0_35, %c0_36] : memref<1x4x384xf32, #tpu.memory_space<vmem>>, vector<1x1x256xf32>
    %52 = vector.shape_cast %51 : vector<1x1x256xf32> to vector<1x256xf32>
    %c0_37 = arith.constant 0 : index
    %c1_38 = arith.constant 1 : index
    %c0_39 = arith.constant 0 : index
    %53 = vector.load %arg1[%c0_37, %c1_38, %c0_39] : memref<1x4x384xf32, #tpu.memory_space<vmem>>, vector<1x1x256xf32>
    %54 = vector.shape_cast %53 : vector<1x1x256xf32> to vector<1x256xf32>
    %c0_40 = arith.constant 0 : index
    %c2 = arith.constant 2 : index
    %c0_41 = arith.constant 0 : index
    %55 = vector.load %arg1[%c0_40, %c2, %c0_41] : memref<1x4x384xf32, #tpu.memory_space<vmem>>, vector<1x1x256xf32>
    %56 = vector.shape_cast %55 : vector<1x1x256xf32> to vector<1x256xf32>
    %c0_42 = arith.constant 0 : index
    %c3 = arith.constant 3 : index
    %c0_43 = arith.constant 0 : index
    %57 = vector.load %arg1[%c0_42, %c3, %c0_43] : memref<1x4x384xf32, #tpu.memory_space<vmem>>, vector<1x1x256xf32>
    %58 = vector.shape_cast %57 : vector<1x1x256xf32> to vector<1x256xf32>
    %c0_44 = arith.constant 0 : index
    %c0_45 = arith.constant 0 : index
    %c1_46 = arith.constant 1 : index
    %59 = vector.load %arg1[%c0_44, %c0_45, %c1_46] : memref<1x4x384xf32, #tpu.memory_space<vmem>>, vector<1x1x256xf32>
    %60 = vector.shape_cast %59 : vector<1x1x256xf32> to vector<1x256xf32>
    %61 = arith.mulf %60, %24 : vector<1x256xf32>
    %c0_47 = arith.constant 0 : index
    %c1_48 = arith.constant 1 : index
    %c1_49 = arith.constant 1 : index
    %62 = vector.load %arg1[%c0_47, %c1_48, %c1_49] : memref<1x4x384xf32, #tpu.memory_space<vmem>>, vector<1x1x256xf32>
    %63 = vector.shape_cast %62 : vector<1x1x256xf32> to vector<1x256xf32>
    %64 = arith.mulf %63, %24 : vector<1x256xf32>
    %c0_50 = arith.constant 0 : index
    %c2_51 = arith.constant 2 : index
    %c1_52 = arith.constant 1 : index
    %65 = vector.load %arg1[%c0_50, %c2_51, %c1_52] : memref<1x4x384xf32, #tpu.memory_space<vmem>>, vector<1x1x256xf32>
    %66 = vector.shape_cast %65 : vector<1x1x256xf32> to vector<1x256xf32>
    %67 = arith.mulf %66, %24 : vector<1x256xf32>
    %c0_53 = arith.constant 0 : index
    %c3_54 = arith.constant 3 : index
    %c1_55 = arith.constant 1 : index
    %68 = vector.load %arg1[%c0_53, %c3_54, %c1_55] : memref<1x4x384xf32, #tpu.memory_space<vmem>>, vector<1x1x256xf32>
    %69 = vector.shape_cast %68 : vector<1x1x256xf32> to vector<1x256xf32>
    %70 = arith.mulf %69, %24 : vector<1x256xf32>
    %c0_56 = arith.constant 0 : index
    %c0_57 = arith.constant 0 : index
    %c16 = arith.constant 16 : index
    %71 = vector.load %arg1[%c0_56, %c0_57, %c16] : memref<1x4x384xf32, #tpu.memory_space<vmem>>, vector<1x1x256xf32>
    %72 = vector.shape_cast %71 : vector<1x1x256xf32> to vector<1x256xf32>
    %c0_58 = arith.constant 0 : index
    %c1_59 = arith.constant 1 : index
    %c16_60 = arith.constant 16 : index
    %73 = vector.load %arg1[%c0_58, %c1_59, %c16_60] : memref<1x4x384xf32, #tpu.memory_space<vmem>>, vector<1x1x256xf32>
    %74 = vector.shape_cast %73 : vector<1x1x256xf32> to vector<1x256xf32>
    %c0_61 = arith.constant 0 : index
    %c2_62 = arith.constant 2 : index
    %c16_63 = arith.constant 16 : index
    %75 = vector.load %arg1[%c0_61, %c2_62, %c16_63] : memref<1x4x384xf32, #tpu.memory_space<vmem>>, vector<1x1x256xf32>
    %76 = vector.shape_cast %75 : vector<1x1x256xf32> to vector<1x256xf32>
    %c0_64 = arith.constant 0 : index
    %c3_65 = arith.constant 3 : index
    %c16_66 = arith.constant 16 : index
    %77 = vector.load %arg1[%c0_64, %c3_65, %c16_66] : memref<1x4x384xf32, #tpu.memory_space<vmem>>, vector<1x1x256xf32>
    %78 = vector.shape_cast %77 : vector<1x1x256xf32> to vector<1x256xf32>
    %c0_67 = arith.constant 0 : index
    %c0_68 = arith.constant 0 : index
    %c17 = arith.constant 17 : index
    %79 = vector.load %arg1[%c0_67, %c0_68, %c17] : memref<1x4x384xf32, #tpu.memory_space<vmem>>, vector<1x1x256xf32>
    %80 = vector.shape_cast %79 : vector<1x1x256xf32> to vector<1x256xf32>
    %81 = arith.mulf %80, %24 : vector<1x256xf32>
    %c0_69 = arith.constant 0 : index
    %c1_70 = arith.constant 1 : index
    %c17_71 = arith.constant 17 : index
    %82 = vector.load %arg1[%c0_69, %c1_70, %c17_71] : memref<1x4x384xf32, #tpu.memory_space<vmem>>, vector<1x1x256xf32>
    %83 = vector.shape_cast %82 : vector<1x1x256xf32> to vector<1x256xf32>
    %84 = arith.mulf %83, %24 : vector<1x256xf32>
    %c0_72 = arith.constant 0 : index
    %c2_73 = arith.constant 2 : index
    %c17_74 = arith.constant 17 : index
    %85 = vector.load %arg1[%c0_72, %c2_73, %c17_74] : memref<1x4x384xf32, #tpu.memory_space<vmem>>, vector<1x1x256xf32>
    %86 = vector.shape_cast %85 : vector<1x1x256xf32> to vector<1x256xf32>
    %87 = arith.mulf %86, %24 : vector<1x256xf32>
    %c0_75 = arith.constant 0 : index
    %c3_76 = arith.constant 3 : index
    %c17_77 = arith.constant 17 : index
    %88 = vector.load %arg1[%c0_75, %c3_76, %c17_77] : memref<1x4x384xf32, #tpu.memory_space<vmem>>, vector<1x1x256xf32>
    %89 = vector.shape_cast %88 : vector<1x1x256xf32> to vector<1x256xf32>
    %90 = arith.mulf %89, %24 : vector<1x256xf32>
    %cst_78 = arith.constant 0.000000e+00 : f32
    %91 = vector.broadcast %cst_78 : f32 to vector<8x256xf32>
    %c0_79 = arith.constant 0 : index
    %c16_80 = arith.constant 16 : index
    %92 = vector.load %arg2[%c0_79, %c16_80] : memref<8x36xf32, #tpu.memory_space<vmem>>, vector<8x1xf32>
    %93 = vector.broadcast %92 : vector<8x1xf32> to vector<8x256xf32>
    %94 = vector.broadcast %52 : vector<1x256xf32> to vector<8x256xf32>
    %95 = arith.mulf %93, %94 : vector<8x256xf32>
    %96 = arith.addf %91, %95 : vector<8x256xf32>
    %c0_81 = arith.constant 0 : index
    %c17_82 = arith.constant 17 : index
    %97 = vector.load %arg2[%c0_81, %c17_82] : memref<8x36xf32, #tpu.memory_space<vmem>>, vector<8x1xf32>
    %98 = vector.broadcast %97 : vector<8x1xf32> to vector<8x256xf32>
    %99 = vector.broadcast %54 : vector<1x256xf32> to vector<8x256xf32>
    %100 = arith.mulf %98, %99 : vector<8x256xf32>
    %101 = arith.addf %96, %100 : vector<8x256xf32>
    %c0_83 = arith.constant 0 : index
    %c18 = arith.constant 18 : index
    %102 = vector.load %arg2[%c0_83, %c18] : memref<8x36xf32, #tpu.memory_space<vmem>>, vector<8x1xf32>
    %103 = vector.broadcast %102 : vector<8x1xf32> to vector<8x256xf32>
    %104 = vector.broadcast %56 : vector<1x256xf32> to vector<8x256xf32>
    %105 = arith.mulf %103, %104 : vector<8x256xf32>
    %106 = arith.addf %101, %105 : vector<8x256xf32>
    %c0_84 = arith.constant 0 : index
    %c19 = arith.constant 19 : index
    %107 = vector.load %arg2[%c0_84, %c19] : memref<8x36xf32, #tpu.memory_space<vmem>>, vector<8x1xf32>
    %108 = vector.broadcast %107 : vector<8x1xf32> to vector<8x256xf32>
    %109 = vector.broadcast %58 : vector<1x256xf32> to vector<8x256xf32>
    %110 = arith.mulf %108, %109 : vector<8x256xf32>
    %111 = arith.addf %106, %110 : vector<8x256xf32>
    %c0_85 = arith.constant 0 : index
    %c0_86 = arith.constant 0 : index
    %112 = vector.load %arg3[%c0_85, %c0_86] : memref<8x1xf32, #tpu.memory_space<vmem>>, vector<8x1xf32>
    %113 = vector.broadcast %112 : vector<8x1xf32> to vector<8x256xf32>
    %114 = arith.addf %111, %113 : vector<8x256xf32>
    %cst_87 = arith.constant 0.000000e+00 : f32
    %115 = vector.broadcast %cst_87 : f32 to vector<8x256xf32>
    %116 = arith.maximumf %114, %115 : vector<8x256xf32>
    %c0_88 = arith.constant 0 : index
    %c0_89 = arith.constant 0 : index
    %c0_90 = arith.constant 0 : index
    %c128 = arith.constant 128 : index
    %117 = vector.load %arg7[%c0_88, %c0_89, %c0_90, %c128] : memref<2x2x8x512xf32, #tpu.memory_space<vmem>>, vector<1x1x8x256xf32>
    %118 = vector.shape_cast %117 : vector<1x1x8x256xf32> to vector<8x256xf32>
    %119 = vector.shape_cast %116 : vector<8x256xf32> to vector<1x1x8x256xf32>
    tpu.vector_store %arg7[%c0_88, %c0_89, %c0_90, %c128], %119 {strides = array<i32>} : memref<2x2x8x512xf32, #tpu.memory_space<vmem>>, vector<1x1x8x256xf32>,
    %cst_91 = arith.constant 0.000000e+00 : f32
    %120 = vector.broadcast %cst_91 : f32 to vector<8x256xf32>
    %c0_92 = arith.constant 0 : index
    %c12 = arith.constant 12 : index
    %121 = vector.load %arg2[%c0_92, %c12] : memref<8x36xf32, #tpu.memory_space<vmem>>, vector<8x1xf32>
    %122 = vector.broadcast %121 : vector<8x1xf32> to vector<8x256xf32>
    %123 = vector.broadcast %52 : vector<1x256xf32> to vector<8x256xf32>
    %124 = arith.mulf %122, %123 : vector<8x256xf32>
    %125 = arith.addf %120, %124 : vector<8x256xf32>
    %c0_93 = arith.constant 0 : index
    %c13 = arith.constant 13 : index
    %126 = vector.load %arg2[%c0_93, %c13] : memref<8x36xf32, #tpu.memory_space<vmem>>, vector<8x1xf32>
    %127 = vector.broadcast %126 : vector<8x1xf32> to vector<8x256xf32>
    %128 = vector.broadcast %54 : vector<1x256xf32> to vector<8x256xf32>
    %129 = arith.mulf %127, %128 : vector<8x256xf32>
    %130 = arith.addf %125, %129 : vector<8x256xf32>
    %c0_94 = arith.constant 0 : index
    %c14 = arith.constant 14 : index
    %131 = vector.load %arg2[%c0_94, %c14] : memref<8x36xf32, #tpu.memory_space<vmem>>, vector<8x1xf32>
    %132 = vector.broadcast %131 : vector<8x1xf32> to vector<8x256xf32>
    %133 = vector.broadcast %56 : vector<1x256xf32> to vector<8x256xf32>
    %134 = arith.mulf %132, %133 : vector<8x256xf32>
    %135 = arith.addf %130, %134 : vector<8x256xf32>
    %c0_95 = arith.constant 0 : index
    %c15 = arith.constant 15 : index
    %136 = vector.load %arg2[%c0_95, %c15] : memref<8x36xf32, #tpu.memory_space<vmem>>, vector<8x1xf32>
    %137 = vector.broadcast %136 : vector<8x1xf32> to vector<8x256xf32>
    %138 = vector.broadcast %58 : vector<1x256xf32> to vector<8x256xf32>
    %139 = arith.mulf %137, %138 : vector<8x256xf32>
    %140 = arith.addf %135, %139 : vector<8x256xf32>
    %c0_96 = arith.constant 0 : index
    %c20 = arith.constant 20 : index
    %141 = vector.load %arg2[%c0_96, %c20] : memref<8x36xf32, #tpu.memory_space<vmem>>, vector<8x1xf32>
    %142 = vector.broadcast %141 : vector<8x1xf32> to vector<8x256xf32>
    %143 = vector.broadcast %61 : vector<1x256xf32> to vector<8x256xf32>
    %144 = arith.mulf %142, %143 : vector<8x256xf32>
    %145 = arith.addf %140, %144 : vector<8x256xf32>
    %c0_97 = arith.constant 0 : index
    %c21 = arith.constant 21 : index
    %146 = vector.load %arg2[%c0_97, %c21] : memref<8x36xf32, #tpu.memory_space<vmem>>, vector<8x1xf32>
    %147 = vector.broadcast %146 : vector<8x1xf32> to vector<8x256xf32>
    %148 = vector.broadcast %64 : vector<1x256xf32> to vector<8x256xf32>
    %149 = arith.mulf %147, %148 : vector<8x256xf32>
    %150 = arith.addf %145, %149 : vector<8x256xf32>
    %c0_98 = arith.constant 0 : index
    %c22 = arith.constant 22 : index
    %151 = vector.load %arg2[%c0_98, %c22] : memref<8x36xf32, #tpu.memory_space<vmem>>, vector<8x1xf32>
    %152 = vector.broadcast %151 : vector<8x1xf32> to vector<8x256xf32>
    %153 = vector.broadcast %67 : vector<1x256xf32> to vector<8x256xf32>
    %154 = arith.mulf %152, %153 : vector<8x256xf32>
    %155 = arith.addf %150, %154 : vector<8x256xf32>
    %c0_99 = arith.constant 0 : index
    %c23 = arith.constant 23 : index
    %156 = vector.load %arg2[%c0_99, %c23] : memref<8x36xf32, #tpu.memory_space<vmem>>, vector<8x1xf32>
    %157 = vector.broadcast %156 : vector<8x1xf32> to vector<8x256xf32>
    %158 = vector.broadcast %70 : vector<1x256xf32> to vector<8x256xf32>
    %159 = arith.mulf %157, %158 : vector<8x256xf32>
    %160 = arith.addf %155, %159 : vector<8x256xf32>
    %c0_100 = arith.constant 0 : index
    %c0_101 = arith.constant 0 : index
    %161 = vector.load %arg3[%c0_100, %c0_101] : memref<8x1xf32, #tpu.memory_space<vmem>>, vector<8x1xf32>
    %162 = vector.broadcast %161 : vector<8x1xf32> to vector<8x256xf32>
    %163 = arith.addf %160, %162 : vector<8x256xf32>
    %cst_102 = arith.constant 0.000000e+00 : f32
    %164 = vector.broadcast %cst_102 : f32 to vector<8x256xf32>
    %165 = arith.maximumf %163, %164 : vector<8x256xf32>
    %c0_103 = arith.constant 0 : index
    %c1_104 = arith.constant 1 : index
    %c0_105 = arith.constant 0 : index
    %c128_106 = arith.constant 128 : index
    %166 = vector.load %arg7[%c0_103, %c1_104, %c0_105, %c128_106] : memref<2x2x8x512xf32, #tpu.memory_space<vmem>>, vector<1x1x8x256xf32>
    %167 = vector.shape_cast %166 : vector<1x1x8x256xf32> to vector<8x256xf32>
    %168 = vector.shape_cast %165 : vector<8x256xf32> to vector<1x1x8x256xf32>
    tpu.vector_store %arg7[%c0_103, %c1_104, %c0_105, %c128_106], %168 {strides = array<i32>} : memref<2x2x8x512xf32, #tpu.memory_space<vmem>>, vector<1x1x8x256xf32>,
    %cst_107 = arith.constant 0.000000e+00 : f32
    %169 = vector.broadcast %cst_107 : f32 to vector<8x256xf32>
    %c0_108 = arith.constant 0 : index
    %c4 = arith.constant 4 : index
    %170 = vector.load %arg2[%c0_108, %c4] : memref<8x36xf32, #tpu.memory_space<vmem>>, vector<8x1xf32>
    %171 = vector.broadcast %170 : vector<8x1xf32> to vector<8x256xf32>
    %172 = vector.broadcast %52 : vector<1x256xf32> to vector<8x256xf32>
    %173 = arith.mulf %171, %172 : vector<8x256xf32>
    %174 = arith.addf %169, %173 : vector<8x256xf32>
    %c0_109 = arith.constant 0 : index
    %c5 = arith.constant 5 : index
    %175 = vector.load %arg2[%c0_109, %c5] : memref<8x36xf32, #tpu.memory_space<vmem>>, vector<8x1xf32>
    %176 = vector.broadcast %175 : vector<8x1xf32> to vector<8x256xf32>
    %177 = vector.broadcast %54 : vector<1x256xf32> to vector<8x256xf32>
    %178 = arith.mulf %176, %177 : vector<8x256xf32>
    %179 = arith.addf %174, %178 : vector<8x256xf32>
    %c0_110 = arith.constant 0 : index
    %c6 = arith.constant 6 : index
    %180 = vector.load %arg2[%c0_110, %c6] : memref<8x36xf32, #tpu.memory_space<vmem>>, vector<8x1xf32>
    %181 = vector.broadcast %180 : vector<8x1xf32> to vector<8x256xf32>
    %182 = vector.broadcast %56 : vector<1x256xf32> to vector<8x256xf32>
    %183 = arith.mulf %181, %182 : vector<8x256xf32>
    %184 = arith.addf %179, %183 : vector<8x256xf32>
    %c0_111 = arith.constant 0 : index
    %c7 = arith.constant 7 : index
    %185 = vector.load %arg2[%c0_111, %c7] : memref<8x36xf32, #tpu.memory_space<vmem>>, vector<8x1xf32>
    %186 = vector.broadcast %185 : vector<8x1xf32> to vector<8x256xf32>
    %187 = vector.broadcast %58 : vector<1x256xf32> to vector<8x256xf32>
    %188 = arith.mulf %186, %187 : vector<8x256xf32>
    %189 = arith.addf %184, %188 : vector<8x256xf32>
    %c0_112 = arith.constant 0 : index
    %c28 = arith.constant 28 : index
    %190 = vector.load %arg2[%c0_112, %c28] : memref<8x36xf32, #tpu.memory_space<vmem>>, vector<8x1xf32>
    %191 = vector.broadcast %190 : vector<8x1xf32> to vector<8x256xf32>
    %192 = vector.broadcast %72 : vector<1x256xf32> to vector<8x256xf32>
    %193 = arith.mulf %191, %192 : vector<8x256xf32>
    %194 = arith.addf %189, %193 : vector<8x256xf32>
    %c0_113 = arith.constant 0 : index
    %c29 = arith.constant 29 : index
    %195 = vector.load %arg2[%c0_113, %c29] : memref<8x36xf32, #tpu.memory_space<vmem>>, vector<8x1xf32>
    %196 = vector.broadcast %195 : vector<8x1xf32> to vector<8x256xf32>
    %197 = vector.broadcast %74 : vector<1x256xf32> to vector<8x256xf32>
    %198 = arith.mulf %196, %197 : vector<8x256xf32>
    %199 = arith.addf %194, %198 : vector<8x256xf32>
    %c0_114 = arith.constant 0 : index
    %c30 = arith.constant 30 : index
    %200 = vector.load %arg2[%c0_114, %c30] : memref<8x36xf32, #tpu.memory_space<vmem>>, vector<8x1xf32>
    %201 = vector.broadcast %200 : vector<8x1xf32> to vector<8x256xf32>
    %202 = vector.broadcast %76 : vector<1x256xf32> to vector<8x256xf32>
    %203 = arith.mulf %201, %202 : vector<8x256xf32>
    %204 = arith.addf %199, %203 : vector<8x256xf32>
    %c0_115 = arith.constant 0 : index
    %c31 = arith.constant 31 : index
    %205 = vector.load %arg2[%c0_115, %c31] : memref<8x36xf32, #tpu.memory_space<vmem>>, vector<8x1xf32>
    %206 = vector.broadcast %205 : vector<8x1xf32> to vector<8x256xf32>
    %207 = vector.broadcast %78 : vector<1x256xf32> to vector<8x256xf32>
    %208 = arith.mulf %206, %207 : vector<8x256xf32>
    %209 = arith.addf %204, %208 : vector<8x256xf32>
    %c0_116 = arith.constant 0 : index
    %c0_117 = arith.constant 0 : index
    %210 = vector.load %arg3[%c0_116, %c0_117] : memref<8x1xf32, #tpu.memory_space<vmem>>, vector<8x1xf32>
    %211 = vector.broadcast %210 : vector<8x1xf32> to vector<8x256xf32>
    %212 = arith.addf %209, %211 : vector<8x256xf32>
    %cst_118 = arith.constant 0.000000e+00 : f32
    %213 = vector.broadcast %cst_118 : f32 to vector<8x256xf32>
    %214 = arith.maximumf %212, %213 : vector<8x256xf32>
    %c1_119 = arith.constant 1 : index
    %c0_120 = arith.constant 0 : index
    %c0_121 = arith.constant 0 : index
    %c128_122 = arith.constant 128 : index
    %215 = vector.load %arg7[%c1_119, %c0_120, %c0_121, %c128_122] : memref<2x2x8x512xf32, #tpu.memory_space<vmem>>, vector<1x1x8x256xf32>
    %216 = vector.shape_cast %215 : vector<1x1x8x256xf32> to vector<8x256xf32>
    %217 = vector.shape_cast %214 : vector<8x256xf32> to vector<1x1x8x256xf32>
    tpu.vector_store %arg7[%c1_119, %c0_120, %c0_121, %c128_122], %217 {strides = array<i32>} : memref<2x2x8x512xf32, #tpu.memory_space<vmem>>, vector<1x1x8x256xf32>,
    %cst_123 = arith.constant 0.000000e+00 : f32
    %218 = vector.broadcast %cst_123 : f32 to vector<8x256xf32>
    %c0_124 = arith.constant 0 : index
    %c0_125 = arith.constant 0 : index
    %219 = vector.load %arg2[%c0_124, %c0_125] : memref<8x36xf32, #tpu.memory_space<vmem>>, vector<8x1xf32>
    %220 = vector.broadcast %219 : vector<8x1xf32> to vector<8x256xf32>
    %221 = vector.broadcast %52 : vector<1x256xf32> to vector<8x256xf32>
    %222 = arith.mulf %220, %221 : vector<8x256xf32>
    %223 = arith.addf %218, %222 : vector<8x256xf32>
    %c0_126 = arith.constant 0 : index
    %c1_127 = arith.constant 1 : index
    %224 = vector.load %arg2[%c0_126, %c1_127] : memref<8x36xf32, #tpu.memory_space<vmem>>, vector<8x1xf32>
    %225 = vector.broadcast %224 : vector<8x1xf32> to vector<8x256xf32>
    %226 = vector.broadcast %54 : vector<1x256xf32> to vector<8x256xf32>
    %227 = arith.mulf %225, %226 : vector<8x256xf32>
    %228 = arith.addf %223, %227 : vector<8x256xf32>
    %c0_128 = arith.constant 0 : index
    %c2_129 = arith.constant 2 : index
    %229 = vector.load %arg2[%c0_128, %c2_129] : memref<8x36xf32, #tpu.memory_space<vmem>>, vector<8x1xf32>
    %230 = vector.broadcast %229 : vector<8x1xf32> to vector<8x256xf32>
    %231 = vector.broadcast %56 : vector<1x256xf32> to vector<8x256xf32>
    %232 = arith.mulf %230, %231 : vector<8x256xf32>
    %233 = arith.addf %228, %232 : vector<8x256xf32>
    %c0_130 = arith.constant 0 : index
    %c3_131 = arith.constant 3 : index
    %234 = vector.load %arg2[%c0_130, %c3_131] : memref<8x36xf32, #tpu.memory_space<vmem>>, vector<8x1xf32>
    %235 = vector.broadcast %234 : vector<8x1xf32> to vector<8x256xf32>
    %236 = vector.broadcast %58 : vector<1x256xf32> to vector<8x256xf32>
    %237 = arith.mulf %235, %236 : vector<8x256xf32>
    %238 = arith.addf %233, %237 : vector<8x256xf32>
    %c0_132 = arith.constant 0 : index
    %c8 = arith.constant 8 : index
    %239 = vector.load %arg2[%c0_132, %c8] : memref<8x36xf32, #tpu.memory_space<vmem>>, vector<8x1xf32>
    %240 = vector.broadcast %239 : vector<8x1xf32> to vector<8x256xf32>
    %241 = vector.broadcast %61 : vector<1x256xf32> to vector<8x256xf32>
    %242 = arith.mulf %240, %241 : vector<8x256xf32>
    %243 = arith.addf %238, %242 : vector<8x256xf32>
    %c0_133 = arith.constant 0 : index
    %c9 = arith.constant 9 : index
    %244 = vector.load %arg2[%c0_133, %c9] : memref<8x36xf32, #tpu.memory_space<vmem>>, vector<8x1xf32>
    %245 = vector.broadcast %244 : vector<8x1xf32> to vector<8x256xf32>
    %246 = vector.broadcast %64 : vector<1x256xf32> to vector<8x256xf32>
    %247 = arith.mulf %245, %246 : vector<8x256xf32>
    %248 = arith.addf %243, %247 : vector<8x256xf32>
    %c0_134 = arith.constant 0 : index
    %c10 = arith.constant 10 : index
    %249 = vector.load %arg2[%c0_134, %c10] : memref<8x36xf32, #tpu.memory_space<vmem>>, vector<8x1xf32>
    %250 = vector.broadcast %249 : vector<8x1xf32> to vector<8x256xf32>
    %251 = vector.broadcast %67 : vector<1x256xf32> to vector<8x256xf32>
    %252 = arith.mulf %250, %251 : vector<8x256xf32>
    %253 = arith.addf %248, %252 : vector<8x256xf32>
    %c0_135 = arith.constant 0 : index
    %c11 = arith.constant 11 : index
    %254 = vector.load %arg2[%c0_135, %c11] : memref<8x36xf32, #tpu.memory_space<vmem>>, vector<8x1xf32>
    %255 = vector.broadcast %254 : vector<8x1xf32> to vector<8x256xf32>
    %256 = vector.broadcast %70 : vector<1x256xf32> to vector<8x256xf32>
    %257 = arith.mulf %255, %256 : vector<8x256xf32>
    %258 = arith.addf %253, %257 : vector<8x256xf32>
    %c0_136 = arith.constant 0 : index
    %c24 = arith.constant 24 : index
    %259 = vector.load %arg2[%c0_136, %c24] : memref<8x36xf32, #tpu.memory_space<vmem>>, vector<8x1xf32>
    %260 = vector.broadcast %259 : vector<8x1xf32> to vector<8x256xf32>
    %261 = vector.broadcast %72 : vector<1x256xf32> to vector<8x256xf32>
    %262 = arith.mulf %260, %261 : vector<8x256xf32>
    %263 = arith.addf %258, %262 : vector<8x256xf32>
    %c0_137 = arith.constant 0 : index
    %c25 = arith.constant 25 : index
    %264 = vector.load %arg2[%c0_137, %c25] : memref<8x36xf32, #tpu.memory_space<vmem>>, vector<8x1xf32>
    %265 = vector.broadcast %264 : vector<8x1xf32> to vector<8x256xf32>
    %266 = vector.broadcast %74 : vector<1x256xf32> to vector<8x256xf32>
    %267 = arith.mulf %265, %266 : vector<8x256xf32>
    %268 = arith.addf %263, %267 : vector<8x256xf32>
    %c0_138 = arith.constant 0 : index
    %c26 = arith.constant 26 : index
    %269 = vector.load %arg2[%c0_138, %c26] : memref<8x36xf32, #tpu.memory_space<vmem>>, vector<8x1xf32>
    %270 = vector.broadcast %269 : vector<8x1xf32> to vector<8x256xf32>
    %271 = vector.broadcast %76 : vector<1x256xf32> to vector<8x256xf32>
    %272 = arith.mulf %270, %271 : vector<8x256xf32>
    %273 = arith.addf %268, %272 : vector<8x256xf32>
    %c0_139 = arith.constant 0 : index
    %c27 = arith.constant 27 : index
    %274 = vector.load %arg2[%c0_139, %c27] : memref<8x36xf32, #tpu.memory_space<vmem>>, vector<8x1xf32>
    %275 = vector.broadcast %274 : vector<8x1xf32> to vector<8x256xf32>
    %276 = vector.broadcast %78 : vector<1x256xf32> to vector<8x256xf32>
    %277 = arith.mulf %275, %276 : vector<8x256xf32>
    %278 = arith.addf %273, %277 : vector<8x256xf32>
    %c0_140 = arith.constant 0 : index
    %c32 = arith.constant 32 : index
    %279 = vector.load %arg2[%c0_140, %c32] : memref<8x36xf32, #tpu.memory_space<vmem>>, vector<8x1xf32>
    %280 = vector.broadcast %279 : vector<8x1xf32> to vector<8x256xf32>
    %281 = vector.broadcast %81 : vector<1x256xf32> to vector<8x256xf32>
    %282 = arith.mulf %280, %281 : vector<8x256xf32>
    %283 = arith.addf %278, %282 : vector<8x256xf32>
    %c0_141 = arith.constant 0 : index
    %c33 = arith.constant 33 : index
    %284 = vector.load %arg2[%c0_141, %c33] : memref<8x36xf32, #tpu.memory_space<vmem>>, vector<8x1xf32>
    %285 = vector.broadcast %284 : vector<8x1xf32> to vector<8x256xf32>
    %286 = vector.broadcast %84 : vector<1x256xf32> to vector<8x256xf32>
    %287 = arith.mulf %285, %286 : vector<8x256xf32>
    %288 = arith.addf %283, %287 : vector<8x256xf32>
    %c0_142 = arith.constant 0 : index
    %c34 = arith.constant 34 : index
    %289 = vector.load %arg2[%c0_142, %c34] : memref<8x36xf32, #tpu.memory_space<vmem>>, vector<8x1xf32>
    %290 = vector.broadcast %289 : vector<8x1xf32> to vector<8x256xf32>
    %291 = vector.broadcast %87 : vector<1x256xf32> to vector<8x256xf32>
    %292 = arith.mulf %290, %291 : vector<8x256xf32>
    %293 = arith.addf %288, %292 : vector<8x256xf32>
    %c0_143 = arith.constant 0 : index
    %c35 = arith.constant 35 : index
    %294 = vector.load %arg2[%c0_143, %c35] : memref<8x36xf32, #tpu.memory_space<vmem>>, vector<8x1xf32>
    %295 = vector.broadcast %294 : vector<8x1xf32> to vector<8x256xf32>
    %296 = vector.broadcast %90 : vector<1x256xf32> to vector<8x256xf32>
    %297 = arith.mulf %295, %296 : vector<8x256xf32>
    %298 = arith.addf %293, %297 : vector<8x256xf32>
    %c0_144 = arith.constant 0 : index
    %c0_145 = arith.constant 0 : index
    %299 = vector.load %arg3[%c0_144, %c0_145] : memref<8x1xf32, #tpu.memory_space<vmem>>, vector<8x1xf32>
    %300 = vector.broadcast %299 : vector<8x1xf32> to vector<8x256xf32>
    %301 = arith.addf %298, %300 : vector<8x256xf32>
    %cst_146 = arith.constant 0.000000e+00 : f32
    %302 = vector.broadcast %cst_146 : f32 to vector<8x256xf32>
    %303 = arith.maximumf %301, %302 : vector<8x256xf32>
    %c1_147 = arith.constant 1 : index
    %c1_148 = arith.constant 1 : index
    %c0_149 = arith.constant 0 : index
    %c128_150 = arith.constant 128 : index
    %304 = vector.load %arg7[%c1_147, %c1_148, %c0_149, %c128_150] : memref<2x2x8x512xf32, #tpu.memory_space<vmem>>, vector<1x1x8x256xf32>
    %305 = vector.shape_cast %304 : vector<1x1x8x256xf32> to vector<8x256xf32>
    %306 = vector.shape_cast %303 : vector<8x256xf32> to vector<1x1x8x256xf32>
    tpu.vector_store %arg7[%c1_147, %c1_148, %c0_149, %c128_150], %306 {strides = array<i32>} : memref<2x2x8x512xf32, #tpu.memory_space<vmem>>, vector<1x1x8x256xf32>,
    %cst_151 = arith.constant 0.000000e+00 : f32
    %307 = vector.broadcast %cst_151 : f32 to vector<8x256xf32>
    %c1_152 = arith.constant 1 : index
    %c1_153 = arith.constant 1 : index
    %c0_154 = arith.constant 0 : index
    %c111 = arith.constant 111 : index
    %308 = vector.load %arg7[%c1_152, %c1_153, %c0_154, %c111] : memref<2x2x8x512xf32, #tpu.memory_space<vmem>>, vector<1x1x1x256xf32>
    %309 = vector.shape_cast %308 : vector<1x1x1x256xf32> to vector<1x256xf32>
    %310 = arith.mulf %309, %20 : vector<1x256xf32>
    %c0_155 = arith.constant 0 : index
    %c0_156 = arith.constant 0 : index
    %311 = vector.load %arg4[%c0_155, %c0_156] : memref<8x128xf32, #tpu.memory_space<vmem>>, vector<8x1xf32>
    %312 = vector.broadcast %311 : vector<8x1xf32> to vector<8x256xf32>
    %313 = vector.broadcast %310 : vector<1x256xf32> to vector<8x256xf32>
    %314 = arith.mulf %312, %313 : vector<8x256xf32>
    %315 = arith.addf %307, %314 : vector<8x256xf32>
    %c1_157 = arith.constant 1 : index
    %c1_158 = arith.constant 1 : index
    %c1_159 = arith.constant 1 : index
    %c111_160 = arith.constant 111 : index
    %316 = vector.load %arg7[%c1_157, %c1_158, %c1_159, %c111_160] : memref<2x2x8x512xf32, #tpu.memory_space<vmem>>, vector<1x1x1x256xf32>
    %317 = vector.shape_cast %316 : vector<1x1x1x256xf32> to vector<1x256xf32>
    %318 = arith.mulf %317, %20 : vector<1x256xf32>
    %c0_161 = arith.constant 0 : index
    %c1_162 = arith.constant 1 : index
    %319 = vector.load %arg4[%c0_161, %c1_162] : memref<8x128xf32, #tpu.memory_space<vmem>>, vector<8x1xf32>
    %320 = vector.broadcast %319 : vector<8x1xf32> to vector<8x256xf32>
    %321 = vector.broadcast %318 : vector<1x256xf32> to vector<8x256xf32>
    %322 = arith.mulf %320, %321 : vector<8x256xf32>
    %323 = arith.addf %315, %322 : vector<8x256xf32>
    %c1_163 = arith.constant 1 : index
    %c1_164 = arith.constant 1 : index
    %c2_165 = arith.constant 2 : index
    %c111_166 = arith.constant 111 : index
    %324 = vector.load %arg7[%c1_163, %c1_164, %c2_165, %c111_166] : memref<2x2x8x512xf32, #tpu.memory_space<vmem>>, vector<1x1x1x256xf32>
    %325 = vector.shape_cast %324 : vector<1x1x1x256xf32> to vector<1x256xf32>
    %326 = arith.mulf %325, %20 : vector<1x256xf32>
    %c0_167 = arith.constant 0 : index
    %c2_168 = arith.constant 2 : index
    %327 = vector.load %arg4[%c0_167, %c2_168] : memref<8x128xf32, #tpu.memory_space<vmem>>, vector<8x1xf32>
    %328 = vector.broadcast %327 : vector<8x1xf32> to vector<8x256xf32>
    %329 = vector.broadcast %326 : vector<1x256xf32> to vector<8x256xf32>
    %330 = arith.mulf %328, %329 : vector<8x256xf32>
    %331 = arith.addf %323, %330 : vector<8x256xf32>
    %c1_169 = arith.constant 1 : index
    %c1_170 = arith.constant 1 : index
    %c3_171 = arith.constant 3 : index
    %c111_172 = arith.constant 111 : index
    %332 = vector.load %arg7[%c1_169, %c1_170, %c3_171, %c111_172] : memref<2x2x8x512xf32, #tpu.memory_space<vmem>>, vector<1x1x1x256xf32>
    %333 = vector.shape_cast %332 : vector<1x1x1x256xf32> to vector<1x256xf32>
    %334 = arith.mulf %333, %20 : vector<1x256xf32>
    %c0_173 = arith.constant 0 : index
    %c3_174 = arith.constant 3 : index
    %335 = vector.load %arg4[%c0_173, %c3_174] : memref<8x128xf32, #tpu.memory_space<vmem>>, vector<8x1xf32>
    %336 = vector.broadcast %335 : vector<8x1xf32> to vector<8x256xf32>
    %337 = vector.broadcast %334 : vector<1x256xf32> to vector<8x256xf32>
    %338 = arith.mulf %336, %337 : vector<8x256xf32>
    %339 = arith.addf %331, %338 : vector<8x256xf32>
    %c1_175 = arith.constant 1 : index
    %c1_176 = arith.constant 1 : index
    %c4_177 = arith.constant 4 : index
    %c111_178 = arith.constant 111 : index
    %340 = vector.load %arg7[%c1_175, %c1_176, %c4_177, %c111_178] : memref<2x2x8x512xf32, #tpu.memory_space<vmem>>, vector<1x1x1x256xf32>
    %341 = vector.shape_cast %340 : vector<1x1x1x256xf32> to vector<1x256xf32>
    %342 = arith.mulf %341, %20 : vector<1x256xf32>
    %c0_179 = arith.constant 0 : index
    %c4_180 = arith.constant 4 : index
    %343 = vector.load %arg4[%c0_179, %c4_180] : memref<8x128xf32, #tpu.memory_space<vmem>>, vector<8x1xf32>
    %344 = vector.broadcast %343 : vector<8x1xf32> to vector<8x256xf32>
    %345 = vector.broadcast %342 : vector<1x256xf32> to vector<8x256xf32>
    %346 = arith.mulf %344, %345 : vector<8x256xf32>
    %347 = arith.addf %339, %346 : vector<8x256xf32>
    %c1_181 = arith.constant 1 : index
    %c1_182 = arith.constant 1 : index
    %c5_183 = arith.constant 5 : index
    %c111_184 = arith.constant 111 : index
    %348 = vector.load %arg7[%c1_181, %c1_182, %c5_183, %c111_184] : memref<2x2x8x512xf32, #tpu.memory_space<vmem>>, vector<1x1x1x256xf32>
    %349 = vector.shape_cast %348 : vector<1x1x1x256xf32> to vector<1x256xf32>
    %350 = arith.mulf %349, %20 : vector<1x256xf32>
    %c0_185 = arith.constant 0 : index
    %c5_186 = arith.constant 5 : index
    %351 = vector.load %arg4[%c0_185, %c5_186] : memref<8x128xf32, #tpu.memory_space<vmem>>, vector<8x1xf32>
    %352 = vector.broadcast %351 : vector<8x1xf32> to vector<8x256xf32>
    %353 = vector.broadcast %350 : vector<1x256xf32> to vector<8x256xf32>
    %354 = arith.mulf %352, %353 : vector<8x256xf32>
    %355 = arith.addf %347, %354 : vector<8x256xf32>
    %c1_187 = arith.constant 1 : index
    %c1_188 = arith.constant 1 : index
    %c6_189 = arith.constant 6 : index
    %c111_190 = arith.constant 111 : index
    %356 = vector.load %arg7[%c1_187, %c1_188, %c6_189, %c111_190] : memref<2x2x8x512xf32, #tpu.memory_space<vmem>>, vector<1x1x1x256xf32>
    %357 = vector.shape_cast %356 : vector<1x1x1x256xf32> to vector<1x256xf32>
    %358 = arith.mulf %357, %20 : vector<1x256xf32>
    %c0_191 = arith.constant 0 : index
    %c6_192 = arith.constant 6 : index
    %359 = vector.load %arg4[%c0_191, %c6_192] : memref<8x128xf32, #tpu.memory_space<vmem>>, vector<8x1xf32>
    %360 = vector.broadcast %359 : vector<8x1xf32> to vector<8x256xf32>
    %361 = vector.broadcast %358 : vector<1x256xf32> to vector<8x256xf32>
    %362 = arith.mulf %360, %361 : vector<8x256xf32>
    %363 = arith.addf %355, %362 : vector<8x256xf32>
    %c1_193 = arith.constant 1 : index
    %c1_194 = arith.constant 1 : index
    %c7_195 = arith.constant 7 : index
    %c111_196 = arith.constant 111 : index
    %364 = vector.load %arg7[%c1_193, %c1_194, %c7_195, %c111_196] : memref<2x2x8x512xf32, #tpu.memory_space<vmem>>, vector<1x1x1x256xf32>
    %365 = vector.shape_cast %364 : vector<1x1x1x256xf32> to vector<1x256xf32>
    %366 = arith.mulf %365, %20 : vector<1x256xf32>
    %c0_197 = arith.constant 0 : index
    %c7_198 = arith.constant 7 : index
    %367 = vector.load %arg4[%c0_197, %c7_198] : memref<8x128xf32, #tpu.memory_space<vmem>>, vector<8x1xf32>
    %368 = vector.broadcast %367 : vector<8x1xf32> to vector<8x256xf32>
    %369 = vector.broadcast %366 : vector<1x256xf32> to vector<8x256xf32>
    %370 = arith.mulf %368, %369 : vector<8x256xf32>
    %371 = arith.addf %363, %370 : vector<8x256xf32>
    %c1_199 = arith.constant 1 : index
    %c0_200 = arith.constant 0 : index
    %c0_201 = arith.constant 0 : index
    %c112 = arith.constant 112 : index
    %372 = vector.load %arg7[%c1_199, %c0_200, %c0_201, %c112] : memref<2x2x8x512xf32, #tpu.memory_space<vmem>>, vector<1x1x1x256xf32>
    %373 = vector.shape_cast %372 : vector<1x1x1x256xf32> to vector<1x256xf32>
    %c0_202 = arith.constant 0 : index
    %c8_203 = arith.constant 8 : index
    %374 = vector.load %arg4[%c0_202, %c8_203] : memref<8x128xf32, #tpu.memory_space<vmem>>, vector<8x1xf32>
    %375 = vector.broadcast %374 : vector<8x1xf32> to vector<8x256xf32>
    %376 = vector.broadcast %373 : vector<1x256xf32> to vector<8x256xf32>
    %377 = arith.mulf %375, %376 : vector<8x256xf32>
    %378 = arith.addf %371, %377 : vector<8x256xf32>
    %c1_204 = arith.constant 1 : index
    %c0_205 = arith.constant 0 : index
    %c1_206 = arith.constant 1 : index
    %c112_207 = arith.constant 112 : index
    %379 = vector.load %arg7[%c1_204, %c0_205, %c1_206, %c112_207] : memref<2x2x8x512xf32, #tpu.memory_space<vmem>>, vector<1x1x1x256xf32>
    %380 = vector.shape_cast %379 : vector<1x1x1x256xf32> to vector<1x256xf32>
    %c0_208 = arith.constant 0 : index
    %c9_209 = arith.constant 9 : index
    %381 = vector.load %arg4[%c0_208, %c9_209] : memref<8x128xf32, #tpu.memory_space<vmem>>, vector<8x1xf32>
    %382 = vector.broadcast %381 : vector<8x1xf32> to vector<8x256xf32>
    %383 = vector.broadcast %380 : vector<1x256xf32> to vector<8x256xf32>
    %384 = arith.mulf %382, %383 : vector<8x256xf32>
    %385 = arith.addf %378, %384 : vector<8x256xf32>
    %c1_210 = arith.constant 1 : index
    %c0_211 = arith.constant 0 : index
    %c2_212 = arith.constant 2 : index
    %c112_213 = arith.constant 112 : index
    %386 = vector.load %arg7[%c1_210, %c0_211, %c2_212, %c112_213] : memref<2x2x8x512xf32, #tpu.memory_space<vmem>>, vector<1x1x1x256xf32>
    %387 = vector.shape_cast %386 : vector<1x1x1x256xf32> to vector<1x256xf32>
    %c0_214 = arith.constant 0 : index
    %c10_215 = arith.constant 10 : index
    %388 = vector.load %arg4[%c0_214, %c10_215] : memref<8x128xf32, #tpu.memory_space<vmem>>, vector<8x1xf32>
    %389 = vector.broadcast %388 : vector<8x1xf32> to vector<8x256xf32>
    %390 = vector.broadcast %387 : vector<1x256xf32> to vector<8x256xf32>
    %391 = arith.mulf %389, %390 : vector<8x256xf32>
    %392 = arith.addf %385, %391 : vector<8x256xf32>
    %c1_216 = arith.constant 1 : index
    %c0_217 = arith.constant 0 : index
    %c3_218 = arith.constant 3 : index
    %c112_219 = arith.constant 112 : index
    %393 = vector.load %arg7[%c1_216, %c0_217, %c3_218, %c112_219] : memref<2x2x8x512xf32, #tpu.memory_space<vmem>>, vector<1x1x1x256xf32>
    %394 = vector.shape_cast %393 : vector<1x1x1x256xf32> to vector<1x256xf32>
    %c0_220 = arith.constant 0 : index
    %c11_221 = arith.constant 11 : index
    %395 = vector.load %arg4[%c0_220, %c11_221] : memref<8x128xf32, #tpu.memory_space<vmem>>, vector<8x1xf32>
    %396 = vector.broadcast %395 : vector<8x1xf32> to vector<8x256xf32>
    %397 = vector.broadcast %394 : vector<1x256xf32> to vector<8x256xf32>
    %398 = arith.mulf %396, %397 : vector<8x256xf32>
    %399 = arith.addf %392, %398 : vector<8x256xf32>
    %c1_222 = arith.constant 1 : index
    %c0_223 = arith.constant 0 : index
    %c4_224 = arith.constant 4 : index
    %c112_225 = arith.constant 112 : index
    %400 = vector.load %arg7[%c1_222, %c0_223, %c4_224, %c112_225] : memref<2x2x8x512xf32, #tpu.memory_space<vmem>>, vector<1x1x1x256xf32>
    %401 = vector.shape_cast %400 : vector<1x1x1x256xf32> to vector<1x256xf32>
    %c0_226 = arith.constant 0 : index
    %c12_227 = arith.constant 12 : index
    %402 = vector.load %arg4[%c0_226, %c12_227] : memref<8x128xf32, #tpu.memory_space<vmem>>, vector<8x1xf32>
    %403 = vector.broadcast %402 : vector<8x1xf32> to vector<8x256xf32>
    %404 = vector.broadcast %401 : vector<1x256xf32> to vector<8x256xf32>
    %405 = arith.mulf %403, %404 : vector<8x256xf32>
    %406 = arith.addf %399, %405 : vector<8x256xf32>
    %c1_228 = arith.constant 1 : index
    %c0_229 = arith.constant 0 : index
    %c5_230 = arith.constant 5 : index
    %c112_231 = arith.constant 112 : index
    %407 = vector.load %arg7[%c1_228, %c0_229, %c5_230, %c112_231] : memref<2x2x8x512xf32, #tpu.memory_space<vmem>>, vector<1x1x1x256xf32>
    %408 = vector.shape_cast %407 : vector<1x1x1x256xf32> to vector<1x256xf32>
    %c0_232 = arith.constant 0 : index
    %c13_233 = arith.constant 13 : index
    %409 = vector.load %arg4[%c0_232, %c13_233] : memref<8x128xf32, #tpu.memory_space<vmem>>, vector<8x1xf32>
    %410 = vector.broadcast %409 : vector<8x1xf32> to vector<8x256xf32>
    %411 = vector.broadcast %408 : vector<1x256xf32> to vector<8x256xf32>
    %412 = arith.mulf %410, %411 : vector<8x256xf32>
    %413 = arith.addf %406, %412 : vector<8x256xf32>
    %c1_234 = arith.constant 1 : index
    %c0_235 = arith.constant 0 : index
    %c6_236 = arith.constant 6 : index
    %c112_237 = arith.constant 112 : index
    %414 = vector.load %arg7[%c1_234, %c0_235, %c6_236, %c112_237] : memref<2x2x8x512xf32, #tpu.memory_space<vmem>>, vector<1x1x1x256xf32>
    %415 = vector.shape_cast %414 : vector<1x1x1x256xf32> to vector<1x256xf32>
    %c0_238 = arith.constant 0 : index
    %c14_239 = arith.constant 14 : index
    %416 = vector.load %arg4[%c0_238, %c14_239] : memref<8x128xf32, #tpu.memory_space<vmem>>, vector<8x1xf32>
    %417 = vector.broadcast %416 : vector<8x1xf32> to vector<8x256xf32>
    %418 = vector.broadcast %415 : vector<1x256xf32> to vector<8x256xf32>
    %419 = arith.mulf %417, %418 : vector<8x256xf32>
    %420 = arith.addf %413, %419 : vector<8x256xf32>
    %c1_240 = arith.constant 1 : index
    %c0_241 = arith.constant 0 : index
    %c7_242 = arith.constant 7 : index
    %c112_243 = arith.constant 112 : index
    %421 = vector.load %arg7[%c1_240, %c0_241, %c7_242, %c112_243] : memref<2x2x8x512xf32, #tpu.memory_space<vmem>>, vector<1x1x1x256xf32>
    %422 = vector.shape_cast %421 : vector<1x1x1x256xf32> to vector<1x256xf32>
    %c0_244 = arith.constant 0 : index
    %c15_245 = arith.constant 15 : index
    %423 = vector.load %arg4[%c0_244, %c15_245] : memref<8x128xf32, #tpu.memory_space<vmem>>, vector<8x1xf32>
    %424 = vector.broadcast %423 : vector<8x1xf32> to vector<8x256xf32>
    %425 = vector.broadcast %422 : vector<1x256xf32> to vector<8x256xf32>
    %426 = arith.mulf %424, %425 : vector<8x256xf32>
    %427 = arith.addf %420, %426 : vector<8x256xf32>
    %c1_246 = arith.constant 1 : index
    %c1_247 = arith.constant 1 : index
    %c0_248 = arith.constant 0 : index
    %c112_249 = arith.constant 112 : index
    %428 = vector.load %arg7[%c1_246, %c1_247, %c0_248, %c112_249] : memref<2x2x8x512xf32, #tpu.memory_space<vmem>>, vector<1x1x1x256xf32>
    %429 = vector.shape_cast %428 : vector<1x1x1x256xf32> to vector<1x256xf32>
    %c0_250 = arith.constant 0 : index
    %c16_251 = arith.constant 16 : index
    %430 = vector.load %arg4[%c0_250, %c16_251] : memref<8x128xf32, #tpu.memory_space<vmem>>, vector<8x1xf32>
    %431 = vector.broadcast %430 : vector<8x1xf32> to vector<8x256xf32>
    %432 = vector.broadcast %429 : vector<1x256xf32> to vector<8x256xf32>
    %433 = arith.mulf %431, %432 : vector<8x256xf32>
    %434 = arith.addf %427, %433 : vector<8x256xf32>
    %c1_252 = arith.constant 1 : index
    %c1_253 = arith.constant 1 : index
    %c1_254 = arith.constant 1 : index
    %c112_255 = arith.constant 112 : index
    %435 = vector.load %arg7[%c1_252, %c1_253, %c1_254, %c112_255] : memref<2x2x8x512xf32, #tpu.memory_space<vmem>>, vector<1x1x1x256xf32>
    %436 = vector.shape_cast %435 : vector<1x1x1x256xf32> to vector<1x256xf32>
    %c0_256 = arith.constant 0 : index
    %c17_257 = arith.constant 17 : index
    %437 = vector.load %arg4[%c0_256, %c17_257] : memref<8x128xf32, #tpu.memory_space<vmem>>, vector<8x1xf32>
    %438 = vector.broadcast %437 : vector<8x1xf32> to vector<8x256xf32>
    %439 = vector.broadcast %436 : vector<1x256xf32> to vector<8x256xf32>
    %440 = arith.mulf %438, %439 : vector<8x256xf32>
    %441 = arith.addf %434, %440 : vector<8x256xf32>
    %c1_258 = arith.constant 1 : index
    %c1_259 = arith.constant 1 : index
    %c2_260 = arith.constant 2 : index
    %c112_261 = arith.constant 112 : index
    %442 = vector.load %arg7[%c1_258, %c1_259, %c2_260, %c112_261] : memref<2x2x8x512xf32, #tpu.memory_space<vmem>>, vector<1x1x1x256xf32>
    %443 = vector.shape_cast %442 : vector<1x1x1x256xf32> to vector<1x256xf32>
    %c0_262 = arith.constant 0 : index
    %c18_263 = arith.constant 18 : index
    %444 = vector.load %arg4[%c0_262, %c18_263] : memref<8x128xf32, #tpu.memory_space<vmem>>, vector<8x1xf32>
    %445 = vector.broadcast %444 : vector<8x1xf32> to vector<8x256xf32>
    %446 = vector.broadcast %443 : vector<1x256xf32> to vector<8x256xf32>
    %447 = arith.mulf %445, %446 : vector<8x256xf32>
    %448 = arith.addf %441, %447 : vector<8x256xf32>
    %c1_264 = arith.constant 1 : index
    %c1_265 = arith.constant 1 : index
    %c3_266 = arith.constant 3 : index
    %c112_267 = arith.constant 112 : index
    %449 = vector.load %arg7[%c1_264, %c1_265, %c3_266, %c112_267] : memref<2x2x8x512xf32, #tpu.memory_space<vmem>>, vector<1x1x1x256xf32>
    %450 = vector.shape_cast %449 : vector<1x1x1x256xf32> to vector<1x256xf32>
    %c0_268 = arith.constant 0 : index
    %c19_269 = arith.constant 19 : index
    %451 = vector.load %arg4[%c0_268, %c19_269] : memref<8x128xf32, #tpu.memory_space<vmem>>, vector<8x1xf32>
    %452 = vector.broadcast %451 : vector<8x1xf32> to vector<8x256xf32>
    %453 = vector.broadcast %450 : vector<1x256xf32> to vector<8x256xf32>
    %454 = arith.mulf %452, %453 : vector<8x256xf32>
    %455 = arith.addf %448, %454 : vector<8x256xf32>
    %c1_270 = arith.constant 1 : index
    %c1_271 = arith.constant 1 : index
    %c4_272 = arith.constant 4 : index
    %c112_273 = arith.constant 112 : index
    %456 = vector.load %arg7[%c1_270, %c1_271, %c4_272, %c112_273] : memref<2x2x8x512xf32, #tpu.memory_space<vmem>>, vector<1x1x1x256xf32>
    %457 = vector.shape_cast %456 : vector<1x1x1x256xf32> to vector<1x256xf32>
    %c0_274 = arith.constant 0 : index
    %c20_275 = arith.constant 20 : index
    %458 = vector.load %arg4[%c0_274, %c20_275] : memref<8x128xf32, #tpu.memory_space<vmem>>, vector<8x1xf32>
    %459 = vector.broadcast %458 : vector<8x1xf32> to vector<8x256xf32>
    %460 = vector.broadcast %457 : vector<1x256xf32> to vector<8x256xf32>
    %461 = arith.mulf %459, %460 : vector<8x256xf32>
    %462 = arith.addf %455, %461 : vector<8x256xf32>
    %c1_276 = arith.constant 1 : index
    %c1_277 = arith.constant 1 : index
    %c5_278 = arith.constant 5 : index
    %c112_279 = arith.constant 112 : index
    %463 = vector.load %arg7[%c1_276, %c1_277, %c5_278, %c112_279] : memref<2x2x8x512xf32, #tpu.memory_space<vmem>>, vector<1x1x1x256xf32>
    %464 = vector.shape_cast %463 : vector<1x1x1x256xf32> to vector<1x256xf32>
    %c0_280 = arith.constant 0 : index
    %c21_281 = arith.constant 21 : index
    %465 = vector.load %arg4[%c0_280, %c21_281] : memref<8x128xf32, #tpu.memory_space<vmem>>, vector<8x1xf32>
    %466 = vector.broadcast %465 : vector<8x1xf32> to vector<8x256xf32>
    %467 = vector.broadcast %464 : vector<1x256xf32> to vector<8x256xf32>
    %468 = arith.mulf %466, %467 : vector<8x256xf32>
    %469 = arith.addf %462, %468 : vector<8x256xf32>
    %c1_282 = arith.constant 1 : index
    %c1_283 = arith.constant 1 : index
    %c6_284 = arith.constant 6 : index
    %c112_285 = arith.constant 112 : index
    %470 = vector.load %arg7[%c1_282, %c1_283, %c6_284, %c112_285] : memref<2x2x8x512xf32, #tpu.memory_space<vmem>>, vector<1x1x1x256xf32>
    %471 = vector.shape_cast %470 : vector<1x1x1x256xf32> to vector<1x256xf32>
    %c0_286 = arith.constant 0 : index
    %c22_287 = arith.constant 22 : index
    %472 = vector.load %arg4[%c0_286, %c22_287] : memref<8x128xf32, #tpu.memory_space<vmem>>, vector<8x1xf32>
    %473 = vector.broadcast %472 : vector<8x1xf32> to vector<8x256xf32>
    %474 = vector.broadcast %471 : vector<1x256xf32> to vector<8x256xf32>
    %475 = arith.mulf %473, %474 : vector<8x256xf32>
    %476 = arith.addf %469, %475 : vector<8x256xf32>
    %c1_288 = arith.constant 1 : index
    %c1_289 = arith.constant 1 : index
    %c7_290 = arith.constant 7 : index
    %c112_291 = arith.constant 112 : index
    %477 = vector.load %arg7[%c1_288, %c1_289, %c7_290, %c112_291] : memref<2x2x8x512xf32, #tpu.memory_space<vmem>>, vector<1x1x1x256xf32>
    %478 = vector.shape_cast %477 : vector<1x1x1x256xf32> to vector<1x256xf32>
    %c0_292 = arith.constant 0 : index
    %c23_293 = arith.constant 23 : index
    %479 = vector.load %arg4[%c0_292, %c23_293] : memref<8x128xf32, #tpu.memory_space<vmem>>, vector<8x1xf32>
    %480 = vector.broadcast %479 : vector<8x1xf32> to vector<8x256xf32>
    %481 = vector.broadcast %478 : vector<1x256xf32> to vector<8x256xf32>
    %482 = arith.mulf %480, %481 : vector<8x256xf32>
    %483 = arith.addf %476, %482 : vector<8x256xf32>
    %c1_294 = arith.constant 1 : index
    %c0_295 = arith.constant 0 : index
    %c0_296 = arith.constant 0 : index
    %c113 = arith.constant 113 : index
    %484 = vector.load %arg7[%c1_294, %c0_295, %c0_296, %c113] : memref<2x2x8x512xf32, #tpu.memory_space<vmem>>, vector<1x1x1x256xf32>
    %485 = vector.shape_cast %484 : vector<1x1x1x256xf32> to vector<1x256xf32>
    %486 = arith.mulf %485, %24 : vector<1x256xf32>
    %c0_297 = arith.constant 0 : index
    %c24_298 = arith.constant 24 : index
    %487 = vector.load %arg4[%c0_297, %c24_298] : memref<8x128xf32, #tpu.memory_space<vmem>>, vector<8x1xf32>
    %488 = vector.broadcast %487 : vector<8x1xf32> to vector<8x256xf32>
    %489 = vector.broadcast %486 : vector<1x256xf32> to vector<8x256xf32>
    %490 = arith.mulf %488, %489 : vector<8x256xf32>
    %491 = arith.addf %483, %490 : vector<8x256xf32>
    %c1_299 = arith.constant 1 : index
    %c0_300 = arith.constant 0 : index
    %c1_301 = arith.constant 1 : index
    %c113_302 = arith.constant 113 : index
    %492 = vector.load %arg7[%c1_299, %c0_300, %c1_301, %c113_302] : memref<2x2x8x512xf32, #tpu.memory_space<vmem>>, vector<1x1x1x256xf32>
    %493 = vector.shape_cast %492 : vector<1x1x1x256xf32> to vector<1x256xf32>
    %494 = arith.mulf %493, %24 : vector<1x256xf32>
    %c0_303 = arith.constant 0 : index
    %c25_304 = arith.constant 25 : index
    %495 = vector.load %arg4[%c0_303, %c25_304] : memref<8x128xf32, #tpu.memory_space<vmem>>, vector<8x1xf32>
    %496 = vector.broadcast %495 : vector<8x1xf32> to vector<8x256xf32>
    %497 = vector.broadcast %494 : vector<1x256xf32> to vector<8x256xf32>
    %498 = arith.mulf %496, %497 : vector<8x256xf32>
    %499 = arith.addf %491, %498 : vector<8x256xf32>
    %c1_305 = arith.constant 1 : index
    %c0_306 = arith.constant 0 : index
    %c2_307 = arith.constant 2 : index
    %c113_308 = arith.constant 113 : index
    %500 = vector.load %arg7[%c1_305, %c0_306, %c2_307, %c113_308] : memref<2x2x8x512xf32, #tpu.memory_space<vmem>>, vector<1x1x1x256xf32>
    %501 = vector.shape_cast %500 : vector<1x1x1x256xf32> to vector<1x256xf32>
    %502 = arith.mulf %501, %24 : vector<1x256xf32>
    %c0_309 = arith.constant 0 : index
    %c26_310 = arith.constant 26 : index
    %503 = vector.load %arg4[%c0_309, %c26_310] : memref<8x128xf32, #tpu.memory_space<vmem>>, vector<8x1xf32>
    %504 = vector.broadcast %503 : vector<8x1xf32> to vector<8x256xf32>
    %505 = vector.broadcast %502 : vector<1x256xf32> to vector<8x256xf32>
    %506 = arith.mulf %504, %505 : vector<8x256xf32>
    %507 = arith.addf %499, %506 : vector<8x256xf32>
    %c1_311 = arith.constant 1 : index
    %c0_312 = arith.constant 0 : index
    %c3_313 = arith.constant 3 : index
    %c113_314 = arith.constant 113 : index
    %508 = vector.load %arg7[%c1_311, %c0_312, %c3_313, %c113_314] : memref<2x2x8x512xf32, #tpu.memory_space<vmem>>, vector<1x1x1x256xf32>
    %509 = vector.shape_cast %508 : vector<1x1x1x256xf32> to vector<1x256xf32>
    %510 = arith.mulf %509, %24 : vector<1x256xf32>
    %c0_315 = arith.constant 0 : index
    %c27_316 = arith.constant 27 : index
    %511 = vector.load %arg4[%c0_315, %c27_316] : memref<8x128xf32, #tpu.memory_space<vmem>>, vector<8x1xf32>
    %512 = vector.broadcast %511 : vector<8x1xf32> to vector<8x256xf32>
    %513 = vector.broadcast %510 : vector<1x256xf32> to vector<8x256xf32>
    %514 = arith.mulf %512, %513 : vector<8x256xf32>
    %515 = arith.addf %507, %514 : vector<8x256xf32>
    %c1_317 = arith.constant 1 : index
    %c0_318 = arith.constant 0 : index
    %c4_319 = arith.constant 4 : index
    %c113_320 = arith.constant 113 : index
    %516 = vector.load %arg7[%c1_317, %c0_318, %c4_319, %c113_320] : memref<2x2x8x512xf32, #tpu.memory_space<vmem>>, vector<1x1x1x256xf32>
    %517 = vector.shape_cast %516 : vector<1x1x1x256xf32> to vector<1x256xf32>
    %518 = arith.mulf %517, %24 : vector<1x256xf32>
    %c0_321 = arith.constant 0 : index
    %c28_322 = arith.constant 28 : index
    %519 = vector.load %arg4[%c0_321, %c28_322] : memref<8x128xf32, #tpu.memory_space<vmem>>, vector<8x1xf32>
    %520 = vector.broadcast %519 : vector<8x1xf32> to vector<8x256xf32>
    %521 = vector.broadcast %518 : vector<1x256xf32> to vector<8x256xf32>
    %522 = arith.mulf %520, %521 : vector<8x256xf32>
    %523 = arith.addf %515, %522 : vector<8x256xf32>
    %c1_323 = arith.constant 1 : index
    %c0_324 = arith.constant 0 : index
    %c5_325 = arith.constant 5 : index
    %c113_326 = arith.constant 113 : index
    %524 = vector.load %arg7[%c1_323, %c0_324, %c5_325, %c113_326] : memref<2x2x8x512xf32, #tpu.memory_space<vmem>>, vector<1x1x1x256xf32>
    %525 = vector.shape_cast %524 : vector<1x1x1x256xf32> to vector<1x256xf32>
    %526 = arith.mulf %525, %24 : vector<1x256xf32>
    %c0_327 = arith.constant 0 : index
    %c29_328 = arith.constant 29 : index
    %527 = vector.load %arg4[%c0_327, %c29_328] : memref<8x128xf32, #tpu.memory_space<vmem>>, vector<8x1xf32>
    %528 = vector.broadcast %527 : vector<8x1xf32> to vector<8x256xf32>
    %529 = vector.broadcast %526 : vector<1x256xf32> to vector<8x256xf32>
    %530 = arith.mulf %528, %529 : vector<8x256xf32>
    %531 = arith.addf %523, %530 : vector<8x256xf32>
    %c1_329 = arith.constant 1 : index
    %c0_330 = arith.constant 0 : index
    %c6_331 = arith.constant 6 : index
    %c113_332 = arith.constant 113 : index
    %532 = vector.load %arg7[%c1_329, %c0_330, %c6_331, %c113_332] : memref<2x2x8x512xf32, #tpu.memory_space<vmem>>, vector<1x1x1x256xf32>
    %533 = vector.shape_cast %532 : vector<1x1x1x256xf32> to vector<1x256xf32>
    %534 = arith.mulf %533, %24 : vector<1x256xf32>
    %c0_333 = arith.constant 0 : index
    %c30_334 = arith.constant 30 : index
    %535 = vector.load %arg4[%c0_333, %c30_334] : memref<8x128xf32, #tpu.memory_space<vmem>>, vector<8x1xf32>
    %536 = vector.broadcast %535 : vector<8x1xf32> to vector<8x256xf32>
    %537 = vector.broadcast %534 : vector<1x256xf32> to vector<8x256xf32>
    %538 = arith.mulf %536, %537 : vector<8x256xf32>
    %539 = arith.addf %531, %538 : vector<8x256xf32>
    %c1_335 = arith.constant 1 : index
    %c0_336 = arith.constant 0 : index
    %c7_337 = arith.constant 7 : index
    %c113_338 = arith.constant 113 : index
    %540 = vector.load %arg7[%c1_335, %c0_336, %c7_337, %c113_338] : memref<2x2x8x512xf32, #tpu.memory_space<vmem>>, vector<1x1x1x256xf32>
    %541 = vector.shape_cast %540 : vector<1x1x1x256xf32> to vector<1x256xf32>
    %542 = arith.mulf %541, %24 : vector<1x256xf32>
    %c0_339 = arith.constant 0 : index
    %c31_340 = arith.constant 31 : index
    %543 = vector.load %arg4[%c0_339, %c31_340] : memref<8x128xf32, #tpu.memory_space<vmem>>, vector<8x1xf32>
    %544 = vector.broadcast %543 : vector<8x1xf32> to vector<8x256xf32>
    %545 = vector.broadcast %542 : vector<1x256xf32> to vector<8x256xf32>
    %546 = arith.mulf %544, %545 : vector<8x256xf32>
    %547 = arith.addf %539, %546 : vector<8x256xf32>
    %c0_341 = arith.constant 0 : index
    %c1_342 = arith.constant 1 : index
    %c0_343 = arith.constant 0 : index
    %c127 = arith.constant 127 : index
    %548 = vector.load %arg7[%c0_341, %c1_342, %c0_343, %c127] : memref<2x2x8x512xf32, #tpu.memory_space<vmem>>, vector<1x1x1x256xf32>
    %549 = vector.shape_cast %548 : vector<1x1x1x256xf32> to vector<1x256xf32>
    %550 = arith.mulf %549, %20 : vector<1x256xf32>
    %c0_344 = arith.constant 0 : index
    %c32_345 = arith.constant 32 : index
    %551 = vector.load %arg4[%c0_344, %c32_345] : memref<8x128xf32, #tpu.memory_space<vmem>>, vector<8x1xf32>
    %552 = vector.broadcast %551 : vector<8x1xf32> to vector<8x256xf32>
    %553 = vector.broadcast %550 : vector<1x256xf32> to vector<8x256xf32>
    %554 = arith.mulf %552, %553 : vector<8x256xf32>
    %555 = arith.addf %547, %554 : vector<8x256xf32>
    %c0_346 = arith.constant 0 : index
    %c1_347 = arith.constant 1 : index
    %c1_348 = arith.constant 1 : index
    %c127_349 = arith.constant 127 : index
    %556 = vector.load %arg7[%c0_346, %c1_347, %c1_348, %c127_349] : memref<2x2x8x512xf32, #tpu.memory_space<vmem>>, vector<1x1x1x256xf32>
    %557 = vector.shape_cast %556 : vector<1x1x1x256xf32> to vector<1x256xf32>
    %558 = arith.mulf %557, %20 : vector<1x256xf32>
    %c0_350 = arith.constant 0 : index
    %c33_351 = arith.constant 33 : index
    %559 = vector.load %arg4[%c0_350, %c33_351] : memref<8x128xf32, #tpu.memory_space<vmem>>, vector<8x1xf32>
    %560 = vector.broadcast %559 : vector<8x1xf32> to vector<8x256xf32>
    %561 = vector.broadcast %558 : vector<1x256xf32> to vector<8x256xf32>
    %562 = arith.mulf %560, %561 : vector<8x256xf32>
    %563 = arith.addf %555, %562 : vector<8x256xf32>
    %c0_352 = arith.constant 0 : index
    %c1_353 = arith.constant 1 : index
    %c2_354 = arith.constant 2 : index
    %c127_355 = arith.constant 127 : index
    %564 = vector.load %arg7[%c0_352, %c1_353, %c2_354, %c127_355] : memref<2x2x8x512xf32, #tpu.memory_space<vmem>>, vector<1x1x1x256xf32>
    %565 = vector.shape_cast %564 : vector<1x1x1x256xf32> to vector<1x256xf32>
    %566 = arith.mulf %565, %20 : vector<1x256xf32>
    %c0_356 = arith.constant 0 : index
    %c34_357 = arith.constant 34 : index
    %567 = vector.load %arg4[%c0_356, %c34_357] : memref<8x128xf32, #tpu.memory_space<vmem>>, vector<8x1xf32>
    %568 = vector.broadcast %567 : vector<8x1xf32> to vector<8x256xf32>
    %569 = vector.broadcast %566 : vector<1x256xf32> to vector<8x256xf32>
    %570 = arith.mulf %568, %569 : vector<8x256xf32>
    %571 = arith.addf %563, %570 : vector<8x256xf32>
    %c0_358 = arith.constant 0 : index
    %c1_359 = arith.constant 1 : index
    %c3_360 = arith.constant 3 : index
    %c127_361 = arith.constant 127 : index
    %572 = vector.load %arg7[%c0_358, %c1_359, %c3_360, %c127_361] : memref<2x2x8x512xf32, #tpu.memory_space<vmem>>, vector<1x1x1x256xf32>
    %573 = vector.shape_cast %572 : vector<1x1x1x256xf32> to vector<1x256xf32>
    %574 = arith.mulf %573, %20 : vector<1x256xf32>
    %c0_362 = arith.constant 0 : index
    %c35_363 = arith.constant 35 : index
    %575 = vector.load %arg4[%c0_362, %c35_363] : memref<8x128xf32, #tpu.memory_space<vmem>>, vector<8x1xf32>
    %576 = vector.broadcast %575 : vector<8x1xf32> to vector<8x256xf32>
    %577 = vector.broadcast %574 : vector<1x256xf32> to vector<8x256xf32>
    %578 = arith.mulf %576, %577 : vector<8x256xf32>
    %579 = arith.addf %571, %578 : vector<8x256xf32>
    %c0_364 = arith.constant 0 : index
    %c1_365 = arith.constant 1 : index
    %c4_366 = arith.constant 4 : index
    %c127_367 = arith.constant 127 : index
    %580 = vector.load %arg7[%c0_364, %c1_365, %c4_366, %c127_367] : memref<2x2x8x512xf32, #tpu.memory_space<vmem>>, vector<1x1x1x256xf32>
    %581 = vector.shape_cast %580 : vector<1x1x1x256xf32> to vector<1x256xf32>
    %582 = arith.mulf %581, %20 : vector<1x256xf32>
    %c0_368 = arith.constant 0 : index
    %c36 = arith.constant 36 : index
    %583 = vector.load %arg4[%c0_368, %c36] : memref<8x128xf32, #tpu.memory_space<vmem>>, vector<8x1xf32>
    %584 = vector.broadcast %583 : vector<8x1xf32> to vector<8x256xf32>
    %585 = vector.broadcast %582 : vector<1x256xf32> to vector<8x256xf32>
    %586 = arith.mulf %584, %585 : vector<8x256xf32>
    %587 = arith.addf %579, %586 : vector<8x256xf32>
    %c0_369 = arith.constant 0 : index
    %c1_370 = arith.constant 1 : index
    %c5_371 = arith.constant 5 : index
    %c127_372 = arith.constant 127 : index
    %588 = vector.load %arg7[%c0_369, %c1_370, %c5_371, %c127_372] : memref<2x2x8x512xf32, #tpu.memory_space<vmem>>, vector<1x1x1x256xf32>
    %589 = vector.shape_cast %588 : vector<1x1x1x256xf32> to vector<1x256xf32>
    %590 = arith.mulf %589, %20 : vector<1x256xf32>
    %c0_373 = arith.constant 0 : index
    %c37 = arith.constant 37 : index
    %591 = vector.load %arg4[%c0_373, %c37] : memref<8x128xf32, #tpu.memory_space<vmem>>, vector<8x1xf32>
    %592 = vector.broadcast %591 : vector<8x1xf32> to vector<8x256xf32>
    %593 = vector.broadcast %590 : vector<1x256xf32> to vector<8x256xf32>
    %594 = arith.mulf %592, %593 : vector<8x256xf32>
    %595 = arith.addf %587, %594 : vector<8x256xf32>
    %c0_374 = arith.constant 0 : index
    %c1_375 = arith.constant 1 : index
    %c6_376 = arith.constant 6 : index
    %c127_377 = arith.constant 127 : index
    %596 = vector.load %arg7[%c0_374, %c1_375, %c6_376, %c127_377] : memref<2x2x8x512xf32, #tpu.memory_space<vmem>>, vector<1x1x1x256xf32>
    %597 = vector.shape_cast %596 : vector<1x1x1x256xf32> to vector<1x256xf32>
    %598 = arith.mulf %597, %20 : vector<1x256xf32>
    %c0_378 = arith.constant 0 : index
    %c38 = arith.constant 38 : index
    %599 = vector.load %arg4[%c0_378, %c38] : memref<8x128xf32, #tpu.memory_space<vmem>>, vector<8x1xf32>
    %600 = vector.broadcast %599 : vector<8x1xf32> to vector<8x256xf32>
    %601 = vector.broadcast %598 : vector<1x256xf32> to vector<8x256xf32>
    %602 = arith.mulf %600, %601 : vector<8x256xf32>
    %603 = arith.addf %595, %602 : vector<8x256xf32>
    %c0_379 = arith.constant 0 : index
    %c1_380 = arith.constant 1 : index
    %c7_381 = arith.constant 7 : index
    %c127_382 = arith.constant 127 : index
    %604 = vector.load %arg7[%c0_379, %c1_380, %c7_381, %c127_382] : memref<2x2x8x512xf32, #tpu.memory_space<vmem>>, vector<1x1x1x256xf32>
    %605 = vector.shape_cast %604 : vector<1x1x1x256xf32> to vector<1x256xf32>
    %606 = arith.mulf %605, %20 : vector<1x256xf32>
    %c0_383 = arith.constant 0 : index
    %c39 = arith.constant 39 : index
    %607 = vector.load %arg4[%c0_383, %c39] : memref<8x128xf32, #tpu.memory_space<vmem>>, vector<8x1xf32>
    %608 = vector.broadcast %607 : vector<8x1xf32> to vector<8x256xf32>
    %609 = vector.broadcast %606 : vector<1x256xf32> to vector<8x256xf32>
    %610 = arith.mulf %608, %609 : vector<8x256xf32>
    %611 = arith.addf %603, %610 : vector<8x256xf32>
    %c0_384 = arith.constant 0 : index
    %c0_385 = arith.constant 0 : index
    %c0_386 = arith.constant 0 : index
    %c128_387 = arith.constant 128 : index
    %612 = vector.load %arg7[%c0_384, %c0_385, %c0_386, %c128_387] : memref<2x2x8x512xf32, #tpu.memory_space<vmem>>, vector<1x1x1x256xf32>
    %613 = vector.shape_cast %612 : vector<1x1x1x256xf32> to vector<1x256xf32>
    %c0_388 = arith.constant 0 : index
    %c40 = arith.constant 40 : index
    %614 = vector.load %arg4[%c0_388, %c40] : memref<8x128xf32, #tpu.memory_space<vmem>>, vector<8x1xf32>
    %615 = vector.broadcast %614 : vector<8x1xf32> to vector<8x256xf32>
    %616 = vector.broadcast %613 : vector<1x256xf32> to vector<8x256xf32>
    %617 = arith.mulf %615, %616 : vector<8x256xf32>
    %618 = arith.addf %611, %617 : vector<8x256xf32>
    %c0_389 = arith.constant 0 : index
    %c0_390 = arith.constant 0 : index
    %c1_391 = arith.constant 1 : index
    %c128_392 = arith.constant 128 : index
    %619 = vector.load %arg7[%c0_389, %c0_390, %c1_391, %c128_392] : memref<2x2x8x512xf32, #tpu.memory_space<vmem>>, vector<1x1x1x256xf32>
    %620 = vector.shape_cast %619 : vector<1x1x1x256xf32> to vector<1x256xf32>
    %c0_393 = arith.constant 0 : index
    %c41 = arith.constant 41 : index
    %621 = vector.load %arg4[%c0_393, %c41] : memref<8x128xf32, #tpu.memory_space<vmem>>, vector<8x1xf32>
    %622 = vector.broadcast %621 : vector<8x1xf32> to vector<8x256xf32>
    %623 = vector.broadcast %620 : vector<1x256xf32> to vector<8x256xf32>
    %624 = arith.mulf %622, %623 : vector<8x256xf32>
    %625 = arith.addf %618, %624 : vector<8x256xf32>
    %c0_394 = arith.constant 0 : index
    %c0_395 = arith.constant 0 : index
    %c2_396 = arith.constant 2 : index
    %c128_397 = arith.constant 128 : index
    %626 = vector.load %arg7[%c0_394, %c0_395, %c2_396, %c128_397] : memref<2x2x8x512xf32, #tpu.memory_space<vmem>>, vector<1x1x1x256xf32>
    %627 = vector.shape_cast %626 : vector<1x1x1x256xf32> to vector<1x256xf32>
    %c0_398 = arith.constant 0 : index
    %c42 = arith.constant 42 : index
    %628 = vector.load %arg4[%c0_398, %c42] : memref<8x128xf32, #tpu.memory_space<vmem>>, vector<8x1xf32>
    %629 = vector.broadcast %628 : vector<8x1xf32> to vector<8x256xf32>
    %630 = vector.broadcast %627 : vector<1x256xf32> to vector<8x256xf32>
    %631 = arith.mulf %629, %630 : vector<8x256xf32>
    %632 = arith.addf %625, %631 : vector<8x256xf32>
    %c0_399 = arith.constant 0 : index
    %c0_400 = arith.constant 0 : index
    %c3_401 = arith.constant 3 : index
    %c128_402 = arith.constant 128 : index
    %633 = vector.load %arg7[%c0_399, %c0_400, %c3_401, %c128_402] : memref<2x2x8x512xf32, #tpu.memory_space<vmem>>, vector<1x1x1x256xf32>
    %634 = vector.shape_cast %633 : vector<1x1x1x256xf32> to vector<1x256xf32>
    %c0_403 = arith.constant 0 : index
    %c43 = arith.constant 43 : index
    %635 = vector.load %arg4[%c0_403, %c43] : memref<8x128xf32, #tpu.memory_space<vmem>>, vector<8x1xf32>
    %636 = vector.broadcast %635 : vector<8x1xf32> to vector<8x256xf32>
    %637 = vector.broadcast %634 : vector<1x256xf32> to vector<8x256xf32>
    %638 = arith.mulf %636, %637 : vector<8x256xf32>
    %639 = arith.addf %632, %638 : vector<8x256xf32>
    %c0_404 = arith.constant 0 : index
    %c0_405 = arith.constant 0 : index
    %c4_406 = arith.constant 4 : index
    %c128_407 = arith.constant 128 : index
    %640 = vector.load %arg7[%c0_404, %c0_405, %c4_406, %c128_407] : memref<2x2x8x512xf32, #tpu.memory_space<vmem>>, vector<1x1x1x256xf32>
    %641 = vector.shape_cast %640 : vector<1x1x1x256xf32> to vector<1x256xf32>
    %c0_408 = arith.constant 0 : index
    %c44 = arith.constant 44 : index
    %642 = vector.load %arg4[%c0_408, %c44] : memref<8x128xf32, #tpu.memory_space<vmem>>, vector<8x1xf32>
    %643 = vector.broadcast %642 : vector<8x1xf32> to vector<8x256xf32>
    %644 = vector.broadcast %641 : vector<1x256xf32> to vector<8x256xf32>
    %645 = arith.mulf %643, %644 : vector<8x256xf32>
    %646 = arith.addf %639, %645 : vector<8x256xf32>
    %c0_409 = arith.constant 0 : index
    %c0_410 = arith.constant 0 : index
    %c5_411 = arith.constant 5 : index
    %c128_412 = arith.constant 128 : index
    %647 = vector.load %arg7[%c0_409, %c0_410, %c5_411, %c128_412] : memref<2x2x8x512xf32, #tpu.memory_space<vmem>>, vector<1x1x1x256xf32>
    %648 = vector.shape_cast %647 : vector<1x1x1x256xf32> to vector<1x256xf32>
    %c0_413 = arith.constant 0 : index
    %c45 = arith.constant 45 : index
    %649 = vector.load %arg4[%c0_413, %c45] : memref<8x128xf32, #tpu.memory_space<vmem>>, vector<8x1xf32>
    %650 = vector.broadcast %649 : vector<8x1xf32> to vector<8x256xf32>
    %651 = vector.broadcast %648 : vector<1x256xf32> to vector<8x256xf32>
    %652 = arith.mulf %650, %651 : vector<8x256xf32>
    %653 = arith.addf %646, %652 : vector<8x256xf32>
    %c0_414 = arith.constant 0 : index
    %c0_415 = arith.constant 0 : index
    %c6_416 = arith.constant 6 : index
    %c128_417 = arith.constant 128 : index
    %654 = vector.load %arg7[%c0_414, %c0_415, %c6_416, %c128_417] : memref<2x2x8x512xf32, #tpu.memory_space<vmem>>, vector<1x1x1x256xf32>
    %655 = vector.shape_cast %654 : vector<1x1x1x256xf32> to vector<1x256xf32>
    %c0_418 = arith.constant 0 : index
    %c46 = arith.constant 46 : index
    %656 = vector.load %arg4[%c0_418, %c46] : memref<8x128xf32, #tpu.memory_space<vmem>>, vector<8x1xf32>
    %657 = vector.broadcast %656 : vector<8x1xf32> to vector<8x256xf32>
    %658 = vector.broadcast %655 : vector<1x256xf32> to vector<8x256xf32>
    %659 = arith.mulf %657, %658 : vector<8x256xf32>
    %660 = arith.addf %653, %659 : vector<8x256xf32>
    %c0_419 = arith.constant 0 : index
    %c0_420 = arith.constant 0 : index
    %c7_421 = arith.constant 7 : index
    %c128_422 = arith.constant 128 : index
    %661 = vector.load %arg7[%c0_419, %c0_420, %c7_421, %c128_422] : memref<2x2x8x512xf32, #tpu.memory_space<vmem>>, vector<1x1x1x256xf32>
    %662 = vector.shape_cast %661 : vector<1x1x1x256xf32> to vector<1x256xf32>
    %c0_423 = arith.constant 0 : index
    %c47 = arith.constant 47 : index
    %663 = vector.load %arg4[%c0_423, %c47] : memref<8x128xf32, #tpu.memory_space<vmem>>, vector<8x1xf32>
    %664 = vector.broadcast %663 : vector<8x1xf32> to vector<8x256xf32>
    %665 = vector.broadcast %662 : vector<1x256xf32> to vector<8x256xf32>
    %666 = arith.mulf %664, %665 : vector<8x256xf32>
    %667 = arith.addf %660, %666 : vector<8x256xf32>
    %c0_424 = arith.constant 0 : index
    %c1_425 = arith.constant 1 : index
    %c0_426 = arith.constant 0 : index
    %c128_427 = arith.constant 128 : index
    %668 = vector.load %arg7[%c0_424, %c1_425, %c0_426, %c128_427] : memref<2x2x8x512xf32, #tpu.memory_space<vmem>>, vector<1x1x1x256xf32>
    %669 = vector.shape_cast %668 : vector<1x1x1x256xf32> to vector<1x256xf32>
    %c0_428 = arith.constant 0 : index
    %c48 = arith.constant 48 : index
    %670 = vector.load %arg4[%c0_428, %c48] : memref<8x128xf32, #tpu.memory_space<vmem>>, vector<8x1xf32>
    %671 = vector.broadcast %670 : vector<8x1xf32> to vector<8x256xf32>
    %672 = vector.broadcast %669 : vector<1x256xf32> to vector<8x256xf32>
    %673 = arith.mulf %671, %672 : vector<8x256xf32>
    %674 = arith.addf %667, %673 : vector<8x256xf32>
    %c0_429 = arith.constant 0 : index
    %c1_430 = arith.constant 1 : index
    %c1_431 = arith.constant 1 : index
    %c128_432 = arith.constant 128 : index
    %675 = vector.load %arg7[%c0_429, %c1_430, %c1_431, %c128_432] : memref<2x2x8x512xf32, #tpu.memory_space<vmem>>, vector<1x1x1x256xf32>
    %676 = vector.shape_cast %675 : vector<1x1x1x256xf32> to vector<1x256xf32>
    %c0_433 = arith.constant 0 : index
    %c49 = arith.constant 49 : index
    %677 = vector.load %arg4[%c0_433, %c49] : memref<8x128xf32, #tpu.memory_space<vmem>>, vector<8x1xf32>
    %678 = vector.broadcast %677 : vector<8x1xf32> to vector<8x256xf32>
    %679 = vector.broadcast %676 : vector<1x256xf32> to vector<8x256xf32>
    %680 = arith.mulf %678, %679 : vector<8x256xf32>
    %681 = arith.addf %674, %680 : vector<8x256xf32>
    %c0_434 = arith.constant 0 : index
    %c1_435 = arith.constant 1 : index
    %c2_436 = arith.constant 2 : index
    %c128_437 = arith.constant 128 : index
    %682 = vector.load %arg7[%c0_434, %c1_435, %c2_436, %c128_437] : memref<2x2x8x512xf32, #tpu.memory_space<vmem>>, vector<1x1x1x256xf32>
    %683 = vector.shape_cast %682 : vector<1x1x1x256xf32> to vector<1x256xf32>
    %c0_438 = arith.constant 0 : index
    %c50 = arith.constant 50 : index
    %684 = vector.load %arg4[%c0_438, %c50] : memref<8x128xf32, #tpu.memory_space<vmem>>, vector<8x1xf32>
    %685 = vector.broadcast %684 : vector<8x1xf32> to vector<8x256xf32>
    %686 = vector.broadcast %683 : vector<1x256xf32> to vector<8x256xf32>
    %687 = arith.mulf %685, %686 : vector<8x256xf32>
    %688 = arith.addf %681, %687 : vector<8x256xf32>
    %c0_439 = arith.constant 0 : index
    %c1_440 = arith.constant 1 : index
    %c3_441 = arith.constant 3 : index
    %c128_442 = arith.constant 128 : index
    %689 = vector.load %arg7[%c0_439, %c1_440, %c3_441, %c128_442] : memref<2x2x8x512xf32, #tpu.memory_space<vmem>>, vector<1x1x1x256xf32>
    %690 = vector.shape_cast %689 : vector<1x1x1x256xf32> to vector<1x256xf32>
    %c0_443 = arith.constant 0 : index
    %c51 = arith.constant 51 : index
    %691 = vector.load %arg4[%c0_443, %c51] : memref<8x128xf32, #tpu.memory_space<vmem>>, vector<8x1xf32>
    %692 = vector.broadcast %691 : vector<8x1xf32> to vector<8x256xf32>
    %693 = vector.broadcast %690 : vector<1x256xf32> to vector<8x256xf32>
    %694 = arith.mulf %692, %693 : vector<8x256xf32>
    %695 = arith.addf %688, %694 : vector<8x256xf32>
    %c0_444 = arith.constant 0 : index
    %c1_445 = arith.constant 1 : index
    %c4_446 = arith.constant 4 : index
    %c128_447 = arith.constant 128 : index
    %696 = vector.load %arg7[%c0_444, %c1_445, %c4_446, %c128_447] : memref<2x2x8x512xf32, #tpu.memory_space<vmem>>, vector<1x1x1x256xf32>
    %697 = vector.shape_cast %696 : vector<1x1x1x256xf32> to vector<1x256xf32>
    %c0_448 = arith.constant 0 : index
    %c52 = arith.constant 52 : index
    %698 = vector.load %arg4[%c0_448, %c52] : memref<8x128xf32, #tpu.memory_space<vmem>>, vector<8x1xf32>
    %699 = vector.broadcast %698 : vector<8x1xf32> to vector<8x256xf32>
    %700 = vector.broadcast %697 : vector<1x256xf32> to vector<8x256xf32>
    %701 = arith.mulf %699, %700 : vector<8x256xf32>
    %702 = arith.addf %695, %701 : vector<8x256xf32>
    %c0_449 = arith.constant 0 : index
    %c1_450 = arith.constant 1 : index
    %c5_451 = arith.constant 5 : index
    %c128_452 = arith.constant 128 : index
    %703 = vector.load %arg7[%c0_449, %c1_450, %c5_451, %c128_452] : memref<2x2x8x512xf32, #tpu.memory_space<vmem>>, vector<1x1x1x256xf32>
    %704 = vector.shape_cast %703 : vector<1x1x1x256xf32> to vector<1x256xf32>
    %c0_453 = arith.constant 0 : index
    %c53 = arith.constant 53 : index
    %705 = vector.load %arg4[%c0_453, %c53] : memref<8x128xf32, #tpu.memory_space<vmem>>, vector<8x1xf32>
    %706 = vector.broadcast %705 : vector<8x1xf32> to vector<8x256xf32>
    %707 = vector.broadcast %704 : vector<1x256xf32> to vector<8x256xf32>
    %708 = arith.mulf %706, %707 : vector<8x256xf32>
    %709 = arith.addf %702, %708 : vector<8x256xf32>
    %c0_454 = arith.constant 0 : index
    %c1_455 = arith.constant 1 : index
    %c6_456 = arith.constant 6 : index
    %c128_457 = arith.constant 128 : index
    %710 = vector.load %arg7[%c0_454, %c1_455, %c6_456, %c128_457] : memref<2x2x8x512xf32, #tpu.memory_space<vmem>>, vector<1x1x1x256xf32>
    %711 = vector.shape_cast %710 : vector<1x1x1x256xf32> to vector<1x256xf32>
    %c0_458 = arith.constant 0 : index
    %c54 = arith.constant 54 : index
    %712 = vector.load %arg4[%c0_458, %c54] : memref<8x128xf32, #tpu.memory_space<vmem>>, vector<8x1xf32>
    %713 = vector.broadcast %712 : vector<8x1xf32> to vector<8x256xf32>
    %714 = vector.broadcast %711 : vector<1x256xf32> to vector<8x256xf32>
    %715 = arith.mulf %713, %714 : vector<8x256xf32>
    %716 = arith.addf %709, %715 : vector<8x256xf32>
    %c0_459 = arith.constant 0 : index
    %c1_460 = arith.constant 1 : index
    %c7_461 = arith.constant 7 : index
    %c128_462 = arith.constant 128 : index
    %717 = vector.load %arg7[%c0_459, %c1_460, %c7_461, %c128_462] : memref<2x2x8x512xf32, #tpu.memory_space<vmem>>, vector<1x1x1x256xf32>
    %718 = vector.shape_cast %717 : vector<1x1x1x256xf32> to vector<1x256xf32>
    %c0_463 = arith.constant 0 : index
    %c55 = arith.constant 55 : index
    %719 = vector.load %arg4[%c0_463, %c55] : memref<8x128xf32, #tpu.memory_space<vmem>>, vector<8x1xf32>
    %720 = vector.broadcast %719 : vector<8x1xf32> to vector<8x256xf32>
    %721 = vector.broadcast %718 : vector<1x256xf32> to vector<8x256xf32>
    %722 = arith.mulf %720, %721 : vector<8x256xf32>
    %723 = arith.addf %716, %722 : vector<8x256xf32>
    %c0_464 = arith.constant 0 : index
    %c0_465 = arith.constant 0 : index
    %c0_466 = arith.constant 0 : index
    %c129 = arith.constant 129 : index
    %724 = vector.load %arg7[%c0_464, %c0_465, %c0_466, %c129] : memref<2x2x8x512xf32, #tpu.memory_space<vmem>>, vector<1x1x1x256xf32>
    %725 = vector.shape_cast %724 : vector<1x1x1x256xf32> to vector<1x256xf32>
    %726 = arith.mulf %725, %24 : vector<1x256xf32>
    %c0_467 = arith.constant 0 : index
    %c56 = arith.constant 56 : index
    %727 = vector.load %arg4[%c0_467, %c56] : memref<8x128xf32, #tpu.memory_space<vmem>>, vector<8x1xf32>
    %728 = vector.broadcast %727 : vector<8x1xf32> to vector<8x256xf32>
    %729 = vector.broadcast %726 : vector<1x256xf32> to vector<8x256xf32>
    %730 = arith.mulf %728, %729 : vector<8x256xf32>
    %731 = arith.addf %723, %730 : vector<8x256xf32>
    %c0_468 = arith.constant 0 : index
    %c0_469 = arith.constant 0 : index
    %c1_470 = arith.constant 1 : index
    %c129_471 = arith.constant 129 : index
    %732 = vector.load %arg7[%c0_468, %c0_469, %c1_470, %c129_471] : memref<2x2x8x512xf32, #tpu.memory_space<vmem>>, vector<1x1x1x256xf32>
    %733 = vector.shape_cast %732 : vector<1x1x1x256xf32> to vector<1x256xf32>
    %734 = arith.mulf %733, %24 : vector<1x256xf32>
    %c0_472 = arith.constant 0 : index
    %c57 = arith.constant 57 : index
    %735 = vector.load %arg4[%c0_472, %c57] : memref<8x128xf32, #tpu.memory_space<vmem>>, vector<8x1xf32>
    %736 = vector.broadcast %735 : vector<8x1xf32> to vector<8x256xf32>
    %737 = vector.broadcast %734 : vector<1x256xf32> to vector<8x256xf32>
    %738 = arith.mulf %736, %737 : vector<8x256xf32>
    %739 = arith.addf %731, %738 : vector<8x256xf32>
    %c0_473 = arith.constant 0 : index
    %c0_474 = arith.constant 0 : index
    %c2_475 = arith.constant 2 : index
    %c129_476 = arith.constant 129 : index
    %740 = vector.load %arg7[%c0_473, %c0_474, %c2_475, %c129_476] : memref<2x2x8x512xf32, #tpu.memory_space<vmem>>, vector<1x1x1x256xf32>
    %741 = vector.shape_cast %740 : vector<1x1x1x256xf32> to vector<1x256xf32>
    %742 = arith.mulf %741, %24 : vector<1x256xf32>
    %c0_477 = arith.constant 0 : index
    %c58 = arith.constant 58 : index
    %743 = vector.load %arg4[%c0_477, %c58] : memref<8x128xf32, #tpu.memory_space<vmem>>, vector<8x1xf32>
    %744 = vector.broadcast %743 : vector<8x1xf32> to vector<8x256xf32>
    %745 = vector.broadcast %742 : vector<1x256xf32> to vector<8x256xf32>
    %746 = arith.mulf %744, %745 : vector<8x256xf32>
    %747 = arith.addf %739, %746 : vector<8x256xf32>
    %c0_478 = arith.constant 0 : index
    %c0_479 = arith.constant 0 : index
    %c3_480 = arith.constant 3 : index
    %c129_481 = arith.constant 129 : index
    %748 = vector.load %arg7[%c0_478, %c0_479, %c3_480, %c129_481] : memref<2x2x8x512xf32, #tpu.memory_space<vmem>>, vector<1x1x1x256xf32>
    %749 = vector.shape_cast %748 : vector<1x1x1x256xf32> to vector<1x256xf32>
    %750 = arith.mulf %749, %24 : vector<1x256xf32>
    %c0_482 = arith.constant 0 : index
    %c59 = arith.constant 59 : index
    %751 = vector.load %arg4[%c0_482, %c59] : memref<8x128xf32, #tpu.memory_space<vmem>>, vector<8x1xf32>
    %752 = vector.broadcast %751 : vector<8x1xf32> to vector<8x256xf32>
    %753 = vector.broadcast %750 : vector<1x256xf32> to vector<8x256xf32>
    %754 = arith.mulf %752, %753 : vector<8x256xf32>
    %755 = arith.addf %747, %754 : vector<8x256xf32>
    %c0_483 = arith.constant 0 : index
    %c0_484 = arith.constant 0 : index
    %c4_485 = arith.constant 4 : index
    %c129_486 = arith.constant 129 : index
    %756 = vector.load %arg7[%c0_483, %c0_484, %c4_485, %c129_486] : memref<2x2x8x512xf32, #tpu.memory_space<vmem>>, vector<1x1x1x256xf32>
    %757 = vector.shape_cast %756 : vector<1x1x1x256xf32> to vector<1x256xf32>
    %758 = arith.mulf %757, %24 : vector<1x256xf32>
    %c0_487 = arith.constant 0 : index
    %c60 = arith.constant 60 : index
    %759 = vector.load %arg4[%c0_487, %c60] : memref<8x128xf32, #tpu.memory_space<vmem>>, vector<8x1xf32>
    %760 = vector.broadcast %759 : vector<8x1xf32> to vector<8x256xf32>
    %761 = vector.broadcast %758 : vector<1x256xf32> to vector<8x256xf32>
    %762 = arith.mulf %760, %761 : vector<8x256xf32>
    %763 = arith.addf %755, %762 : vector<8x256xf32>
    %c0_488 = arith.constant 0 : index
    %c0_489 = arith.constant 0 : index
    %c5_490 = arith.constant 5 : index
    %c129_491 = arith.constant 129 : index
    %764 = vector.load %arg7[%c0_488, %c0_489, %c5_490, %c129_491] : memref<2x2x8x512xf32, #tpu.memory_space<vmem>>, vector<1x1x1x256xf32>
    %765 = vector.shape_cast %764 : vector<1x1x1x256xf32> to vector<1x256xf32>
    %766 = arith.mulf %765, %24 : vector<1x256xf32>
    %c0_492 = arith.constant 0 : index
    %c61 = arith.constant 61 : index
    %767 = vector.load %arg4[%c0_492, %c61] : memref<8x128xf32, #tpu.memory_space<vmem>>, vector<8x1xf32>
    %768 = vector.broadcast %767 : vector<8x1xf32> to vector<8x256xf32>
    %769 = vector.broadcast %766 : vector<1x256xf32> to vector<8x256xf32>
    %770 = arith.mulf %768, %769 : vector<8x256xf32>
    %771 = arith.addf %763, %770 : vector<8x256xf32>
    %c0_493 = arith.constant 0 : index
    %c0_494 = arith.constant 0 : index
    %c6_495 = arith.constant 6 : index
    %c129_496 = arith.constant 129 : index
    %772 = vector.load %arg7[%c0_493, %c0_494, %c6_495, %c129_496] : memref<2x2x8x512xf32, #tpu.memory_space<vmem>>, vector<1x1x1x256xf32>
    %773 = vector.shape_cast %772 : vector<1x1x1x256xf32> to vector<1x256xf32>
    %774 = arith.mulf %773, %24 : vector<1x256xf32>
    %c0_497 = arith.constant 0 : index
    %c62 = arith.constant 62 : index
    %775 = vector.load %arg4[%c0_497, %c62] : memref<8x128xf32, #tpu.memory_space<vmem>>, vector<8x1xf32>
    %776 = vector.broadcast %775 : vector<8x1xf32> to vector<8x256xf32>
    %777 = vector.broadcast %774 : vector<1x256xf32> to vector<8x256xf32>
    %778 = arith.mulf %776, %777 : vector<8x256xf32>
    %779 = arith.addf %771, %778 : vector<8x256xf32>
    %c0_498 = arith.constant 0 : index
    %c0_499 = arith.constant 0 : index
    %c7_500 = arith.constant 7 : index
    %c129_501 = arith.constant 129 : index
    %780 = vector.load %arg7[%c0_498, %c0_499, %c7_500, %c129_501] : memref<2x2x8x512xf32, #tpu.memory_space<vmem>>, vector<1x1x1x256xf32>
    %781 = vector.shape_cast %780 : vector<1x1x1x256xf32> to vector<1x256xf32>
    %782 = arith.mulf %781, %24 : vector<1x256xf32>
    %c0_502 = arith.constant 0 : index
    %c63 = arith.constant 63 : index
    %783 = vector.load %arg4[%c0_502, %c63] : memref<8x128xf32, #tpu.memory_space<vmem>>, vector<8x1xf32>
    %784 = vector.broadcast %783 : vector<8x1xf32> to vector<8x256xf32>
    %785 = vector.broadcast %782 : vector<1x256xf32> to vector<8x256xf32>
    %786 = arith.mulf %784, %785 : vector<8x256xf32>
    %787 = arith.addf %779, %786 : vector<8x256xf32>
    %c1_503 = arith.constant 1 : index
    %c1_504 = arith.constant 1 : index
    %c0_505 = arith.constant 0 : index
    %c127_506 = arith.constant 127 : index
    %788 = vector.load %arg7[%c1_503, %c1_504, %c0_505, %c127_506] : memref<2x2x8x512xf32, #tpu.memory_space<vmem>>, vector<1x1x1x256xf32>
    %789 = vector.shape_cast %788 : vector<1x1x1x256xf32> to vector<1x256xf32>
    %790 = arith.mulf %789, %20 : vector<1x256xf32>
    %c0_507 = arith.constant 0 : index
    %c64 = arith.constant 64 : index
    %791 = vector.load %arg4[%c0_507, %c64] : memref<8x128xf32, #tpu.memory_space<vmem>>, vector<8x1xf32>
    %792 = vector.broadcast %791 : vector<8x1xf32> to vector<8x256xf32>
    %793 = vector.broadcast %790 : vector<1x256xf32> to vector<8x256xf32>
    %794 = arith.mulf %792, %793 : vector<8x256xf32>
    %795 = arith.addf %787, %794 : vector<8x256xf32>
    %c1_508 = arith.constant 1 : index
    %c1_509 = arith.constant 1 : index
    %c1_510 = arith.constant 1 : index
    %c127_511 = arith.constant 127 : index
    %796 = vector.load %arg7[%c1_508, %c1_509, %c1_510, %c127_511] : memref<2x2x8x512xf32, #tpu.memory_space<vmem>>, vector<1x1x1x256xf32>
    %797 = vector.shape_cast %796 : vector<1x1x1x256xf32> to vector<1x256xf32>
    %798 = arith.mulf %797, %20 : vector<1x256xf32>
    %c0_512 = arith.constant 0 : index
    %c65 = arith.constant 65 : index
    %799 = vector.load %arg4[%c0_512, %c65] : memref<8x128xf32, #tpu.memory_space<vmem>>, vector<8x1xf32>
    %800 = vector.broadcast %799 : vector<8x1xf32> to vector<8x256xf32>
    %801 = vector.broadcast %798 : vector<1x256xf32> to vector<8x256xf32>
    %802 = arith.mulf %800, %801 : vector<8x256xf32>
    %803 = arith.addf %795, %802 : vector<8x256xf32>
    %c1_513 = arith.constant 1 : index
    %c1_514 = arith.constant 1 : index
    %c2_515 = arith.constant 2 : index
    %c127_516 = arith.constant 127 : index
    %804 = vector.load %arg7[%c1_513, %c1_514, %c2_515, %c127_516] : memref<2x2x8x512xf32, #tpu.memory_space<vmem>>, vector<1x1x1x256xf32>
    %805 = vector.shape_cast %804 : vector<1x1x1x256xf32> to vector<1x256xf32>
    %806 = arith.mulf %805, %20 : vector<1x256xf32>
    %c0_517 = arith.constant 0 : index
    %c66 = arith.constant 66 : index
    %807 = vector.load %arg4[%c0_517, %c66] : memref<8x128xf32, #tpu.memory_space<vmem>>, vector<8x1xf32>
    %808 = vector.broadcast %807 : vector<8x1xf32> to vector<8x256xf32>
    %809 = vector.broadcast %806 : vector<1x256xf32> to vector<8x256xf32>
    %810 = arith.mulf %808, %809 : vector<8x256xf32>
    %811 = arith.addf %803, %810 : vector<8x256xf32>
    %c1_518 = arith.constant 1 : index
    %c1_519 = arith.constant 1 : index
    %c3_520 = arith.constant 3 : index
    %c127_521 = arith.constant 127 : index
    %812 = vector.load %arg7[%c1_518, %c1_519, %c3_520, %c127_521] : memref<2x2x8x512xf32, #tpu.memory_space<vmem>>, vector<1x1x1x256xf32>
    %813 = vector.shape_cast %812 : vector<1x1x1x256xf32> to vector<1x256xf32>
    %814 = arith.mulf %813, %20 : vector<1x256xf32>
    %c0_522 = arith.constant 0 : index
    %c67 = arith.constant 67 : index
    %815 = vector.load %arg4[%c0_522, %c67] : memref<8x128xf32, #tpu.memory_space<vmem>>, vector<8x1xf32>
    %816 = vector.broadcast %815 : vector<8x1xf32> to vector<8x256xf32>
    %817 = vector.broadcast %814 : vector<1x256xf32> to vector<8x256xf32>
    %818 = arith.mulf %816, %817 : vector<8x256xf32>
    %819 = arith.addf %811, %818 : vector<8x256xf32>
    %c1_523 = arith.constant 1 : index
    %c1_524 = arith.constant 1 : index
    %c4_525 = arith.constant 4 : index
    %c127_526 = arith.constant 127 : index
    %820 = vector.load %arg7[%c1_523, %c1_524, %c4_525, %c127_526] : memref<2x2x8x512xf32, #tpu.memory_space<vmem>>, vector<1x1x1x256xf32>
    %821 = vector.shape_cast %820 : vector<1x1x1x256xf32> to vector<1x256xf32>
    %822 = arith.mulf %821, %20 : vector<1x256xf32>
    %c0_527 = arith.constant 0 : index
    %c68 = arith.constant 68 : index
    %823 = vector.load %arg4[%c0_527, %c68] : memref<8x128xf32, #tpu.memory_space<vmem>>, vector<8x1xf32>
    %824 = vector.broadcast %823 : vector<8x1xf32> to vector<8x256xf32>
    %825 = vector.broadcast %822 : vector<1x256xf32> to vector<8x256xf32>
    %826 = arith.mulf %824, %825 : vector<8x256xf32>
    %827 = arith.addf %819, %826 : vector<8x256xf32>
    %c1_528 = arith.constant 1 : index
    %c1_529 = arith.constant 1 : index
    %c5_530 = arith.constant 5 : index
    %c127_531 = arith.constant 127 : index
    %828 = vector.load %arg7[%c1_528, %c1_529, %c5_530, %c127_531] : memref<2x2x8x512xf32, #tpu.memory_space<vmem>>, vector<1x1x1x256xf32>
    %829 = vector.shape_cast %828 : vector<1x1x1x256xf32> to vector<1x256xf32>
    %830 = arith.mulf %829, %20 : vector<1x256xf32>
    %c0_532 = arith.constant 0 : index
    %c69 = arith.constant 69 : index
    %831 = vector.load %arg4[%c0_532, %c69] : memref<8x128xf32, #tpu.memory_space<vmem>>, vector<8x1xf32>
    %832 = vector.broadcast %831 : vector<8x1xf32> to vector<8x256xf32>
    %833 = vector.broadcast %830 : vector<1x256xf32> to vector<8x256xf32>
    %834 = arith.mulf %832, %833 : vector<8x256xf32>
    %835 = arith.addf %827, %834 : vector<8x256xf32>
    %c1_533 = arith.constant 1 : index
    %c1_534 = arith.constant 1 : index
    %c6_535 = arith.constant 6 : index
    %c127_536 = arith.constant 127 : index
    %836 = vector.load %arg7[%c1_533, %c1_534, %c6_535, %c127_536] : memref<2x2x8x512xf32, #tpu.memory_space<vmem>>, vector<1x1x1x256xf32>
    %837 = vector.shape_cast %836 : vector<1x1x1x256xf32> to vector<1x256xf32>
    %838 = arith.mulf %837, %20 : vector<1x256xf32>
    %c0_537 = arith.constant 0 : index
    %c70 = arith.constant 70 : index
    %839 = vector.load %arg4[%c0_537, %c70] : memref<8x128xf32, #tpu.memory_space<vmem>>, vector<8x1xf32>
    %840 = vector.broadcast %839 : vector<8x1xf32> to vector<8x256xf32>
    %841 = vector.broadcast %838 : vector<1x256xf32> to vector<8x256xf32>
    %842 = arith.mulf %840, %841 : vector<8x256xf32>
    %843 = arith.addf %835, %842 : vector<8x256xf32>
    %c1_538 = arith.constant 1 : index
    %c1_539 = arith.constant 1 : index
    %c7_540 = arith.constant 7 : index
    %c127_541 = arith.constant 127 : index
    %844 = vector.load %arg7[%c1_538, %c1_539, %c7_540, %c127_541] : memref<2x2x8x512xf32, #tpu.memory_space<vmem>>, vector<1x1x1x256xf32>
    %845 = vector.shape_cast %844 : vector<1x1x1x256xf32> to vector<1x256xf32>
    %846 = arith.mulf %845, %20 : vector<1x256xf32>
    %c0_542 = arith.constant 0 : index
    %c71 = arith.constant 71 : index
    %847 = vector.load %arg4[%c0_542, %c71] : memref<8x128xf32, #tpu.memory_space<vmem>>, vector<8x1xf32>
    %848 = vector.broadcast %847 : vector<8x1xf32> to vector<8x256xf32>
    %849 = vector.broadcast %846 : vector<1x256xf32> to vector<8x256xf32>
    %850 = arith.mulf %848, %849 : vector<8x256xf32>
    %851 = arith.addf %843, %850 : vector<8x256xf32>
    %c1_543 = arith.constant 1 : index
    %c0_544 = arith.constant 0 : index
    %c0_545 = arith.constant 0 : index
    %c128_546 = arith.constant 128 : index
    %852 = vector.load %arg7[%c1_543, %c0_544, %c0_545, %c128_546] : memref<2x2x8x512xf32, #tpu.memory_space<vmem>>, vector<1x1x1x256xf32>
    %853 = vector.shape_cast %852 : vector<1x1x1x256xf32> to vector<1x256xf32>
    %c0_547 = arith.constant 0 : index
    %c72 = arith.constant 72 : index
    %854 = vector.load %arg4[%c0_547, %c72] : memref<8x128xf32, #tpu.memory_space<vmem>>, vector<8x1xf32>
    %855 = vector.broadcast %854 : vector<8x1xf32> to vector<8x256xf32>
    %856 = vector.broadcast %853 : vector<1x256xf32> to vector<8x256xf32>
    %857 = arith.mulf %855, %856 : vector<8x256xf32>
    %858 = arith.addf %851, %857 : vector<8x256xf32>
    %c1_548 = arith.constant 1 : index
    %c0_549 = arith.constant 0 : index
    %c1_550 = arith.constant 1 : index
    %c128_551 = arith.constant 128 : index
    %859 = vector.load %arg7[%c1_548, %c0_549, %c1_550, %c128_551] : memref<2x2x8x512xf32, #tpu.memory_space<vmem>>, vector<1x1x1x256xf32>
    %860 = vector.shape_cast %859 : vector<1x1x1x256xf32> to vector<1x256xf32>
    %c0_552 = arith.constant 0 : index
    %c73 = arith.constant 73 : index
    %861 = vector.load %arg4[%c0_552, %c73] : memref<8x128xf32, #tpu.memory_space<vmem>>, vector<8x1xf32>
    %862 = vector.broadcast %861 : vector<8x1xf32> to vector<8x256xf32>
    %863 = vector.broadcast %860 : vector<1x256xf32> to vector<8x256xf32>
    %864 = arith.mulf %862, %863 : vector<8x256xf32>
    %865 = arith.addf %858, %864 : vector<8x256xf32>
    %c1_553 = arith.constant 1 : index
    %c0_554 = arith.constant 0 : index
    %c2_555 = arith.constant 2 : index
    %c128_556 = arith.constant 128 : index
    %866 = vector.load %arg7[%c1_553, %c0_554, %c2_555, %c128_556] : memref<2x2x8x512xf32, #tpu.memory_space<vmem>>, vector<1x1x1x256xf32>
    %867 = vector.shape_cast %866 : vector<1x1x1x256xf32> to vector<1x256xf32>
    %c0_557 = arith.constant 0 : index
    %c74 = arith.constant 74 : index
    %868 = vector.load %arg4[%c0_557, %c74] : memref<8x128xf32, #tpu.memory_space<vmem>>, vector<8x1xf32>
    %869 = vector.broadcast %868 : vector<8x1xf32> to vector<8x256xf32>
    %870 = vector.broadcast %867 : vector<1x256xf32> to vector<8x256xf32>
    %871 = arith.mulf %869, %870 : vector<8x256xf32>
    %872 = arith.addf %865, %871 : vector<8x256xf32>
    %c1_558 = arith.constant 1 : index
    %c0_559 = arith.constant 0 : index
    %c3_560 = arith.constant 3 : index
    %c128_561 = arith.constant 128 : index
    %873 = vector.load %arg7[%c1_558, %c0_559, %c3_560, %c128_561] : memref<2x2x8x512xf32, #tpu.memory_space<vmem>>, vector<1x1x1x256xf32>
    %874 = vector.shape_cast %873 : vector<1x1x1x256xf32> to vector<1x256xf32>
    %c0_562 = arith.constant 0 : index
    %c75 = arith.constant 75 : index
    %875 = vector.load %arg4[%c0_562, %c75] : memref<8x128xf32, #tpu.memory_space<vmem>>, vector<8x1xf32>
    %876 = vector.broadcast %875 : vector<8x1xf32> to vector<8x256xf32>
    %877 = vector.broadcast %874 : vector<1x256xf32> to vector<8x256xf32>
    %878 = arith.mulf %876, %877 : vector<8x256xf32>
    %879 = arith.addf %872, %878 : vector<8x256xf32>
    %c1_563 = arith.constant 1 : index
    %c0_564 = arith.constant 0 : index
    %c4_565 = arith.constant 4 : index
    %c128_566 = arith.constant 128 : index
    %880 = vector.load %arg7[%c1_563, %c0_564, %c4_565, %c128_566] : memref<2x2x8x512xf32, #tpu.memory_space<vmem>>, vector<1x1x1x256xf32>
    %881 = vector.shape_cast %880 : vector<1x1x1x256xf32> to vector<1x256xf32>
    %c0_567 = arith.constant 0 : index
    %c76 = arith.constant 76 : index
    %882 = vector.load %arg4[%c0_567, %c76] : memref<8x128xf32, #tpu.memory_space<vmem>>, vector<8x1xf32>
    %883 = vector.broadcast %882 : vector<8x1xf32> to vector<8x256xf32>
    %884 = vector.broadcast %881 : vector<1x256xf32> to vector<8x256xf32>
    %885 = arith.mulf %883, %884 : vector<8x256xf32>
    %886 = arith.addf %879, %885 : vector<8x256xf32>
    %c1_568 = arith.constant 1 : index
    %c0_569 = arith.constant 0 : index
    %c5_570 = arith.constant 5 : index
    %c128_571 = arith.constant 128 : index
    %887 = vector.load %arg7[%c1_568, %c0_569, %c5_570, %c128_571] : memref<2x2x8x512xf32, #tpu.memory_space<vmem>>, vector<1x1x1x256xf32>
    %888 = vector.shape_cast %887 : vector<1x1x1x256xf32> to vector<1x256xf32>
    %c0_572 = arith.constant 0 : index
    %c77 = arith.constant 77 : index
    %889 = vector.load %arg4[%c0_572, %c77] : memref<8x128xf32, #tpu.memory_space<vmem>>, vector<8x1xf32>
    %890 = vector.broadcast %889 : vector<8x1xf32> to vector<8x256xf32>
    %891 = vector.broadcast %888 : vector<1x256xf32> to vector<8x256xf32>
    %892 = arith.mulf %890, %891 : vector<8x256xf32>
    %893 = arith.addf %886, %892 : vector<8x256xf32>
    %c1_573 = arith.constant 1 : index
    %c0_574 = arith.constant 0 : index
    %c6_575 = arith.constant 6 : index
    %c128_576 = arith.constant 128 : index
    %894 = vector.load %arg7[%c1_573, %c0_574, %c6_575, %c128_576] : memref<2x2x8x512xf32, #tpu.memory_space<vmem>>, vector<1x1x1x256xf32>
    %895 = vector.shape_cast %894 : vector<1x1x1x256xf32> to vector<1x256xf32>
    %c0_577 = arith.constant 0 : index
    %c78 = arith.constant 78 : index
    %896 = vector.load %arg4[%c0_577, %c78] : memref<8x128xf32, #tpu.memory_space<vmem>>, vector<8x1xf32>
    %897 = vector.broadcast %896 : vector<8x1xf32> to vector<8x256xf32>
    %898 = vector.broadcast %895 : vector<1x256xf32> to vector<8x256xf32>
    %899 = arith.mulf %897, %898 : vector<8x256xf32>
    %900 = arith.addf %893, %899 : vector<8x256xf32>
    %c1_578 = arith.constant 1 : index
    %c0_579 = arith.constant 0 : index
    %c7_580 = arith.constant 7 : index
    %c128_581 = arith.constant 128 : index
    %901 = vector.load %arg7[%c1_578, %c0_579, %c7_580, %c128_581] : memref<2x2x8x512xf32, #tpu.memory_space<vmem>>, vector<1x1x1x256xf32>
    %902 = vector.shape_cast %901 : vector<1x1x1x256xf32> to vector<1x256xf32>
    %c0_582 = arith.constant 0 : index
    %c79 = arith.constant 79 : index
    %903 = vector.load %arg4[%c0_582, %c79] : memref<8x128xf32, #tpu.memory_space<vmem>>, vector<8x1xf32>
    %904 = vector.broadcast %903 : vector<8x1xf32> to vector<8x256xf32>
    %905 = vector.broadcast %902 : vector<1x256xf32> to vector<8x256xf32>
    %906 = arith.mulf %904, %905 : vector<8x256xf32>
    %907 = arith.addf %900, %906 : vector<8x256xf32>
    %c1_583 = arith.constant 1 : index
    %c1_584 = arith.constant 1 : index
    %c0_585 = arith.constant 0 : index
    %c128_586 = arith.constant 128 : index
    %908 = vector.load %arg7[%c1_583, %c1_584, %c0_585, %c128_586] : memref<2x2x8x512xf32, #tpu.memory_space<vmem>>, vector<1x1x1x256xf32>
    %909 = vector.shape_cast %908 : vector<1x1x1x256xf32> to vector<1x256xf32>
    %c0_587 = arith.constant 0 : index
    %c80 = arith.constant 80 : index
    %910 = vector.load %arg4[%c0_587, %c80] : memref<8x128xf32, #tpu.memory_space<vmem>>, vector<8x1xf32>
    %911 = vector.broadcast %910 : vector<8x1xf32> to vector<8x256xf32>
    %912 = vector.broadcast %909 : vector<1x256xf32> to vector<8x256xf32>
    %913 = arith.mulf %911, %912 : vector<8x256xf32>
    %914 = arith.addf %907, %913 : vector<8x256xf32>
    %c1_588 = arith.constant 1 : index
    %c1_589 = arith.constant 1 : index
    %c1_590 = arith.constant 1 : index
    %c128_591 = arith.constant 128 : index
    %915 = vector.load %arg7[%c1_588, %c1_589, %c1_590, %c128_591] : memref<2x2x8x512xf32, #tpu.memory_space<vmem>>, vector<1x1x1x256xf32>
    %916 = vector.shape_cast %915 : vector<1x1x1x256xf32> to vector<1x256xf32>
    %c0_592 = arith.constant 0 : index
    %c81 = arith.constant 81 : index
    %917 = vector.load %arg4[%c0_592, %c81] : memref<8x128xf32, #tpu.memory_space<vmem>>, vector<8x1xf32>
    %918 = vector.broadcast %917 : vector<8x1xf32> to vector<8x256xf32>
    %919 = vector.broadcast %916 : vector<1x256xf32> to vector<8x256xf32>
    %920 = arith.mulf %918, %919 : vector<8x256xf32>
    %921 = arith.addf %914, %920 : vector<8x256xf32>
    %c1_593 = arith.constant 1 : index
    %c1_594 = arith.constant 1 : index
    %c2_595 = arith.constant 2 : index
    %c128_596 = arith.constant 128 : index
    %922 = vector.load %arg7[%c1_593, %c1_594, %c2_595, %c128_596] : memref<2x2x8x512xf32, #tpu.memory_space<vmem>>, vector<1x1x1x256xf32>
    %923 = vector.shape_cast %922 : vector<1x1x1x256xf32> to vector<1x256xf32>
    %c0_597 = arith.constant 0 : index
    %c82 = arith.constant 82 : index
    %924 = vector.load %arg4[%c0_597, %c82] : memref<8x128xf32, #tpu.memory_space<vmem>>, vector<8x1xf32>
    %925 = vector.broadcast %924 : vector<8x1xf32> to vector<8x256xf32>
    %926 = vector.broadcast %923 : vector<1x256xf32> to vector<8x256xf32>
    %927 = arith.mulf %925, %926 : vector<8x256xf32>
    %928 = arith.addf %921, %927 : vector<8x256xf32>
    %c1_598 = arith.constant 1 : index
    %c1_599 = arith.constant 1 : index
    %c3_600 = arith.constant 3 : index
    %c128_601 = arith.constant 128 : index
    %929 = vector.load %arg7[%c1_598, %c1_599, %c3_600, %c128_601] : memref<2x2x8x512xf32, #tpu.memory_space<vmem>>, vector<1x1x1x256xf32>
    %930 = vector.shape_cast %929 : vector<1x1x1x256xf32> to vector<1x256xf32>
    %c0_602 = arith.constant 0 : index
    %c83 = arith.constant 83 : index
    %931 = vector.load %arg4[%c0_602, %c83] : memref<8x128xf32, #tpu.memory_space<vmem>>, vector<8x1xf32>
    %932 = vector.broadcast %931 : vector<8x1xf32> to vector<8x256xf32>
    %933 = vector.broadcast %930 : vector<1x256xf32> to vector<8x256xf32>
    %934 = arith.mulf %932, %933 : vector<8x256xf32>
    %935 = arith.addf %928, %934 : vector<8x256xf32>
    %c1_603 = arith.constant 1 : index
    %c1_604 = arith.constant 1 : index
    %c4_605 = arith.constant 4 : index
    %c128_606 = arith.constant 128 : index
    %936 = vector.load %arg7[%c1_603, %c1_604, %c4_605, %c128_606] : memref<2x2x8x512xf32, #tpu.memory_space<vmem>>, vector<1x1x1x256xf32>
    %937 = vector.shape_cast %936 : vector<1x1x1x256xf32> to vector<1x256xf32>
    %c0_607 = arith.constant 0 : index
    %c84 = arith.constant 84 : index
    %938 = vector.load %arg4[%c0_607, %c84] : memref<8x128xf32, #tpu.memory_space<vmem>>, vector<8x1xf32>
    %939 = vector.broadcast %938 : vector<8x1xf32> to vector<8x256xf32>
    %940 = vector.broadcast %937 : vector<1x256xf32> to vector<8x256xf32>
    %941 = arith.mulf %939, %940 : vector<8x256xf32>
    %942 = arith.addf %935, %941 : vector<8x256xf32>
    %c1_608 = arith.constant 1 : index
    %c1_609 = arith.constant 1 : index
    %c5_610 = arith.constant 5 : index
    %c128_611 = arith.constant 128 : index
    %943 = vector.load %arg7[%c1_608, %c1_609, %c5_610, %c128_611] : memref<2x2x8x512xf32, #tpu.memory_space<vmem>>, vector<1x1x1x256xf32>
    %944 = vector.shape_cast %943 : vector<1x1x1x256xf32> to vector<1x256xf32>
    %c0_612 = arith.constant 0 : index
    %c85 = arith.constant 85 : index
    %945 = vector.load %arg4[%c0_612, %c85] : memref<8x128xf32, #tpu.memory_space<vmem>>, vector<8x1xf32>
    %946 = vector.broadcast %945 : vector<8x1xf32> to vector<8x256xf32>
    %947 = vector.broadcast %944 : vector<1x256xf32> to vector<8x256xf32>
    %948 = arith.mulf %946, %947 : vector<8x256xf32>
    %949 = arith.addf %942, %948 : vector<8x256xf32>
    %c1_613 = arith.constant 1 : index
    %c1_614 = arith.constant 1 : index
    %c6_615 = arith.constant 6 : index
    %c128_616 = arith.constant 128 : index
    %950 = vector.load %arg7[%c1_613, %c1_614, %c6_615, %c128_616] : memref<2x2x8x512xf32, #tpu.memory_space<vmem>>, vector<1x1x1x256xf32>
    %951 = vector.shape_cast %950 : vector<1x1x1x256xf32> to vector<1x256xf32>
    %c0_617 = arith.constant 0 : index
    %c86 = arith.constant 86 : index
    %952 = vector.load %arg4[%c0_617, %c86] : memref<8x128xf32, #tpu.memory_space<vmem>>, vector<8x1xf32>
    %953 = vector.broadcast %952 : vector<8x1xf32> to vector<8x256xf32>
    %954 = vector.broadcast %951 : vector<1x256xf32> to vector<8x256xf32>
    %955 = arith.mulf %953, %954 : vector<8x256xf32>
    %956 = arith.addf %949, %955 : vector<8x256xf32>
    %c1_618 = arith.constant 1 : index
    %c1_619 = arith.constant 1 : index
    %c7_620 = arith.constant 7 : index
    %c128_621 = arith.constant 128 : index
    %957 = vector.load %arg7[%c1_618, %c1_619, %c7_620, %c128_621] : memref<2x2x8x512xf32, #tpu.memory_space<vmem>>, vector<1x1x1x256xf32>
    %958 = vector.shape_cast %957 : vector<1x1x1x256xf32> to vector<1x256xf32>
    %c0_622 = arith.constant 0 : index
    %c87 = arith.constant 87 : index
    %959 = vector.load %arg4[%c0_622, %c87] : memref<8x128xf32, #tpu.memory_space<vmem>>, vector<8x1xf32>
    %960 = vector.broadcast %959 : vector<8x1xf32> to vector<8x256xf32>
    %961 = vector.broadcast %958 : vector<1x256xf32> to vector<8x256xf32>
    %962 = arith.mulf %960, %961 : vector<8x256xf32>
    %963 = arith.addf %956, %962 : vector<8x256xf32>
    %c1_623 = arith.constant 1 : index
    %c0_624 = arith.constant 0 : index
    %c0_625 = arith.constant 0 : index
    %c129_626 = arith.constant 129 : index
    %964 = vector.load %arg7[%c1_623, %c0_624, %c0_625, %c129_626] : memref<2x2x8x512xf32, #tpu.memory_space<vmem>>, vector<1x1x1x256xf32>
    %965 = vector.shape_cast %964 : vector<1x1x1x256xf32> to vector<1x256xf32>
    %966 = arith.mulf %965, %24 : vector<1x256xf32>
    %c0_627 = arith.constant 0 : index
    %c88 = arith.constant 88 : index
    %967 = vector.load %arg4[%c0_627, %c88] : memref<8x128xf32, #tpu.memory_space<vmem>>, vector<8x1xf32>
    %968 = vector.broadcast %967 : vector<8x1xf32> to vector<8x256xf32>
    %969 = vector.broadcast %966 : vector<1x256xf32> to vector<8x256xf32>
    %970 = arith.mulf %968, %969 : vector<8x256xf32>
    %971 = arith.addf %963, %970 : vector<8x256xf32>
    %c1_628 = arith.constant 1 : index
    %c0_629 = arith.constant 0 : index
    %c1_630 = arith.constant 1 : index
    %c129_631 = arith.constant 129 : index
    %972 = vector.load %arg7[%c1_628, %c0_629, %c1_630, %c129_631] : memref<2x2x8x512xf32, #tpu.memory_space<vmem>>, vector<1x1x1x256xf32>
    %973 = vector.shape_cast %972 : vector<1x1x1x256xf32> to vector<1x256xf32>
    %974 = arith.mulf %973, %24 : vector<1x256xf32>
    %c0_632 = arith.constant 0 : index
    %c89 = arith.constant 89 : index
    %975 = vector.load %arg4[%c0_632, %c89] : memref<8x128xf32, #tpu.memory_space<vmem>>, vector<8x1xf32>
    %976 = vector.broadcast %975 : vector<8x1xf32> to vector<8x256xf32>
    %977 = vector.broadcast %974 : vector<1x256xf32> to vector<8x256xf32>
    %978 = arith.mulf %976, %977 : vector<8x256xf32>
    %979 = arith.addf %971, %978 : vector<8x256xf32>
    %c1_633 = arith.constant 1 : index
    %c0_634 = arith.constant 0 : index
    %c2_635 = arith.constant 2 : index
    %c129_636 = arith.constant 129 : index
    %980 = vector.load %arg7[%c1_633, %c0_634, %c2_635, %c129_636] : memref<2x2x8x512xf32, #tpu.memory_space<vmem>>, vector<1x1x1x256xf32>
    %981 = vector.shape_cast %980 : vector<1x1x1x256xf32> to vector<1x256xf32>
    %982 = arith.mulf %981, %24 : vector<1x256xf32>
    %c0_637 = arith.constant 0 : index
    %c90 = arith.constant 90 : index
    %983 = vector.load %arg4[%c0_637, %c90] : memref<8x128xf32, #tpu.memory_space<vmem>>, vector<8x1xf32>
    %984 = vector.broadcast %983 : vector<8x1xf32> to vector<8x256xf32>
    %985 = vector.broadcast %982 : vector<1x256xf32> to vector<8x256xf32>
    %986 = arith.mulf %984, %985 : vector<8x256xf32>
    %987 = arith.addf %979, %986 : vector<8x256xf32>
    %c1_638 = arith.constant 1 : index
    %c0_639 = arith.constant 0 : index
    %c3_640 = arith.constant 3 : index
    %c129_641 = arith.constant 129 : index
    %988 = vector.load %arg7[%c1_638, %c0_639, %c3_640, %c129_641] : memref<2x2x8x512xf32, #tpu.memory_space<vmem>>, vector<1x1x1x256xf32>
    %989 = vector.shape_cast %988 : vector<1x1x1x256xf32> to vector<1x256xf32>
    %990 = arith.mulf %989, %24 : vector<1x256xf32>
    %c0_642 = arith.constant 0 : index
    %c91 = arith.constant 91 : index
    %991 = vector.load %arg4[%c0_642, %c91] : memref<8x128xf32, #tpu.memory_space<vmem>>, vector<8x1xf32>
    %992 = vector.broadcast %991 : vector<8x1xf32> to vector<8x256xf32>
    %993 = vector.broadcast %990 : vector<1x256xf32> to vector<8x256xf32>
    %994 = arith.mulf %992, %993 : vector<8x256xf32>
    %995 = arith.addf %987, %994 : vector<8x256xf32>
    %c1_643 = arith.constant 1 : index
    %c0_644 = arith.constant 0 : index
    %c4_645 = arith.constant 4 : index
    %c129_646 = arith.constant 129 : index
    %996 = vector.load %arg7[%c1_643, %c0_644, %c4_645, %c129_646] : memref<2x2x8x512xf32, #tpu.memory_space<vmem>>, vector<1x1x1x256xf32>
    %997 = vector.shape_cast %996 : vector<1x1x1x256xf32> to vector<1x256xf32>
    %998 = arith.mulf %997, %24 : vector<1x256xf32>
    %c0_647 = arith.constant 0 : index
    %c92 = arith.constant 92 : index
    %999 = vector.load %arg4[%c0_647, %c92] : memref<8x128xf32, #tpu.memory_space<vmem>>, vector<8x1xf32>
    %1000 = vector.broadcast %999 : vector<8x1xf32> to vector<8x256xf32>
    %1001 = vector.broadcast %998 : vector<1x256xf32> to vector<8x256xf32>
    %1002 = arith.mulf %1000, %1001 : vector<8x256xf32>
    %1003 = arith.addf %995, %1002 : vector<8x256xf32>
    %c1_648 = arith.constant 1 : index
    %c0_649 = arith.constant 0 : index
    %c5_650 = arith.constant 5 : index
    %c129_651 = arith.constant 129 : index
    %1004 = vector.load %arg7[%c1_648, %c0_649, %c5_650, %c129_651] : memref<2x2x8x512xf32, #tpu.memory_space<vmem>>, vector<1x1x1x256xf32>
    %1005 = vector.shape_cast %1004 : vector<1x1x1x256xf32> to vector<1x256xf32>
    %1006 = arith.mulf %1005, %24 : vector<1x256xf32>
    %c0_652 = arith.constant 0 : index
    %c93 = arith.constant 93 : index
    %1007 = vector.load %arg4[%c0_652, %c93] : memref<8x128xf32, #tpu.memory_space<vmem>>, vector<8x1xf32>
    %1008 = vector.broadcast %1007 : vector<8x1xf32> to vector<8x256xf32>
    %1009 = vector.broadcast %1006 : vector<1x256xf32> to vector<8x256xf32>
    %1010 = arith.mulf %1008, %1009 : vector<8x256xf32>
    %1011 = arith.addf %1003, %1010 : vector<8x256xf32>
    %c1_653 = arith.constant 1 : index
    %c0_654 = arith.constant 0 : index
    %c6_655 = arith.constant 6 : index
    %c129_656 = arith.constant 129 : index
    %1012 = vector.load %arg7[%c1_653, %c0_654, %c6_655, %c129_656] : memref<2x2x8x512xf32, #tpu.memory_space<vmem>>, vector<1x1x1x256xf32>
    %1013 = vector.shape_cast %1012 : vector<1x1x1x256xf32> to vector<1x256xf32>
    %1014 = arith.mulf %1013, %24 : vector<1x256xf32>
    %c0_657 = arith.constant 0 : index
    %c94 = arith.constant 94 : index
    %1015 = vector.load %arg4[%c0_657, %c94] : memref<8x128xf32, #tpu.memory_space<vmem>>, vector<8x1xf32>
    %1016 = vector.broadcast %1015 : vector<8x1xf32> to vector<8x256xf32>
    %1017 = vector.broadcast %1014 : vector<1x256xf32> to vector<8x256xf32>
    %1018 = arith.mulf %1016, %1017 : vector<8x256xf32>
    %1019 = arith.addf %1011, %1018 : vector<8x256xf32>
    %c1_658 = arith.constant 1 : index
    %c0_659 = arith.constant 0 : index
    %c7_660 = arith.constant 7 : index
    %c129_661 = arith.constant 129 : index
    %1020 = vector.load %arg7[%c1_658, %c0_659, %c7_660, %c129_661] : memref<2x2x8x512xf32, #tpu.memory_space<vmem>>, vector<1x1x1x256xf32>
    %1021 = vector.shape_cast %1020 : vector<1x1x1x256xf32> to vector<1x256xf32>
    %1022 = arith.mulf %1021, %24 : vector<1x256xf32>
    %c0_662 = arith.constant 0 : index
    %c95 = arith.constant 95 : index
    %1023 = vector.load %arg4[%c0_662, %c95] : memref<8x128xf32, #tpu.memory_space<vmem>>, vector<8x1xf32>
    %1024 = vector.broadcast %1023 : vector<8x1xf32> to vector<8x256xf32>
    %1025 = vector.broadcast %1022 : vector<1x256xf32> to vector<8x256xf32>
    %1026 = arith.mulf %1024, %1025 : vector<8x256xf32>
    %1027 = arith.addf %1019, %1026 : vector<8x256xf32>
    %c0_663 = arith.constant 0 : index
    %c1_664 = arith.constant 1 : index
    %c0_665 = arith.constant 0 : index
    %c143 = arith.constant 143 : index
    %1028 = vector.load %arg7[%c0_663, %c1_664, %c0_665, %c143] : memref<2x2x8x512xf32, #tpu.memory_space<vmem>>, vector<1x1x1x256xf32>
    %1029 = vector.shape_cast %1028 : vector<1x1x1x256xf32> to vector<1x256xf32>
    %1030 = arith.mulf %1029, %20 : vector<1x256xf32>
    %c0_666 = arith.constant 0 : index
    %c96 = arith.constant 96 : index
    %1031 = vector.load %arg4[%c0_666, %c96] : memref<8x128xf32, #tpu.memory_space<vmem>>, vector<8x1xf32>
    %1032 = vector.broadcast %1031 : vector<8x1xf32> to vector<8x256xf32>
    %1033 = vector.broadcast %1030 : vector<1x256xf32> to vector<8x256xf32>
    %1034 = arith.mulf %1032, %1033 : vector<8x256xf32>
    %1035 = arith.addf %1027, %1034 : vector<8x256xf32>
    %c0_667 = arith.constant 0 : index
    %c1_668 = arith.constant 1 : index
    %c1_669 = arith.constant 1 : index
    %c143_670 = arith.constant 143 : index
    %1036 = vector.load %arg7[%c0_667, %c1_668, %c1_669, %c143_670] : memref<2x2x8x512xf32, #tpu.memory_space<vmem>>, vector<1x1x1x256xf32>
    %1037 = vector.shape_cast %1036 : vector<1x1x1x256xf32> to vector<1x256xf32>
    %1038 = arith.mulf %1037, %20 : vector<1x256xf32>
    %c0_671 = arith.constant 0 : index
    %c97 = arith.constant 97 : index
    %1039 = vector.load %arg4[%c0_671, %c97] : memref<8x128xf32, #tpu.memory_space<vmem>>, vector<8x1xf32>
    %1040 = vector.broadcast %1039 : vector<8x1xf32> to vector<8x256xf32>
    %1041 = vector.broadcast %1038 : vector<1x256xf32> to vector<8x256xf32>
    %1042 = arith.mulf %1040, %1041 : vector<8x256xf32>
    %1043 = arith.addf %1035, %1042 : vector<8x256xf32>
    %c0_672 = arith.constant 0 : index
    %c1_673 = arith.constant 1 : index
    %c2_674 = arith.constant 2 : index
    %c143_675 = arith.constant 143 : index
    %1044 = vector.load %arg7[%c0_672, %c1_673, %c2_674, %c143_675] : memref<2x2x8x512xf32, #tpu.memory_space<vmem>>, vector<1x1x1x256xf32>
    %1045 = vector.shape_cast %1044 : vector<1x1x1x256xf32> to vector<1x256xf32>
    %1046 = arith.mulf %1045, %20 : vector<1x256xf32>
    %c0_676 = arith.constant 0 : index
    %c98 = arith.constant 98 : index
    %1047 = vector.load %arg4[%c0_676, %c98] : memref<8x128xf32, #tpu.memory_space<vmem>>, vector<8x1xf32>
    %1048 = vector.broadcast %1047 : vector<8x1xf32> to vector<8x256xf32>
    %1049 = vector.broadcast %1046 : vector<1x256xf32> to vector<8x256xf32>
    %1050 = arith.mulf %1048, %1049 : vector<8x256xf32>
    %1051 = arith.addf %1043, %1050 : vector<8x256xf32>
    %c0_677 = arith.constant 0 : index
    %c1_678 = arith.constant 1 : index
    %c3_679 = arith.constant 3 : index
    %c143_680 = arith.constant 143 : index
    %1052 = vector.load %arg7[%c0_677, %c1_678, %c3_679, %c143_680] : memref<2x2x8x512xf32, #tpu.memory_space<vmem>>, vector<1x1x1x256xf32>
    %1053 = vector.shape_cast %1052 : vector<1x1x1x256xf32> to vector<1x256xf32>
    %1054 = arith.mulf %1053, %20 : vector<1x256xf32>
    %c0_681 = arith.constant 0 : index
    %c99 = arith.constant 99 : index
    %1055 = vector.load %arg4[%c0_681, %c99] : memref<8x128xf32, #tpu.memory_space<vmem>>, vector<8x1xf32>
    %1056 = vector.broadcast %1055 : vector<8x1xf32> to vector<8x256xf32>
    %1057 = vector.broadcast %1054 : vector<1x256xf32> to vector<8x256xf32>
    %1058 = arith.mulf %1056, %1057 : vector<8x256xf32>
    %1059 = arith.addf %1051, %1058 : vector<8x256xf32>
    %c0_682 = arith.constant 0 : index
    %c1_683 = arith.constant 1 : index
    %c4_684 = arith.constant 4 : index
    %c143_685 = arith.constant 143 : index
    %1060 = vector.load %arg7[%c0_682, %c1_683, %c4_684, %c143_685] : memref<2x2x8x512xf32, #tpu.memory_space<vmem>>, vector<1x1x1x256xf32>
    %1061 = vector.shape_cast %1060 : vector<1x1x1x256xf32> to vector<1x256xf32>
    %1062 = arith.mulf %1061, %20 : vector<1x256xf32>
    %c0_686 = arith.constant 0 : index
    %c100 = arith.constant 100 : index
    %1063 = vector.load %arg4[%c0_686, %c100] : memref<8x128xf32, #tpu.memory_space<vmem>>, vector<8x1xf32>
    %1064 = vector.broadcast %1063 : vector<8x1xf32> to vector<8x256xf32>
    %1065 = vector.broadcast %1062 : vector<1x256xf32> to vector<8x256xf32>
    %1066 = arith.mulf %1064, %1065 : vector<8x256xf32>
    %1067 = arith.addf %1059, %1066 : vector<8x256xf32>
    %c0_687 = arith.constant 0 : index
    %c1_688 = arith.constant 1 : index
    %c5_689 = arith.constant 5 : index
    %c143_690 = arith.constant 143 : index
    %1068 = vector.load %arg7[%c0_687, %c1_688, %c5_689, %c143_690] : memref<2x2x8x512xf32, #tpu.memory_space<vmem>>, vector<1x1x1x256xf32>
    %1069 = vector.shape_cast %1068 : vector<1x1x1x256xf32> to vector<1x256xf32>
    %1070 = arith.mulf %1069, %20 : vector<1x256xf32>
    %c0_691 = arith.constant 0 : index
    %c101 = arith.constant 101 : index
    %1071 = vector.load %arg4[%c0_691, %c101] : memref<8x128xf32, #tpu.memory_space<vmem>>, vector<8x1xf32>
    %1072 = vector.broadcast %1071 : vector<8x1xf32> to vector<8x256xf32>
    %1073 = vector.broadcast %1070 : vector<1x256xf32> to vector<8x256xf32>
    %1074 = arith.mulf %1072, %1073 : vector<8x256xf32>
    %1075 = arith.addf %1067, %1074 : vector<8x256xf32>
    %c0_692 = arith.constant 0 : index
    %c1_693 = arith.constant 1 : index
    %c6_694 = arith.constant 6 : index
    %c143_695 = arith.constant 143 : index
    %1076 = vector.load %arg7[%c0_692, %c1_693, %c6_694, %c143_695] : memref<2x2x8x512xf32, #tpu.memory_space<vmem>>, vector<1x1x1x256xf32>
    %1077 = vector.shape_cast %1076 : vector<1x1x1x256xf32> to vector<1x256xf32>
    %1078 = arith.mulf %1077, %20 : vector<1x256xf32>
    %c0_696 = arith.constant 0 : index
    %c102 = arith.constant 102 : index
    %1079 = vector.load %arg4[%c0_696, %c102] : memref<8x128xf32, #tpu.memory_space<vmem>>, vector<8x1xf32>
    %1080 = vector.broadcast %1079 : vector<8x1xf32> to vector<8x256xf32>
    %1081 = vector.broadcast %1078 : vector<1x256xf32> to vector<8x256xf32>
    %1082 = arith.mulf %1080, %1081 : vector<8x256xf32>
    %1083 = arith.addf %1075, %1082 : vector<8x256xf32>
    %c0_697 = arith.constant 0 : index
    %c1_698 = arith.constant 1 : index
    %c7_699 = arith.constant 7 : index
    %c143_700 = arith.constant 143 : index
    %1084 = vector.load %arg7[%c0_697, %c1_698, %c7_699, %c143_700] : memref<2x2x8x512xf32, #tpu.memory_space<vmem>>, vector<1x1x1x256xf32>
    %1085 = vector.shape_cast %1084 : vector<1x1x1x256xf32> to vector<1x256xf32>
    %1086 = arith.mulf %1085, %20 : vector<1x256xf32>
    %c0_701 = arith.constant 0 : index
    %c103 = arith.constant 103 : index
    %1087 = vector.load %arg4[%c0_701, %c103] : memref<8x128xf32, #tpu.memory_space<vmem>>, vector<8x1xf32>
    %1088 = vector.broadcast %1087 : vector<8x1xf32> to vector<8x256xf32>
    %1089 = vector.broadcast %1086 : vector<1x256xf32> to vector<8x256xf32>
    %1090 = arith.mulf %1088, %1089 : vector<8x256xf32>
    %1091 = arith.addf %1083, %1090 : vector<8x256xf32>
    %c0_702 = arith.constant 0 : index
    %c0_703 = arith.constant 0 : index
    %c0_704 = arith.constant 0 : index
    %c144 = arith.constant 144 : index
    %1092 = vector.load %arg7[%c0_702, %c0_703, %c0_704, %c144] : memref<2x2x8x512xf32, #tpu.memory_space<vmem>>, vector<1x1x1x256xf32>
    %1093 = vector.shape_cast %1092 : vector<1x1x1x256xf32> to vector<1x256xf32>
    %c0_705 = arith.constant 0 : index
    %c104 = arith.constant 104 : index
    %1094 = vector.load %arg4[%c0_705, %c104] : memref<8x128xf32, #tpu.memory_space<vmem>>, vector<8x1xf32>
    %1095 = vector.broadcast %1094 : vector<8x1xf32> to vector<8x256xf32>
    %1096 = vector.broadcast %1093 : vector<1x256xf32> to vector<8x256xf32>
    %1097 = arith.mulf %1095, %1096 : vector<8x256xf32>
    %1098 = arith.addf %1091, %1097 : vector<8x256xf32>
    %c0_706 = arith.constant 0 : index
    %c0_707 = arith.constant 0 : index
    %c1_708 = arith.constant 1 : index
    %c144_709 = arith.constant 144 : index
    %1099 = vector.load %arg7[%c0_706, %c0_707, %c1_708, %c144_709] : memref<2x2x8x512xf32, #tpu.memory_space<vmem>>, vector<1x1x1x256xf32>
    %1100 = vector.shape_cast %1099 : vector<1x1x1x256xf32> to vector<1x256xf32>
    %c0_710 = arith.constant 0 : index
    %c105 = arith.constant 105 : index
    %1101 = vector.load %arg4[%c0_710, %c105] : memref<8x128xf32, #tpu.memory_space<vmem>>, vector<8x1xf32>
    %1102 = vector.broadcast %1101 : vector<8x1xf32> to vector<8x256xf32>
    %1103 = vector.broadcast %1100 : vector<1x256xf32> to vector<8x256xf32>
    %1104 = arith.mulf %1102, %1103 : vector<8x256xf32>
    %1105 = arith.addf %1098, %1104 : vector<8x256xf32>
    %c0_711 = arith.constant 0 : index
    %c0_712 = arith.constant 0 : index
    %c2_713 = arith.constant 2 : index
    %c144_714 = arith.constant 144 : index
    %1106 = vector.load %arg7[%c0_711, %c0_712, %c2_713, %c144_714] : memref<2x2x8x512xf32, #tpu.memory_space<vmem>>, vector<1x1x1x256xf32>
    %1107 = vector.shape_cast %1106 : vector<1x1x1x256xf32> to vector<1x256xf32>
    %c0_715 = arith.constant 0 : index
    %c106 = arith.constant 106 : index
    %1108 = vector.load %arg4[%c0_715, %c106] : memref<8x128xf32, #tpu.memory_space<vmem>>, vector<8x1xf32>
    %1109 = vector.broadcast %1108 : vector<8x1xf32> to vector<8x256xf32>
    %1110 = vector.broadcast %1107 : vector<1x256xf32> to vector<8x256xf32>
    %1111 = arith.mulf %1109, %1110 : vector<8x256xf32>
    %1112 = arith.addf %1105, %1111 : vector<8x256xf32>
    %c0_716 = arith.constant 0 : index
    %c0_717 = arith.constant 0 : index
    %c3_718 = arith.constant 3 : index
    %c144_719 = arith.constant 144 : index
    %1113 = vector.load %arg7[%c0_716, %c0_717, %c3_718, %c144_719] : memref<2x2x8x512xf32, #tpu.memory_space<vmem>>, vector<1x1x1x256xf32>
    %1114 = vector.shape_cast %1113 : vector<1x1x1x256xf32> to vector<1x256xf32>
    %c0_720 = arith.constant 0 : index
    %c107 = arith.constant 107 : index
    %1115 = vector.load %arg4[%c0_720, %c107] : memref<8x128xf32, #tpu.memory_space<vmem>>, vector<8x1xf32>
    %1116 = vector.broadcast %1115 : vector<8x1xf32> to vector<8x256xf32>
    %1117 = vector.broadcast %1114 : vector<1x256xf32> to vector<8x256xf32>
    %1118 = arith.mulf %1116, %1117 : vector<8x256xf32>
    %1119 = arith.addf %1112, %1118 : vector<8x256xf32>
    %c0_721 = arith.constant 0 : index
    %c0_722 = arith.constant 0 : index
    %c4_723 = arith.constant 4 : index
    %c144_724 = arith.constant 144 : index
    %1120 = vector.load %arg7[%c0_721, %c0_722, %c4_723, %c144_724] : memref<2x2x8x512xf32, #tpu.memory_space<vmem>>, vector<1x1x1x256xf32>
    %1121 = vector.shape_cast %1120 : vector<1x1x1x256xf32> to vector<1x256xf32>
    %c0_725 = arith.constant 0 : index
    %c108 = arith.constant 108 : index
    %1122 = vector.load %arg4[%c0_725, %c108] : memref<8x128xf32, #tpu.memory_space<vmem>>, vector<8x1xf32>
    %1123 = vector.broadcast %1122 : vector<8x1xf32> to vector<8x256xf32>
    %1124 = vector.broadcast %1121 : vector<1x256xf32> to vector<8x256xf32>
    %1125 = arith.mulf %1123, %1124 : vector<8x256xf32>
    %1126 = arith.addf %1119, %1125 : vector<8x256xf32>
    %c0_726 = arith.constant 0 : index
    %c0_727 = arith.constant 0 : index
    %c5_728 = arith.constant 5 : index
    %c144_729 = arith.constant 144 : index
    %1127 = vector.load %arg7[%c0_726, %c0_727, %c5_728, %c144_729] : memref<2x2x8x512xf32, #tpu.memory_space<vmem>>, vector<1x1x1x256xf32>
    %1128 = vector.shape_cast %1127 : vector<1x1x1x256xf32> to vector<1x256xf32>
    %c0_730 = arith.constant 0 : index
    %c109 = arith.constant 109 : index
    %1129 = vector.load %arg4[%c0_730, %c109] : memref<8x128xf32, #tpu.memory_space<vmem>>, vector<8x1xf32>
    %1130 = vector.broadcast %1129 : vector<8x1xf32> to vector<8x256xf32>
    %1131 = vector.broadcast %1128 : vector<1x256xf32> to vector<8x256xf32>
    %1132 = arith.mulf %1130, %1131 : vector<8x256xf32>
    %1133 = arith.addf %1126, %1132 : vector<8x256xf32>
    %c0_731 = arith.constant 0 : index
    %c0_732 = arith.constant 0 : index
    %c6_733 = arith.constant 6 : index
    %c144_734 = arith.constant 144 : index
    %1134 = vector.load %arg7[%c0_731, %c0_732, %c6_733, %c144_734] : memref<2x2x8x512xf32, #tpu.memory_space<vmem>>, vector<1x1x1x256xf32>
    %1135 = vector.shape_cast %1134 : vector<1x1x1x256xf32> to vector<1x256xf32>
    %c0_735 = arith.constant 0 : index
    %c110 = arith.constant 110 : index
    %1136 = vector.load %arg4[%c0_735, %c110] : memref<8x128xf32, #tpu.memory_space<vmem>>, vector<8x1xf32>
    %1137 = vector.broadcast %1136 : vector<8x1xf32> to vector<8x256xf32>
    %1138 = vector.broadcast %1135 : vector<1x256xf32> to vector<8x256xf32>
    %1139 = arith.mulf %1137, %1138 : vector<8x256xf32>
    %1140 = arith.addf %1133, %1139 : vector<8x256xf32>
    %c0_736 = arith.constant 0 : index
    %c0_737 = arith.constant 0 : index
    %c7_738 = arith.constant 7 : index
    %c144_739 = arith.constant 144 : index
    %1141 = vector.load %arg7[%c0_736, %c0_737, %c7_738, %c144_739] : memref<2x2x8x512xf32, #tpu.memory_space<vmem>>, vector<1x1x1x256xf32>
    %1142 = vector.shape_cast %1141 : vector<1x1x1x256xf32> to vector<1x256xf32>
    %c0_740 = arith.constant 0 : index
    %c111_741 = arith.constant 111 : index
    %1143 = vector.load %arg4[%c0_740, %c111_741] : memref<8x128xf32, #tpu.memory_space<vmem>>, vector<8x1xf32>
    %1144 = vector.broadcast %1143 : vector<8x1xf32> to vector<8x256xf32>
    %1145 = vector.broadcast %1142 : vector<1x256xf32> to vector<8x256xf32>
    %1146 = arith.mulf %1144, %1145 : vector<8x256xf32>
    %1147 = arith.addf %1140, %1146 : vector<8x256xf32>
    %c0_742 = arith.constant 0 : index
    %c1_743 = arith.constant 1 : index
    %c0_744 = arith.constant 0 : index
    %c144_745 = arith.constant 144 : index
    %1148 = vector.load %arg7[%c0_742, %c1_743, %c0_744, %c144_745] : memref<2x2x8x512xf32, #tpu.memory_space<vmem>>, vector<1x1x1x256xf32>
    %1149 = vector.shape_cast %1148 : vector<1x1x1x256xf32> to vector<1x256xf32>
    %c0_746 = arith.constant 0 : index
    %c112_747 = arith.constant 112 : index
    %1150 = vector.load %arg4[%c0_746, %c112_747] : memref<8x128xf32, #tpu.memory_space<vmem>>, vector<8x1xf32>
    %1151 = vector.broadcast %1150 : vector<8x1xf32> to vector<8x256xf32>
    %1152 = vector.broadcast %1149 : vector<1x256xf32> to vector<8x256xf32>
    %1153 = arith.mulf %1151, %1152 : vector<8x256xf32>
    %1154 = arith.addf %1147, %1153 : vector<8x256xf32>
    %c0_748 = arith.constant 0 : index
    %c1_749 = arith.constant 1 : index
    %c1_750 = arith.constant 1 : index
    %c144_751 = arith.constant 144 : index
    %1155 = vector.load %arg7[%c0_748, %c1_749, %c1_750, %c144_751] : memref<2x2x8x512xf32, #tpu.memory_space<vmem>>, vector<1x1x1x256xf32>
    %1156 = vector.shape_cast %1155 : vector<1x1x1x256xf32> to vector<1x256xf32>
    %c0_752 = arith.constant 0 : index
    %c113_753 = arith.constant 113 : index
    %1157 = vector.load %arg4[%c0_752, %c113_753] : memref<8x128xf32, #tpu.memory_space<vmem>>, vector<8x1xf32>
    %1158 = vector.broadcast %1157 : vector<8x1xf32> to vector<8x256xf32>
    %1159 = vector.broadcast %1156 : vector<1x256xf32> to vector<8x256xf32>
    %1160 = arith.mulf %1158, %1159 : vector<8x256xf32>
    %1161 = arith.addf %1154, %1160 : vector<8x256xf32>
    %c0_754 = arith.constant 0 : index
    %c1_755 = arith.constant 1 : index
    %c2_756 = arith.constant 2 : index
    %c144_757 = arith.constant 144 : index
    %1162 = vector.load %arg7[%c0_754, %c1_755, %c2_756, %c144_757] : memref<2x2x8x512xf32, #tpu.memory_space<vmem>>, vector<1x1x1x256xf32>
    %1163 = vector.shape_cast %1162 : vector<1x1x1x256xf32> to vector<1x256xf32>
    %c0_758 = arith.constant 0 : index
    %c114 = arith.constant 114 : index
    %1164 = vector.load %arg4[%c0_758, %c114] : memref<8x128xf32, #tpu.memory_space<vmem>>, vector<8x1xf32>
    %1165 = vector.broadcast %1164 : vector<8x1xf32> to vector<8x256xf32>
    %1166 = vector.broadcast %1163 : vector<1x256xf32> to vector<8x256xf32>
    %1167 = arith.mulf %1165, %1166 : vector<8x256xf32>
    %1168 = arith.addf %1161, %1167 : vector<8x256xf32>
    %c0_759 = arith.constant 0 : index
    %c1_760 = arith.constant 1 : index
    %c3_761 = arith.constant 3 : index
    %c144_762 = arith.constant 144 : index
    %1169 = vector.load %arg7[%c0_759, %c1_760, %c3_761, %c144_762] : memref<2x2x8x512xf32, #tpu.memory_space<vmem>>, vector<1x1x1x256xf32>
    %1170 = vector.shape_cast %1169 : vector<1x1x1x256xf32> to vector<1x256xf32>
    %c0_763 = arith.constant 0 : index
    %c115 = arith.constant 115 : index
    %1171 = vector.load %arg4[%c0_763, %c115] : memref<8x128xf32, #tpu.memory_space<vmem>>, vector<8x1xf32>
    %1172 = vector.broadcast %1171 : vector<8x1xf32> to vector<8x256xf32>
    %1173 = vector.broadcast %1170 : vector<1x256xf32> to vector<8x256xf32>
    %1174 = arith.mulf %1172, %1173 : vector<8x256xf32>
    %1175 = arith.addf %1168, %1174 : vector<8x256xf32>
    %c0_764 = arith.constant 0 : index
    %c1_765 = arith.constant 1 : index
    %c4_766 = arith.constant 4 : index
    %c144_767 = arith.constant 144 : index
    %1176 = vector.load %arg7[%c0_764, %c1_765, %c4_766, %c144_767] : memref<2x2x8x512xf32, #tpu.memory_space<vmem>>, vector<1x1x1x256xf32>
    %1177 = vector.shape_cast %1176 : vector<1x1x1x256xf32> to vector<1x256xf32>
    %c0_768 = arith.constant 0 : index
    %c116 = arith.constant 116 : index
    %1178 = vector.load %arg4[%c0_768, %c116] : memref<8x128xf32, #tpu.memory_space<vmem>>, vector<8x1xf32>
    %1179 = vector.broadcast %1178 : vector<8x1xf32> to vector<8x256xf32>
    %1180 = vector.broadcast %1177 : vector<1x256xf32> to vector<8x256xf32>
    %1181 = arith.mulf %1179, %1180 : vector<8x256xf32>
    %1182 = arith.addf %1175, %1181 : vector<8x256xf32>
    %c0_769 = arith.constant 0 : index
    %c1_770 = arith.constant 1 : index
    %c5_771 = arith.constant 5 : index
    %c144_772 = arith.constant 144 : index
    %1183 = vector.load %arg7[%c0_769, %c1_770, %c5_771, %c144_772] : memref<2x2x8x512xf32, #tpu.memory_space<vmem>>, vector<1x1x1x256xf32>
    %1184 = vector.shape_cast %1183 : vector<1x1x1x256xf32> to vector<1x256xf32>
    %c0_773 = arith.constant 0 : index
    %c117 = arith.constant 117 : index
    %1185 = vector.load %arg4[%c0_773, %c117] : memref<8x128xf32, #tpu.memory_space<vmem>>, vector<8x1xf32>
    %1186 = vector.broadcast %1185 : vector<8x1xf32> to vector<8x256xf32>
    %1187 = vector.broadcast %1184 : vector<1x256xf32> to vector<8x256xf32>
    %1188 = arith.mulf %1186, %1187 : vector<8x256xf32>
    %1189 = arith.addf %1182, %1188 : vector<8x256xf32>
    %c0_774 = arith.constant 0 : index
    %c1_775 = arith.constant 1 : index
    %c6_776 = arith.constant 6 : index
    %c144_777 = arith.constant 144 : index
    %1190 = vector.load %arg7[%c0_774, %c1_775, %c6_776, %c144_777] : memref<2x2x8x512xf32, #tpu.memory_space<vmem>>, vector<1x1x1x256xf32>
    %1191 = vector.shape_cast %1190 : vector<1x1x1x256xf32> to vector<1x256xf32>
    %c0_778 = arith.constant 0 : index
    %c118 = arith.constant 118 : index
    %1192 = vector.load %arg4[%c0_778, %c118] : memref<8x128xf32, #tpu.memory_space<vmem>>, vector<8x1xf32>
    %1193 = vector.broadcast %1192 : vector<8x1xf32> to vector<8x256xf32>
    %1194 = vector.broadcast %1191 : vector<1x256xf32> to vector<8x256xf32>
    %1195 = arith.mulf %1193, %1194 : vector<8x256xf32>
    %1196 = arith.addf %1189, %1195 : vector<8x256xf32>
    %c0_779 = arith.constant 0 : index
    %c1_780 = arith.constant 1 : index
    %c7_781 = arith.constant 7 : index
    %c144_782 = arith.constant 144 : index
    %1197 = vector.load %arg7[%c0_779, %c1_780, %c7_781, %c144_782] : memref<2x2x8x512xf32, #tpu.memory_space<vmem>>, vector<1x1x1x256xf32>
    %1198 = vector.shape_cast %1197 : vector<1x1x1x256xf32> to vector<1x256xf32>
    %c0_783 = arith.constant 0 : index
    %c119 = arith.constant 119 : index
    %1199 = vector.load %arg4[%c0_783, %c119] : memref<8x128xf32, #tpu.memory_space<vmem>>, vector<8x1xf32>
    %1200 = vector.broadcast %1199 : vector<8x1xf32> to vector<8x256xf32>
    %1201 = vector.broadcast %1198 : vector<1x256xf32> to vector<8x256xf32>
    %1202 = arith.mulf %1200, %1201 : vector<8x256xf32>
    %1203 = arith.addf %1196, %1202 : vector<8x256xf32>
    %c0_784 = arith.constant 0 : index
    %c0_785 = arith.constant 0 : index
    %c0_786 = arith.constant 0 : index
    %c145 = arith.constant 145 : index
    %1204 = vector.load %arg7[%c0_784, %c0_785, %c0_786, %c145] : memref<2x2x8x512xf32, #tpu.memory_space<vmem>>, vector<1x1x1x256xf32>
    %1205 = vector.shape_cast %1204 : vector<1x1x1x256xf32> to vector<1x256xf32>
    %1206 = arith.mulf %1205, %24 : vector<1x256xf32>
    %c0_787 = arith.constant 0 : index
    %c120 = arith.constant 120 : index
    %1207 = vector.load %arg4[%c0_787, %c120] : memref<8x128xf32, #tpu.memory_space<vmem>>, vector<8x1xf32>
    %1208 = vector.broadcast %1207 : vector<8x1xf32> to vector<8x256xf32>
    %1209 = vector.broadcast %1206 : vector<1x256xf32> to vector<8x256xf32>
    %1210 = arith.mulf %1208, %1209 : vector<8x256xf32>
    %1211 = arith.addf %1203, %1210 : vector<8x256xf32>
    %c0_788 = arith.constant 0 : index
    %c0_789 = arith.constant 0 : index
    %c1_790 = arith.constant 1 : index
    %c145_791 = arith.constant 145 : index
    %1212 = vector.load %arg7[%c0_788, %c0_789, %c1_790, %c145_791] : memref<2x2x8x512xf32, #tpu.memory_space<vmem>>, vector<1x1x1x256xf32>
    %1213 = vector.shape_cast %1212 : vector<1x1x1x256xf32> to vector<1x256xf32>
    %1214 = arith.mulf %1213, %24 : vector<1x256xf32>
    %c0_792 = arith.constant 0 : index
    %c121 = arith.constant 121 : index
    %1215 = vector.load %arg4[%c0_792, %c121] : memref<8x128xf32, #tpu.memory_space<vmem>>, vector<8x1xf32>
    %1216 = vector.broadcast %1215 : vector<8x1xf32> to vector<8x256xf32>
    %1217 = vector.broadcast %1214 : vector<1x256xf32> to vector<8x256xf32>
    %1218 = arith.mulf %1216, %1217 : vector<8x256xf32>
    %1219 = arith.addf %1211, %1218 : vector<8x256xf32>
    %c0_793 = arith.constant 0 : index
    %c0_794 = arith.constant 0 : index
    %c2_795 = arith.constant 2 : index
    %c145_796 = arith.constant 145 : index
    %1220 = vector.load %arg7[%c0_793, %c0_794, %c2_795, %c145_796] : memref<2x2x8x512xf32, #tpu.memory_space<vmem>>, vector<1x1x1x256xf32>
    %1221 = vector.shape_cast %1220 : vector<1x1x1x256xf32> to vector<1x256xf32>
    %1222 = arith.mulf %1221, %24 : vector<1x256xf32>
    %c0_797 = arith.constant 0 : index
    %c122 = arith.constant 122 : index
    %1223 = vector.load %arg4[%c0_797, %c122] : memref<8x128xf32, #tpu.memory_space<vmem>>, vector<8x1xf32>
    %1224 = vector.broadcast %1223 : vector<8x1xf32> to vector<8x256xf32>
    %1225 = vector.broadcast %1222 : vector<1x256xf32> to vector<8x256xf32>
    %1226 = arith.mulf %1224, %1225 : vector<8x256xf32>
    %1227 = arith.addf %1219, %1226 : vector<8x256xf32>
    %c0_798 = arith.constant 0 : index
    %c0_799 = arith.constant 0 : index
    %c3_800 = arith.constant 3 : index
    %c145_801 = arith.constant 145 : index
    %1228 = vector.load %arg7[%c0_798, %c0_799, %c3_800, %c145_801] : memref<2x2x8x512xf32, #tpu.memory_space<vmem>>, vector<1x1x1x256xf32>
    %1229 = vector.shape_cast %1228 : vector<1x1x1x256xf32> to vector<1x256xf32>
    %1230 = arith.mulf %1229, %24 : vector<1x256xf32>
    %c0_802 = arith.constant 0 : index
    %c123 = arith.constant 123 : index
    %1231 = vector.load %arg4[%c0_802, %c123] : memref<8x128xf32, #tpu.memory_space<vmem>>, vector<8x1xf32>
    %1232 = vector.broadcast %1231 : vector<8x1xf32> to vector<8x256xf32>
    %1233 = vector.broadcast %1230 : vector<1x256xf32> to vector<8x256xf32>
    %1234 = arith.mulf %1232, %1233 : vector<8x256xf32>
    %1235 = arith.addf %1227, %1234 : vector<8x256xf32>
    %c0_803 = arith.constant 0 : index
    %c0_804 = arith.constant 0 : index
    %c4_805 = arith.constant 4 : index
    %c145_806 = arith.constant 145 : index
    %1236 = vector.load %arg7[%c0_803, %c0_804, %c4_805, %c145_806] : memref<2x2x8x512xf32, #tpu.memory_space<vmem>>, vector<1x1x1x256xf32>
    %1237 = vector.shape_cast %1236 : vector<1x1x1x256xf32> to vector<1x256xf32>
    %1238 = arith.mulf %1237, %24 : vector<1x256xf32>
    %c0_807 = arith.constant 0 : index
    %c124 = arith.constant 124 : index
    %1239 = vector.load %arg4[%c0_807, %c124] : memref<8x128xf32, #tpu.memory_space<vmem>>, vector<8x1xf32>
    %1240 = vector.broadcast %1239 : vector<8x1xf32> to vector<8x256xf32>
    %1241 = vector.broadcast %1238 : vector<1x256xf32> to vector<8x256xf32>
    %1242 = arith.mulf %1240, %1241 : vector<8x256xf32>
    %1243 = arith.addf %1235, %1242 : vector<8x256xf32>
    %c0_808 = arith.constant 0 : index
    %c0_809 = arith.constant 0 : index
    %c5_810 = arith.constant 5 : index
    %c145_811 = arith.constant 145 : index
    %1244 = vector.load %arg7[%c0_808, %c0_809, %c5_810, %c145_811] : memref<2x2x8x512xf32, #tpu.memory_space<vmem>>, vector<1x1x1x256xf32>
    %1245 = vector.shape_cast %1244 : vector<1x1x1x256xf32> to vector<1x256xf32>
    %1246 = arith.mulf %1245, %24 : vector<1x256xf32>
    %c0_812 = arith.constant 0 : index
    %c125 = arith.constant 125 : index
    %1247 = vector.load %arg4[%c0_812, %c125] : memref<8x128xf32, #tpu.memory_space<vmem>>, vector<8x1xf32>
    %1248 = vector.broadcast %1247 : vector<8x1xf32> to vector<8x256xf32>
    %1249 = vector.broadcast %1246 : vector<1x256xf32> to vector<8x256xf32>
    %1250 = arith.mulf %1248, %1249 : vector<8x256xf32>
    %1251 = arith.addf %1243, %1250 : vector<8x256xf32>
    %c0_813 = arith.constant 0 : index
    %c0_814 = arith.constant 0 : index
    %c6_815 = arith.constant 6 : index
    %c145_816 = arith.constant 145 : index
    %1252 = vector.load %arg7[%c0_813, %c0_814, %c6_815, %c145_816] : memref<2x2x8x512xf32, #tpu.memory_space<vmem>>, vector<1x1x1x256xf32>
    %1253 = vector.shape_cast %1252 : vector<1x1x1x256xf32> to vector<1x256xf32>
    %1254 = arith.mulf %1253, %24 : vector<1x256xf32>
    %c0_817 = arith.constant 0 : index
    %c126 = arith.constant 126 : index
    %1255 = vector.load %arg4[%c0_817, %c126] : memref<8x128xf32, #tpu.memory_space<vmem>>, vector<8x1xf32>
    %1256 = vector.broadcast %1255 : vector<8x1xf32> to vector<8x256xf32>
    %1257 = vector.broadcast %1254 : vector<1x256xf32> to vector<8x256xf32>
    %1258 = arith.mulf %1256, %1257 : vector<8x256xf32>
    %1259 = arith.addf %1251, %1258 : vector<8x256xf32>
    %c0_818 = arith.constant 0 : index
    %c0_819 = arith.constant 0 : index
    %c7_820 = arith.constant 7 : index
    %c145_821 = arith.constant 145 : index
    %1260 = vector.load %arg7[%c0_818, %c0_819, %c7_820, %c145_821] : memref<2x2x8x512xf32, #tpu.memory_space<vmem>>, vector<1x1x1x256xf32>
    %1261 = vector.shape_cast %1260 : vector<1x1x1x256xf32> to vector<1x256xf32>
    %1262 = arith.mulf %1261, %24 : vector<1x256xf32>
    %c0_822 = arith.constant 0 : index
    %c127_823 = arith.constant 127 : index
    %1263 = vector.load %arg4[%c0_822, %c127_823] : memref<8x128xf32, #tpu.memory_space<vmem>>, vector<8x1xf32>
    %1264 = vector.broadcast %1263 : vector<8x1xf32> to vector<8x256xf32>
    %1265 = vector.broadcast %1262 : vector<1x256xf32> to vector<8x256xf32>
    %1266 = arith.mulf %1264, %1265 : vector<8x256xf32>
    %1267 = arith.addf %1259, %1266 : vector<8x256xf32>
    %c0_824 = arith.constant 0 : index
    %c0_825 = arith.constant 0 : index
    %1268 = vector.load %arg5[%c0_824, %c0_825] : memref<8x1xf32, #tpu.memory_space<vmem>>, vector<8x1xf32>
    %1269 = vector.broadcast %1268 : vector<8x1xf32> to vector<8x256xf32>
    %1270 = arith.addf %1267, %1269 : vector<8x256xf32>
    %c0_826 = arith.constant 0 : index
    %c0_827 = arith.constant 0 : index
    %c0_828 = arith.constant 0 : index
    %1271 = vector.load %arg6[%c0_826, %c0_827, %c0_828] : memref<1x8x256xf32, #tpu.memory_space<vmem>>, vector<1x8x256xf32>
    %1272 = vector.shape_cast %1271 : vector<1x8x256xf32> to vector<8x256xf32>
    %1273 = vector.shape_cast %1270 : vector<8x256xf32> to vector<1x8x256xf32>
    tpu.vector_store %arg6[%c0_826, %c0_827, %c0_828], %1273 {strides = array<i32>} : memref<1x8x256xf32, #tpu.memory_space<vmem>>, vector<1x8x256xf32>,
    return
  }
  func.func @transform_0(%arg0: i32) -> (i32, i32, i32) {
    %c0_i32 = arith.constant 0 : i32
    %c0_i32_0 = arith.constant 0 : i32
    %c0_i32_1 = arith.constant 0 : i32
    return %arg0, %c0_i32, %c0_i32_0 : i32, i32, i32
  }
  func.func @transform_1(%arg0: i32) -> (i32, i32) {
    %c0_i32 = arith.constant 0 : i32
    %c0_i32_0 = arith.constant 0 : i32
    %c0_i32_1 = arith.constant 0 : i32
    return %c0_i32, %c0_i32_0 : i32, i32
  }
  func.func @transform_2(%arg0: i32) -> (i32, i32) {
    %c0_i32 = arith.constant 0 : i32
    %c0_i32_0 = arith.constant 0 : i32
    %c0_i32_1 = arith.constant 0 : i32
    return %c0_i32, %c0_i32_0 : i32, i32
  }
  func.func @transform_3(%arg0: i32) -> (i32, i32) {
    %c0_i32 = arith.constant 0 : i32
    %c0_i32_0 = arith.constant 0 : i32
    %c0_i32_1 = arith.constant 0 : i32
    return %c0_i32, %c0_i32_0 : i32, i32
  }
  func.func @transform_4(%arg0: i32) -> (i32, i32) {
    %c0_i32 = arith.constant 0 : i32
    %c0_i32_0 = arith.constant 0 : i32
    %c0_i32_1 = arith.constant 0 : i32
    return %c0_i32, %c0_i32_0 : i32, i32
  }
  func.func @transform_5(%arg0: i32) -> (i32, i32, i32) {
    %c0_i32 = arith.constant 0 : i32
    %c0_i32_0 = arith.constant 0 : i32
    %c0_i32_1 = arith.constant 0 : i32
    return %arg0, %c0_i32, %c0_i32_0 : i32, i32, i32
  }
}

</mosaic_0001>

<bundles_post_ra>
// kernel: tpu_custom_call.1
= control target key start
LH: loop header
LB: loop body
LE: loop exit
PB: predicated region body
PF: predicated region fallthrough
CT: control target
= control target key end

     0   :  { %10 = vsyncpa [#allocation4], 0  ;;  %s10125_s0 = inlined_call_operand.hbm [shape: f32[2,4,384], index: 0, kind: input, shape index: {}]   ;;  %s10126_s1 = inlined_call_operand.vmem [shape: f32[8,36], index: 1, kind: input, shape index: {}]   ;;  %s10127_s2 = inlined_call_operand.vmem [shape: f32[8,1], index: 2, kind: input, shape index: {}]   ;;  %s10128_s3 = inlined_call_operand.vmem [shape: f32[8,128], index: 3, kind: input, shape index: {}]   ;;  %s10129_s4 = inlined_call_operand.vmem [shape: f32[8,1], index: 4, kind: input, shape index: {}]   ;;  %s10130_s5 = inlined_call_operand.hbm [shape: f32[2,8,256], index: 5, kind: output, shape index: {}]  }
   0x1   :  { %12 = vsyncpa [#allocation4 + $0x1], 0 }
   0x2   :  { %13 = vsyncpa [#allocation5], 0 }
   0x3   :  { %15 = vsyncpa [#allocation5 + $0x1], 0  ;;  %s7116_s18 = smov 0   ;;  %s7118_s19 = smov 0  }
   0x4   :  { %s7120_s20 = smov 0   ;;  %s7122_s21 = smov 0  }
   0x5 LB: > { %s7137_s22 = sadd.s32 4294967295, %s6940_s21   ;;  %s6462_s23 = sadd.s32 4294967294, %s6940_s21   ;;  %s6940_s21 = sphi %s7122_s21, %s10961_s21   ;;  %s6936_s20 = sphi %s7120_s20, %s10960_s20   ;;  %s6932_s19 = sphi %s7118_s19, %s10959_s19   ;;  %s6928_s18 = sphi %s7116_s18, %s10958_s18  }
   0x6   : > { %s7141_s24 = sadd.s32 1, %s6940_s21   ;;  %s28_s25 = sadd.s32 1, %s6936_s20 }
   0x7   : > { %s25_s26 = ssub.s32 %s6940_s21, %s7141_s24  ;;  %p35_p0 = scmp.ne.s32.totalorder %s6936_s20, %s6932_s19 }
   0x8   : > { %p26_p1 = scmp.eq.s32.totalorder %s25_s26, 0  ;;  %p36_p2 = scmp.eq.s32.totalorder %s6940_s21, 0 }
   0x9   : > { %p41_p3 = scmp.ne.s32.totalorder %s6932_s19, %s6928_s18  ;;  %p42_p4 = scmp.eq.s32.totalorder %s7137_s22, 0 }
   0xa   : > { %s7153_s27 = scalar_select %p26_p1, %s6936_s20, %s28_s25  }
   0xb   : > { %p37_p5 = por %p36_p2, %p35_p0  ;;  %p7155_p6 = por %p42_p4, %p41_p3 }
   0xc   : > { %p149_p7 = scmp.eq.s32.totalorder %s7137_s22, 1  ;;  %p155_p8 = scmp.eq.s32.totalorder %s6462_s23, 1 }
   0xd   : > { %p6499_p10 = scmp.lt.s32.totalorder %s6940_s21, 2  ;;  %s187_s6 = sand.u32 1, %s6936_s20  }
   0xe   : > { %p7162_p11 = por %p149_p7, %p35_p0  ;;  %p7166_p12 = por %p155_p8, %p41_p3 }
   0xf   : > { %s6485_s7 = smul.u32 192, %s6940_s21  ;;  %p7177_p13 = pnand %p6499_p10, %p37_p5 }
  0x10   : > { %s10360_s29 = scalar_select %p7162_p11, 1, 0 }
  0x11   : > { %s10361_s30 = scalar_select %p7166_p12, 1, 0 }
  0x12   : > { %s6484_s8 = smul.u32 12, %s187_s6  ;;  %s7175_s11 = scalar_lea.hbm %s10125_s0, %s6485_s7 }
  0x13   : > { %s188_s15 = scalar_lea.sflag [#allocation4], %s187_s6  ;;  %s6844_s16 = scalar_lea.hbm %s7175_s11, 192 }
  0x14   : > { %s191_s13 = scalar_lea.vmem [#allocation3], %s6484_s8  ;;  %p6845_p2 = scmp.ne.s32.totalorder %s7175_s11, %s6844_s16 }
  0x15   : > { %s199_s14 = sshll.u32 %s191_s13, 4  ;;  %p6846_p3 = pneg %p7177_p13  ;;  %s7182_s14 = int_to_ptr.vmem [resolvable:$true] %s199_s14 }
  0x16   : > { %s6849_s25 = scalar_lea.hbm %s10125_s0, 384  ;;  %p6850_p7 = scmp.lt.u32.totalorder %s7175_s11, %s10125_s0 }
  0x17   : > { %p6847_p4 = pnand %p6846_p3, %p6845_p2  ;;  %p6851_p8 = scmp.lt.u32.totalorder %s6849_s25, %s6844_s16 }
  0x18   : > { %p6853_p9 = scmp.lt.u32.totalorder %s6844_s16, %s7175_s11 }
  0x19   : > { %p6848_p5 = pneg %p6847_p4  ;;  %p6852_p10 = por %p6851_p8, %p6850_p7 }
  0x1b   : > { %p6854_p0 = por %p6853_p9, %p6852_p10 }
  0x1d   : > { %p6855_p1 = pnand %p6854_p0, %p6848_p5 }
  0x1f   : > { %6858 = shalt.err (!%p6855_p1)
}
  0x20   : > { %s6859_s6 = scalar_lea.vmem %s7182_s14, 192  ;;  %s6942_s8 = smov [#allocation3]  }
  0x21   : > { %p6860_p2 = scmp.ne.s32.totalorder %s7182_s14, %s6859_s6  ;;  %s6864_s9 = sshll.u32 %s6942_s8, 4  ;;  %s6865_s9 = int_to_ptr.vmem [resolvable:$false] %s6864_s9 }
  0x22   : > { %s6866_s10 = scalar_lea.vmem %s6865_s9, 384  ;;  %p6867_p11 = scmp.lt.s32.totalorder %s7182_s14, %s6865_s9 }
  0x23   : > { %p6862_p4 = pnand %p6860_p2, %p6846_p3  ;;  %p6868_p7 = scmp.lt.s32.totalorder %s6866_s10, %s6859_s6 }
  0x25   : > { %p6863_p12 = pneg %p6862_p4  ;;  %p6869_p8 = por %p6868_p7, %p6867_p11 }
  0x27   : > { %p6870_p9 = pnand %p6869_p8, %p6863_p12 }
  0x29   : > { %6873 = shalt.err (!%p6870_p9)
}
  0x2a   : > { %6494 = dma.hbm_to_vmem [thread:$0]  (!%p7177_p13), %s7175_s11, 192, %s7182_s14, %s188_s15  }
  0x2b   : > { %p10363_p0 = scmp.lt.s32.totalorder %s6940_s21, 3  ;;  %p10364_p1 = scmp.ge.s32.totalorder %s6940_s21, 1 }
  0x2d   : > { %p205_p3 = pnand %p10364_p1, %p10363_p0 }
  0x2f   : > { %208 = sbr.rel (%p205_p3) target bundleno = 11100 (0x2b5c), region = 40 }
  0x36   : > { %s7215_s13 = sand.u32 1, %s6932_s19  }
  0x37   : > { %s6486_s16 = smul.u32 12, %s7215_s13  ;;  %s211_s17 = scalar_lea.sflag [#allocation4], %s7215_s13 }
  0x39   : > { %s7219_s23 = scalar_lea.vmem [#allocation3], %s6486_s16 }
  0x3a   : > { %6919 = dma.done.wait (%p7155_p6), %s211_s17, 192  }
  0x3b   : > { %6921 = vsyncadd (%p7155_p6), %s211_s17, 4294967104  ;;  %v241_v0 = vlaneseq  ;;  %v10143_v1 = vmov 16   ;;  %v10141_v2 = vmov 18   ;;  %v6945_v4 = vmov 1966171168   ;;  %v7247_v12 = vld [vmem:[%s10126_s1] sm:$0xff] }
  0x3c   : > { %6675 = vset.pattern.permute.xlu1 %v10143_v1  ;;  %6677 = vset.pattern.permute.xlu0 %v10141_v2  ;;  %v303_v5 = vunpack.c.l.s4 %v6945_v4  ;;  %v10156_v6 = vmov 0.0   ;;  %v10142_v17 = vmov 17   ;;  %v10147_v19 = vmov 12   ;;  %s6949_s12 = smov 1   ;;  %s6951_s14 = smov 17   ;;  %v7273_v22 = vld [vmem:[%s10127_s2] sm:$0xff] }
  0x3d   : > { %v7227_v3 = vand.u32 127, %v241_v0  ;;  %281 = vst [vmem:[#allocation2 + $0x18] sm:$0xff] %v10156_v6  ;;  %283 = vst [vmem:[#allocation2 + $0x20] sm:$0xff] %v10156_v6  ;;  %v7239_v10 = vshrl.u32 %v241_v0, 7  ;;  %345 = vperm.xlu1 %6675, %v7247_v12   ;;  %383 = vperm.xlu0 %6677, %v7247_v12   ;;  %v10140_v21 = vmov 19   ;;  %v10160_v23 = vmov 0  }
  0x3e   : > { %284 = vst [vmem:[#allocation2 + $0x38] sm:$0xff] %v10156_v6  ;;  %286 = vst [vmem:[#allocation2 + $0x40] sm:$0xff] %v10156_v6  ;;  %v304_v9 = vunpack.c.0.s8 %v303_v5  ;;  %v10146_v24 = vmov 13   ;;  %v10144_v25 = vmov 15   ;;  %v10145_v26 = vmov 14   ;;  %s6973_s26 = smov 112  }
  0x3f   : > { %287 = vst [vmem:[#allocation2 + $0x58] sm:$0xff] %v10156_v6  ;;  %289 = vst [vmem:[#allocation2 + $0x60] sm:$0xff] %v10156_v6  ;;  %v7236_v7 = vadd.s32 128, %v7227_v3  ;;  %v10159_v8 = vand.u32 15, %v7227_v3  ;;  %v10138_v27 = vmov 21   ;;  %v10139_v28 = vmov 20  }
  0x40   : > { %v7255_v14 = vsub.s32 %v304_v9, %v7239_v10  ;;  %v10134_v29 = vmov 29   ;;  %v10137_v30 = vmov 22   ;;  %v10136_v31 = vmov 23   ;;  %v291_v45 = vld [vmem:[%s7219_s23] ss:$4 sm:$0x3] }
  0x41   : > { %v10158_v11 = vand.u32 15, %v7236_v7  ;;  %vm274_vm0 = vcmp.ne.s32.totalorder %v10159_v8, 15  ;;  %6676 = vset.pattern.permute.xlu1 %v10142_v17  ;;  %6680 = vset.pattern.permute.xlu0 %v10147_v19  ;;  %v10154_v32 = vmov 3   ;;  %v10150_v33 = vmov 9   ;;  %s6974_s7 = smov 127   ;;  %s6981_s6 = smov 111  }
  0x42   : > { %v6470_v13 = vsel %vm274_vm0, 1.0, %v10156_v6  ;;  %364 = vperm.xlu1 %6676, %v7247_v12   ;;  %v10153_v34 = vmov 5   ;;  %v6964_v35 = vmov 1   ;;  %v10152_v36 = vmov 6   ;;  %s6986_s10 = smov 113   ;;  %s6987_s16 = smov 126  }
  0x43   : > { %vm275_vm1 = vcmp.ne.s32.totalorder %v10158_v11, 15  ;;  %v10135_v37 = vmov 28   ;;  %v10133_v38 = vmov 30   ;;  %v10132_v39 = vmov 31   ;;  %s7010_s28 = smov 110   ;;  %s7084_s17 = smov 94  }
  0x44   : > { %v6471_v15 = vsel %vm275_vm1, 1.0, %v10156_v6  ;;  %v10155_v40 = vmov 2   ;;  %v10151_v41 = vmov 8   ;;  %v10149_v42 = vmov 10   ;;  %s6467_s11 = sshll.u32 %s7215_s13, 4  ;;  %s6483_s25 = sshll.u32 %s7137_s22, 8 }
  0x45   : > { %v301_v16 = vcombine.low %v6470_v13, %v6471_v15  ;;  %v7322_v43 = vsub.s32 0, %v7239_v10  ;;  %v7325_v44 = vsub.s32 1, %v7239_v10  ;;  %v6472_v46 = vld [vmem:[%s7219_s23 + $0x1] ss:$4 sm:$0x3]  ;;  %v10148_v49 = vmov 11  }
  0x46   : > { %6678 = vset.pattern.permute.xlu1 %v10140_v21  ;;  %v6473_v47 = vld [vmem:[%s7219_s23 + $0x2] ss:$4 sm:$0x3]  ;;  %v6474_v57 = vld [vmem:[%s7219_s23 + $0x3] ss:$4 sm:$0x3] }
  0x47   : > { %v308_v18 = vrot.slane %v301_v16, %v7255_v14  ;;  %402 = vperm.xlu1 %6678, %v7247_v12   ;;  %v7332_v50 = vrot.slane %v291_v45, %v7322_v43  ;;  %v7335_v51 = vrot.slane %v291_v45, %v7325_v44  ;;  %v7338_v52 = vrot.slane %v6472_v46, %v7322_v43  ;;  %p10955_p11 = scmp.ne.s32.totalorder %s10360_s29, 0  ;;  %s7085_s22 = smov [#allocation6]  }
  0x48   : > { %v7341_v53 = vrot.slane %v6472_v46, %v7325_v44  ;;  %v7344_v54 = vrot.slane %v6473_v47, %v7322_v43  ;;  %v7347_v55 = vrot.slane %v6473_v47, %v7325_v44  ;;  %v7357_v4 = vrot.slane %v6474_v57, %v7322_v43  ;;  %s6878_s9 = sshll.u32 %s7085_s22, 4  ;;  %s6879_s9 = int_to_ptr.vmem [resolvable:$false] %s6878_s9 }
  0x49   : > { %v7263_v20 = vrot.slane %v308_v18, %v7255_v14  ;;  %v7360_v5 = vrot.slane %v6474_v57, %v7325_v44  ;;  %vm335_vm2 = vcmask 138240   ;;  %vm319_vm3 = vcmask 7168  }
  0x4a   : > { %10366 = vst [vmem:[#allocation10_spill] sm:$0xff] %v7347_v55  ;;  %10367 = vst [vmem:[#allocation11_spill] sm:$0xff] %v7357_v4  ;;  %vm498_vm4 = vcmask 1039360   ;;  %vm697_vm7 = vcmask 916480   ;;  %vm1072_vm8 = vcmask 908288   ;;  %vm2140_vm9 = vcmask 924672  }
  0x4b   : > { %10365 = vst [vmem:[#allocation9_spill] sm:$0xff] %v7263_v20  ;;  %316 = vrot.lane.b32.xlu0 %v7263_v20, %s6949_s12  ;;  %6679 = vset.pattern.permute.xlu1 %v10160_v23  ;;  %10368 = vst [vmem:[#allocation12_spill] sm:$0xff] %v7360_v5  ;;  %vm4944_vm10 = vcmask 121856   ;;  %vm2178_vm11 = vcmask 1031168   ;;  %vm3407_vm12 = vcmask 900096   ;;  %vm4982_vm13 = vcmask 785408  }
  0x4c   : > { %423 = vperm.xlu1 %6679, %v7273_v22   ;;  %vm5332_vm14 = vcmask 777216   ;;  %vm5991_vm15 = vcmask 769024   ;;  %s240_s12 = scalar_lea.vmem [#allocation6], %s6467_s11 }
  0x4d   : > { %s6347_s15 = sshll.u32 %s240_s12, 4  ;;  %s10082_s15 = int_to_ptr.vmem [resolvable:$true] %s6347_s15 }
  0x4e   : > { %s6874_s8 = scalar_lea.vmem %s10082_s15, 256  ;;  %p6881_p5 = scmp.lt.s32.totalorder %s10082_s15, %s6879_s9 }
  0x4f   : > { %332 = vrot.lane.b32.xlu0 %v7263_v20, %s6951_s14  ;;  %p6875_p6 = scmp.ne.s32.totalorder %s10082_s15, %s6874_s8 }
  0x50   : > { %6681 = vset.pattern.permute.xlu1 %v10146_v24  ;;  %v7447_v24 = vld [vmem:[%s7219_s23 + $0x3] ss:$4 sm:$0x7] }
  0x51   : > { %443 = vperm.xlu1 %6681, %v7247_v12   ;;  %p6876_p12 = pnand %p6875_p6, %p10955_p11 }
  0x53   : > { %435 = vperm.xlu0 %6680, %v7247_v12   ;;  %p6877_p13 = pneg %p6876_p12 }
  0x55   : > { %6682 = vset.pattern.permute.xlu1 %v10145_v26 }
  0x56   : > { %451 = vperm.xlu1 %6682, %v7247_v12  }
  0x57   : > { %6683 = vset.pattern.permute.xlu0 %v10144_v25 }
  0x58   : > { %459 = vperm.xlu0 %6683, %v7247_v12  }
  0x5a   : > { %6684 = vset.pattern.permute.xlu1 %v10139_v28 }
  0x5b   : > { %467 = vperm.xlu1 %6684, %v7247_v12  }
  0x5c   : > { %6685 = vset.pattern.permute.xlu0 %v10138_v27 }
  0x5d   : > { %506 = vperm.xlu0 %6685, %v7247_v12  }
  0x5f   : > { %6686 = vset.pattern.permute.xlu1 %v10137_v30  ;;  %v7420_v30 = vld [vmem:[%s7219_s23 + $0x2] ss:$4 sm:$0x7] }
  0x60   : > { %544 = vperm.xlu1 %6686, %v7247_v12   ;;  %v7427_v28 = vrot.slane %v7420_v30, %v7322_v43 }
  0x61   : > { %6692 = vset.pattern.permute.xlu0 %v10134_v29 }
  0x62   : > { %705 = vperm.xlu0 %6692, %v7247_v12  }
  0x64   : > { %6687 = vset.pattern.permute.xlu1 %v10136_v31 }
  0x65   : > { %582 = vperm.xlu1 %6687, %v7247_v12  }
  0x66   : > { %6696 = vset.pattern.permute.xlu0 %v10160_v23 }
  0x67   : > { %833 = vperm.xlu0 %6696, %v7247_v12  }
  0x69   : > { %6688 = vset.pattern.permute.xlu1 %v10160_v23 }
  0x6a   : > { %622 = vperm.xlu1 %6688, %v7273_v22  }
  0x6b   : > { %6699 = vset.pattern.permute.xlu0 %v10154_v32 }
  0x6c   : > { %857 = vperm.xlu0 %6699, %v7247_v12  }
  0x6e   : > { %6689 = vset.pattern.permute.xlu1 %v10153_v34 }
  0x6f   : > { %642 = vperm.xlu1 %6689, %v7247_v12  }
  0x70   : > { %6701 = vset.pattern.permute.xlu0 %v10150_v33 }
  0x71   : > { %887 = vperm.xlu0 %6701, %v7247_v12  }
  0x73   : > { %6690 = vset.pattern.permute.xlu1 %v10152_v36 }
  0x74   : > { %650 = vperm.xlu1 %6690, %v7247_v12  }
  0x75   : > { %6713 = vset.pattern.permute.xlu0 %v6964_v35 }
  0x78   : > { %6691 = vset.pattern.permute.xlu1 %v10135_v37 }
  0x79   : > { %666 = vperm.xlu1 %6691, %v7247_v12  }
  0x7d   : > { %6693 = vset.pattern.permute.xlu1 %v10133_v38 }
  0x7e   : > { %743 = vperm.xlu1 %6693, %v7247_v12  }
  0x82   : > { %6694 = vset.pattern.permute.xlu1 %v10132_v39 }
  0x83   : > { %781 = vperm.xlu1 %6694, %v7247_v12  }
  0x87   : > { %6695 = vset.pattern.permute.xlu1 %v10160_v23 }
  0x88   : > { %821 = vperm.xlu1 %6695, %v7273_v22  }
  0x8c   : > { %6697 = vset.pattern.permute.xlu1 %v6964_v35 }
  0x8d   : > { %841 = vperm.xlu1 %6697, %v7247_v12  }
  0x91   : > { %6698 = vset.pattern.permute.xlu1 %v10155_v40 }
  0x92   : > { %849 = vperm.xlu1 %6698, %v7247_v12  }
  0x96   : > { %6700 = vset.pattern.permute.xlu1 %v10151_v41  ;;  %v7473_v41 = vrot.slane %v7447_v24, %v7325_v44 }
  0x97   : > { %865 = vperm.xlu1 %6700, %v7247_v12  }
  0x9b   : > { %6702 = vset.pattern.permute.xlu1 %v10149_v42 }
  0x9c   : > { %909 = vperm.xlu1 %6702, %v7247_v12  }
  0xa0   : > { %6703 = vset.pattern.permute.xlu1 %v10148_v49 }
  0xbc   : > { %v346_v48 = vpop.permute.xlu1 %345  ;;  %v384_v56 = vpop.permute.xlu0 %383 }
  0xbd   : > { %v359_v58 = vmul.f32 %v7332_v50, %v346_v48  ;;  %v360_v59 = vmul.f32 %v7335_v51, %v346_v48  ;;  %v397_v63 = vmul.f32 %v7344_v54, %v384_v56  ;;  %v398_v0 = vmul.f32 %v7347_v55, %v384_v56 }
  0xc1   : > { %v365_v60 = vpop.permute.xlu1 %364 }
  0xc2   : > { %v378_v61 = vmul.f32 %v7338_v52, %v365_v60  ;;  %v379_v62 = vmul.f32 %v7341_v53, %v365_v60 }
  0xc4   : > { %v380_v9 = vadd.f32 %v378_v61, %v359_v58  ;;  %v381_v13 = vadd.f32 %v379_v62, %v360_v59  ;;  %v317_v61 = vpop.permute.xlu0 %316 }
  0xc5   : > { %v318_v26 = vrot.slane %v317_v61, 7 }
  0xc6   : > { %v399_v15 = vadd.f32 %v397_v63, %v380_v9  ;;  %v400_v16 = vadd.f32 %v398_v0, %v381_v13  ;;  %v403_v18 = vpop.permute.xlu1 %402 }
  0xc7   : > { %v416_v35 = vmul.f32 %v7357_v4, %v403_v18  ;;  %v417_v45 = vmul.f32 %v7360_v5, %v403_v18  ;;  %v7461_v49 = vsel %vm319_vm3, %v318_v26, %v317_v61 }
  0xc8   : > { %v333_v63 = vpop.permute.xlu0 %332  ;;  %10373 = vst [vmem:[#allocation17_spill] sm:$0xff] %v7461_v49 }
  0xc9   : > { %v418_v46 = vadd.f32 %v416_v35, %v399_v15  ;;  %v419_v47 = vadd.f32 %v417_v45, %v400_v16  ;;  %v334_v13 = vrot.slane %v333_v63, 7 }
  0xcb   : > { %v424_v48 = vpop.permute.xlu1 %423 }
  0xcc   : > { %v426_v60 = vadd.f32 %v424_v48, %v418_v46  ;;  %v427_v56 = vadd.f32 %v424_v48, %v419_v47  ;;  %v7393_v47 = vld [vmem:[%s7219_s23] ss:$4 sm:$0x7]  ;;  %v7396_v48 = vsub.s32 2, %v7239_v10 }
  0xcd   : > { %v322_v26 = vmul.f32 %v7461_v49, %v7393_v47 }
  0xce   : > { %v428_v39 = vmax.f32 %v426_v60, 0.0  ;;  %v429_v38 = vmax.f32 %v427_v56, 0.0  ;;  %v7400_v60 = vrot.slane %v7393_v47, %v7325_v44  ;;  %v7404_v56 = vrot.slane %v7393_v47, %v7322_v43 }
  0xcf   : > { %v7417_v37 = vrot.slane %v7393_v47, %v7396_v48  ;;  %v7440_v1 = vrot.slane %v7420_v30, %v7396_v48  ;;  %v482_v34 = vrot.slane %v322_v26, %v7396_v48 }
  0xd0   : > { %430 = vst [vmem:[#allocation2 + $0x8] sm:$0xff] %v428_v39  ;;  %431 = vst [vmem:[#allocation2 + $0x10] sm:$0xff] %v429_v38  ;;  %v7364_v57 = vpop.permute.xlu1 %443  ;;  %v7379_v38 = vsel %vm335_vm2, %v334_v13, %v333_v63  ;;  %v7407_v63 = vld [vmem:[%s7219_s23 + $0x1] ss:$4 sm:$0x7] }
  0xd1   : > { %10369 = vst [vmem:[#allocation13_spill] sm:$0xff] %v7379_v38  ;;  %v7411_v13 = vrot.slane %v7407_v63, %v7396_v48  ;;  %v7431_v21 = vrot.slane %v7407_v63, %v7322_v43  ;;  %v7444_v25 = vrot.slane %v7407_v63, %v7325_v44 }
  0xd2   : > { %v7376_v15 = vpop.permute.xlu0 %435 }
  0xd5   : > { %v7366_v58 = vpop.permute.xlu1 %451 }
  0xd7   : > { %v7381_v39 = vpop.permute.xlu0 %459  ;;  %v5299_v18 = vld [vmem:[#allocation2 + $0x8] ss:$8 sm:$0x7] }
  0xd8   : > { %v7386_v35 = vmul.f32 %v5299_v18, %v7379_v38 }
  0xda   : > { %v7368_v59 = vpop.permute.xlu1 %467  ;;  %10371 = vst [vmem:[#allocation15_spill] sm:$0xff] %v7386_v35 }
  0xdc   : > { %v7390_v46 = vpop.permute.xlu0 %506 }
  0xdf   : > { %v7370_v62 = vpop.permute.xlu1 %544 }
  0xe1   : > { %v706_v31 = vpop.permute.xlu0 %705 }
  0xe2   : > { %v726_v27 = vmul.f32 %v7411_v13, %v706_v31  ;;  %v725_v19 = vmul.f32 %v7444_v25, %v706_v31 }
  0xe4   : > { %v7372_v0 = vpop.permute.xlu1 %582 }
  0xe6   : > { %v7516_v35 = vpop.permute.xlu0 %833 }
  0xe9   : > { %v7374_v9 = vpop.permute.xlu1 %622 }
  0xee   : > { %v7383_v16 = vpop.permute.xlu1 %642 }
  0xef   : > { %10370 = vst [vmem:[#allocation14_spill] sm:$0xff] %v7383_v16 }
  0xf3   : > { %v7388_v45 = vpop.permute.xlu1 %650 }
  0xf4   : > { %10372 = vst [vmem:[#allocation16_spill] sm:$0xff] %v7388_v45 }
  0xf8   : > { %v667_v18 = vpop.permute.xlu1 %666 }
  0xf9   : > { %v686_v29 = vmul.f32 %v7400_v60, %v667_v18  ;;  %v685_v10 = vmul.f32 %v7404_v56, %v667_v18  ;;  %v687_v2 = vmul.f32 %v7417_v37, %v667_v18  ;;  %v7458_v18 = vrot.slane %v7420_v30, %v7325_v44 }
  0xfb   : > { %693 = vrot.lane.b32.xlu0 %v686_v29, %s6973_s26  ;;  %691 = vrot.lane.b32.xlu1 %v685_v10, %s6973_s26  ;;  %v724_v10 = vmul.f32 %v7431_v21, %v706_v31 }
  0xfd   : > { %v744_v17 = vpop.permute.xlu1 %743 }
  0xfe   : > { %v762_v29 = vmul.f32 %v7427_v28, %v744_v17  ;;  %v763_v33 = vmul.f32 %v7458_v18, %v744_v17 }
  0xff   : > { %734 = vrot.lane.b32.xlu0 %v726_v27, %s6973_s26  ;;  %695 = vrot.lane.b32.xlu1 %v687_v2, %s6973_s26  ;;  %v764_v2 = vmul.f32 %v7440_v1, %v744_v17  ;;  %v7454_v27 = vrot.slane %v7447_v24, %v7322_v43  ;;  %v325_v17 = vmul.f32 %v7407_v63, %v7461_v49 }
 0x101   : > { %v513_v6 = vrot.slane %v325_v17, %v7322_v43  ;;  %v517_v11 = vrot.slane %v325_v17, %v7325_v44 }
 0x102   : > { %v782_v42 = vpop.permute.xlu1 %781 }
 0x103   : > { %768 = vrot.lane.b32.xlu0 %v762_v29, %s6973_s26  ;;  %730 = vrot.lane.b32.xlu1 %v724_v10, %s6973_s26  ;;  %v7465_v29 = vrot.slane %v7447_v24, %v7396_v48  ;;  %v800_v10 = vmul.f32 %v7454_v27, %v782_v42  ;;  %v801_v61 = vmul.f32 %v7473_v41, %v782_v42 }
 0x105   : > { %v802_v31 = vmul.f32 %v7465_v29, %v782_v42  ;;  %v521_v42 = vrot.slane %v325_v17, %v7396_v48 }
 0x107   : > { %772 = vrot.lane.b32.xlu0 %v764_v2, %s6973_s26  ;;  %732 = vrot.lane.b32.xlu1 %v725_v19, %s6973_s26  ;;  %v478_v19 = vrot.slane %v322_v26, %v7325_v44  ;;  %v474_v2 = vrot.slane %v322_v26, %v7322_v43  ;;  %v7495_v32 = vpop.permute.xlu1 %821 }
 0x108   : > { %10374 = vst [vmem:[#allocation18_spill] sm:$0xff] %v7495_v32 }
 0x109   : > { %v486_v36 = vmul.f32 %v474_v2, %v7368_v59 }
 0x10b   : > { %806 = vrot.lane.b32.xlu0 %v800_v10, %s6973_s26  ;;  %770 = vrot.lane.b32.xlu1 %v763_v33, %s6973_s26  ;;  %v328_v10 = vmul.f32 %v7420_v30, %v7461_v49  ;;  %v487_v33 = vmul.f32 %v478_v19, %v7368_v59 }
 0x10c   : > { %v7507_v8 = vpop.permute.xlu1 %841 }
 0x10d   : > { %v551_v40 = vrot.slane %v328_v10, %v7322_v43  ;;  %v555_v23 = vrot.slane %v328_v10, %v7325_v44 }
 0x10f   : > { %810 = vrot.lane.b32.xlu0 %v802_v31, %s6973_s26  ;;  %808 = vrot.lane.b32.xlu1 %v801_v61, %s6973_s26  ;;  %v527_v31 = vmul.f32 %v521_v42, %v7390_v46  ;;  %v488_v61 = vmul.f32 %v482_v34, %v7368_v59  ;;  %v563_v26 = vmul.f32 %v551_v40, %v7370_v62 }
 0x110   : > { %v331_v59 = vmul.f32 %v7447_v24, %v7461_v49  ;;  %v564_v49 = vmul.f32 %v555_v23, %v7370_v62 }
 0x112   : > { %v7521_v17 = vrot.slane %v331_v59, %v7322_v43 }
 0x113   : > { %494 = vrot.lane.b32.xlu0 %v487_v33, %s6974_s7  ;;  %492 = vrot.lane.b32.xlu1 %v486_v36, %s6974_s7  ;;  %v525_v33 = vmul.f32 %v513_v6, %v7390_v46  ;;  %v559_v36 = vrot.slane %v328_v10, %v7396_v48  ;;  %v7534_v10 = vrot.slane %v331_v59, %v7325_v44 }
 0x115   : > { %v602_v20 = vmul.f32 %v7534_v10, %v7372_v0 }
 0x117   : > { %535 = vrot.lane.b32.xlu0 %v527_v31, %s6974_s7  ;;  %496 = vrot.lane.b32.xlu1 %v488_v61, %s6974_s7  ;;  %v565_v31 = vmul.f32 %v559_v36, %v7370_v62  ;;  %v526_v61 = vmul.f32 %v517_v11, %v7390_v46  ;;  %v7531_v46 = vrot.slane %v331_v59, %v7396_v48 }
 0x11b   : > { %569 = vrot.lane.b32.xlu0 %v563_v26, %s6974_s7  ;;  %531 = vrot.lane.b32.xlu1 %v525_v33, %s6974_s7  ;;  %v7523_v26 = vpop.permute.xlu1 %849  ;;  %v601_v33 = vmul.f32 %v7521_v17, %v7372_v0 }
 0x11c   : > { %10375 = vst [vmem:[#allocation19_spill] sm:$0xff] %v7523_v26 }
 0x11f   : > { %573 = vrot.lane.b32.xlu0 %v565_v31, %s6974_s7  ;;  %533 = vrot.lane.b32.xlu1 %v526_v61, %s6974_s7  ;;  %v7536_v31 = vpop.permute.xlu0 %857  ;;  %v603_v61 = vmul.f32 %v7531_v46, %v7372_v0  ;;  %v866_v32 = vpop.permute.xlu1 %865 }
 0x120   : > { %10376 = vst [vmem:[#allocation20_spill] sm:$0xff] %v7536_v31  ;;  %v868_v62 = vmul.f32 %v866_v32, %v474_v2  ;;  %v870_v45 = vmul.f32 %v866_v32, %v482_v34 }
 0x123   : > { %607 = vrot.lane.b32.xlu0 %v601_v33, %s6974_s7  ;;  %571 = vrot.lane.b32.xlu1 %v564_v49, %s6974_s7  ;;  %v869_v49 = vmul.f32 %v866_v32, %v478_v19  ;;  %v888_v33 = vpop.permute.xlu0 %887  ;;  %v910_v16 = vpop.permute.xlu1 %909  ;;  %v10170_v32 = vmov 24  }
 0x124   : > { %v892_v59 = vmul.f32 %v888_v33, %v521_v42  ;;  %v912_v0 = vmul.f32 %v910_v16, %v551_v40  ;;  %v890_v31 = vmul.f32 %v888_v33, %v513_v6  ;;  %v891_v19 = vmul.f32 %v888_v33, %v517_v11 }
 0x125   : > { %v913_v2 = vmul.f32 %v910_v16, %v555_v23 }
 0x127   : > { %611 = vrot.lane.b32.xlu0 %v603_v61, %s6974_s7  ;;  %609 = vrot.lane.b32.xlu1 %v602_v20, %s6974_s7  ;;  %v914_v20 = vmul.f32 %v910_v16, %v559_v36 }
 0x12b   : > { %876 = vrot.lane.b32.xlu0 %v869_v49, %s6974_s7  ;;  %874 = vrot.lane.b32.xlu1 %v868_v62, %s6974_s7 }
 0x12f   : > { %900 = vrot.lane.b32.xlu0 %v892_v59, %s6974_s7  ;;  %878 = vrot.lane.b32.xlu1 %v870_v45, %s6974_s7  ;;  %v438_v59 = vmul.f32 %v7376_v15, %v7332_v50 }
 0x133   : > { %918 = vrot.lane.b32.xlu0 %v912_v0, %s6974_s7  ;;  %896 = vrot.lane.b32.xlu1 %v890_v31, %s6974_s7  ;;  %v439_v0 = vmul.f32 %v7376_v15, %v7335_v51  ;;  %v462_v15 = vmul.f32 %v7381_v39, %v7357_v4 }
 0x137   : > { %922 = vrot.lane.b32.xlu0 %v914_v20, %s6974_s7  ;;  %898 = vrot.lane.b32.xlu1 %v891_v19, %s6974_s7  ;;  %v446_v20 = vmul.f32 %v7364_v57, %v7338_v52  ;;  %v447_v19 = vmul.f32 %v7364_v57, %v7341_v53  ;;  %v463_v57 = vmul.f32 %v7381_v39, %v7360_v5 }
 0x13b   : > { %920 = vrot.lane.b32.xlu1 %v913_v2, %s6974_s7 }
 0x13f   : > { %931 = vperm.xlu1 %6703, %v7247_v12  }
 0x143   : > { %6704 = vset.pattern.permute.xlu1 %v10170_v32 }
 0x16d   : > { %v7555_v34 = vpop.permute.xlu0 %693  ;;  %v7557_v6 = vpop.permute.xlu1 %691 }
 0x16e   : > { %10377 = vst [vmem:[#allocation21_spill] sm:$0xff] %v7555_v34  ;;  %10378 = vst [vmem:[#allocation22_spill] sm:$0xff] %v7557_v6 }
 0x171   : > { %v7559_v40 = vpop.permute.xlu0 %734  ;;  %v7561_v45 = vpop.permute.xlu1 %695 }
 0x172   : > { %10379 = vst [vmem:[#allocation23_spill] sm:$0xff] %v7559_v40  ;;  %10380 = vst [vmem:[#allocation24_spill] sm:$0xff] %v7561_v45 }
 0x175   : > { %v7563_v11 = vpop.permute.xlu0 %768  ;;  %v7565_v42 = vpop.permute.xlu1 %730 }
 0x176   : > { %10381 = vst [vmem:[#allocation25_spill] sm:$0xff] %v7563_v11  ;;  %10382 = vst [vmem:[#allocation26_spill] sm:$0xff] %v7565_v42 }
 0x179   : > { %v7567_v23 = vpop.permute.xlu0 %772  ;;  %v7569_v16 = vpop.permute.xlu1 %732 }
 0x17a   : > { %10383 = vst [vmem:[#allocation27_spill] sm:$0xff] %v7567_v23  ;;  %10384 = vst [vmem:[#allocation28_spill] sm:$0xff] %v7569_v16  ;;  %v449_v23 = vadd.f32 %v447_v19, %v439_v0 }
 0x17d   : > { %v7571_v36 = vpop.permute.xlu0 %806  ;;  %v7573_v31 = vpop.permute.xlu1 %770 }
 0x17e   : > { %10385 = vst [vmem:[#allocation29_spill] sm:$0xff] %v7571_v36  ;;  %10386 = vst [vmem:[#allocation30_spill] sm:$0xff] %v7573_v31  ;;  %v455_v36 = vmul.f32 %v7366_v58, %v7347_v55 }
 0x180   : > { %v457_v42 = vadd.f32 %v455_v36, %v449_v23 }
 0x181   : > { %v7575_v61 = vpop.permute.xlu0 %810  ;;  %v7577_v49 = vpop.permute.xlu1 %808 }
 0x182   : > { %10387 = vst [vmem:[#allocation31_spill] sm:$0xff] %v7575_v61  ;;  %10388 = vst [vmem:[#allocation32_spill] sm:$0xff] %v7577_v49  ;;  %v454_v61 = vmul.f32 %v7366_v58, %v7344_v54  ;;  %v448_v49 = vadd.f32 %v446_v20, %v438_v59  ;;  %v465_v59 = vadd.f32 %v463_v57, %v457_v42 }
 0x184   : > { %v456_v40 = vadd.f32 %v454_v61, %v448_v49 }
 0x185   : > { %v495_v62 = vpop.permute.xlu0 %494  ;;  %v493_v33 = vpop.permute.xlu1 %492 }
 0x186   : > { %v499_v6 = vsel %vm498_vm4, %v493_v33, %v495_v62  ;;  %v464_v58 = vadd.f32 %v462_v15, %v456_v40 }
 0x188   : > { %v503_v19 = vadd.f32 %v499_v6, %v464_v58  ;;  %v6976_v58 = vmov 25  }
 0x189   : > { %v536_v2 = vpop.permute.xlu0 %535  ;;  %v497_v32 = vpop.permute.xlu1 %496 }
 0x18a   : > { %v500_v34 = vsel %vm498_vm4, %v495_v62, %v497_v32 }
 0x18b   : > { %v504_v4 = vadd.f32 %v500_v34, %v465_v59 }
 0x18d   : > { %v570_v11 = vpop.permute.xlu0 %569  ;;  %v532_v31 = vpop.permute.xlu1 %531 }
 0x191   : > { %v574_v16 = vpop.permute.xlu0 %573  ;;  %v534_v45 = vpop.permute.xlu1 %533 }
 0x192   : > { %v537_v0 = vsel %vm498_vm4, %v532_v31, %v534_v45  ;;  %v538_v20 = vsel %vm498_vm4, %v534_v45, %v536_v2 }
 0x193   : > { %v541_v49 = vadd.f32 %v537_v0, %v503_v19  ;;  %v542_v5 = vadd.f32 %v538_v20, %v504_v4  ;;  %v10186_v20 = vmov 26  }
 0x195   : > { %v608_v61 = vpop.permute.xlu0 %607  ;;  %v572_v23 = vpop.permute.xlu1 %571 }
 0x196   : > { %v575_v36 = vsel %vm498_vm4, %v570_v11, %v572_v23  ;;  %v576_v39 = vsel %vm498_vm4, %v572_v23, %v574_v16  ;;  %v10185_v23 = vmov 27  }
 0x197   : > { %v579_v55 = vadd.f32 %v575_v36, %v541_v49  ;;  %v580_v33 = vadd.f32 %v576_v39, %v542_v5  ;;  %v6979_v49 = vmov 32  }
 0x199   : > { %v612_v26 = vpop.permute.xlu0 %611  ;;  %v610_v32 = vpop.permute.xlu1 %609 }
 0x19a   : > { %v613_v40 = vsel %vm498_vm4, %v608_v61, %v610_v32  ;;  %v614_v42 = vsel %vm498_vm4, %v610_v32, %v612_v26 }
 0x19b   : > { %v617_v31 = vadd.f32 %v613_v40, %v579_v55  ;;  %v618_v45 = vadd.f32 %v614_v42, %v580_v33  ;;  %v10184_v40 = vmov 33   ;;  %v338_v42 = vmul.f32 %v7379_v38, %v7393_v47 }
 0x19c   : > { %v10183_v47 = vmov 34  }
 0x19d   : > { %v625_v34 = vadd.f32 %v7374_v9, %v617_v31  ;;  %v626_v6 = vadd.f32 %v7374_v9, %v618_v45  ;;  %v7605_v16 = vpop.permute.xlu1 %874 }
 0x19f   : > { %v627_v62 = vmax.f32 %v625_v34, 0.0  ;;  %v628_v11 = vmax.f32 %v626_v6, 0.0 }
 0x1a1   : > { %629 = vst [vmem:[#allocation2 + $0x28] sm:$0xff] %v627_v62  ;;  %630 = vst [vmem:[#allocation2 + $0x30] sm:$0xff] %v628_v11  ;;  %v7607_v4 = vpop.permute.xlu1 %878  ;;  %v339_v11 = vmul.f32 %v7407_v63, %v7379_v38  ;;  %v10182_v63 = vmov 35  }
 0x1a5   : > { %v7609_v5 = vpop.permute.xlu1 %896 }
 0x1a9   : > { %v7611_v2 = vpop.permute.xlu1 %898 }
 0x1ad   : > { %v7613_v15 = vpop.permute.xlu1 %920 }
 0x1be   : > { %v932_v55 = vpop.permute.xlu1 %931 }
 0x1bf   : > { %v935_v26 = vmul.f32 %v932_v55, %v7534_v10  ;;  %v934_v57 = vmul.f32 %v932_v55, %v7521_v17  ;;  %v936_v9 = vmul.f32 %v932_v55, %v7531_v46 }
 0x1c1   : > { %942 = vrot.lane.b32.xlu1 %v935_v26, %s6974_s7  ;;  %940 = vrot.lane.b32.xlu0 %v934_v57, %s6974_s7  ;;  %v1091_v26 = vrot.slane %v339_v11, %v7325_v44  ;;  %v1087_v57 = vrot.slane %v339_v11, %v7322_v43 }
 0x1c5   : > { %953 = vperm.xlu1 %6704, %v7247_v12   ;;  %944 = vrot.lane.b32.xlu0 %v936_v9, %s6974_s7 }
 0x1c9   : > { %6705 = vset.pattern.permute.xlu1 %v6976_v58 }
 0x233   : > { %v7623_v59 = vpop.permute.xlu1 %942 }
 0x244   : > { %v954_v0 = vpop.permute.xlu1 %953 }
 0x245   : > { %v957_v10 = vmul.f32 %v954_v0, %v7400_v60  ;;  %v956_v17 = vmul.f32 %v954_v0, %v7404_v56  ;;  %v958_v46 = vmul.f32 %v954_v0, %v7417_v37 }
 0x247   : > { %964 = vrot.lane.b32.xlu1 %v957_v10, %s6973_s26  ;;  %962 = vrot.lane.b32.xlu0 %v956_v17, %s6973_s26  ;;  %v1095_v17 = vrot.slane %v339_v11, %v7396_v48 }
 0x24b   : > { %975 = vperm.xlu1 %6705, %v7247_v12   ;;  %966 = vrot.lane.b32.xlu0 %v958_v46, %s6973_s26 }
 0x24f   : > { %6706 = vset.pattern.permute.xlu1 %v10186_v20 }
 0x2b9   : > { %v7633_v19 = vpop.permute.xlu1 %964 }
 0x2ca   : > { %v976_v61 = vpop.permute.xlu1 %975 }
 0x2cb   : > { %v979_v60 = vmul.f32 %v976_v61, %v7444_v25  ;;  %v978_v56 = vmul.f32 %v976_v61, %v7431_v21  ;;  %v980_v37 = vmul.f32 %v976_v61, %v7411_v13  ;;  %v340_v61 = vmul.f32 %v7420_v30, %v7379_v38 }
 0x2cc   : > { %v10389_v30 = vmov 0  }
 0x2cd   : > { %986 = vrot.lane.b32.xlu1 %v979_v60, %s6973_s26  ;;  %984 = vrot.lane.b32.xlu0 %v978_v56, %s6973_s26  ;;  %v1129_v56 = vrot.slane %v340_v61, %v7325_v44 }
 0x2d1   : > { %997 = vperm.xlu1 %6706, %v7247_v12   ;;  %988 = vrot.lane.b32.xlu0 %v980_v37, %s6973_s26  ;;  %v1125_v37 = vrot.slane %v340_v61, %v7322_v43 }
 0x2d5   : > { %6707 = vset.pattern.permute.xlu1 %v10185_v23 }
 0x33f   : > { %v7643_v36 = vpop.permute.xlu1 %986 }
 0x350   : > { %v998_v39 = vpop.permute.xlu1 %997 }
 0x351   : > { %v1001_v25 = vmul.f32 %v998_v39, %v7458_v18  ;;  %v1000_v21 = vmul.f32 %v998_v39, %v7427_v28  ;;  %v1002_v13 = vmul.f32 %v998_v39, %v7440_v1 }
 0x353   : > { %1008 = vrot.lane.b32.xlu1 %v1001_v25, %s6973_s26  ;;  %1006 = vrot.lane.b32.xlu0 %v1000_v21, %s6973_s26 }
 0x357   : > { %1019 = vperm.xlu1 %6707, %v7247_v12   ;;  %1010 = vrot.lane.b32.xlu0 %v1002_v13, %s6973_s26  ;;  %v1133_v13 = vrot.slane %v340_v61, %v7396_v48  ;;  %v6985_v61 = vmov 7  }
 0x35b   : > { %6708 = vset.pattern.permute.xlu1 %v6979_v49 }
 0x3c5   : > { %v7653_v33 = vpop.permute.xlu1 %1008 }
 0x3d6   : > { %v1020_v32 = vpop.permute.xlu1 %1019 }
 0x3d7   : > { %v1023_v18 = vmul.f32 %v1020_v32, %v7473_v41  ;;  %v1022_v28 = vmul.f32 %v1020_v32, %v7454_v27  ;;  %v1024_v1 = vmul.f32 %v1020_v32, %v7465_v29  ;;  %v1052_v41 = vrot.slane %v338_v42, %v7325_v44 }
 0x3d8   : > { %v1048_v27 = vrot.slane %v338_v42, %v7322_v43  ;;  %v1056_v29 = vrot.slane %v338_v42, %v7396_v48 }
 0x3d9   : > { %1030 = vrot.lane.b32.xlu1 %v1023_v18, %s6973_s26  ;;  %1028 = vrot.lane.b32.xlu0 %v1022_v28, %s6973_s26  ;;  %v10390_v18 = vand.u32 15, %v7227_v3  ;;  %v10391_v28 = vand.u32 15, %v7236_v7 }
 0x3db   : > { %vm268_vm5 = vcmp.ne.s32.totalorder %v10390_v18, 0  ;;  %vm269_vm6 = vcmp.ne.s32.totalorder %v10391_v28, 0  ;;  %v10401_v18 = vmov 11  }
 0x3dd   : > { %1041 = vperm.xlu1 %6708, %v7247_v12   ;;  %1032 = vrot.lane.b32.xlu0 %v1024_v1, %s6973_s26  ;;  %v341_v1 = vmul.f32 %v7447_v24, %v7379_v38 }
 0x3df   : > { %v1171_v7 = vrot.slane %v341_v1, %v7396_v48 }
 0x3e1   : > { %6709 = vset.pattern.permute.xlu1 %v10184_v40 }
 0x44b   : > { %v7665_v31 = vpop.permute.xlu1 %1030 }
 0x45c   : > { %v1042_v45 = vpop.permute.xlu1 %1041 }
 0x45d   : > { %v1061_v34 = vmul.f32 %v1052_v41, %v1042_v45  ;;  %v1060_v6 = vmul.f32 %v1048_v27, %v1042_v45  ;;  %v1062_v62 = vmul.f32 %v1056_v29, %v1042_v45  ;;  %v10392_v41 = vmov 0.0  }
 0x45e   : > { %v6468_v27 = vsel %vm268_vm5, 1.0, %v10392_v41  ;;  %v6469_v45 = vsel %vm269_vm6, 1.0, %v10392_v41 }
 0x45f   : > { %1068 = vrot.lane.b32.xlu1 %v1061_v34, %s6981_s6  ;;  %1066 = vrot.lane.b32.xlu0 %v1060_v6, %s6981_s6  ;;  %v1167_v34 = vrot.slane %v341_v1, %v7325_v44  ;;  %v1163_v6 = vrot.slane %v341_v1, %v7322_v43  ;;  %v1208_v29 = vcombine.low %v6468_v27, %v6469_v45  ;;  %v10402_v1 = vmov 12  }
 0x461   : > { %v1215_v24 = vrot.slane %v1208_v29, %v7255_v14 }
 0x463   : > { %1080 = vperm.xlu1 %6709, %v7247_v12   ;;  %1070 = vrot.lane.b32.xlu0 %v1062_v62, %s6981_s6 }
 0x467   : > { %6710 = vset.pattern.permute.xlu1 %v10183_v47 }
 0x4d1   : > { %v7677_v55 = vpop.permute.xlu1 %1068 }
 0x4e2   : > { %v1081_v9 = vpop.permute.xlu1 %1080 }
 0x4e3   : > { %v1100_v0 = vmul.f32 %v1091_v26, %v1081_v9  ;;  %v1099_v10 = vmul.f32 %v1087_v57, %v1081_v9  ;;  %v1101_v46 = vmul.f32 %v1095_v17, %v1081_v9  ;;  %v7718_v57 = vrot.slane %v1215_v24, %v7255_v14  ;;  %v7723_v9 = vld [vmem:[%s10128_s3] sm:$0xff] }
 0x4e4   : > { %v10394_v14 = vmov 3   ;;  %v837_v24 = vmul.f32 %v7516_v35, %v7335_v51 }
 0x4e5   : > { %1107 = vrot.lane.b32.xlu1 %v1100_v0, %s6981_s6  ;;  %1105 = vrot.lane.b32.xlu0 %v1099_v10, %s6981_s6  ;;  %v10393_v0 = vmov 2   ;;  %v6984_v10 = vmov 4  }
 0x4e9   : > { %1118 = vperm.xlu1 %6710, %v7247_v12   ;;  %1109 = vrot.lane.b32.xlu0 %v1101_v46, %s6981_s6  ;;  %v10395_v46 = vmov 5  }
 0x4ed   : > { %6711 = vset.pattern.permute.xlu1 %v10182_v63 }
 0x557   : > { %v7689_v60 = vpop.permute.xlu1 %1107 }
 0x568   : > { %v1119_v39 = vpop.permute.xlu1 %1118 }
 0x569   : > { %v1138_v25 = vmul.f32 %v1129_v56, %v1119_v39  ;;  %v1137_v21 = vmul.f32 %v1125_v37, %v1119_v39  ;;  %v1139_v32 = vmul.f32 %v1133_v13, %v1119_v39  ;;  %v10396_v56 = vmov 6  }
 0x56a   : > { %v10397_v39 = vmov 8   ;;  %v10399_v13 = vmov 10  }
 0x56b   : > { %1145 = vrot.lane.b32.xlu1 %v1138_v25, %s6981_s6  ;;  %1143 = vrot.lane.b32.xlu0 %v1137_v21, %s6981_s6  ;;  %v10398_v21 = vmov 9  }
 0x56f   : > { %1156 = vperm.xlu1 %6711, %v7247_v12   ;;  %1147 = vrot.lane.b32.xlu0 %v1139_v32, %s6981_s6 }
 0x573   : > { %6712 = vset.pattern.permute.xlu1 %v10389_v30 }
 0x5dd   : > { %v7705_v42 = vpop.permute.xlu1 %1145 }
 0x5ee   : > { %v1157_v62 = vpop.permute.xlu1 %1156 }
 0x5ef   : > { %v1176_v3 = vmul.f32 %v1167_v34, %v1157_v62  ;;  %v1175_v11 = vmul.f32 %v1163_v6, %v1157_v62  ;;  %v1177_v26 = vmul.f32 %v1171_v7, %v1157_v62  ;;  %v836_v7 = vmul.f32 %v7516_v35, %v7332_v50  ;;  %v10407_v35 = vld [vmem:[#allocation12_spill] sm:$0xff] }
 0x5f1   : > { %1183 = vrot.lane.b32.xlu1 %v1176_v3, %s6981_s6  ;;  %1181 = vrot.lane.b32.xlu0 %v1175_v11, %s6981_s6 }
 0x5f5   : > { %1196 = vperm.xlu1 %6712, %v7273_v22   ;;  %1185 = vrot.lane.b32.xlu0 %v1177_v26, %s6981_s6  ;;  %v877_v22 = vpop.permute.xlu0 %876  ;;  %v844_v26 = vmul.f32 %v7507_v8, %v7338_v52 }
 0x5f9   : > { %1232 = vperm.xlu1 %6712, %v7723_v9   ;;  %1223 = vrot.lane.b32.xlu0 %v7718_v57, %s6981_s6  ;;  %v901_v17 = vpop.permute.xlu0 %900 }
 0x5fd   : > { %6715 = vset.pattern.permute.xlu1 %v10393_v0  ;;  %1263 = vperm.xlu0 %6713, %v7723_v9   ;;  %v919_v37 = vpop.permute.xlu0 %918  ;;  %v845_v0 = vmul.f32 %v7507_v8, %v7341_v53  ;;  %v880_v8 = vsel %vm498_vm4, %v7605_v16, %v877_v22 }
 0x5fe   : > { %1294 = vperm.xlu1 %6715, %v7723_v9  }
 0x601   : > { %6714 = vset.pattern.permute.xlu0 %v6984_v10  ;;  %v923_v25 = vpop.permute.xlu0 %922 }
 0x602   : > { %6716 = vset.pattern.permute.xlu1 %v10394_v14  ;;  %634 = vperm.xlu0 %6714, %v7247_v12   ;;  %v846_v14 = vadd.f32 %v844_v26, %v836_v7  ;;  %v881_v7 = vsel %vm498_vm4, %v877_v22, %v7607_v4  ;;  %v925_v16 = vsel %vm498_vm4, %v7613_v15, %v923_v25 }
 0x603   : > { %1325 = vperm.xlu1 %6716, %v7723_v9  }
 0x605   : > { %v941_v32 = vpop.permute.xlu0 %940 }
 0x606   : > { %1356 = vperm.xlu0 %6714, %v7723_v9  }
 0x607   : > { %6718 = vset.pattern.permute.xlu1 %v10395_v46  ;;  %v847_v46 = vadd.f32 %v845_v0, %v837_v24  ;;  %v902_v0 = vsel %vm498_vm4, %v7609_v5, %v7611_v2 }
 0x608   : > { %1387 = vperm.xlu1 %6718, %v7723_v9  }
 0x609   : > { %v945_v28 = vpop.permute.xlu0 %944 }
 0x60a   : > { %6717 = vset.pattern.permute.xlu0 %v6985_v61  ;;  %v10403_v61 = vld [vmem:[#allocation19_spill] sm:$0xff]  ;;  %v947_v5 = vsel %vm498_vm4, %v7623_v59, %v945_v28 }
 0x60b   : > { %658 = vperm.xlu0 %6717, %v7247_v12   ;;  %v10400_v12 = vmov 24  }
 0x60c   : > { %6719 = vset.pattern.permute.xlu1 %v10396_v56  ;;  %v852_v56 = vmul.f32 %v10403_v61, %v7344_v54 }
 0x60d   : > { %1418 = vperm.xlu1 %6719, %v7723_v9   ;;  %v963_v41 = vpop.permute.xlu0 %962 }
 0x60e   : > { %v854_v47 = vadd.f32 %v852_v56, %v846_v14 }
 0x60f   : > { %1449 = vperm.xlu0 %6717, %v7723_v9  }
 0x611   : > { %6720 = vset.pattern.permute.xlu1 %v10397_v39  ;;  %v967_v27 = vpop.permute.xlu0 %966  ;;  %v10404_v39 = vld [vmem:[#allocation10_spill] sm:$0xff] }
 0x612   : > { %1476 = vperm.xlu1 %6720, %v7723_v9   ;;  %v969_v22 = vsel %vm697_vm7, %v7633_v19, %v967_v27 }
 0x613   : > { %6721 = vset.pattern.permute.xlu0 %v10398_v21  ;;  %v853_v21 = vmul.f32 %v10403_v61, %v10404_v39  ;;  %v903_v61 = vsel %vm498_vm4, %v7611_v2, %v901_v17 }
 0x614   : > { %1518 = vperm.xlu0 %6721, %v7723_v9  }
 0x615   : > { %v985_v45 = vpop.permute.xlu0 %984  ;;  %v855_v40 = vadd.f32 %v853_v21, %v847_v46  ;;  %v924_v46 = vsel %vm498_vm4, %v919_v37, %v7613_v15 }
 0x616   : > { %6722 = vset.pattern.permute.xlu1 %v10399_v13 }
 0x617   : > { %1560 = vperm.xlu1 %6722, %v7723_v9  }
 0x618   : > { %6736 = vset.pattern.permute.xlu0 %v10400_v12  ;;  %v10405_v12 = vld [vmem:[#allocation11_spill] sm:$0xff] }
 0x619   : > { %v989_v34 = vpop.permute.xlu0 %988 }
 0x61a   : > { %v991_v25 = vsel %vm697_vm7, %v7643_v36, %v989_v34 }
 0x61b   : > { %6723 = vset.pattern.permute.xlu1 %v10401_v18  ;;  %v10406_v18 = vld [vmem:[#allocation20_spill] sm:$0xff] }
 0x61c   : > { %1602 = vperm.xlu1 %6723, %v7723_v9   ;;  %v861_v63 = vmul.f32 %v10406_v18, %v10407_v35 }
 0x61d   : > { %v1007_v6 = vpop.permute.xlu0 %1006 }
 0x61e   : > { %v863_v26 = vadd.f32 %v861_v63, %v855_v40  ;;  %v946_v40 = vsel %vm498_vm4, %v941_v32, %v7623_v59  ;;  %v968_v63 = vsel %vm697_vm7, %v963_v41, %v7633_v19  ;;  %v1012_v28 = vsel %vm697_vm7, %v1007_v6, %v7653_v33 }
 0x620   : > { %6724 = vset.pattern.permute.xlu1 %v10402_v1  ;;  %v860_v1 = vmul.f32 %v10406_v18, %v10405_v12  ;;  %v885_v18 = vadd.f32 %v881_v7, %v863_v26 }
 0x621   : > { %v1011_v29 = vpop.permute.xlu0 %1010 }
 0x622   : > { %v862_v24 = vadd.f32 %v860_v1, %v854_v47  ;;  %v907_v4 = vadd.f32 %v903_v61, %v885_v18  ;;  %v1013_v41 = vsel %vm697_vm7, %v7653_v33, %v1011_v29 }
 0x624   : > { %v884_v20 = vadd.f32 %v880_v8, %v862_v24  ;;  %v929_v2 = vadd.f32 %v925_v16, %v907_v4 }
 0x625   : > { %v1029_v62 = vpop.permute.xlu0 %1028 }
 0x626   : > { %v906_v56 = vadd.f32 %v902_v0, %v884_v20  ;;  %v951_v37 = vadd.f32 %v947_v5, %v929_v2  ;;  %v990_v20 = vsel %vm697_vm7, %v985_v45, %v7643_v36  ;;  %v1034_v27 = vsel %vm697_vm7, %v1029_v62, %v7665_v31 }
 0x628   : > { %v928_v47 = vadd.f32 %v924_v46, %v906_v56  ;;  %v973_v59 = vadd.f32 %v969_v22, %v951_v37 }
 0x629   : > { %v1033_v3 = vpop.permute.xlu0 %1032 }
 0x62a   : > { %v950_v17 = vadd.f32 %v946_v40, %v928_v47  ;;  %v995_v1 = vadd.f32 %v991_v25, %v973_v59  ;;  %v1035_v45 = vsel %vm697_vm7, %v7665_v31, %v1033_v3 }
 0x62c   : > { %v972_v32 = vadd.f32 %v968_v63, %v950_v17  ;;  %v1017_v36 = vadd.f32 %v1013_v41, %v995_v1  ;;  %v10409_v17 = vld [vmem:[#allocation14_spill] sm:$0xff] }
 0x62d   : > { %v1067_v11 = vpop.permute.xlu0 %1066  ;;  %v645_v37 = vmul.f32 %v10409_v17, %v7338_v52 }
 0x62e   : > { %v994_v21 = vadd.f32 %v990_v20, %v972_v32  ;;  %v1073_v34 = vsel %vm1072_vm8, %v1067_v11, %v7677_v55  ;;  %v1039_v33 = vadd.f32 %v1035_v45, %v1017_v36  ;;  %v10413_v45 = vld [vmem:[#allocation22_spill] sm:$0xff]  ;;  %v10414_v36 = vld [vmem:[#allocation24_spill] sm:$0xff] }
 0x630   : > { %v1016_v8 = vadd.f32 %v1012_v28, %v994_v21  ;;  %v10411_v28 = vld [vmem:[#allocation16_spill] sm:$0xff] }
 0x631   : > { %v1071_v10 = vpop.permute.xlu0 %1070  ;;  %v653_v41 = vmul.f32 %v10411_v28, %v7344_v54  ;;  %v654_v21 = vmul.f32 %v10411_v28, %v10404_v39 }
 0x632   : > { %v1074_v6 = vsel %vm1072_vm8, %v7677_v55, %v1071_v10  ;;  %v1038_v7 = vadd.f32 %v1034_v27, %v1016_v8 }
 0x633   : > { %v1078_v26 = vadd.f32 %v1074_v6, %v1039_v33  ;;  %v10416_v33 = vld [vmem:[#allocation26_spill] sm:$0xff] }
 0x634   : > { %v1077_v62 = vadd.f32 %v1073_v34, %v1038_v7  ;;  %v10415_v7 = vld [vmem:[#allocation28_spill] sm:$0xff] }
 0x635   : > { %v1106_v13 = vpop.permute.xlu0 %1105 }
 0x636   : > { %v1111_v29 = vsel %vm1072_vm8, %v1106_v13, %v7689_v60 }
 0x637   : > { %v1115_v61 = vadd.f32 %v1111_v29, %v1077_v62  ;;  %v10417_v29 = vld [vmem:[#allocation23_spill] sm:$0xff] }
 0x639   : > { %v1110_v23 = vpop.permute.xlu0 %1109 }
 0x63a   : > { %v1112_v24 = vsel %vm1072_vm8, %v7689_v60, %v1110_v23 }
 0x63b   : > { %v1116_v55 = vadd.f32 %v1112_v24, %v1078_v26  ;;  %v10418_v26 = vld [vmem:[#allocation30_spill] sm:$0xff] }
 0x63d   : > { %v1144_v14 = vpop.permute.xlu0 %1143 }
 0x63e   : > { %v1149_v3 = vsel %vm1072_vm8, %v1144_v14, %v7705_v42 }
 0x63f   : > { %v1153_v13 = vadd.f32 %v1149_v3, %v1115_v61  ;;  %v10420_v3 = vld [vmem:[#allocation27_spill] sm:$0xff] }
 0x641   : > { %v1148_v15 = vpop.permute.xlu0 %1147 }
 0x642   : > { %v1150_v11 = vsel %vm1072_vm8, %v7705_v42, %v1148_v15  ;;  %v646_v15 = vmul.f32 %v10409_v17, %v7341_v53  ;;  %v10412_v53 = vld [vmem:[#allocation21_spill] sm:$0xff] }
 0x643   : > { %v1154_v46 = vadd.f32 %v1150_v11, %v1116_v55  ;;  %v698_v8 = vsel %vm697_vm7, %v10413_v45, %v10412_v53  ;;  %v699_v34 = vsel %vm697_vm7, %v10412_v53, %v10414_v36  ;;  %v775_v11 = vsel %vm697_vm7, %v10418_v26, %v10420_v3 }
 0x663   : > { %v1182_v19 = vpop.permute.xlu0 %1181  ;;  %v1184_v0 = vpop.permute.xlu1 %1183 }
 0x664   : > { %v1187_v10 = vsel %vm1072_vm8, %v1182_v19, %v1184_v0 }
 0x665   : > { %v1191_v16 = vadd.f32 %v1187_v10, %v1153_v13  ;;  %v10421_v10 = vld [vmem:[#allocation32_spill] sm:$0xff] }
 0x667   : > { %v1186_v31 = vpop.permute.xlu0 %1185 }
 0x668   : > { %v1188_v18 = vsel %vm1072_vm8, %v1184_v0, %v1186_v31  ;;  %v10419_v0 = vld [vmem:[#allocation25_spill] sm:$0xff] }
 0x669   : > { %v1192_v23 = vadd.f32 %v1188_v18, %v1154_v46  ;;  %v774_v31 = vsel %vm697_vm7, %v10419_v0, %v10418_v26  ;;  %v10422_v18 = vld [vmem:[#allocation29_spill] sm:$0xff]  ;;  %v10423_v46 = vld [vmem:[#allocation31_spill] sm:$0xff] }
 0x66a   : > { %v812_v13 = vsel %vm697_vm7, %v10422_v18, %v10421_v10 }
 0x66b   : > { %v7814_v47 = vpop.permute.xlu0 %1223 }
 0x674   : > { %v1197_v60 = vpop.permute.xlu1 %1196 }
 0x675   : > { %v1199_v56 = vadd.f32 %v1197_v60, %v1191_v16  ;;  %v1200_v4 = vadd.f32 %v1197_v60, %v1192_v23  ;;  %v813_v16 = vsel %vm697_vm7, %v10421_v10, %v10423_v46 }
 0x677   : > { %v1201_v40 = vmax.f32 %v1199_v56, 0.0  ;;  %v1202_v5 = vmax.f32 %v1200_v4, 0.0  ;;  %v10424_v4 = vld [vmem:[#allocation18_spill] sm:$0xff] }
 0x678   : > { %v7826_v32 = vpop.permute.xlu1 %1232 }
 0x679   : > { %1203 = vst [vmem:[#allocation2 + $0x68] sm:$0xff] %v1201_v40  ;;  %1204 = vst [vmem:[#allocation2 + $0x70] sm:$0xff] %v1202_v5 }
 0x67a   : > { %10410 = vst [vmem:[#allocation10_spill] sm:$0xff] %v7826_v32 }
 0x67c   : > { %v7816_v42 = vpop.permute.xlu0 %1263 }
 0x67d   : > { %10408 = vst [vmem:[#allocation19_spill] sm:$0xff] %v7816_v42  ;;  %v7840_v54 = vpop.permute.xlu1 %1294 }
 0x681   : > { %v635_v14 = vpop.permute.xlu0 %634 }
 0x682   : > { %v637_v63 = vmul.f32 %v635_v14, %v7332_v50  ;;  %v638_v22 = vmul.f32 %v635_v14, %v7335_v51  ;;  %v7860_v23 = vpop.permute.xlu1 %1325 }
 0x684   : > { %v647_v20 = vadd.f32 %v645_v37, %v637_v63  ;;  %v648_v25 = vadd.f32 %v646_v15, %v638_v22 }
 0x685   : > { %v7818_v2 = vpop.permute.xlu0 %1356 }
 0x686   : > { %v655_v50 = vadd.f32 %v653_v41, %v647_v20  ;;  %v656_v1 = vadd.f32 %v654_v21, %v648_v25 }
 0x687   : > { %v7864_v22 = vpop.permute.xlu1 %1387 }
 0x68a   : > { %v659_v59 = vpop.permute.xlu0 %658 }
 0x68b   : > { %v661_v51 = vmul.f32 %v659_v59, %v10405_v12  ;;  %v662_v52 = vmul.f32 %v659_v59, %v10407_v35  ;;  %v736_v12 = vsel %vm697_vm7, %v10416_v33, %v10415_v7  ;;  %v737_v35 = vsel %vm697_vm7, %v10415_v7, %v10417_v29 }
 0x68c   : > { %v7866_v17 = vpop.permute.xlu1 %1418 }
 0x68d   : > { %v663_v19 = vadd.f32 %v661_v51, %v655_v50  ;;  %v664_v27 = vadd.f32 %v662_v52, %v656_v1 }
 0x68e   : > { %v7868_v37 = vpop.permute.xlu0 %1449 }
 0x68f   : > { %v702_v6 = vadd.f32 %v698_v8, %v663_v19  ;;  %v703_v39 = vadd.f32 %v699_v34, %v664_v27 }
 0x691   : > { %v740_v24 = vadd.f32 %v736_v12, %v702_v6  ;;  %v741_v62 = vadd.f32 %v737_v35, %v703_v39  ;;  %v1477_v59 = vpop.permute.xlu1 %1476 }
 0x693   : > { %v778_v61 = vadd.f32 %v774_v31, %v740_v24  ;;  %v779_v55 = vadd.f32 %v775_v11, %v741_v62  ;;  %v1519_v51 = vpop.permute.xlu0 %1518 }
 0x695   : > { %v816_v60 = vadd.f32 %v812_v13, %v778_v61  ;;  %v817_v56 = vadd.f32 %v813_v16, %v779_v55  ;;  %v10425_v61 = vmov 13  }
 0x696   : > { %v1561_v8 = vpop.permute.xlu1 %1560 }
 0x697   : > { %v824_v40 = vadd.f32 %v10424_v4, %v816_v60  ;;  %v825_v5 = vadd.f32 %v10424_v4, %v817_v56 }
 0x699   : > { %v826_v14 = vmax.f32 %v824_v40, 0.0  ;;  %v827_v63 = vmax.f32 %v825_v5, 0.0 }
 0x69b   : > { %828 = vst [vmem:[#allocation2 + $0x48] sm:$0xff] %v826_v14  ;;  %829 = vst [vmem:[#allocation2 + $0x50] sm:$0xff] %v827_v63  ;;  %v1603_v35 = vpop.permute.xlu1 %1602 }
 0x6a2   : > { %v7870_v15 = vld [vmem:[#allocation2 + $0x40] ss:$8 sm:$0x7]  ;;  %v1516_v28 = vld [vmem:[#allocation2 + $0x41] ss:$8 sm:$0x7] }
 0x6a3   : > { %v1483_v20 = vrot.slane %v7870_v15, %v7322_v43  ;;  %v1487_v25 = vrot.slane %v7870_v15, %v7325_v44  ;;  %v1491_v50 = vrot.slane %v7870_v15, %v7396_v48  ;;  %v1558_v1 = vld [vmem:[#allocation2 + $0x42] ss:$8 sm:$0x7]  ;;  %v1533_v52 = vrot.slane %v1516_v28, %v7396_v48  ;;  %v1600_v6 = vld [vmem:[#allocation2 + $0x43] ss:$8 sm:$0x7] }
 0x6a4   : > { %v1567_v19 = vrot.slane %v1558_v1, %v7322_v43  ;;  %v1525_v45 = vrot.slane %v1516_v28, %v7322_v43  ;;  %v1575_v36 = vrot.slane %v1558_v1, %v7396_v48  ;;  %v1529_v39 = vrot.slane %v1516_v28, %v7325_v44  ;;  %v1642_v60 = vld [vmem:[#allocation2 + $0x44] ss:$8 sm:$0x7]  ;;  %v1684_v28 = vld [vmem:[#allocation2 + $0x45] ss:$8 sm:$0x7] }
 0x6a5   : > { %v1495_v41 = vmul.f32 %v1483_v20, %v1477_v59  ;;  %v1496_v21 = vmul.f32 %v1487_v25, %v1477_v59  ;;  %v1539_v27 = vmul.f32 %v1533_v52, %v1519_v51  ;;  %v1497_v53 = vmul.f32 %v1491_v50, %v1477_v59 }
 0x6a6   : > { %v1579_v34 = vmul.f32 %v1567_v19, %v1561_v8  ;;  %v1537_v7 = vmul.f32 %v1525_v45, %v1519_v51  ;;  %v1581_v33 = vmul.f32 %v1575_v36, %v1561_v8  ;;  %v1609_v12 = vrot.slane %v1600_v6, %v7322_v43  ;;  %v1726_v45 = vld [vmem:[#allocation2 + $0x46] ss:$8 sm:$0x7] }
 0x6a7   : > { %1503 = vrot.lane.b32.xlu0 %v1496_v21, %s6974_s7  ;;  %1501 = vrot.lane.b32.xlu1 %v1495_v41, %s6974_s7  ;;  %v1571_v29 = vrot.slane %v1558_v1, %v7325_v44  ;;  %v1538_v24 = vmul.f32 %v1529_v39, %v1519_v51  ;;  %v1617_v62 = vrot.slane %v1600_v6, %v7396_v48  ;;  %v10426_v25 = vmov 14  }
 0x6a8   : > { %v1621_v26 = vmul.f32 %v1609_v12, %v1603_v35  ;;  %v1613_v31 = vrot.slane %v1600_v6, %v7325_v44  ;;  %v1651_v56 = vrot.slane %v1642_v60, %v7322_v43  ;;  %v1655_v4 = vrot.slane %v1642_v60, %v7325_v44 }
 0x6a9   : > { %v1580_v0 = vmul.f32 %v1571_v29, %v1561_v8  ;;  %v1623_v3 = vmul.f32 %v1617_v62, %v1603_v35  ;;  %v1659_v63 = vrot.slane %v1642_v60, %v7396_v48  ;;  %v1693_v41 = vrot.slane %v1684_v28, %v7322_v43 }
 0x6aa   : > { %v1622_v11 = vmul.f32 %v1613_v31, %v1603_v35  ;;  %v1697_v21 = vrot.slane %v1684_v28, %v7325_v44  ;;  %v1701_v52 = vrot.slane %v1684_v28, %v7396_v48  ;;  %v1735_v8 = vrot.slane %v1726_v45, %v7322_v43  ;;  %v1768_v35 = vld [vmem:[#allocation2 + $0x47] ss:$8 sm:$0x7] }
 0x6ab   : > { %1547 = vrot.lane.b32.xlu0 %v1539_v27, %s6974_s7  ;;  %1505 = vrot.lane.b32.xlu1 %v1497_v53, %s6974_s7  ;;  %v10427_v27 = vmov 15   ;;  %v1739_v36 = vrot.slane %v1726_v45, %v7325_v44  ;;  %v10428_v12 = vmov 16   ;;  %v1781_v62 = vrot.slane %v1768_v35, %v7325_v44 }
 0x6ac   : > { %v10430_v28 = vmov 18  }
 0x6af   : > { %1585 = vrot.lane.b32.xlu0 %v1579_v34, %s6974_s7  ;;  %1543 = vrot.lane.b32.xlu1 %v1537_v7, %s6974_s7  ;;  %v1743_v7 = vrot.slane %v1726_v45, %v7396_v48 }
 0x6b3   : > { %1589 = vrot.lane.b32.xlu0 %v1581_v33, %s6974_s7  ;;  %1545 = vrot.lane.b32.xlu1 %v1538_v24, %s6974_s7  ;;  %v1777_v24 = vrot.slane %v1768_v35, %v7322_v43 }
 0x6b7   : > { %1627 = vrot.lane.b32.xlu0 %v1621_v26, %s6974_s7  ;;  %1587 = vrot.lane.b32.xlu1 %v1580_v0, %s6974_s7 }
 0x6bb   : > { %1631 = vrot.lane.b32.xlu0 %v1623_v3, %s6974_s7  ;;  %1629 = vrot.lane.b32.xlu1 %v1622_v11, %s6974_s7  ;;  %v1785_v3 = vrot.slane %v1768_v35, %v7396_v48 }
 0x6bf   : > { %1644 = vperm.xlu1 %6724, %v7723_v9  }
 0x6c3   : > { %6725 = vset.pattern.permute.xlu1 %v10425_v61  ;;  %v10429_v61 = vmov 17  }
 0x719   : > { %v7901_v55 = vpop.permute.xlu1 %1501 }
 0x71d   : > { %v7903_v10 = vpop.permute.xlu1 %1505 }
 0x721   : > { %v7905_v18 = vpop.permute.xlu1 %1543 }
 0x725   : > { %v7907_v13 = vpop.permute.xlu1 %1545 }
 0x729   : > { %v7909_v46 = vpop.permute.xlu1 %1587 }
 0x72d   : > { %v7911_v16 = vpop.permute.xlu1 %1629 }
 0x73e   : > { %v1645_v40 = vpop.permute.xlu1 %1644 }
 0x73f   : > { %v1663_v5 = vmul.f32 %v1651_v56, %v1645_v40  ;;  %v1664_v14 = vmul.f32 %v1655_v4, %v1645_v40  ;;  %v1665_v20 = vmul.f32 %v1659_v63, %v1645_v40  ;;  %v1809_v56 = vld [vmem:[#allocation2 + $0x60] ss:$8 sm:$0x7] }
 0x740   : > { %v1818_v4 = vrot.slane %v1809_v56, %v7322_v43  ;;  %v1822_v40 = vrot.slane %v1809_v56, %v7325_v44 }
 0x741   : > { %1671 = vrot.lane.b32.xlu1 %v1664_v14, %s6974_s7  ;;  %1669 = vrot.lane.b32.xlu0 %v1663_v5, %s6974_s7 }
 0x745   : > { %1686 = vperm.xlu1 %6725, %v7723_v9   ;;  %1673 = vrot.lane.b32.xlu0 %v1665_v20, %s6974_s7  ;;  %v1826_v20 = vrot.slane %v1809_v56, %v7396_v48 }
 0x749   : > { %6726 = vset.pattern.permute.xlu1 %v10426_v25 }
 0x7b3   : > { %v7921_v59 = vpop.permute.xlu1 %1671 }
 0x7c4   : > { %v1687_v50 = vpop.permute.xlu1 %1686 }
 0x7c5   : > { %v1705_v1 = vmul.f32 %v1693_v41, %v1687_v50  ;;  %v1706_v51 = vmul.f32 %v1697_v21, %v1687_v50  ;;  %v1707_v19 = vmul.f32 %v1701_v52, %v1687_v50  ;;  %v1850_v21 = vld [vmem:[#allocation2 + $0x61] ss:$8 sm:$0x7] }
 0x7c6   : > { %v1859_v50 = vrot.slane %v1850_v21, %v7322_v43 }
 0x7c7   : > { %1713 = vrot.lane.b32.xlu1 %v1706_v51, %s6974_s7  ;;  %1711 = vrot.lane.b32.xlu0 %v1705_v1, %s6974_s7  ;;  %v1863_v1 = vrot.slane %v1850_v21, %v7325_v44 }
 0x7cb   : > { %1728 = vperm.xlu1 %6726, %v7723_v9   ;;  %1715 = vrot.lane.b32.xlu0 %v1707_v19, %s6974_s7 }
 0x7cf   : > { %6727 = vset.pattern.permute.xlu1 %v10427_v27  ;;  %v1867_v27 = vrot.slane %v1850_v21, %v7396_v48 }
 0x839   : > { %v7931_v53 = vpop.permute.xlu1 %1713 }
 0x84a   : > { %v1729_v34 = vpop.permute.xlu1 %1728 }
 0x84b   : > { %v1747_v6 = vmul.f32 %v1735_v8, %v1729_v34  ;;  %v1748_v39 = vmul.f32 %v1739_v36, %v1729_v34  ;;  %v1749_v33 = vmul.f32 %v1743_v7, %v1729_v34  ;;  %v10431_v8 = vmov 19   ;;  %v1891_v34 = vld [vmem:[#allocation2 + $0x62] ss:$8 sm:$0x7] }
 0x84c   : > { %v1908_v35 = vrot.slane %v1891_v34, %v7396_v48 }
 0x84d   : > { %1755 = vrot.lane.b32.xlu1 %v1748_v39, %s6974_s7  ;;  %1753 = vrot.lane.b32.xlu0 %v1747_v6, %s6974_s7  ;;  %v1900_v6 = vrot.slane %v1891_v34, %v7322_v43  ;;  %v1904_v39 = vrot.slane %v1891_v34, %v7325_v44 }
 0x851   : > { %1770 = vperm.xlu1 %6727, %v7723_v9   ;;  %1757 = vrot.lane.b32.xlu0 %v1749_v33, %s6974_s7 }
 0x855   : > { %6728 = vset.pattern.permute.xlu1 %v10428_v12 }
 0x8bf   : > { %v7941_v29 = vpop.permute.xlu1 %1755 }
 0x8d0   : > { %v1771_v26 = vpop.permute.xlu1 %1770 }
 0x8d1   : > { %v1789_v0 = vmul.f32 %v1777_v24, %v1771_v26  ;;  %v1790_v31 = vmul.f32 %v1781_v62, %v1771_v26  ;;  %v1791_v11 = vmul.f32 %v1785_v3, %v1771_v26  ;;  %v10432_v62 = vmov 20  }
 0x8d3   : > { %1797 = vrot.lane.b32.xlu1 %v1790_v31, %s6974_s7  ;;  %1795 = vrot.lane.b32.xlu0 %v1789_v0, %s6974_s7  ;;  %v1932_v0 = vld [vmem:[#allocation2 + $0x63] ss:$8 sm:$0x7] }
 0x8d4   : > { %v1941_v31 = vrot.slane %v1932_v0, %v7322_v43  ;;  %v1945_v3 = vrot.slane %v1932_v0, %v7325_v44 }
 0x8d7   : > { %1811 = vperm.xlu1 %6728, %v7723_v9   ;;  %1799 = vrot.lane.b32.xlu0 %v1791_v11, %s6974_s7 }
 0x8db   : > { %6729 = vset.pattern.permute.xlu1 %v10429_v61 }
 0x945   : > { %v7951_v60 = vpop.permute.xlu1 %1797 }
 0x956   : > { %v1812_v5 = vpop.permute.xlu1 %1811 }
 0x957   : > { %v1830_v14 = vmul.f32 %v1818_v4, %v1812_v5  ;;  %v1831_v63 = vmul.f32 %v1822_v40, %v1812_v5  ;;  %v1832_v25 = vmul.f32 %v1826_v20, %v1812_v5  ;;  %v1949_v4 = vrot.slane %v1932_v0, %v7396_v48 }
 0x958   : > { %v10434_v5 = vmov 21  }
 0x959   : > { %1838 = vrot.lane.b32.xlu1 %v1831_v63, %s6974_s7  ;;  %1836 = vrot.lane.b32.xlu0 %v1830_v14, %s6974_s7  ;;  %v1973_v63 = vld [vmem:[#allocation2 + $0x64] ss:$8 sm:$0x7] }
 0x95a   : > { %v1982_v20 = vrot.slane %v1973_v63, %v7322_v43 }
 0x95d   : > { %1852 = vperm.xlu1 %6729, %v7723_v9   ;;  %1840 = vrot.lane.b32.xlu0 %v1832_v25, %s6974_s7  ;;  %v1986_v25 = vrot.slane %v1973_v63, %v7325_v44 }
 0x961   : > { %6730 = vset.pattern.permute.xlu1 %v10430_v28 }
 0x9cb   : > { %v7961_v41 = vpop.permute.xlu1 %1838 }
 0x9dc   : > { %v1853_v51 = vpop.permute.xlu1 %1852 }
 0x9dd   : > { %v1871_v52 = vmul.f32 %v1859_v50, %v1853_v51  ;;  %v1872_v19 = vmul.f32 %v1863_v1, %v1853_v51  ;;  %v1873_v45 = vmul.f32 %v1867_v27, %v1853_v51  ;;  %v1990_v1 = vrot.slane %v1973_v63, %v7396_v48  ;;  %v2014_v27 = vld [vmem:[#allocation2 + $0x65] ss:$8 sm:$0x7] }
 0x9df   : > { %1879 = vrot.lane.b32.xlu1 %v1872_v19, %s6974_s7  ;;  %1877 = vrot.lane.b32.xlu0 %v1871_v52, %s6974_s7  ;;  %v10436_v52 = vmov 22  }
 0x9e3   : > { %1893 = vperm.xlu1 %6730, %v7723_v9   ;;  %1881 = vrot.lane.b32.xlu0 %v1873_v45, %s6974_s7  ;;  %v2023_v45 = vrot.slane %v2014_v27, %v7322_v43 }
 0x9e7   : > { %6731 = vset.pattern.permute.xlu1 %v10431_v8  ;;  %v2027_v8 = vrot.slane %v2014_v27, %v7325_v44 }
 0xa51   : > { %v7971_v36 = vpop.permute.xlu1 %1879 }
 0xa62   : > { %v1894_v7 = vpop.permute.xlu1 %1893 }
 0xa63   : > { %v1912_v33 = vmul.f32 %v1900_v6, %v1894_v7  ;;  %v1913_v12 = vmul.f32 %v1904_v39, %v1894_v7  ;;  %v1914_v24 = vmul.f32 %v1908_v35, %v1894_v7  ;;  %v2031_v7 = vrot.slane %v2014_v27, %v7396_v48  ;;  %v10441_v27 = vld [vmem:[#allocation9_spill] sm:$0xff] }
 0xa65   : > { %1920 = vrot.lane.b32.xlu1 %v1913_v12, %s6974_s7  ;;  %1918 = vrot.lane.b32.xlu0 %v1912_v33, %s6974_s7  ;;  %v10438_v12 = vmov 23  }
 0xa69   : > { %1934 = vperm.xlu1 %6731, %v7723_v9   ;;  %1922 = vrot.lane.b32.xlu0 %v1914_v24, %s6974_s7  ;;  %v2055_v24 = vld [vmem:[#allocation2 + $0x66] ss:$8 sm:$0x7] }
 0xa6a   : > { %v2068_v0 = vrot.slane %v2055_v24, %v7325_v44 }
 0xa6d   : > { %6732 = vset.pattern.permute.xlu1 %v10432_v62  ;;  %v2064_v62 = vrot.slane %v2055_v24, %v7322_v43 }
 0xad7   : > { %v7981_v26 = vpop.permute.xlu1 %1920 }
 0xad8   : > { %10433 = vst [vmem:[#allocation11_spill] sm:$0xff] %v7981_v26 }
 0xae8   : > { %v1935_v11 = vpop.permute.xlu1 %1934 }
 0xae9   : > { %v1953_v61 = vmul.f32 %v1941_v31, %v1935_v11  ;;  %v1954_v56 = vmul.f32 %v1945_v3, %v1935_v11  ;;  %v1955_v40 = vmul.f32 %v1949_v4, %v1935_v11  ;;  %v8021_v4 = vpop.permute.xlu0 %1503 }
 0xaeb   : > { %1961 = vrot.lane.b32.xlu1 %v1954_v56, %s6974_s7  ;;  %1959 = vrot.lane.b32.xlu0 %v1953_v61, %s6974_s7  ;;  %v2072_v61 = vrot.slane %v2055_v24, %v7396_v48 }
 0xaef   : > { %1975 = vperm.xlu1 %6732, %v7723_v9   ;;  %1963 = vrot.lane.b32.xlu0 %v1955_v40, %s6974_s7  ;;  %v8023_v40 = vpop.permute.xlu0 %1547 }
 0xaf3   : > { %6733 = vset.pattern.permute.xlu1 %v10434_v5  ;;  %v8025_v5 = vpop.permute.xlu0 %1585 }
 0xb5d   : > { %v7991_v14 = vpop.permute.xlu1 %1961 }
 0xb5e   : > { %10435 = vst [vmem:[#allocation20_spill] sm:$0xff] %v7991_v14 }
 0xb6e   : > { %v1976_v28 = vpop.permute.xlu1 %1975 }
 0xb6f   : > { %v1994_v21 = vmul.f32 %v1982_v20, %v1976_v28  ;;  %v1995_v50 = vmul.f32 %v1986_v25, %v1976_v28  ;;  %v1996_v51 = vmul.f32 %v1990_v1, %v1976_v28  ;;  %v2096_v20 = vld [vmem:[#allocation2 + $0x67] ss:$8 sm:$0x7] }
 0xb70   : > { %v2105_v25 = vrot.slane %v2096_v20, %v7322_v43  ;;  %v2109_v28 = vrot.slane %v2096_v20, %v7325_v44 }
 0xb71   : > { %2002 = vrot.lane.b32.xlu1 %v1995_v50, %s6974_s7  ;;  %2000 = vrot.lane.b32.xlu0 %v1994_v21, %s6974_s7 }
 0xb75   : > { %2016 = vperm.xlu1 %6733, %v7723_v9   ;;  %2004 = vrot.lane.b32.xlu0 %v1996_v51, %s6974_s7  ;;  %v8031_v51 = vpop.permute.xlu0 %1589 }
 0xb79   : > { %6734 = vset.pattern.permute.xlu1 %v10436_v52 }
 0xbe3   : > { %v8001_v19 = vpop.permute.xlu1 %2002 }
 0xbe4   : > { %10437 = vst [vmem:[#allocation12_spill] sm:$0xff] %v8001_v19 }
 0xbf4   : > { %v2017_v34 = vpop.permute.xlu1 %2016 }
 0xbf5   : > { %v2035_v6 = vmul.f32 %v2023_v45, %v2017_v34  ;;  %v2036_v39 = vmul.f32 %v2027_v8, %v2017_v34  ;;  %v2037_v33 = vmul.f32 %v2031_v7, %v2017_v34  ;;  %v8038_v45 = vpop.permute.xlu0 %1627 }
 0xbf7   : > { %2043 = vrot.lane.b32.xlu1 %v2036_v39, %s6974_s7  ;;  %2041 = vrot.lane.b32.xlu0 %v2035_v6, %s6974_s7 }
 0xbf9   : > { %v8041_v8 = vpop.permute.xlu0 %1631 }
 0xbfb   : > { %2057 = vperm.xlu1 %6734, %v7723_v9   ;;  %2045 = vrot.lane.b32.xlu0 %v2037_v33, %s6974_s7 }
 0xbfd   : > { %v8044_v34 = vpop.permute.xlu0 %1669 }
 0xbff   : > { %6735 = vset.pattern.permute.xlu1 %v10438_v12 }
 0xc01   : > { %v8046_v6 = vpop.permute.xlu0 %1673 }
 0xc05   : > { %v8048_v39 = vpop.permute.xlu0 %1711 }
 0xc09   : > { %v8050_v7 = vpop.permute.xlu0 %1715 }
 0xc0d   : > { %v8052_v33 = vpop.permute.xlu0 %1753 }
 0xc11   : > { %v8054_v12 = vpop.permute.xlu0 %1757 }
 0xc15   : > { %v8056_v24 = vpop.permute.xlu0 %1795 }
 0xc69   : > { %v8011_v35 = vpop.permute.xlu1 %2043 }
 0xc6a   : > { %10439 = vst [vmem:[#allocation14_spill] sm:$0xff] %v8011_v35 }
 0xc7a   : > { %v2058_v31 = vpop.permute.xlu1 %2057 }
 0xc7b   : > { %v2076_v3 = vmul.f32 %v2064_v62, %v2058_v31  ;;  %v2077_v11 = vmul.f32 %v2068_v0, %v2058_v31  ;;  %v2078_v56 = vmul.f32 %v2072_v61, %v2058_v31  ;;  %v8058_v62 = vpop.permute.xlu0 %1799 }
 0xc7d   : > { %2084 = vrot.lane.b32.xlu1 %v2077_v11, %s6974_s7  ;;  %2082 = vrot.lane.b32.xlu0 %v2076_v3, %s6974_s7 }
 0xc81   : > { %2098 = vperm.xlu1 %6735, %v7723_v9   ;;  %2086 = vrot.lane.b32.xlu0 %v2078_v56, %s6974_s7 }
 0xc85   : > { %6737 = vset.pattern.permute.xlu1 %v6976_v58  ;;  %v2113_v58 = vrot.slane %v2096_v20, %v7396_v48 }
 0xcef   : > { %v8027_v63 = vpop.permute.xlu1 %2084 }
 0xcf0   : > { %10440 = vst [vmem:[#allocation16_spill] sm:$0xff] %v8027_v63 }
 0xd00   : > { %v2099_v21 = vpop.permute.xlu1 %2098 }
 0xd01   : > { %v2117_v50 = vmul.f32 %v2105_v25, %v2099_v21  ;;  %v2118_v1 = vmul.f32 %v2109_v28, %v2099_v21  ;;  %v2119_v52 = vmul.f32 %v2113_v58, %v2099_v21 }
 0xd03   : > { %2125 = vrot.lane.b32.xlu1 %v2118_v1, %s6974_s7  ;;  %2123 = vrot.lane.b32.xlu0 %v2117_v50, %s6974_s7 }
 0xd07   : > { %2137 = vrot.lane.b32.xlu1 %v10441_v27, %s6986_s10  ;;  %2127 = vrot.lane.b32.xlu0 %v2119_v52, %s6974_s7  ;;  %s6880_s10 = scalar_lea.vmem %s6879_s9, 512 }
 0xd08   : > { %p6882_p10 = scmp.lt.s32.totalorder %s6880_s10, %s6874_s8 }
 0xd0a   : > { %p6883_p2 = por %p6882_p10, %p6881_p5 }
 0xd0b   : > { %2147 = vperm.xlu0 %6736, %v7723_v9   ;;  %v8060_v9 = vpop.permute.xlu0 %1836 }
 0xd0c   : > { %p6884_p4 = pnand %p6883_p2, %p6877_p13 }
 0xd0f   : > { %6744 = vset.pattern.permute.xlu0 %v6979_v49  ;;  %v8062_v0 = vpop.permute.xlu0 %1840 }
 0xd13   : > { %v8064_v49 = vpop.permute.xlu0 %1877 }
 0xd17   : > { %v8066_v31 = vpop.permute.xlu0 %1881 }
 0xd18   : > { %10442 = vst [vmem:[#allocation21_spill] sm:$0xff] %v8066_v31 }
 0xd1b   : > { %v8068_v3 = vpop.permute.xlu0 %1918 }
 0xd1c   : > { %10443 = vst [vmem:[#allocation22_spill] sm:$0xff] %v8068_v3 }
 0xd1f   : > { %v8070_v11 = vpop.permute.xlu0 %1922 }
 0xd20   : > { %10444 = vst [vmem:[#allocation24_spill] sm:$0xff] %v8070_v11 }
 0xd23   : > { %v8072_v61 = vpop.permute.xlu0 %1959 }
 0xd24   : > { %10445 = vst [vmem:[#allocation28_spill] sm:$0xff] %v8072_v61 }
 0xd27   : > { %v8074_v56 = vpop.permute.xlu0 %1963 }
 0xd28   : > { %10446 = vst [vmem:[#allocation26_spill] sm:$0xff] %v8074_v56 }
 0xd2b   : > { %v8076_v20 = vpop.permute.xlu0 %2000 }
 0xd2c   : > { %10447 = vst [vmem:[#allocation23_spill] sm:$0xff] %v8076_v20 }
 0xd2f   : > { %v8078_v25 = vpop.permute.xlu0 %2004 }
 0xd30   : > { %10448 = vst [vmem:[#allocation30_spill] sm:$0xff] %v8078_v25 }
 0xd33   : > { %v8080_v28 = vpop.permute.xlu0 %2041 }
 0xd34   : > { %10449 = vst [vmem:[#allocation25_spill] sm:$0xff] %v8080_v28 }
 0xd37   : > { %v8082_v21 = vpop.permute.xlu0 %2045 }
 0xd38   : > { %10450 = vst [vmem:[#allocation27_spill] sm:$0xff] %v8082_v21 }
 0xd3b   : > { %v8086_v1 = vpop.permute.xlu0 %2082 }
 0xd3c   : > { %10452 = vst [vmem:[#allocation29_spill] sm:$0xff] %v8086_v1 }
 0xd3f   : > { %v8088_v52 = vpop.permute.xlu0 %2086 }
 0xd40   : > { %10453 = vst [vmem:[#allocation31_spill] sm:$0xff] %v8088_v52 }
 0xd75   : > { %v8084_v50 = vpop.permute.xlu1 %2125  ;;  %v8090_v38 = vpop.permute.xlu0 %2123 }
 0xd76   : > { %10451 = vst [vmem:[#allocation32_spill] sm:$0xff] %v8084_v50  ;;  %10454 = vst [vmem:[#allocation18_spill] sm:$0xff] %v8090_v38 }
 0xd79   : > { %v2138_v58 = vpop.permute.xlu1 %2137  ;;  %v8096_v35 = vpop.permute.xlu0 %2127 }
 0xd7a   : > { %v2139_v27 = vrot.slane %v2138_v58, 7  ;;  %10455 = vst [vmem:[#allocation9_spill] sm:$0xff] %v8096_v35 }
 0xd7c   : > { %v8092_v30 = vsel %vm2140_vm9, %v2139_v27, %v2138_v58  ;;  %v10456_v27 = vmov 26  }
 0xd7d   : > { %v2143_v63 = vmul.f32 %v8092_v30, %v7870_v15  ;;  %v8107_v15 = vld [vmem:[%s10128_s3] sm:$0xff] }
 0xd7f   : > { %v2154_v21 = vrot.slane %v2143_v63, %v7322_v43  ;;  %v2162_v50 = vrot.slane %v2143_v63, %v7396_v48  ;;  %v2158_v52 = vrot.slane %v2143_v63, %v7325_v44  ;;  %v2187_v63 = vld [vmem:[#allocation2 + $0x41] ss:$8 sm:$0x7] }
 0xd8a   : > { %v2148_v28 = vpop.permute.xlu0 %2147 }
 0xd8b   : > { %v2166_v1 = vmul.f32 %v2154_v21, %v2148_v28  ;;  %v2168_v25 = vmul.f32 %v2162_v50, %v2148_v28  ;;  %v2167_v58 = vmul.f32 %v2158_v52, %v2148_v28  ;;  %v2188_v50 = vmul.f32 %v2187_v63, %v8092_v30 }
 0xd8c   : > { %v10459_v63 = vmov 27  }
 0xd8d   : > { %2176 = vrot.lane.b32.xlu0 %v2168_v25, %s6987_s16  ;;  %2172 = vrot.lane.b32.xlu1 %v2166_v1, %s6987_s16  ;;  %v2199_v28 = vrot.slane %v2188_v50, %v7322_v43  ;;  %v2203_v1 = vrot.slane %v2188_v50, %v7325_v44  ;;  %v2207_v38 = vrot.slane %v2188_v50, %v7396_v48 }
 0xd91   : > { %2174 = vrot.lane.b32.xlu1 %v2167_v58, %s6987_s16 }
 0xd95   : > { %2192 = vperm.xlu1 %6737, %v8107_v15  }
 0xd99   : > { %6738 = vset.pattern.permute.xlu1 %v10456_v27 }
 0xdff   : > { %v8111_v21 = vpop.permute.xlu1 %2172 }
 0xe00   : > { %10457 = vst [vmem:[#allocation33_spill] sm:$0xff] %v8111_v21  ;;  %v2231_v21 = vld [vmem:[#allocation2 + $0x42] ss:$8 sm:$0x7] }
 0xe03   : > { %v8114_v25 = vpop.permute.xlu1 %2174 }
 0xe04   : > { %10458 = vst [vmem:[#allocation34_spill] sm:$0xff] %v8114_v25  ;;  %v2232_v25 = vmul.f32 %v2231_v21, %v8092_v30  ;;  %v10461_v21 = vmov 28  }
 0xe06   : > { %v2247_v50 = vrot.slane %v2232_v25, %v7325_v44 }
 0xe14   : > { %v2193_v52 = vpop.permute.xlu1 %2192 }
 0xe15   : > { %v2211_v58 = vmul.f32 %v2199_v28, %v2193_v52  ;;  %v2212_v35 = vmul.f32 %v2203_v1, %v2193_v52  ;;  %v2213_v27 = vmul.f32 %v2207_v38, %v2193_v52  ;;  %v2243_v28 = vrot.slane %v2232_v25, %v7322_v43 }
 0xe16   : > { %v2251_v38 = vrot.slane %v2232_v25, %v7396_v48 }
 0xe17   : > { %2219 = vrot.lane.b32.xlu1 %v2212_v35, %s6987_s16  ;;  %2217 = vrot.lane.b32.xlu0 %v2211_v58, %s6987_s16  ;;  %v2275_v58 = vld [vmem:[#allocation2 + $0x43] ss:$8 sm:$0x7] }
 0xe1b   : > { %2236 = vperm.xlu1 %6738, %v8107_v15   ;;  %2221 = vrot.lane.b32.xlu0 %v2213_v27, %s6987_s16  ;;  %v2276_v27 = vmul.f32 %v2275_v58, %v8092_v30 }
 0xe1d   : > { %v2291_v25 = vrot.slane %v2276_v27, %v7325_v44 }
 0xe1f   : > { %6739 = vset.pattern.permute.xlu1 %v10459_v63 }
 0xe89   : > { %v8125_v20 = vpop.permute.xlu1 %2219 }
 0xe8a   : > { %10460 = vst [vmem:[#allocation35_spill] sm:$0xff] %v8125_v20 }
 0xe9a   : > { %v2237_v1 = vpop.permute.xlu1 %2236 }
 0xe9b   : > { %v2255_v35 = vmul.f32 %v2243_v28, %v2237_v1  ;;  %v2256_v19 = vmul.f32 %v2247_v50, %v2237_v1  ;;  %v2257_v52 = vmul.f32 %v2251_v38, %v2237_v1  ;;  %v2287_v28 = vrot.slane %v2276_v27, %v7322_v43 }
 0xe9c   : > { %v2295_v1 = vrot.slane %v2276_v27, %v7396_v48  ;;  %v10463_v38 = vmov 29  }
 0xe9d   : > { %2263 = vrot.lane.b32.xlu1 %v2256_v19, %s6987_s16  ;;  %2261 = vrot.lane.b32.xlu0 %v2255_v35, %s6987_s16 }
 0xea1   : > { %2280 = vperm.xlu1 %6739, %v8107_v15   ;;  %2265 = vrot.lane.b32.xlu0 %v2257_v52, %s6987_s16  ;;  %v2319_v52 = vld [vmem:[#allocation2 + $0x44] ss:$8 sm:$0x7] }
 0xea5   : > { %6740 = vset.pattern.permute.xlu1 %v10461_v21  ;;  %v2320_v21 = vmul.f32 %v2319_v52, %v8092_v30 }
 0xea7   : > { %v2335_v27 = vrot.slane %v2320_v21, %v7325_v44 }
 0xf0f   : > { %v8136_v63 = vpop.permute.xlu1 %2263 }
 0xf10   : > { %10462 = vst [vmem:[#allocation36_spill] sm:$0xff] %v8136_v63 }
 0xf20   : > { %v2281_v50 = vpop.permute.xlu1 %2280 }
 0xf21   : > { %v2299_v19 = vmul.f32 %v2287_v28, %v2281_v50  ;;  %v2300_v20 = vmul.f32 %v2291_v25, %v2281_v50  ;;  %v2301_v35 = vmul.f32 %v2295_v1, %v2281_v50  ;;  %v2331_v28 = vrot.slane %v2320_v21, %v7322_v43 }
 0xf22   : > { %v2339_v50 = vrot.slane %v2320_v21, %v7396_v48  ;;  %v10465_v1 = vmov 30  }
 0xf23   : > { %2307 = vrot.lane.b32.xlu1 %v2300_v20, %s6987_s16  ;;  %2305 = vrot.lane.b32.xlu0 %v2299_v19, %s6987_s16 }
 0xf27   : > { %2324 = vperm.xlu1 %6740, %v8107_v15   ;;  %2309 = vrot.lane.b32.xlu0 %v2301_v35, %s6987_s16  ;;  %v2363_v35 = vld [vmem:[#allocation2 + $0x45] ss:$8 sm:$0x7] }
 0xf2b   : > { %6741 = vset.pattern.permute.xlu1 %v10463_v38  ;;  %v2364_v38 = vmul.f32 %v2363_v35, %v8092_v30 }
 0xf2d   : > { %v2379_v21 = vrot.slane %v2364_v38, %v7325_v44 }
 0xf95   : > { %v8147_v58 = vpop.permute.xlu1 %2307 }
 0xf96   : > { %10464 = vst [vmem:[#allocation37_spill] sm:$0xff] %v8147_v58 }
 0xfa6   : > { %v2325_v25 = vpop.permute.xlu1 %2324 }
 0xfa7   : > { %v2343_v20 = vmul.f32 %v2331_v28, %v2325_v25  ;;  %v2344_v63 = vmul.f32 %v2335_v27, %v2325_v25  ;;  %v2345_v19 = vmul.f32 %v2339_v50, %v2325_v25  ;;  %v2375_v28 = vrot.slane %v2364_v38, %v7322_v43 }
 0xfa8   : > { %v2383_v25 = vrot.slane %v2364_v38, %v7396_v48  ;;  %v10467_v50 = vmov 31  }
 0xfa9   : > { %2351 = vrot.lane.b32.xlu1 %v2344_v63, %s6987_s16  ;;  %2349 = vrot.lane.b32.xlu0 %v2343_v20, %s6987_s16 }
 0xfad   : > { %2368 = vperm.xlu1 %6741, %v8107_v15   ;;  %2353 = vrot.lane.b32.xlu0 %v2345_v19, %s6987_s16  ;;  %v2407_v19 = vld [vmem:[#allocation2 + $0x46] ss:$8 sm:$0x7] }
 0xfb1   : > { %6742 = vset.pattern.permute.xlu1 %v10465_v1  ;;  %v2408_v1 = vmul.f32 %v2407_v19, %v8092_v30 }
 0xfb3   : > { %v2423_v38 = vrot.slane %v2408_v1, %v7325_v44 }
0x101b   : > { %v8158_v52 = vpop.permute.xlu1 %2351 }
0x101c   : > { %10466 = vst [vmem:[#allocation38_spill] sm:$0xff] %v8158_v52 }
0x102c   : > { %v2369_v27 = vpop.permute.xlu1 %2368 }
0x102d   : > { %v2387_v63 = vmul.f32 %v2375_v28, %v2369_v27  ;;  %v2388_v58 = vmul.f32 %v2379_v21, %v2369_v27  ;;  %v2389_v20 = vmul.f32 %v2383_v25, %v2369_v27  ;;  %v2419_v28 = vrot.slane %v2408_v1, %v7322_v43 }
0x102e   : > { %v2427_v27 = vrot.slane %v2408_v1, %v7396_v48  ;;  %v10469_v25 = vmov 33  }
0x102f   : > { %2395 = vrot.lane.b32.xlu1 %v2388_v58, %s6987_s16  ;;  %2393 = vrot.lane.b32.xlu0 %v2387_v63, %s6987_s16 }
0x1033   : > { %2412 = vperm.xlu1 %6742, %v8107_v15   ;;  %2397 = vrot.lane.b32.xlu0 %v2389_v20, %s6987_s16  ;;  %v2451_v20 = vld [vmem:[#allocation2 + $0x47] ss:$8 sm:$0x7] }
0x1037   : > { %6743 = vset.pattern.permute.xlu1 %v10467_v50  ;;  %v2452_v50 = vmul.f32 %v2451_v20, %v8092_v30  ;;  %v8191_v30 = vpop.permute.xlu0 %2176 }
0x1038   : > { %10471 = vst [vmem:[#allocation41_spill] sm:$0xff] %v8191_v30 }
0x1039   : > { %v2467_v1 = vrot.slane %v2452_v50, %v7325_v44 }
0x10a1   : > { %v8169_v35 = vpop.permute.xlu1 %2395 }
0x10a2   : > { %10468 = vst [vmem:[#allocation39_spill] sm:$0xff] %v8169_v35 }
0x10b2   : > { %v2413_v21 = vpop.permute.xlu1 %2412 }
0x10b3   : > { %v2431_v58 = vmul.f32 %v2419_v28, %v2413_v21  ;;  %v2432_v52 = vmul.f32 %v2423_v38, %v2413_v21  ;;  %v2433_v63 = vmul.f32 %v2427_v27, %v2413_v21  ;;  %v2463_v28 = vrot.slane %v2452_v50, %v7322_v43  ;;  %v8193_v27 = vpop.permute.xlu0 %2217 }
0x10b4   : > { %v2471_v21 = vrot.slane %v2452_v50, %v7396_v48  ;;  %10472 = vst [vmem:[#allocation42_spill] sm:$0xff] %v8193_v27 }
0x10b5   : > { %2439 = vrot.lane.b32.xlu1 %v2432_v52, %s6987_s16  ;;  %2437 = vrot.lane.b32.xlu0 %v2431_v58, %s6987_s16 }
0x10b9   : > { %2456 = vperm.xlu1 %6743, %v8107_v15   ;;  %2441 = vrot.lane.b32.xlu0 %v2433_v63, %s6987_s16  ;;  %v8195_v63 = vpop.permute.xlu0 %2221 }
0x10ba   : > { %10473 = vst [vmem:[#allocation43_spill] sm:$0xff] %v8195_v63 }
0x10bd   : > { %6745 = vset.pattern.permute.xlu1 %v10469_v25  ;;  %v8197_v25 = vpop.permute.xlu0 %2261 }
0x10be   : > { %10474 = vst [vmem:[#allocation44_spill] sm:$0xff] %v8197_v25 }
0x10c1   : > { %v8199_v20 = vpop.permute.xlu0 %2265 }
0x10c2   : > { %10475 = vst [vmem:[#allocation45_spill] sm:$0xff] %v8199_v20 }
0x1127   : > { %v8180_v19 = vpop.permute.xlu1 %2439 }
0x1128   : > { %10470 = vst [vmem:[#allocation40_spill] sm:$0xff] %v8180_v19 }
0x1138   : > { %v2457_v38 = vpop.permute.xlu1 %2456 }
0x1139   : > { %v2475_v52 = vmul.f32 %v2463_v28, %v2457_v38  ;;  %v2476_v35 = vmul.f32 %v2467_v1, %v2457_v38  ;;  %v2477_v58 = vmul.f32 %v2471_v21, %v2457_v38 }
0x113b   : > { %2483 = vrot.lane.b32.xlu1 %v2476_v35, %s6987_s16  ;;  %2481 = vrot.lane.b32.xlu0 %v2475_v52, %s6987_s16  ;;  %v8201_v35 = vpop.permute.xlu0 %2305 }
0x113c   : > { %10476 = vst [vmem:[#allocation46_spill] sm:$0xff] %v8201_v35 }
0x113f   : > { %2496 = vrot.lane.b32.xlu1 %v7718_v57, %s6974_s7  ;;  %2485 = vrot.lane.b32.xlu0 %v2477_v58, %s6987_s16  ;;  %v8203_v50 = vpop.permute.xlu0 %2309  ;;  %s7052_s7 = smov 96  }
0x1140   : > { %10477 = vst [vmem:[#allocation47_spill] sm:$0xff] %v8203_v50 }
0x1143   : > { %2505 = vperm.xlu0 %6744, %v8107_v15   ;;  %v8205_v28 = vpop.permute.xlu0 %2349 }
0x1144   : > { %10478 = vst [vmem:[#allocation48_spill] sm:$0xff] %v8205_v28  ;;  %v2495_v28 = vld [vmem:[#allocation2 + $0x20] ss:$8 sm:$0x7] }
0x1147   : > { %v8207_v1 = vpop.permute.xlu0 %2353 }
0x1148   : > { %10479 = vst [vmem:[#allocation49_spill] sm:$0xff] %v8207_v1 }
0x114b   : > { %v8209_v38 = vpop.permute.xlu0 %2393 }
0x114c   : > { %10480 = vst [vmem:[#allocation50_spill] sm:$0xff] %v8209_v38 }
0x114f   : > { %v8211_v52 = vpop.permute.xlu0 %2397 }
0x1150   : > { %10481 = vst [vmem:[#allocation51_spill] sm:$0xff] %v8211_v52 }
0x1153   : > { %v8215_v58 = vpop.permute.xlu0 %2437 }
0x1154   : > { %10483 = vst [vmem:[#allocation53_spill] sm:$0xff] %v8215_v58 }
0x1157   : > { %v8217_v25 = vpop.permute.xlu0 %2441 }
0x1158   : > { %10484 = vst [vmem:[#allocation54_spill] sm:$0xff] %v8217_v25 }
0x11ad   : > { %v8213_v21 = vpop.permute.xlu1 %2483  ;;  %v8219_v63 = vpop.permute.xlu0 %2481 }
0x11ae   : > { %10482 = vst [vmem:[#allocation52_spill] sm:$0xff] %v8213_v21  ;;  %10485 = vst [vmem:[#allocation55_spill] sm:$0xff] %v8219_v63 }
0x11b1   : > { %v2497_v19 = vpop.permute.xlu1 %2496  ;;  %v8225_v35 = vpop.permute.xlu0 %2485 }
0x11b2   : > { %v2498_v20 = vrot.slane %v2497_v19, 7  ;;  %10486 = vst [vmem:[#allocation56_spill] sm:$0xff] %v8225_v35  ;;  %v2545_v35 = vld [vmem:[#allocation2 + $0x21] ss:$8 sm:$0x7] }
0x11b4   : > { %v8222_v50 = vsel %vm498_vm4, %v2498_v20, %v2497_v19  ;;  %v10487_v20 = vmov 34  }
0x11b5   : > { %v2501_v1 = vmul.f32 %v8222_v50, %v2495_v28  ;;  %v2546_v63 = vmul.f32 %v2545_v35, %v8222_v50  ;;  %v10490_v35 = vmov 35  }
0x11b7   : > { %v2512_v52 = vrot.slane %v2501_v1, %v7322_v43  ;;  %v2520_v21 = vrot.slane %v2501_v1, %v7396_v48  ;;  %v2516_v25 = vrot.slane %v2501_v1, %v7325_v44  ;;  %v2557_v1 = vrot.slane %v2546_v63, %v7322_v43 }
0x11c2   : > { %v2506_v38 = vpop.permute.xlu0 %2505 }
0x11c3   : > { %v2524_v58 = vmul.f32 %v2512_v52, %v2506_v38  ;;  %v2526_v27 = vmul.f32 %v2520_v21, %v2506_v38  ;;  %v2525_v19 = vmul.f32 %v2516_v25, %v2506_v38  ;;  %v2565_v38 = vrot.slane %v2546_v63, %v7396_v48 }
0x11c5   : > { %2534 = vrot.lane.b32.xlu0 %v2526_v27, %s6973_s26  ;;  %2530 = vrot.lane.b32.xlu1 %v2524_v58, %s6973_s26  ;;  %v2561_v27 = vrot.slane %v2546_v63, %v7325_v44 }
0x11c9   : > { %2532 = vrot.lane.b32.xlu1 %v2525_v19, %s6973_s26 }
0x11cd   : > { %2550 = vperm.xlu1 %6745, %v8107_v15  }
0x11d1   : > { %6746 = vset.pattern.permute.xlu1 %v10487_v20  ;;  %v2590_v20 = vld [vmem:[#allocation2 + $0x22] ss:$8 sm:$0x7] }
0x1237   : > { %v8235_v28 = vpop.permute.xlu1 %2530 }
0x1238   : > { %10488 = vst [vmem:[#allocation57_spill] sm:$0xff] %v8235_v28  ;;  %v2591_v28 = vmul.f32 %v2590_v20, %v8222_v50 }
0x123a   : > { %v2606_v63 = vrot.slane %v2591_v28, %v7325_v44 }
0x123b   : > { %v8238_v52 = vpop.permute.xlu1 %2532 }
0x123c   : > { %10489 = vst [vmem:[#allocation58_spill] sm:$0xff] %v8238_v52 }
0x124c   : > { %v2551_v21 = vpop.permute.xlu1 %2550 }
0x124d   : > { %v2569_v58 = vmul.f32 %v2557_v1, %v2551_v21  ;;  %v2570_v25 = vmul.f32 %v2561_v27, %v2551_v21  ;;  %v2571_v19 = vmul.f32 %v2565_v38, %v2551_v21  ;;  %v2602_v1 = vrot.slane %v2591_v28, %v7322_v43 }
0x124e   : > { %v2610_v21 = vrot.slane %v2591_v28, %v7396_v48  ;;  %v6988_v38 = vmov 36  }
0x124f   : > { %2577 = vrot.lane.b32.xlu1 %v2570_v25, %s6973_s26  ;;  %2575 = vrot.lane.b32.xlu0 %v2569_v58, %s6973_s26 }
0x1253   : > { %2595 = vperm.xlu1 %6746, %v8107_v15   ;;  %2579 = vrot.lane.b32.xlu0 %v2571_v19, %s6973_s26  ;;  %v2635_v19 = vld [vmem:[#allocation2 + $0x23] ss:$8 sm:$0x7] }
0x1257   : > { %6747 = vset.pattern.permute.xlu1 %v10490_v35  ;;  %v2636_v35 = vmul.f32 %v2635_v19, %v8222_v50 }
0x1259   : > { %v2651_v28 = vrot.slane %v2636_v35, %v7325_v44 }
0x12c1   : > { %v8249_v52 = vpop.permute.xlu1 %2577 }
0x12c2   : > { %10491 = vst [vmem:[#allocation59_spill] sm:$0xff] %v8249_v52 }
0x12d2   : > { %v2596_v27 = vpop.permute.xlu1 %2595 }
0x12d3   : > { %v2614_v25 = vmul.f32 %v2602_v1, %v2596_v27  ;;  %v2615_v30 = vmul.f32 %v2606_v63, %v2596_v27  ;;  %v2616_v58 = vmul.f32 %v2610_v21, %v2596_v27  ;;  %v2647_v1 = vrot.slane %v2636_v35, %v7322_v43 }
0x12d4   : > { %v2655_v27 = vrot.slane %v2636_v35, %v7396_v48  ;;  %v6989_v21 = vmov 37  }
0x12d5   : > { %2622 = vrot.lane.b32.xlu1 %v2615_v30, %s6973_s26  ;;  %2620 = vrot.lane.b32.xlu0 %v2614_v25, %s6973_s26 }
0x12d9   : > { %2640 = vperm.xlu1 %6747, %v8107_v15   ;;  %2624 = vrot.lane.b32.xlu0 %v2616_v58, %s6973_s26  ;;  %v2680_v58 = vld [vmem:[#allocation2 + $0x24] ss:$8 sm:$0x7] }
0x12dd   : > { %6748 = vset.pattern.permute.xlu1 %v6988_v38  ;;  %v2681_v38 = vmul.f32 %v2680_v58, %v8222_v50 }
0x12df   : > { %v2696_v35 = vrot.slane %v2681_v38, %v7325_v44 }
0x1347   : > { %v8259_v20 = vpop.permute.xlu1 %2622 }
0x1348   : > { %10492 = vst [vmem:[#allocation60_spill] sm:$0xff] %v8259_v20 }
0x1358   : > { %v2641_v63 = vpop.permute.xlu1 %2640 }
0x1359   : > { %v2659_v30 = vmul.f32 %v2647_v1, %v2641_v63  ;;  %v2660_v52 = vmul.f32 %v2651_v28, %v2641_v63  ;;  %v2661_v25 = vmul.f32 %v2655_v27, %v2641_v63  ;;  %v2692_v1 = vrot.slane %v2681_v38, %v7322_v43 }
0x135a   : > { %v2700_v63 = vrot.slane %v2681_v38, %v7396_v48  ;;  %v6990_v27 = vmov 38  }
0x135b   : > { %2667 = vrot.lane.b32.xlu1 %v2660_v52, %s6973_s26  ;;  %2665 = vrot.lane.b32.xlu0 %v2659_v30, %s6973_s26 }
0x135f   : > { %2685 = vperm.xlu1 %6748, %v8107_v15   ;;  %2669 = vrot.lane.b32.xlu0 %v2661_v25, %s6973_s26  ;;  %v2725_v25 = vld [vmem:[#allocation2 + $0x25] ss:$8 sm:$0x7] }
0x1363   : > { %6749 = vset.pattern.permute.xlu1 %v6989_v21  ;;  %v2726_v21 = vmul.f32 %v2725_v25, %v8222_v50 }
0x1365   : > { %v2741_v38 = vrot.slane %v2726_v21, %v7325_v44 }
0x13cd   : > { %v8269_v19 = vpop.permute.xlu1 %2667 }
0x13ce   : > { %10493 = vst [vmem:[#allocation61_spill] sm:$0xff] %v8269_v19 }
0x13de   : > { %v2686_v28 = vpop.permute.xlu1 %2685 }
0x13df   : > { %v2704_v52 = vmul.f32 %v2692_v1, %v2686_v28  ;;  %v2705_v20 = vmul.f32 %v2696_v35, %v2686_v28  ;;  %v2706_v30 = vmul.f32 %v2700_v63, %v2686_v28  ;;  %v2737_v1 = vrot.slane %v2726_v21, %v7322_v43 }
0x13e0   : > { %v2745_v28 = vrot.slane %v2726_v21, %v7396_v48  ;;  %v6991_v63 = vmov 39  }
0x13e1   : > { %2712 = vrot.lane.b32.xlu1 %v2705_v20, %s6973_s26  ;;  %2710 = vrot.lane.b32.xlu0 %v2704_v52, %s6973_s26 }
0x13e5   : > { %2730 = vperm.xlu1 %6749, %v8107_v15   ;;  %2714 = vrot.lane.b32.xlu0 %v2706_v30, %s6973_s26  ;;  %v2770_v30 = vld [vmem:[#allocation2 + $0x26] ss:$8 sm:$0x7] }
0x13e9   : > { %6750 = vset.pattern.permute.xlu1 %v6990_v27  ;;  %v2771_v27 = vmul.f32 %v2770_v30, %v8222_v50 }
0x13eb   : > { %v2786_v21 = vrot.slane %v2771_v27, %v7325_v44 }
0x1453   : > { %v8279_v58 = vpop.permute.xlu1 %2712 }
0x1454   : > { %10494 = vst [vmem:[#allocation62_spill] sm:$0xff] %v8279_v58 }
0x1464   : > { %v2731_v35 = vpop.permute.xlu1 %2730 }
0x1465   : > { %v2749_v20 = vmul.f32 %v2737_v1, %v2731_v35  ;;  %v2750_v19 = vmul.f32 %v2741_v38, %v2731_v35  ;;  %v2751_v52 = vmul.f32 %v2745_v28, %v2731_v35  ;;  %v2782_v1 = vrot.slane %v2771_v27, %v7322_v43 }
0x1466   : > { %v2790_v35 = vrot.slane %v2771_v27, %v7396_v48  ;;  %v6992_v28 = vmov 40  }
0x1467   : > { %2757 = vrot.lane.b32.xlu1 %v2750_v19, %s6973_s26  ;;  %2755 = vrot.lane.b32.xlu0 %v2749_v20, %s6973_s26 }
0x146b   : > { %2775 = vperm.xlu1 %6750, %v8107_v15   ;;  %2759 = vrot.lane.b32.xlu0 %v2751_v52, %s6973_s26  ;;  %v2815_v52 = vld [vmem:[#allocation2 + $0x27] ss:$8 sm:$0x7] }
0x146f   : > { %6751 = vset.pattern.permute.xlu1 %v6991_v63  ;;  %v2816_v63 = vmul.f32 %v2815_v52, %v8222_v50 }
0x1471   : > { %v2831_v27 = vrot.slane %v2816_v63, %v7325_v44 }
0x14d9   : > { %v8289_v25 = vpop.permute.xlu1 %2757 }
0x14da   : > { %10495 = vst [vmem:[#allocation63_spill] sm:$0xff] %v8289_v25 }
0x14ea   : > { %v2776_v38 = vpop.permute.xlu1 %2775 }
0x14eb   : > { %v2794_v19 = vmul.f32 %v2782_v1, %v2776_v38  ;;  %v2795_v58 = vmul.f32 %v2786_v21, %v2776_v38  ;;  %v2796_v20 = vmul.f32 %v2790_v35, %v2776_v38  ;;  %v2827_v1 = vrot.slane %v2816_v63, %v7322_v43 }
0x14ec   : > { %v2835_v38 = vrot.slane %v2816_v63, %v7396_v48  ;;  %v6993_v35 = vmov 41  }
0x14ed   : > { %2802 = vrot.lane.b32.xlu1 %v2795_v58, %s6973_s26  ;;  %2800 = vrot.lane.b32.xlu0 %v2794_v19, %s6973_s26 }
0x14ee   : > { %6753 = vset.pattern.permute.xlu0 %v6993_v35  ;;  %v7000_v35 = vmov 48  }
0x14f1   : > { %2820 = vperm.xlu1 %6751, %v8107_v15   ;;  %2804 = vrot.lane.b32.xlu0 %v2796_v20, %s6973_s26 }
0x14f5   : > { %6752 = vset.pattern.permute.xlu1 %v6992_v28  ;;  %v2860_v28 = vld [vmem:[#allocation2 + $0x8] ss:$8 sm:$0x3] }
0x14f6   : > { %v2869_v52 = vrot.slane %v2860_v28, %v7322_v43 }
0x155f   : > { %v8299_v30 = vpop.permute.xlu1 %2802 }
0x1560   : > { %10496 = vst [vmem:[#allocation64_spill] sm:$0xff] %v8299_v30 }
0x1570   : > { %v2821_v21 = vpop.permute.xlu1 %2820 }
0x1571   : > { %v2839_v58 = vmul.f32 %v2827_v1, %v2821_v21  ;;  %v2840_v25 = vmul.f32 %v2831_v27, %v2821_v21  ;;  %v2841_v19 = vmul.f32 %v2835_v38, %v2821_v21  ;;  %v2873_v1 = vrot.slane %v2860_v28, %v7325_v44 }
0x1572   : > { %v6995_v21 = vmov 43   ;;  %v6997_v38 = vmov 45   ;;  %v7001_v28 = vmov 49  }
0x1573   : > { %2847 = vrot.lane.b32.xlu1 %v2840_v25, %s6973_s26  ;;  %2845 = vrot.lane.b32.xlu0 %v2839_v58, %s6973_s26  ;;  %v6994_v25 = vmov 42   ;;  %v6996_v58 = vmov 44  }
0x1577   : > { %2862 = vperm.xlu1 %6752, %v8107_v15   ;;  %2849 = vrot.lane.b32.xlu0 %v2841_v19, %s6973_s26  ;;  %v6999_v19 = vmov 47  }
0x15e5   : > { %v8308_v20 = vpop.permute.xlu1 %2847 }
0x15e6   : > { %10497 = vst [vmem:[#allocation65_spill] sm:$0xff] %v8308_v20 }
0x15f6   : > { %v2863_v27 = vpop.permute.xlu1 %2862 }
0x15f7   : > { %v2876_v63 = vmul.f32 %v2869_v52, %v2863_v27  ;;  %v2877_v30 = vmul.f32 %v2873_v1, %v2863_v27  ;;  %v7002_v52 = vmov 50   ;;  %v8324_v1 = vpop.permute.xlu0 %2534  ;;  %v7003_v27 = vmov 51  }
0x15f8   : > { %10498 = vst [vmem:[#allocation66_spill] sm:$0xff] %v8324_v1 }
0x15f9   : > { %2882 = vrot.lane.b32.xlu1 %v2877_v30, %s6981_s6  ;;  %2880 = vrot.lane.b32.xlu0 %v2876_v63, %s6981_s6  ;;  %v6998_v30 = vmov 46  }
0x15fb   : > { %v8327_v63 = vpop.permute.xlu0 %2575 }
0x15fc   : > { %10499 = vst [vmem:[#allocation67_spill] sm:$0xff] %v8327_v63 }
0x15fd   : > { %2894 = vperm.xlu0 %6753, %v8107_v15  }
0x1601   : > { %6754 = vset.pattern.permute.xlu0 %v6994_v25  ;;  %v7004_v25 = vmov 52  }
0x1602   : > { %2926 = vperm.xlu0 %6754, %v8107_v15  }
0x1606   : > { %6755 = vset.pattern.permute.xlu0 %v6995_v21  ;;  %v8330_v21 = vpop.permute.xlu0 %2579 }
0x1607   : > { %2958 = vperm.xlu0 %6755, %v8107_v15   ;;  %10500 = vst [vmem:[#allocation68_spill] sm:$0xff] %v8330_v21 }
0x160b   : > { %6756 = vset.pattern.permute.xlu0 %v6996_v58  ;;  %v7005_v58 = vmov 53  }
0x160c   : > { %2990 = vperm.xlu0 %6756, %v8107_v15  }
0x1610   : > { %6757 = vset.pattern.permute.xlu0 %v6997_v38  ;;  %v8333_v38 = vpop.permute.xlu0 %2620 }
0x1611   : > { %3022 = vperm.xlu0 %6757, %v8107_v15   ;;  %10501 = vst [vmem:[#allocation69_spill] sm:$0xff] %v8333_v38 }
0x1615   : > { %6758 = vset.pattern.permute.xlu0 %v6998_v30  ;;  %v7006_v30 = vmov 54  }
0x1616   : > { %3054 = vperm.xlu0 %6758, %v8107_v15  }
0x161a   : > { %6759 = vset.pattern.permute.xlu0 %v6999_v19  ;;  %v8336_v19 = vpop.permute.xlu0 %2624 }
0x161b   : > { %3086 = vperm.xlu0 %6759, %v8107_v15   ;;  %10502 = vst [vmem:[#allocation70_spill] sm:$0xff] %v8336_v19 }
0x161f   : > { %6760 = vset.pattern.permute.xlu0 %v7000_v35  ;;  %v7007_v35 = vmov 55  }
0x1620   : > { %3118 = vperm.xlu0 %6760, %v8107_v15  }
0x1624   : > { %6761 = vset.pattern.permute.xlu0 %v7001_v28  ;;  %v8339_v28 = vpop.permute.xlu0 %2665 }
0x1625   : > { %3150 = vperm.xlu0 %6761, %v8107_v15   ;;  %10503 = vst [vmem:[#allocation71_spill] sm:$0xff] %v8339_v28 }
0x1629   : > { %6762 = vset.pattern.permute.xlu0 %v7002_v52  ;;  %v7008_v52 = vmov 56  }
0x162a   : > { %3182 = vperm.xlu0 %6762, %v8107_v15  }
0x162e   : > { %6763 = vset.pattern.permute.xlu0 %v7003_v27  ;;  %v8342_v27 = vpop.permute.xlu0 %2669 }
0x162f   : > { %3214 = vperm.xlu0 %6763, %v8107_v15   ;;  %10504 = vst [vmem:[#allocation72_spill] sm:$0xff] %v8342_v27 }
0x1633   : > { %6764 = vset.pattern.permute.xlu0 %v7004_v25  ;;  %v8344_v25 = vpop.permute.xlu0 %2710 }
0x1634   : > { %3246 = vperm.xlu0 %6764, %v8107_v15   ;;  %10505 = vst [vmem:[#allocation73_spill] sm:$0xff] %v8344_v25 }
0x1638   : > { %6765 = vset.pattern.permute.xlu0 %v7005_v58  ;;  %v8346_v58 = vpop.permute.xlu0 %2714 }
0x1639   : > { %3278 = vperm.xlu0 %6765, %v8107_v15   ;;  %10506 = vst [vmem:[#allocation74_spill] sm:$0xff] %v8346_v58 }
0x163d   : > { %6766 = vset.pattern.permute.xlu0 %v7006_v30  ;;  %v8348_v30 = vpop.permute.xlu0 %2755 }
0x163e   : > { %3310 = vperm.xlu0 %6766, %v8107_v15   ;;  %10507 = vst [vmem:[#allocation75_spill] sm:$0xff] %v8348_v30  ;;  %v7009_v30 = vmov 57  }
0x163f   : > { %6769 = vset.pattern.permute.xlu1 %v7009_v30 }
0x1641   : > { %v8350_v20 = vpop.permute.xlu0 %2759 }
0x1642   : > { %6767 = vset.pattern.permute.xlu0 %v7007_v35  ;;  %10508 = vst [vmem:[#allocation76_spill] sm:$0xff] %v8350_v20  ;;  %v2924_v20 = vld [vmem:[#allocation2 + $0xa] ss:$8 sm:$0x3] }
0x1643   : > { %3342 = vperm.xlu0 %6767, %v8107_v15   ;;  %v2937_v63 = vrot.slane %v2924_v20, %v7325_v44 }
0x1645   : > { %v8352_v19 = vpop.permute.xlu0 %2800 }
0x1646   : > { %10509 = vst [vmem:[#allocation77_spill] sm:$0xff] %v8352_v19 }
0x1647   : > { %6768 = vset.pattern.permute.xlu0 %v7008_v52 }
0x1648   : > { %3376 = vperm.xlu0 %6768, %v8107_v15   ;;  %v2892_v15 = vld [vmem:[#allocation2 + $0x9] ss:$8 sm:$0x3] }
0x1649   : > { %v8354_v35 = vpop.permute.xlu0 %2804  ;;  %v2901_v27 = vrot.slane %v2892_v15, %v7322_v43  ;;  %v2905_v58 = vrot.slane %v2892_v15, %v7325_v44 }
0x164a   : > { %10510 = vst [vmem:[#allocation78_spill] sm:$0xff] %v8354_v35 }
0x164d   : > { %v8356_v38 = vpop.permute.xlu0 %2845 }
0x164e   : > { %10511 = vst [vmem:[#allocation79_spill] sm:$0xff] %v8356_v38  ;;  %v2933_v38 = vrot.slane %v2924_v20, %v7322_v43 }
0x1651   : > { %v8358_v28 = vpop.permute.xlu0 %2849 }
0x1652   : > { %10512 = vst [vmem:[#allocation80_spill] sm:$0xff] %v8358_v28 }
0x166b   : > { %v8360_v52 = vpop.permute.xlu0 %2880 }
0x166c   : > { %10513 = vst [vmem:[#allocation81_spill] sm:$0xff] %v8360_v52 }
0x167c   : > { %v2895_v25 = vpop.permute.xlu0 %2894 }
0x167d   : > { %v2908_v21 = vmul.f32 %v2901_v27, %v2895_v25  ;;  %v2909_v19 = vmul.f32 %v2905_v58, %v2895_v25  ;;  %v2956_v27 = vld [vmem:[#allocation2 + $0xb] ss:$8 sm:$0x3]  ;;  %v2988_v58 = vld [vmem:[#allocation2 + $0xc] ss:$8 sm:$0x3] }
0x167e   : > { %v2965_v15 = vrot.slane %v2956_v27, %v7322_v43  ;;  %v2969_v25 = vrot.slane %v2956_v27, %v7325_v44  ;;  %v2997_v56 = vrot.slane %v2988_v58, %v7322_v43 }
0x167f   : > { %2912 = vrot.lane.b32.xlu1 %v2908_v21, %s6981_s6 }
0x1681   : > { %v2927_v35 = vpop.permute.xlu0 %2926 }
0x1682   : > { %v2940_v28 = vmul.f32 %v2933_v38, %v2927_v35  ;;  %v2941_v1 = vmul.f32 %v2937_v63, %v2927_v35  ;;  %v3001_v63 = vrot.slane %v2988_v58, %v7325_v44 }
0x1683   : > { %2914 = vrot.lane.b32.xlu1 %v2909_v19, %s6981_s6 }
0x1686   : > { %v2959_v52 = vpop.permute.xlu0 %2958 }
0x1687   : > { %2944 = vrot.lane.b32.xlu1 %v2940_v28, %s6981_s6  ;;  %v2972_v30 = vmul.f32 %v2965_v15, %v2959_v52  ;;  %v2973_v38 = vmul.f32 %v2969_v25, %v2959_v52 }
0x168b   : > { %2946 = vrot.lane.b32.xlu1 %v2941_v1, %s6981_s6  ;;  %v2991_v21 = vpop.permute.xlu0 %2990  ;;  %v3020_v1 = vld [vmem:[#allocation2 + $0xd] ss:$8 sm:$0x3] }
0x168c   : > { %v3004_v20 = vmul.f32 %v2997_v56, %v2991_v21  ;;  %v3005_v35 = vmul.f32 %v3001_v63, %v2991_v21  ;;  %v3029_v27 = vrot.slane %v3020_v1, %v7322_v43  ;;  %v3033_v52 = vrot.slane %v3020_v1, %v7325_v44  ;;  %v3084_v63 = vld [vmem:[#allocation2 + $0xf] ss:$8 sm:$0x3] }
0x168d   : > { %v3093_v1 = vrot.slane %v3084_v63, %v7322_v43 }
0x168f   : > { %2976 = vrot.lane.b32.xlu1 %v2972_v30, %s6981_s6 }
0x1690   : > { %v3023_v19 = vpop.permute.xlu0 %3022 }
0x1691   : > { %v3036_v30 = vmul.f32 %v3029_v27, %v3023_v19  ;;  %v3037_v56 = vmul.f32 %v3033_v52, %v3023_v19  ;;  %v3097_v19 = vrot.slane %v3084_v63, %v7325_v44  ;;  %v3116_v52 = vld [vmem:[#allocation2 + $0x28] ss:$8 sm:$0x3] }
0x1693   : > { %2978 = vrot.lane.b32.xlu1 %v2973_v38, %s6981_s6  ;;  %v3052_v38 = vld [vmem:[#allocation2 + $0xe] ss:$8 sm:$0x3] }
0x1694   : > { %v3061_v61 = vrot.slane %v3052_v38, %v7322_v43  ;;  %v3065_v21 = vrot.slane %v3052_v38, %v7325_v44 }
0x1695   : > { %v3055_v28 = vpop.permute.xlu0 %3054 }
0x1697   : > { %3008 = vrot.lane.b32.xlu1 %v3004_v20, %s6981_s6  ;;  %v3068_v20 = vmul.f32 %v3061_v61, %v3055_v28  ;;  %v3125_v61 = vrot.slane %v3116_v52, %v7322_v43 }
0x169a   : > { %v3087_v15 = vpop.permute.xlu0 %3086 }
0x169b   : > { %3010 = vrot.lane.b32.xlu1 %v3005_v35, %s6981_s6  ;;  %v3069_v35 = vmul.f32 %v3065_v21, %v3055_v28  ;;  %v3129_v28 = vrot.slane %v3116_v52, %v7325_v44  ;;  %v3148_v21 = vld [vmem:[#allocation2 + $0x29] ss:$8 sm:$0x3]  ;;  %v10514_v52 = vld [vmem:[#allocation17_spill] sm:$0xff] }
0x169c   : > { %v3157_v11 = vrot.slane %v3148_v21, %v7322_v43 }
0x169f   : > { %3040 = vrot.lane.b32.xlu1 %v3036_v30, %s6981_s6  ;;  %v3119_v25 = vpop.permute.xlu0 %3118  ;;  %v3100_v30 = vmul.f32 %v3093_v1, %v3087_v15 }
0x16a0   : > { %v3133_v1 = vmul.f32 %v3129_v28, %v3119_v25 }
0x16a3   : > { %3042 = vrot.lane.b32.xlu1 %v3037_v56, %s6981_s6  ;;  %v3101_v56 = vmul.f32 %v3097_v19, %v3087_v15  ;;  %v3161_v15 = vrot.slane %v3148_v21, %v7325_v44  ;;  %v3371_v19 = vld [vmem:[#allocation2 + $0x8] ss:$8 sm:$0x7] }
0x16a4   : > { %v3151_v58 = vpop.permute.xlu0 %3150  ;;  %v3372_v26 = vmul.f32 %v3371_v19, %v10514_v52 }
0x16a5   : > { %v3164_v63 = vmul.f32 %v3157_v11, %v3151_v58 }
0x16a6   : > { %v3391_v28 = vrot.slane %v3372_v26, %v7396_v48 }
0x16a7   : > { %3072 = vrot.lane.b32.xlu1 %v3068_v20, %s6981_s6  ;;  %v3132_v20 = vmul.f32 %v3125_v61, %v3119_v25  ;;  %v3165_v61 = vmul.f32 %v3161_v15, %v3151_v58 }
0x16a9   : > { %v3183_v27 = vpop.permute.xlu0 %3182 }
0x16ab   : > { %3074 = vrot.lane.b32.xlu1 %v3069_v35, %s6981_s6 }
0x16ae   : > { %v3215_v14 = vpop.permute.xlu0 %3214 }
0x16af   : > { %3104 = vrot.lane.b32.xlu1 %v3100_v30, %s6981_s6 }
0x16b3   : > { %3106 = vrot.lane.b32.xlu1 %v3101_v56, %s6981_s6  ;;  %v3247_v38 = vpop.permute.xlu0 %3246  ;;  %v3180_v56 = vld [vmem:[#allocation2 + $0x2a] ss:$8 sm:$0x3] }
0x16b4   : > { %v3193_v11 = vrot.slane %v3180_v56, %v7325_v44 }
0x16b6   : > { %v3197_v31 = vmul.f32 %v3193_v11, %v3183_v27 }
0x16b7   : > { %3136 = vrot.lane.b32.xlu1 %v3132_v20, %s6981_s6  ;;  %v3189_v20 = vrot.slane %v3180_v56, %v7322_v43 }
0x16b8   : > { %v3279_v35 = vpop.permute.xlu0 %3278 }
0x16b9   : > { %v3196_v25 = vmul.f32 %v3189_v20, %v3183_v27 }
0x16bb   : > { %3138 = vrot.lane.b32.xlu1 %v3133_v1, %s6981_s6  ;;  %v3212_v1 = vld [vmem:[#allocation2 + $0x2b] ss:$8 sm:$0x3] }
0x16bc   : > { %v3221_v58 = vrot.slane %v3212_v1, %v7322_v43  ;;  %v3225_v19 = vrot.slane %v3212_v1, %v7325_v44 }
0x16bd   : > { %v3311_v30 = vpop.permute.xlu0 %3310 }
0x16be   : > { %v3228_v15 = vmul.f32 %v3221_v58, %v3215_v14  ;;  %v3229_v56 = vmul.f32 %v3225_v19, %v3215_v14  ;;  %v3308_v14 = vld [vmem:[#allocation2 + $0x2e] ss:$8 sm:$0x3] }
0x16bf   : > { %3168 = vrot.lane.b32.xlu1 %v3164_v63, %s6981_s6 }
0x16c2   : > { %v3343_v3 = vpop.permute.xlu0 %3342 }
0x16c3   : > { %3170 = vrot.lane.b32.xlu1 %v3165_v61, %s6981_s6  ;;  %v3244_v61 = vld [vmem:[#allocation2 + $0x2c] ss:$8 sm:$0x3] }
0x16c4   : > { %v3253_v20 = vrot.slane %v3244_v61, %v7322_v43  ;;  %v3257_v27 = vrot.slane %v3244_v61, %v7325_v44  ;;  %v3321_v61 = vrot.slane %v3308_v14, %v7325_v44 }
0x16c6   : > { %v3261_v11 = vmul.f32 %v3257_v27, %v3247_v38 }
0x16c7   : > { %3200 = vrot.lane.b32.xlu1 %v3196_v25, %s6981_s6  ;;  %v3377_v21 = vpop.permute.xlu0 %3376  ;;  %v3260_v25 = vmul.f32 %v3253_v20, %v3247_v38  ;;  %v3340_v38 = vld [vmem:[#allocation2 + $0x2f] ss:$8 sm:$0x3] }
0x16c8   : > { %v3397_v63 = vmul.f32 %v3391_v28, %v3377_v21  ;;  %v3276_v28 = vld [vmem:[#allocation2 + $0x2d] ss:$8 sm:$0x3]  ;;  %v3349_v20 = vrot.slane %v3340_v38, %v7322_v43 }
0x16ca   : > { %3405 = vrot.lane.b32.xlu0 %v3397_v63, %s7010_s28  ;;  %v3289_v63 = vrot.slane %v3276_v28, %v7325_v44  ;;  %v3356_v27 = vmul.f32 %v3349_v20, %v3343_v3 }
0x16cb   : > { %3202 = vrot.lane.b32.xlu1 %v3197_v31, %s6981_s6  ;;  %v3285_v31 = vrot.slane %v3276_v28, %v7322_v43 }
0x16cc   : > { %v3293_v58 = vmul.f32 %v3289_v63, %v3279_v35  ;;  %v3387_v63 = vrot.slane %v3372_v26, %v7325_v44 }
0x16cd   : > { %v3292_v1 = vmul.f32 %v3285_v31, %v3279_v35  ;;  %v3353_v35 = vrot.slane %v3340_v38, %v7325_v44  ;;  %v3383_v31 = vrot.slane %v3372_v26, %v7322_v43 }
0x16cf   : > { %3232 = vrot.lane.b32.xlu1 %v3228_v15, %s6981_s6  ;;  %v3317_v15 = vrot.slane %v3308_v14, %v7322_v43  ;;  %v3357_v28 = vmul.f32 %v3353_v35, %v3343_v3  ;;  %v3396_v14 = vmul.f32 %v3387_v63, %v3377_v21  ;;  %v8440_v3 = vld [vmem:[%s10128_s3] sm:$0xff] }
0x16d1   : > { %v3324_v19 = vmul.f32 %v3317_v15, %v3311_v30 }
0x16d3   : > { %3234 = vrot.lane.b32.xlu1 %v3229_v56, %s6981_s6  ;;  %v3325_v56 = vmul.f32 %v3321_v61, %v3311_v30  ;;  %v7011_v61 = vmov 58  }
0x16d7   : > { %3264 = vrot.lane.b32.xlu1 %v3260_v25, %s6981_s6  ;;  %v8422_v25 = vpop.permute.xlu1 %2882 }
0x16d8   : > { %10515 = vst [vmem:[#allocation17_spill] sm:$0xff] %v8422_v25 }
0x16db   : > { %3266 = vrot.lane.b32.xlu1 %v3261_v11, %s6981_s6 }
0x16df   : > { %3296 = vrot.lane.b32.xlu1 %v3292_v1, %s6981_s6  ;;  %v3395_v1 = vmul.f32 %v3383_v31, %v3377_v21 }
0x16e3   : > { %3298 = vrot.lane.b32.xlu1 %v3293_v58, %s6981_s6 }
0x16e7   : > { %3328 = vrot.lane.b32.xlu1 %v3324_v19, %s6981_s6 }
0x16eb   : > { %3330 = vrot.lane.b32.xlu1 %v3325_v56, %s6981_s6 }
0x16ef   : > { %3360 = vrot.lane.b32.xlu1 %v3356_v27, %s6981_s6 }
0x16f1   : > { %v8426_v11 = vpop.permute.xlu1 %2912 }
0x16f2   : > { %10516 = vst [vmem:[#allocation82_spill] sm:$0xff] %v8426_v11 }
0x16f3   : > { %3362 = vrot.lane.b32.xlu1 %v3357_v28, %s6981_s6 }
0x16f5   : > { %v8430_v30 = vpop.permute.xlu1 %2914 }
0x16f6   : > { %10517 = vst [vmem:[#allocation83_spill] sm:$0xff] %v8430_v30 }
0x16f7   : > { %3401 = vrot.lane.b32.xlu1 %v3395_v1, %s7010_s28 }
0x16f9   : > { %v8434_v58 = vpop.permute.xlu1 %2944 }
0x16fa   : > { %10518 = vst [vmem:[#allocation84_spill] sm:$0xff] %v8434_v58 }
0x16fb   : > { %3403 = vrot.lane.b32.xlu1 %v3396_v14, %s7010_s28 }
0x16fd   : > { %v8442_v15 = vpop.permute.xlu1 %2946 }
0x16fe   : > { %10519 = vst [vmem:[#allocation85_spill] sm:$0xff] %v8442_v15 }
0x16ff   : > { %3421 = vperm.xlu1 %6769, %v8440_v3  }
0x1701   : > { %v8445_v19 = vpop.permute.xlu1 %2976 }
0x1702   : > { %10520 = vst [vmem:[#allocation86_spill] sm:$0xff] %v8445_v19 }
0x1703   : > { %6770 = vset.pattern.permute.xlu1 %v7011_v61 }
0x1705   : > { %v8447_v26 = vpop.permute.xlu1 %2978 }
0x1706   : > { %10521 = vst [vmem:[#allocation87_spill] sm:$0xff] %v8447_v26 }
0x1709   : > { %v8449_v21 = vpop.permute.xlu1 %3008 }
0x170a   : > { %10522 = vst [vmem:[#allocation88_spill] sm:$0xff] %v8449_v21 }
0x170d   : > { %v8451_v38 = vpop.permute.xlu1 %3010 }
0x170e   : > { %10523 = vst [vmem:[#allocation89_spill] sm:$0xff] %v8451_v38 }
0x1711   : > { %v8453_v56 = vpop.permute.xlu1 %3040 }
0x1712   : > { %10524 = vst [vmem:[#allocation90_spill] sm:$0xff] %v8453_v56 }
0x1715   : > { %v8455_v20 = vpop.permute.xlu1 %3042 }
0x1716   : > { %10525 = vst [vmem:[#allocation91_spill] sm:$0xff] %v8455_v20 }
0x1719   : > { %v8457_v27 = vpop.permute.xlu1 %3072 }
0x171a   : > { %10526 = vst [vmem:[#allocation92_spill] sm:$0xff] %v8457_v27 }
0x171d   : > { %v8459_v35 = vpop.permute.xlu1 %3074 }
0x171e   : > { %10527 = vst [vmem:[#allocation93_spill] sm:$0xff] %v8459_v35 }
0x1721   : > { %v8461_v28 = vpop.permute.xlu1 %3104 }
0x1722   : > { %10528 = vst [vmem:[#allocation94_spill] sm:$0xff] %v8461_v28 }
0x1725   : > { %v8463_v31 = vpop.permute.xlu1 %3106 }
0x1726   : > { %10529 = vst [vmem:[#allocation95_spill] sm:$0xff] %v8463_v31 }
0x1729   : > { %v8465_v1 = vpop.permute.xlu1 %3136 }
0x172a   : > { %10530 = vst [vmem:[#allocation96_spill] sm:$0xff] %v8465_v1 }
0x172d   : > { %v8467_v63 = vpop.permute.xlu1 %3138 }
0x172e   : > { %10531 = vst [vmem:[#allocation97_spill] sm:$0xff] %v8467_v63 }
0x1731   : > { %v8469_v14 = vpop.permute.xlu1 %3168 }
0x1732   : > { %10532 = vst [vmem:[#allocation98_spill] sm:$0xff] %v8469_v14 }
0x1735   : > { %v8471_v61 = vpop.permute.xlu1 %3170 }
0x1736   : > { %10533 = vst [vmem:[#allocation99_spill] sm:$0xff] %v8471_v61 }
0x1739   : > { %v8473_v21 = vpop.permute.xlu1 %3200 }
0x173a   : > { %10534 = vst [vmem:[#allocation100_spill] sm:$0xff] %v8473_v21 }
0x173d   : > { %v8475_v56 = vpop.permute.xlu1 %3202 }
0x173e   : > { %10535 = vst [vmem:[#allocation101_spill] sm:$0xff] %v8475_v56 }
0x1741   : > { %v8477_v20 = vpop.permute.xlu1 %3232 }
0x1742   : > { %10536 = vst [vmem:[#allocation102_spill] sm:$0xff] %v8477_v20  ;;  %v3416_v20 = vld [vmem:[#allocation2 + $0x9] ss:$8 sm:$0x7] }
0x1745   : > { %v8479_v27 = vpop.permute.xlu1 %3234 }
0x1746   : > { %10537 = vst [vmem:[#allocation103_spill] sm:$0xff] %v8479_v27  ;;  %v3417_v27 = vmul.f32 %v3416_v20, %v10514_v52  ;;  %v7012_v20 = vmov 59  }
0x1749   : > { %v8481_v35 = vpop.permute.xlu1 %3264 }
0x174a   : > { %10538 = vst [vmem:[#allocation104_spill] sm:$0xff] %v8481_v35 }
0x174d   : > { %v8483_v28 = vpop.permute.xlu1 %3266 }
0x174e   : > { %10539 = vst [vmem:[#allocation105_spill] sm:$0xff] %v8483_v28  ;;  %v3428_v28 = vrot.slane %v3417_v27, %v7322_v43 }
0x1751   : > { %v8485_v31 = vpop.permute.xlu1 %3296 }
0x1752   : > { %10540 = vst [vmem:[#allocation106_spill] sm:$0xff] %v8485_v31  ;;  %v3432_v31 = vrot.slane %v3417_v27, %v7325_v44 }
0x1755   : > { %v8487_v1 = vpop.permute.xlu1 %3298 }
0x1756   : > { %10541 = vst [vmem:[#allocation107_spill] sm:$0xff] %v8487_v1 }
0x1759   : > { %v8489_v63 = vpop.permute.xlu1 %3328 }
0x175a   : > { %10542 = vst [vmem:[#allocation108_spill] sm:$0xff] %v8489_v63 }
0x175d   : > { %v8491_v14 = vpop.permute.xlu1 %3330 }
0x175e   : > { %10543 = vst [vmem:[#allocation109_spill] sm:$0xff] %v8491_v14  ;;  %v3436_v14 = vrot.slane %v3417_v27, %v7396_v48 }
0x1761   : > { %v8493_v61 = vpop.permute.xlu1 %3360 }
0x1762   : > { %10544 = vst [vmem:[#allocation110_spill] sm:$0xff] %v8493_v61 }
0x1765   : > { %v8495_v21 = vpop.permute.xlu1 %3362 }
0x1766   : > { %10545 = vst [vmem:[#allocation111_spill] sm:$0xff] %v8495_v21 }
0x1769   : > { %v8497_v56 = vpop.permute.xlu1 %3401 }
0x176a   : > { %10546 = vst [vmem:[#allocation112_spill] sm:$0xff] %v8497_v56  ;;  %v3460_v56 = vld [vmem:[#allocation2 + $0xa] ss:$8 sm:$0x7] }
0x176d   : > { %v8500_v35 = vpop.permute.xlu1 %3403 }
0x176e   : > { %10547 = vst [vmem:[#allocation113_spill] sm:$0xff] %v8500_v35  ;;  %v3461_v35 = vmul.f32 %v3460_v56, %v10514_v52  ;;  %v7013_v56 = vmov 60  }
0x1770   : > { %v3476_v27 = vrot.slane %v3461_v35, %v7325_v44 }
0x177e   : > { %v3422_v1 = vpop.permute.xlu1 %3421 }
0x177f   : > { %v3440_v38 = vmul.f32 %v3428_v28, %v3422_v1  ;;  %v3441_v63 = vmul.f32 %v3432_v31, %v3422_v1  ;;  %v3442_v61 = vmul.f32 %v3436_v14, %v3422_v1  ;;  %v3472_v28 = vrot.slane %v3461_v35, %v7322_v43  ;;  %v3504_v14 = vld [vmem:[#allocation2 + $0xb] ss:$8 sm:$0x7] }
0x1781   : > { %3448 = vrot.lane.b32.xlu1 %v3441_v63, %s7010_s28  ;;  %3446 = vrot.lane.b32.xlu0 %v3440_v38, %s7010_s28  ;;  %v3480_v38 = vrot.slane %v3461_v35, %v7396_v48 }
0x1785   : > { %3465 = vperm.xlu1 %6770, %v8440_v3   ;;  %3450 = vrot.lane.b32.xlu0 %v3442_v61, %s7010_s28  ;;  %v3505_v61 = vmul.f32 %v3504_v14, %v10514_v52 }
0x1787   : > { %v3520_v35 = vrot.slane %v3505_v61, %v7325_v44 }
0x1789   : > { %6771 = vset.pattern.permute.xlu1 %v7012_v20 }
0x17f3   : > { %v8510_v21 = vpop.permute.xlu1 %3448 }
0x17f4   : > { %10548 = vst [vmem:[#allocation114_spill] sm:$0xff] %v8510_v21 }
0x1804   : > { %v3466_v31 = vpop.permute.xlu1 %3465 }
0x1805   : > { %v3484_v63 = vmul.f32 %v3472_v28, %v3466_v31  ;;  %v3485_v19 = vmul.f32 %v3476_v27, %v3466_v31  ;;  %v3486_v1 = vmul.f32 %v3480_v38, %v3466_v31  ;;  %v3516_v28 = vrot.slane %v3505_v61, %v7322_v43 }
0x1806   : > { %v3524_v31 = vrot.slane %v3505_v61, %v7396_v48  ;;  %v7014_v38 = vmov 61  }
0x1807   : > { %3492 = vrot.lane.b32.xlu1 %v3485_v19, %s7010_s28  ;;  %3490 = vrot.lane.b32.xlu0 %v3484_v63, %s7010_s28 }
0x180b   : > { %3509 = vperm.xlu1 %6771, %v8440_v3   ;;  %3494 = vrot.lane.b32.xlu0 %v3486_v1, %s7010_s28  ;;  %v3548_v1 = vld [vmem:[#allocation2 + $0xc] ss:$8 sm:$0x7] }
0x180f   : > { %6772 = vset.pattern.permute.xlu1 %v7013_v56  ;;  %v3549_v56 = vmul.f32 %v3548_v1, %v10514_v52 }
0x1811   : > { %v3564_v61 = vrot.slane %v3549_v56, %v7325_v44 }
0x1879   : > { %v8520_v20 = vpop.permute.xlu1 %3492 }
0x187a   : > { %10549 = vst [vmem:[#allocation115_spill] sm:$0xff] %v8520_v20 }
0x188a   : > { %v3510_v27 = vpop.permute.xlu1 %3509 }
0x188b   : > { %v3528_v19 = vmul.f32 %v3516_v28, %v3510_v27  ;;  %v3529_v21 = vmul.f32 %v3520_v35, %v3510_v27  ;;  %v3530_v63 = vmul.f32 %v3524_v31, %v3510_v27  ;;  %v3560_v28 = vrot.slane %v3549_v56, %v7322_v43 }
0x188c   : > { %v3568_v27 = vrot.slane %v3549_v56, %v7396_v48  ;;  %v7015_v31 = vmov 62  }
0x188d   : > { %3536 = vrot.lane.b32.xlu1 %v3529_v21, %s7010_s28  ;;  %3534 = vrot.lane.b32.xlu0 %v3528_v19, %s7010_s28 }
0x1891   : > { %3553 = vperm.xlu1 %6772, %v8440_v3   ;;  %3538 = vrot.lane.b32.xlu0 %v3530_v63, %s7010_s28  ;;  %v3592_v63 = vld [vmem:[#allocation2 + $0xd] ss:$8 sm:$0x7] }
0x1895   : > { %6773 = vset.pattern.permute.xlu1 %v7014_v38  ;;  %v3593_v38 = vmul.f32 %v3592_v63, %v10514_v52 }
0x1897   : > { %v3608_v56 = vrot.slane %v3593_v38, %v7325_v44 }
0x18ff   : > { %v8530_v14 = vpop.permute.xlu1 %3536 }
0x1900   : > { %10550 = vst [vmem:[#allocation116_spill] sm:$0xff] %v8530_v14 }
0x1910   : > { %v3554_v35 = vpop.permute.xlu1 %3553 }
0x1911   : > { %v3572_v21 = vmul.f32 %v3560_v28, %v3554_v35  ;;  %v3573_v20 = vmul.f32 %v3564_v61, %v3554_v35  ;;  %v3574_v19 = vmul.f32 %v3568_v27, %v3554_v35  ;;  %v3604_v28 = vrot.slane %v3593_v38, %v7322_v43 }
0x1912   : > { %v3612_v35 = vrot.slane %v3593_v38, %v7396_v48  ;;  %v7016_v27 = vmov 63  }
0x1913   : > { %3580 = vrot.lane.b32.xlu1 %v3573_v20, %s7010_s28  ;;  %3578 = vrot.lane.b32.xlu0 %v3572_v21, %s7010_s28 }
0x1917   : > { %3597 = vperm.xlu1 %6773, %v8440_v3   ;;  %3582 = vrot.lane.b32.xlu0 %v3574_v19, %s7010_s28  ;;  %v3636_v19 = vld [vmem:[#allocation2 + $0xe] ss:$8 sm:$0x7] }
0x191b   : > { %6774 = vset.pattern.permute.xlu1 %v7015_v31  ;;  %v3637_v31 = vmul.f32 %v3636_v19, %v10514_v52 }
0x191d   : > { %v3652_v38 = vrot.slane %v3637_v31, %v7325_v44 }
0x1985   : > { %v8540_v1 = vpop.permute.xlu1 %3580 }
0x1986   : > { %10551 = vst [vmem:[#allocation117_spill] sm:$0xff] %v8540_v1 }
0x1996   : > { %v3598_v61 = vpop.permute.xlu1 %3597 }
0x1997   : > { %v3616_v20 = vmul.f32 %v3604_v28, %v3598_v61  ;;  %v3617_v14 = vmul.f32 %v3608_v56, %v3598_v61  ;;  %v3618_v21 = vmul.f32 %v3612_v35, %v3598_v61  ;;  %v3648_v28 = vrot.slane %v3637_v31, %v7322_v43 }
0x1998   : > { %v3656_v61 = vrot.slane %v3637_v31, %v7396_v48  ;;  %v7017_v35 = vmov 64  }
0x1999   : > { %3624 = vrot.lane.b32.xlu1 %v3617_v14, %s7010_s28  ;;  %3622 = vrot.lane.b32.xlu0 %v3616_v20, %s7010_s28 }
0x199d   : > { %3641 = vperm.xlu1 %6774, %v8440_v3   ;;  %3626 = vrot.lane.b32.xlu0 %v3618_v21, %s7010_s28  ;;  %v3680_v21 = vld [vmem:[#allocation2 + $0xf] ss:$8 sm:$0x7] }
0x19a1   : > { %6775 = vset.pattern.permute.xlu1 %v7016_v27  ;;  %v3681_v27 = vmul.f32 %v3680_v21, %v10514_v52 }
0x19a3   : > { %v3696_v31 = vrot.slane %v3681_v27, %v7325_v44 }
0x1a0b   : > { %v8550_v63 = vpop.permute.xlu1 %3624 }
0x1a0c   : > { %10552 = vst [vmem:[#allocation118_spill] sm:$0xff] %v8550_v63 }
0x1a1c   : > { %v3642_v56 = vpop.permute.xlu1 %3641 }
0x1a1d   : > { %v3660_v14 = vmul.f32 %v3648_v28, %v3642_v56  ;;  %v3661_v1 = vmul.f32 %v3652_v38, %v3642_v56  ;;  %v3662_v20 = vmul.f32 %v3656_v61, %v3642_v56  ;;  %v3692_v28 = vrot.slane %v3681_v27, %v7322_v43 }
0x1a1e   : > { %v3700_v56 = vrot.slane %v3681_v27, %v7396_v48  ;;  %v7018_v61 = vmov 65  }
0x1a1f   : > { %3668 = vrot.lane.b32.xlu1 %v3661_v1, %s7010_s28  ;;  %3666 = vrot.lane.b32.xlu0 %v3660_v14, %s7010_s28 }
0x1a23   : > { %3685 = vperm.xlu1 %6775, %v8440_v3   ;;  %3670 = vrot.lane.b32.xlu0 %v3662_v20, %s7010_s28  ;;  %v3724_v20 = vld [vmem:[#allocation2 + $0x60] ss:$8 sm:$0x7] }
0x1a27   : > { %6776 = vset.pattern.permute.xlu1 %v7017_v35  ;;  %v3725_v35 = vmul.f32 %v3724_v20, %v8222_v50 }
0x1a29   : > { %v3740_v27 = vrot.slane %v3725_v35, %v7325_v44 }
0x1a91   : > { %v8560_v19 = vpop.permute.xlu1 %3668 }
0x1a92   : > { %10553 = vst [vmem:[#allocation119_spill] sm:$0xff] %v8560_v19 }
0x1aa2   : > { %v3686_v38 = vpop.permute.xlu1 %3685 }
0x1aa3   : > { %v3704_v1 = vmul.f32 %v3692_v28, %v3686_v38  ;;  %v3705_v63 = vmul.f32 %v3696_v31, %v3686_v38  ;;  %v3706_v14 = vmul.f32 %v3700_v56, %v3686_v38  ;;  %v3736_v28 = vrot.slane %v3725_v35, %v7322_v43 }
0x1aa4   : > { %v3744_v38 = vrot.slane %v3725_v35, %v7396_v48  ;;  %v7019_v56 = vmov 66  }
0x1aa5   : > { %3712 = vrot.lane.b32.xlu1 %v3705_v63, %s7010_s28  ;;  %3710 = vrot.lane.b32.xlu0 %v3704_v1, %s7010_s28 }
0x1aa9   : > { %3729 = vperm.xlu1 %6776, %v8440_v3   ;;  %3714 = vrot.lane.b32.xlu0 %v3706_v14, %s7010_s28  ;;  %v3768_v14 = vld [vmem:[#allocation2 + $0x61] ss:$8 sm:$0x7] }
0x1aad   : > { %6777 = vset.pattern.permute.xlu1 %v7018_v61  ;;  %v3769_v61 = vmul.f32 %v3768_v14, %v8222_v50 }
0x1aaf   : > { %v3784_v35 = vrot.slane %v3769_v61, %v7325_v44 }
0x1b17   : > { %v8570_v21 = vpop.permute.xlu1 %3712 }
0x1b18   : > { %10554 = vst [vmem:[#allocation120_spill] sm:$0xff] %v8570_v21 }
0x1b28   : > { %v3730_v31 = vpop.permute.xlu1 %3729 }
0x1b29   : > { %v3748_v63 = vmul.f32 %v3736_v28, %v3730_v31  ;;  %v3749_v19 = vmul.f32 %v3740_v27, %v3730_v31  ;;  %v3750_v1 = vmul.f32 %v3744_v38, %v3730_v31  ;;  %v3780_v28 = vrot.slane %v3769_v61, %v7322_v43 }
0x1b2a   : > { %v3788_v31 = vrot.slane %v3769_v61, %v7396_v48  ;;  %v7020_v38 = vmov 67  }
0x1b2b   : > { %3756 = vrot.lane.b32.xlu1 %v3749_v19, %s6973_s26  ;;  %3754 = vrot.lane.b32.xlu0 %v3748_v63, %s6973_s26 }
0x1b2f   : > { %3773 = vperm.xlu1 %6777, %v8440_v3   ;;  %3758 = vrot.lane.b32.xlu0 %v3750_v1, %s6973_s26  ;;  %v3812_v1 = vld [vmem:[#allocation2 + $0x62] ss:$8 sm:$0x7] }
0x1b33   : > { %6778 = vset.pattern.permute.xlu1 %v7019_v56  ;;  %v3813_v56 = vmul.f32 %v3812_v1, %v8222_v50 }
0x1b35   : > { %v3828_v61 = vrot.slane %v3813_v56, %v7325_v44 }
0x1b9d   : > { %v8580_v20 = vpop.permute.xlu1 %3756 }
0x1b9e   : > { %10555 = vst [vmem:[#allocation121_spill] sm:$0xff] %v8580_v20 }
0x1bae   : > { %v3774_v27 = vpop.permute.xlu1 %3773 }
0x1baf   : > { %v3792_v19 = vmul.f32 %v3780_v28, %v3774_v27  ;;  %v3793_v21 = vmul.f32 %v3784_v35, %v3774_v27  ;;  %v3794_v63 = vmul.f32 %v3788_v31, %v3774_v27  ;;  %v3824_v28 = vrot.slane %v3813_v56, %v7322_v43 }
0x1bb0   : > { %v3832_v27 = vrot.slane %v3813_v56, %v7396_v48  ;;  %v7021_v31 = vmov 68  }
0x1bb1   : > { %3800 = vrot.lane.b32.xlu1 %v3793_v21, %s6973_s26  ;;  %3798 = vrot.lane.b32.xlu0 %v3792_v19, %s6973_s26 }
0x1bb5   : > { %3817 = vperm.xlu1 %6778, %v8440_v3   ;;  %3802 = vrot.lane.b32.xlu0 %v3794_v63, %s6973_s26  ;;  %v3856_v63 = vld [vmem:[#allocation2 + $0x63] ss:$8 sm:$0x7] }
0x1bb9   : > { %6779 = vset.pattern.permute.xlu1 %v7020_v38  ;;  %v3857_v38 = vmul.f32 %v3856_v63, %v8222_v50 }
0x1bbb   : > { %v3872_v56 = vrot.slane %v3857_v38, %v7325_v44 }
0x1c23   : > { %v8590_v14 = vpop.permute.xlu1 %3800 }
0x1c24   : > { %10556 = vst [vmem:[#allocation122_spill] sm:$0xff] %v8590_v14 }
0x1c34   : > { %v3818_v35 = vpop.permute.xlu1 %3817 }
0x1c35   : > { %v3836_v21 = vmul.f32 %v3824_v28, %v3818_v35  ;;  %v3837_v20 = vmul.f32 %v3828_v61, %v3818_v35  ;;  %v3838_v19 = vmul.f32 %v3832_v27, %v3818_v35  ;;  %v3868_v28 = vrot.slane %v3857_v38, %v7322_v43 }
0x1c36   : > { %v3876_v35 = vrot.slane %v3857_v38, %v7396_v48  ;;  %v7022_v27 = vmov 69  }
0x1c37   : > { %3844 = vrot.lane.b32.xlu1 %v3837_v20, %s6973_s26  ;;  %3842 = vrot.lane.b32.xlu0 %v3836_v21, %s6973_s26 }
0x1c3b   : > { %3861 = vperm.xlu1 %6779, %v8440_v3   ;;  %3846 = vrot.lane.b32.xlu0 %v3838_v19, %s6973_s26  ;;  %v3900_v19 = vld [vmem:[#allocation2 + $0x64] ss:$8 sm:$0x7] }
0x1c3f   : > { %6780 = vset.pattern.permute.xlu1 %v7021_v31  ;;  %v3901_v31 = vmul.f32 %v3900_v19, %v8222_v50 }
0x1c41   : > { %v3916_v38 = vrot.slane %v3901_v31, %v7325_v44 }
0x1ca9   : > { %v8600_v1 = vpop.permute.xlu1 %3844 }
0x1caa   : > { %10557 = vst [vmem:[#allocation123_spill] sm:$0xff] %v8600_v1 }
0x1cba   : > { %v3862_v61 = vpop.permute.xlu1 %3861 }
0x1cbb   : > { %v3880_v20 = vmul.f32 %v3868_v28, %v3862_v61  ;;  %v3881_v14 = vmul.f32 %v3872_v56, %v3862_v61  ;;  %v3882_v21 = vmul.f32 %v3876_v35, %v3862_v61  ;;  %v3912_v28 = vrot.slane %v3901_v31, %v7322_v43 }
0x1cbc   : > { %v3920_v61 = vrot.slane %v3901_v31, %v7396_v48  ;;  %v7023_v35 = vmov 70  }
0x1cbd   : > { %3888 = vrot.lane.b32.xlu1 %v3881_v14, %s6973_s26  ;;  %3886 = vrot.lane.b32.xlu0 %v3880_v20, %s6973_s26 }
0x1cc1   : > { %3905 = vperm.xlu1 %6780, %v8440_v3   ;;  %3890 = vrot.lane.b32.xlu0 %v3882_v21, %s6973_s26  ;;  %v3944_v21 = vld [vmem:[#allocation2 + $0x65] ss:$8 sm:$0x7] }
0x1cc5   : > { %6781 = vset.pattern.permute.xlu1 %v7022_v27  ;;  %v3945_v27 = vmul.f32 %v3944_v21, %v8222_v50 }
0x1cc7   : > { %v3960_v31 = vrot.slane %v3945_v27, %v7325_v44 }
0x1d2f   : > { %v8610_v63 = vpop.permute.xlu1 %3888 }
0x1d30   : > { %10558 = vst [vmem:[#allocation124_spill] sm:$0xff] %v8610_v63 }
0x1d40   : > { %v3906_v56 = vpop.permute.xlu1 %3905 }
0x1d41   : > { %v3924_v14 = vmul.f32 %v3912_v28, %v3906_v56  ;;  %v3925_v1 = vmul.f32 %v3916_v38, %v3906_v56  ;;  %v3926_v20 = vmul.f32 %v3920_v61, %v3906_v56  ;;  %v3956_v28 = vrot.slane %v3945_v27, %v7322_v43 }
0x1d42   : > { %v3964_v56 = vrot.slane %v3945_v27, %v7396_v48  ;;  %v7024_v61 = vmov 71  }
0x1d43   : > { %3932 = vrot.lane.b32.xlu1 %v3925_v1, %s6973_s26  ;;  %3930 = vrot.lane.b32.xlu0 %v3924_v14, %s6973_s26 }
0x1d47   : > { %3949 = vperm.xlu1 %6781, %v8440_v3   ;;  %3934 = vrot.lane.b32.xlu0 %v3926_v20, %s6973_s26  ;;  %v3988_v20 = vld [vmem:[#allocation2 + $0x66] ss:$8 sm:$0x7] }
0x1d4b   : > { %6782 = vset.pattern.permute.xlu1 %v7023_v35  ;;  %v3989_v35 = vmul.f32 %v3988_v20, %v8222_v50 }
0x1d4d   : > { %v4004_v27 = vrot.slane %v3989_v35, %v7325_v44 }
0x1db5   : > { %v8620_v19 = vpop.permute.xlu1 %3932 }
0x1db6   : > { %10559 = vst [vmem:[#allocation125_spill] sm:$0xff] %v8620_v19 }
0x1dc6   : > { %v3950_v38 = vpop.permute.xlu1 %3949 }
0x1dc7   : > { %v3968_v1 = vmul.f32 %v3956_v28, %v3950_v38  ;;  %v3969_v63 = vmul.f32 %v3960_v31, %v3950_v38  ;;  %v3970_v14 = vmul.f32 %v3964_v56, %v3950_v38  ;;  %v4000_v28 = vrot.slane %v3989_v35, %v7322_v43 }
0x1dc8   : > { %v4008_v38 = vrot.slane %v3989_v35, %v7396_v48  ;;  %v7025_v56 = vmov 72  }
0x1dc9   : > { %3976 = vrot.lane.b32.xlu1 %v3969_v63, %s6973_s26  ;;  %3974 = vrot.lane.b32.xlu0 %v3968_v1, %s6973_s26 }
0x1dcd   : > { %3993 = vperm.xlu1 %6782, %v8440_v3   ;;  %3978 = vrot.lane.b32.xlu0 %v3970_v14, %s6973_s26  ;;  %v4032_v14 = vld [vmem:[#allocation2 + $0x67] ss:$8 sm:$0x7] }
0x1dd1   : > { %6783 = vset.pattern.permute.xlu1 %v7024_v61  ;;  %v4033_v61 = vmul.f32 %v4032_v14, %v8222_v50  ;;  %v7026_v50 = vmov 73  }
0x1dd2   : > { %6785 = vset.pattern.permute.xlu0 %v7026_v50 }
0x1dd3   : > { %v4048_v35 = vrot.slane %v4033_v61, %v7325_v44 }
0x1e3b   : > { %v8630_v21 = vpop.permute.xlu1 %3976 }
0x1e3c   : > { %10560 = vst [vmem:[#allocation126_spill] sm:$0xff] %v8630_v21 }
0x1e4c   : > { %v3994_v31 = vpop.permute.xlu1 %3993 }
0x1e4d   : > { %v4012_v63 = vmul.f32 %v4000_v28, %v3994_v31  ;;  %v4013_v19 = vmul.f32 %v4004_v27, %v3994_v31  ;;  %v4014_v1 = vmul.f32 %v4008_v38, %v3994_v31  ;;  %v4044_v28 = vrot.slane %v4033_v61, %v7322_v43  ;;  %v8649_v38 = vpop.permute.xlu0 %3405 }
0x1e4e   : > { %v4052_v31 = vrot.slane %v4033_v61, %v7396_v48  ;;  %10562 = vst [vmem:[#allocation128_spill] sm:$0xff] %v8649_v38  ;;  %v7027_v38 = vmov 74  }
0x1e4f   : > { %4020 = vrot.lane.b32.xlu1 %v4013_v19, %s6973_s26  ;;  %4018 = vrot.lane.b32.xlu0 %v4012_v63, %s6973_s26 }
0x1e53   : > { %4037 = vperm.xlu1 %6783, %v8440_v3   ;;  %4022 = vrot.lane.b32.xlu0 %v4014_v1, %s6973_s26  ;;  %v8651_v1 = vpop.permute.xlu0 %3446 }
0x1e54   : > { %10563 = vst [vmem:[#allocation129_spill] sm:$0xff] %v8651_v1 }
0x1e57   : > { %6784 = vset.pattern.permute.xlu1 %v7025_v56  ;;  %v8653_v56 = vpop.permute.xlu0 %3450 }
0x1e58   : > { %10564 = vst [vmem:[#allocation130_spill] sm:$0xff] %v8653_v56 }
0x1e5b   : > { %v8655_v14 = vpop.permute.xlu0 %3490 }
0x1e5c   : > { %10565 = vst [vmem:[#allocation131_spill] sm:$0xff] %v8655_v14 }
0x1e5f   : > { %v8657_v61 = vpop.permute.xlu0 %3494 }
0x1e60   : > { %10566 = vst [vmem:[#allocation132_spill] sm:$0xff] %v8657_v61 }
0x1ec1   : > { %v8640_v20 = vpop.permute.xlu1 %4020 }
0x1ec2   : > { %10561 = vst [vmem:[#allocation127_spill] sm:$0xff] %v8640_v20  ;;  %v7035_v20 = vmov 82  }
0x1ed2   : > { %v4038_v27 = vpop.permute.xlu1 %4037 }
0x1ed3   : > { %v4056_v19 = vmul.f32 %v4044_v28, %v4038_v27  ;;  %v4057_v21 = vmul.f32 %v4048_v35, %v4038_v27  ;;  %v4058_v63 = vmul.f32 %v4052_v31, %v4038_v27  ;;  %v4077_v28 = vld [vmem:[#allocation2 + $0x48] ss:$8 sm:$0x3] }
0x1ed4   : > { %v4086_v35 = vrot.slane %v4077_v28, %v7322_v43  ;;  %v4090_v27 = vrot.slane %v4077_v28, %v7325_v44 }
0x1ed5   : > { %4064 = vrot.lane.b32.xlu1 %v4057_v21, %s6973_s26  ;;  %4062 = vrot.lane.b32.xlu0 %v4056_v19, %s6973_s26  ;;  %v8663_v19 = vpop.permute.xlu0 %3534 }
0x1ed6   : > { %10568 = vst [vmem:[#allocation134_spill] sm:$0xff] %v8663_v19 }
0x1ed9   : > { %4079 = vperm.xlu1 %6784, %v8440_v3   ;;  %4066 = vrot.lane.b32.xlu0 %v4058_v63, %s6973_s26  ;;  %v8667_v56 = vpop.permute.xlu0 %3538  ;;  %s7050_s26 = smov 15  }
0x1eda   : > { %10569 = vst [vmem:[#allocation135_spill] sm:$0xff] %v8667_v56  ;;  %v7033_v56 = vmov 80  }
0x1edd   : > { %v8670_v61 = vpop.permute.xlu0 %3578 }
0x1ede   : > { %10570 = vst [vmem:[#allocation136_spill] sm:$0xff] %v8670_v61 }
0x1ee1   : > { %v8673_v28 = vpop.permute.xlu0 %3582 }
0x1ee2   : > { %10571 = vst [vmem:[#allocation137_spill] sm:$0xff] %v8673_v28  ;;  %v7032_v28 = vmov 79  }
0x1f47   : > { %v8659_v21 = vpop.permute.xlu1 %4064 }
0x1f48   : > { %10567 = vst [vmem:[#allocation133_spill] sm:$0xff] %v8659_v21  ;;  %v7028_v21 = vmov 75  }
0x1f58   : > { %v4080_v31 = vpop.permute.xlu1 %4079 }
0x1f59   : > { %v4093_v63 = vmul.f32 %v4086_v35, %v4080_v31  ;;  %v4094_v50 = vmul.f32 %v4090_v27, %v4080_v31  ;;  %v8676_v35 = vpop.permute.xlu0 %3622  ;;  %v7029_v27 = vmov 76  }
0x1f5a   : > { %10572 = vst [vmem:[#allocation138_spill] sm:$0xff] %v8676_v35 }
0x1f5b   : > { %4099 = vrot.lane.b32.xlu1 %v4094_v50, %s6981_s6  ;;  %4097 = vrot.lane.b32.xlu0 %v4093_v63, %s6981_s6  ;;  %v7030_v63 = vmov 77   ;;  %v7031_v50 = vmov 78  }
0x1f5d   : > { %v8679_v31 = vpop.permute.xlu0 %3626 }
0x1f5e   : > { %10573 = vst [vmem:[#allocation139_spill] sm:$0xff] %v8679_v31  ;;  %v7034_v31 = vmov 81  }
0x1f5f   : > { %4111 = vperm.xlu0 %6785, %v8440_v3  }
0x1f63   : > { %6786 = vset.pattern.permute.xlu0 %v7027_v38  ;;  %v8682_v38 = vpop.permute.xlu0 %3666 }
0x1f64   : > { %4143 = vperm.xlu0 %6786, %v8440_v3   ;;  %10574 = vst [vmem:[#allocation140_spill] sm:$0xff] %v8682_v38 }
0x1f68   : > { %6787 = vset.pattern.permute.xlu0 %v7028_v21  ;;  %v8685_v21 = vpop.permute.xlu0 %3670 }
0x1f69   : > { %4175 = vperm.xlu0 %6787, %v8440_v3   ;;  %10575 = vst [vmem:[#allocation141_spill] sm:$0xff] %v8685_v21  ;;  %v7036_v21 = vmov 83  }
0x1f6d   : > { %6788 = vset.pattern.permute.xlu0 %v7029_v27  ;;  %v8688_v27 = vpop.permute.xlu0 %3710 }
0x1f6e   : > { %4207 = vperm.xlu0 %6788, %v8440_v3   ;;  %10576 = vst [vmem:[#allocation142_spill] sm:$0xff] %v8688_v27  ;;  %v7037_v27 = vmov 84  }
0x1f72   : > { %6789 = vset.pattern.permute.xlu0 %v7030_v63  ;;  %v8691_v63 = vpop.permute.xlu0 %3714 }
0x1f73   : > { %4239 = vperm.xlu0 %6789, %v8440_v3   ;;  %10577 = vst [vmem:[#allocation143_spill] sm:$0xff] %v8691_v63  ;;  %v7038_v63 = vmov 85  }
0x1f77   : > { %6790 = vset.pattern.permute.xlu0 %v7031_v50  ;;  %v8694_v50 = vpop.permute.xlu0 %3754 }
0x1f78   : > { %4271 = vperm.xlu0 %6790, %v8440_v3   ;;  %10578 = vst [vmem:[#allocation144_spill] sm:$0xff] %v8694_v50  ;;  %v7039_v50 = vmov 86  }
0x1f7c   : > { %6791 = vset.pattern.permute.xlu0 %v7032_v28  ;;  %v8697_v28 = vpop.permute.xlu0 %3758 }
0x1f7d   : > { %4303 = vperm.xlu0 %6791, %v8440_v3   ;;  %10579 = vst [vmem:[#allocation145_spill] sm:$0xff] %v8697_v28  ;;  %v7040_v28 = vmov 87  }
0x1f81   : > { %6792 = vset.pattern.permute.xlu0 %v7033_v56  ;;  %v8700_v56 = vpop.permute.xlu0 %3798 }
0x1f82   : > { %4335 = vperm.xlu0 %6792, %v8440_v3   ;;  %10580 = vst [vmem:[#allocation146_spill] sm:$0xff] %v8700_v56  ;;  %v7041_v56 = vmov 88  }
0x1f86   : > { %6793 = vset.pattern.permute.xlu0 %v7034_v31  ;;  %v8703_v31 = vpop.permute.xlu0 %3802 }
0x1f87   : > { %4367 = vperm.xlu0 %6793, %v8440_v3   ;;  %10581 = vst [vmem:[#allocation147_spill] sm:$0xff] %v8703_v31 }
0x1f8b   : > { %6794 = vset.pattern.permute.xlu0 %v7035_v20  ;;  %v8706_v20 = vpop.permute.xlu0 %3842 }
0x1f8c   : > { %4399 = vperm.xlu0 %6794, %v8440_v3   ;;  %10582 = vst [vmem:[#allocation148_spill] sm:$0xff] %v8706_v20 }
0x1f90   : > { %6795 = vset.pattern.permute.xlu0 %v7036_v21  ;;  %v8709_v21 = vpop.permute.xlu0 %3846 }
0x1f91   : > { %4431 = vperm.xlu0 %6795, %v8440_v3   ;;  %10583 = vst [vmem:[#allocation149_spill] sm:$0xff] %v8709_v21 }
0x1f95   : > { %6796 = vset.pattern.permute.xlu0 %v7037_v27  ;;  %v8712_v27 = vpop.permute.xlu0 %3886 }
0x1f96   : > { %4463 = vperm.xlu0 %6796, %v8440_v3   ;;  %10584 = vst [vmem:[#allocation150_spill] sm:$0xff] %v8712_v27 }
0x1f9a   : > { %6797 = vset.pattern.permute.xlu0 %v7038_v63  ;;  %v8715_v63 = vpop.permute.xlu0 %3890 }
0x1f9b   : > { %4495 = vperm.xlu0 %6797, %v8440_v3   ;;  %10585 = vst [vmem:[#allocation151_spill] sm:$0xff] %v8715_v63 }
0x1f9e   : > { %v8717_v31 = vpop.permute.xlu0 %3930 }
0x1f9f   : > { %6798 = vset.pattern.permute.xlu0 %v7039_v50  ;;  %10586 = vst [vmem:[#allocation152_spill] sm:$0xff] %v8717_v31 }
0x1fa0   : > { %4527 = vperm.xlu0 %6798, %v8440_v3  }
0x1fa2   : > { %v8719_v20 = vpop.permute.xlu0 %3934 }
0x1fa3   : > { %10587 = vst [vmem:[#allocation153_spill] sm:$0xff] %v8719_v20 }
0x1fa4   : > { %6799 = vset.pattern.permute.xlu0 %v7040_v28 }
0x1fa5   : > { %4559 = vperm.xlu0 %6799, %v8440_v3  }
0x1fa6   : > { %v8721_v50 = vpop.permute.xlu0 %3974 }
0x1fa7   : > { %10588 = vst [vmem:[#allocation154_spill] sm:$0xff] %v8721_v50  ;;  %v7042_v50 = vmov 89  }
0x1fa8   : > { %6801 = vset.pattern.permute.xlu1 %v7042_v50 }
0x1fa9   : > { %6800 = vset.pattern.permute.xlu0 %v7041_v56 }
0x1faa   : > { %4593 = vperm.xlu0 %6800, %v8440_v3   ;;  %v8723_v38 = vpop.permute.xlu0 %3978  ;;  %v4109_v3 = vld [vmem:[#allocation2 + $0x49] ss:$8 sm:$0x3] }
0x1fab   : > { %10589 = vst [vmem:[#allocation155_spill] sm:$0xff] %v8723_v38  ;;  %v4118_v63 = vrot.slane %v4109_v3, %v7322_v43  ;;  %v4122_v20 = vrot.slane %v4109_v3, %v7325_v44  ;;  %v4141_v38 = vld [vmem:[#allocation2 + $0x4a] ss:$8 sm:$0x3] }
0x1fac   : > { %v4154_v19 = vrot.slane %v4141_v38, %v7325_v44 }
0x1fae   : > { %v8725_v21 = vpop.permute.xlu0 %4018 }
0x1faf   : > { %10590 = vst [vmem:[#allocation156_spill] sm:$0xff] %v8725_v21 }
0x1fb2   : > { %v8727_v28 = vpop.permute.xlu0 %4022 }
0x1fb3   : > { %10591 = vst [vmem:[#allocation157_spill] sm:$0xff] %v8727_v28 }
0x1fb6   : > { %v8729_v35 = vpop.permute.xlu0 %4062 }
0x1fb7   : > { %10592 = vst [vmem:[#allocation158_spill] sm:$0xff] %v8729_v35  ;;  %v4150_v35 = vrot.slane %v4141_v38, %v7322_v43 }
0x1fba   : > { %v8731_v27 = vpop.permute.xlu0 %4066 }
0x1fbb   : > { %10593 = vst [vmem:[#allocation159_spill] sm:$0xff] %v8731_v27 }
0x1fcd   : > { %v8733_v56 = vpop.permute.xlu0 %4097 }
0x1fce   : > { %10594 = vst [vmem:[#allocation160_spill] sm:$0xff] %v8733_v56 }
0x1fde   : > { %v4112_v31 = vpop.permute.xlu0 %4111 }
0x1fdf   : > { %v4125_v61 = vmul.f32 %v4118_v63, %v4112_v31  ;;  %v4126_v21 = vmul.f32 %v4122_v20, %v4112_v31  ;;  %v4173_v63 = vld [vmem:[#allocation2 + $0x4b] ss:$8 sm:$0x3]  ;;  %v4205_v20 = vld [vmem:[#allocation2 + $0x4c] ss:$8 sm:$0x3] }
0x1fe0   : > { %v4182_v3 = vrot.slane %v4173_v63, %v7322_v43  ;;  %v4186_v31 = vrot.slane %v4173_v63, %v7325_v44  ;;  %v4214_v1 = vrot.slane %v4205_v20, %v7322_v43 }
0x1fe1   : > { %4129 = vrot.lane.b32.xlu1 %v4125_v61, %s6981_s6 }
0x1fe3   : > { %v4144_v28 = vpop.permute.xlu0 %4143 }
0x1fe4   : > { %v4157_v27 = vmul.f32 %v4150_v35, %v4144_v28  ;;  %v4158_v14 = vmul.f32 %v4154_v19, %v4144_v28  ;;  %v4218_v19 = vrot.slane %v4205_v20, %v7325_v44 }
0x1fe5   : > { %4131 = vrot.lane.b32.xlu1 %v4126_v21, %s6981_s6 }
0x1fe8   : > { %v4176_v56 = vpop.permute.xlu0 %4175 }
0x1fe9   : > { %4161 = vrot.lane.b32.xlu1 %v4157_v27, %s6981_s6  ;;  %v4189_v50 = vmul.f32 %v4182_v3, %v4176_v56  ;;  %v4190_v35 = vmul.f32 %v4186_v31, %v4176_v56 }
0x1fed   : > { %4163 = vrot.lane.b32.xlu1 %v4158_v14, %s6981_s6  ;;  %v4208_v61 = vpop.permute.xlu0 %4207  ;;  %v4237_v14 = vld [vmem:[#allocation2 + $0x4d] ss:$8 sm:$0x3] }
0x1fee   : > { %v4221_v38 = vmul.f32 %v4214_v1, %v4208_v61  ;;  %v4222_v28 = vmul.f32 %v4218_v19, %v4208_v61  ;;  %v4246_v63 = vrot.slane %v4237_v14, %v7322_v43  ;;  %v4250_v56 = vrot.slane %v4237_v14, %v7325_v44  ;;  %v4301_v19 = vld [vmem:[#allocation2 + $0x4f] ss:$8 sm:$0x3] }
0x1fef   : > { %v4310_v14 = vrot.slane %v4301_v19, %v7322_v43 }
0x1ff1   : > { %4193 = vrot.lane.b32.xlu1 %v4189_v50, %s6981_s6 }
0x1ff2   : > { %v4240_v21 = vpop.permute.xlu0 %4239 }
0x1ff3   : > { %v4253_v50 = vmul.f32 %v4246_v63, %v4240_v21  ;;  %v4254_v1 = vmul.f32 %v4250_v56, %v4240_v21  ;;  %v4314_v21 = vrot.slane %v4301_v19, %v7325_v44  ;;  %v4333_v56 = vld [vmem:[#allocation2 + $0x68] ss:$8 sm:$0x3] }
0x1ff5   : > { %4195 = vrot.lane.b32.xlu1 %v4190_v35, %s6981_s6  ;;  %v4269_v35 = vld [vmem:[#allocation2 + $0x4e] ss:$8 sm:$0x3] }
0x1ff6   : > { %v4278_v26 = vrot.slane %v4269_v35, %v7322_v43  ;;  %v4282_v61 = vrot.slane %v4269_v35, %v7325_v44 }
0x1ff7   : > { %v4272_v27 = vpop.permute.xlu0 %4271 }
0x1ff9   : > { %4225 = vrot.lane.b32.xlu1 %v4221_v38, %s6981_s6  ;;  %v4285_v38 = vmul.f32 %v4278_v26, %v4272_v27  ;;  %v4342_v26 = vrot.slane %v4333_v56, %v7322_v43 }
0x1ffc   : > { %v4304_v3 = vpop.permute.xlu0 %4303 }
0x1ffd   : > { %4227 = vrot.lane.b32.xlu1 %v4222_v28, %s6981_s6  ;;  %v4286_v28 = vmul.f32 %v4282_v61, %v4272_v27  ;;  %v4346_v27 = vrot.slane %v4333_v56, %v7325_v44  ;;  %v4365_v61 = vld [vmem:[#allocation2 + $0x69] ss:$8 sm:$0x3] }
0x1ffe   : > { %v4374_v15 = vrot.slane %v4365_v61, %v7322_v43 }
0x2001   : > { %4257 = vrot.lane.b32.xlu1 %v4253_v50, %s6981_s6  ;;  %v4336_v31 = vpop.permute.xlu0 %4335  ;;  %v4317_v50 = vmul.f32 %v4310_v14, %v4304_v3 }
0x2002   : > { %v4350_v14 = vmul.f32 %v4346_v27, %v4336_v31 }
0x2005   : > { %4259 = vrot.lane.b32.xlu1 %v4254_v1, %s6981_s6  ;;  %v4318_v1 = vmul.f32 %v4314_v21, %v4304_v3  ;;  %v4378_v3 = vrot.slane %v4365_v61, %v7325_v44  ;;  %v4588_v21 = vld [vmem:[#allocation2 + $0x48] ss:$8 sm:$0x7] }
0x2006   : > { %v4368_v20 = vpop.permute.xlu0 %4367  ;;  %v4589_v56 = vmul.f32 %v4588_v21, %v10514_v52 }
0x2007   : > { %v4381_v19 = vmul.f32 %v4374_v15, %v4368_v20 }
0x2008   : > { %v4608_v27 = vrot.slane %v4589_v56, %v7396_v48 }
0x2009   : > { %4289 = vrot.lane.b32.xlu1 %v4285_v38, %s6981_s6  ;;  %v4349_v38 = vmul.f32 %v4342_v26, %v4336_v31  ;;  %v4382_v26 = vmul.f32 %v4378_v3, %v4368_v20 }
0x200b   : > { %v4400_v63 = vpop.permute.xlu0 %4399 }
0x200d   : > { %4291 = vrot.lane.b32.xlu1 %v4286_v28, %s6981_s6 }
0x2010   : > { %v4432_v58 = vpop.permute.xlu0 %4431 }
0x2011   : > { %4321 = vrot.lane.b32.xlu1 %v4317_v50, %s6981_s6 }
0x2015   : > { %4323 = vrot.lane.b32.xlu1 %v4318_v1, %s6981_s6  ;;  %v4464_v35 = vpop.permute.xlu0 %4463  ;;  %v4397_v1 = vld [vmem:[#allocation2 + $0x6a] ss:$8 sm:$0x3] }
0x2016   : > { %v4410_v15 = vrot.slane %v4397_v1, %v7325_v44 }
0x2018   : > { %v4414_v30 = vmul.f32 %v4410_v15, %v4400_v63 }
0x2019   : > { %4353 = vrot.lane.b32.xlu1 %v4349_v38, %s6981_s6  ;;  %v4406_v38 = vrot.slane %v4397_v1, %v7322_v43 }
0x201a   : > { %v4496_v28 = vpop.permute.xlu0 %4495 }
0x201b   : > { %v4413_v31 = vmul.f32 %v4406_v38, %v4400_v63 }
0x201d   : > { %4355 = vrot.lane.b32.xlu1 %v4350_v14, %s6981_s6  ;;  %v4429_v14 = vld [vmem:[#allocation2 + $0x6b] ss:$8 sm:$0x3] }
0x201e   : > { %v4438_v20 = vrot.slane %v4429_v14, %v7322_v43  ;;  %v4442_v21 = vrot.slane %v4429_v14, %v7325_v44 }
0x201f   : > { %v4528_v50 = vpop.permute.xlu0 %4527 }
0x2020   : > { %v4445_v3 = vmul.f32 %v4438_v20, %v4432_v58  ;;  %v4446_v38 = vmul.f32 %v4442_v21, %v4432_v58  ;;  %v4525_v58 = vld [vmem:[#allocation2 + $0x6e] ss:$8 sm:$0x3] }
0x2021   : > { %4385 = vrot.lane.b32.xlu1 %v4381_v19, %s6981_s6 }
0x2024   : > { %v4560_v11 = vpop.permute.xlu0 %4559 }
0x2025   : > { %4387 = vrot.lane.b32.xlu1 %v4382_v26, %s6981_s6  ;;  %v4461_v26 = vld [vmem:[#allocation2 + $0x6c] ss:$8 sm:$0x3] }
0x2026   : > { %v4470_v1 = vrot.slane %v4461_v26, %v7322_v43  ;;  %v4474_v63 = vrot.slane %v4461_v26, %v7325_v44  ;;  %v4538_v26 = vrot.slane %v4525_v58, %v7325_v44 }
0x2028   : > { %v4478_v15 = vmul.f32 %v4474_v63, %v4464_v35 }
0x2029   : > { %4417 = vrot.lane.b32.xlu1 %v4413_v31, %s6981_s6  ;;  %v4594_v61 = vpop.permute.xlu0 %4593  ;;  %v4477_v31 = vmul.f32 %v4470_v1, %v4464_v35  ;;  %v4557_v35 = vld [vmem:[#allocation2 + $0x6f] ss:$8 sm:$0x3] }
0x202a   : > { %v4614_v19 = vmul.f32 %v4608_v27, %v4594_v61  ;;  %v4493_v27 = vld [vmem:[#allocation2 + $0x6d] ss:$8 sm:$0x3]  ;;  %v4566_v1 = vrot.slane %v4557_v35, %v7322_v43 }
0x202c   : > { %4622 = vrot.lane.b32.xlu0 %v4614_v19, %s7010_s28  ;;  %v4506_v19 = vrot.slane %v4493_v27, %v7325_v44  ;;  %v4573_v63 = vmul.f32 %v4566_v1, %v4560_v11 }
0x202d   : > { %4419 = vrot.lane.b32.xlu1 %v4414_v30, %s6981_s6  ;;  %v4502_v30 = vrot.slane %v4493_v27, %v7322_v43 }
0x202e   : > { %v4510_v20 = vmul.f32 %v4506_v19, %v4496_v28  ;;  %v4604_v19 = vrot.slane %v4589_v56, %v7325_v44 }
0x202f   : > { %v4509_v14 = vmul.f32 %v4502_v30, %v4496_v28  ;;  %v4570_v28 = vrot.slane %v4557_v35, %v7325_v44  ;;  %v4600_v30 = vrot.slane %v4589_v56, %v7322_v43 }
0x2031   : > { %4449 = vrot.lane.b32.xlu1 %v4445_v3, %s6981_s6  ;;  %v4534_v3 = vrot.slane %v4525_v58, %v7322_v43  ;;  %v4574_v27 = vmul.f32 %v4570_v28, %v4560_v11  ;;  %v4613_v58 = vmul.f32 %v4604_v19, %v4594_v61  ;;  %v8813_v11 = vld [vmem:[%s10128_s3] sm:$0xff] }
0x2033   : > { %v4541_v21 = vmul.f32 %v4534_v3, %v4528_v50 }
0x2035   : > { %4451 = vrot.lane.b32.xlu1 %v4446_v38, %s6981_s6  ;;  %v4542_v38 = vmul.f32 %v4538_v26, %v4528_v50  ;;  %v7043_v26 = vmov 90  }
0x2039   : > { %4481 = vrot.lane.b32.xlu1 %v4477_v31, %s6981_s6  ;;  %v8795_v31 = vpop.permute.xlu1 %4099 }
0x203a   : > { %10595 = vst [vmem:[#allocation161_spill] sm:$0xff] %v8795_v31 }
0x203d   : > { %4483 = vrot.lane.b32.xlu1 %v4478_v15, %s6981_s6 }
0x2041   : > { %4513 = vrot.lane.b32.xlu1 %v4509_v14, %s6981_s6  ;;  %v4612_v14 = vmul.f32 %v4600_v30, %v4594_v61 }
0x2045   : > { %4515 = vrot.lane.b32.xlu1 %v4510_v20, %s6981_s6 }
0x2049   : > { %4545 = vrot.lane.b32.xlu1 %v4541_v21, %s6981_s6 }
0x204d   : > { %4547 = vrot.lane.b32.xlu1 %v4542_v38, %s6981_s6 }
0x2051   : > { %4577 = vrot.lane.b32.xlu1 %v4573_v63, %s6981_s6 }
0x2053   : > { %v8799_v15 = vpop.permute.xlu1 %4129 }
0x2055   : > { %4579 = vrot.lane.b32.xlu1 %v4574_v27, %s6981_s6  ;;  %s7061_s6 = smov 95  }
0x2057   : > { %v8803_v50 = vpop.permute.xlu1 %4131 }
0x2058   : > { %10596 = vst [vmem:[#allocation162_spill] sm:$0xff] %v8803_v50 }
0x2059   : > { %4618 = vrot.lane.b32.xlu1 %v4612_v14, %s7010_s28 }
0x205b   : > { %v8807_v20 = vpop.permute.xlu1 %4161 }
0x205d   : > { %4620 = vrot.lane.b32.xlu1 %v4613_v58, %s7010_s28 }
0x205f   : > { %v8815_v3 = vpop.permute.xlu1 %4163 }
0x2060   : > { %10597 = vst [vmem:[#allocation163_spill] sm:$0xff] %v8815_v3 }
0x2061   : > { %4637 = vperm.xlu1 %6801, %v8813_v11  }
0x2063   : > { %v8818_v21 = vpop.permute.xlu1 %4193 }
0x2064   : > { %10598 = vst [vmem:[#allocation164_spill] sm:$0xff] %v8818_v21 }
0x2065   : > { %6802 = vset.pattern.permute.xlu1 %v7043_v26 }
0x2067   : > { %v8820_v56 = vpop.permute.xlu1 %4195 }
0x2068   : > { %10599 = vst [vmem:[#allocation165_spill] sm:$0xff] %v8820_v56 }
0x206b   : > { %v8822_v61 = vpop.permute.xlu1 %4225 }
0x206c   : > { %10600 = vst [vmem:[#allocation166_spill] sm:$0xff] %v8822_v61 }
0x206f   : > { %v8824_v35 = vpop.permute.xlu1 %4227 }
0x2070   : > { %10601 = vst [vmem:[#allocation167_spill] sm:$0xff] %v8824_v35 }
0x2073   : > { %v8826_v38 = vpop.permute.xlu1 %4257 }
0x2074   : > { %10602 = vst [vmem:[#allocation168_spill] sm:$0xff] %v8826_v38 }
0x2077   : > { %v8828_v1 = vpop.permute.xlu1 %4259 }
0x2078   : > { %10603 = vst [vmem:[#allocation169_spill] sm:$0xff] %v8828_v1 }
0x207b   : > { %v8830_v63 = vpop.permute.xlu1 %4289 }
0x207c   : > { %10604 = vst [vmem:[#allocation170_spill] sm:$0xff] %v8830_v63 }
0x207f   : > { %v8832_v28 = vpop.permute.xlu1 %4291 }
0x2080   : > { %10605 = vst [vmem:[#allocation171_spill] sm:$0xff] %v8832_v28 }
0x2083   : > { %v8834_v27 = vpop.permute.xlu1 %4321 }
0x2084   : > { %10606 = vst [vmem:[#allocation172_spill] sm:$0xff] %v8834_v27 }
0x2087   : > { %v8836_v30 = vpop.permute.xlu1 %4323 }
0x2088   : > { %10607 = vst [vmem:[#allocation173_spill] sm:$0xff] %v8836_v30 }
0x208b   : > { %v8838_v14 = vpop.permute.xlu1 %4353 }
0x208c   : > { %10608 = vst [vmem:[#allocation174_spill] sm:$0xff] %v8838_v14 }
0x208f   : > { %v8840_v19 = vpop.permute.xlu1 %4355 }
0x2090   : > { %10609 = vst [vmem:[#allocation175_spill] sm:$0xff] %v8840_v19 }
0x2093   : > { %v8842_v58 = vpop.permute.xlu1 %4385 }
0x2094   : > { %10610 = vst [vmem:[#allocation176_spill] sm:$0xff] %v8842_v58 }
0x2097   : > { %v8844_v26 = vpop.permute.xlu1 %4387 }
0x2098   : > { %10611 = vst [vmem:[#allocation177_spill] sm:$0xff] %v8844_v26 }
0x209b   : > { %v8846_v61 = vpop.permute.xlu1 %4417 }
0x209c   : > { %10612 = vst [vmem:[#allocation178_spill] sm:$0xff] %v8846_v61 }
0x209f   : > { %v8848_v38 = vpop.permute.xlu1 %4419 }
0x20a0   : > { %10613 = vst [vmem:[#allocation179_spill] sm:$0xff] %v8848_v38 }
0x20a3   : > { %v8850_v1 = vpop.permute.xlu1 %4449 }
0x20a4   : > { %10614 = vst [vmem:[#allocation180_spill] sm:$0xff] %v8850_v1  ;;  %v4632_v1 = vld [vmem:[#allocation2 + $0x49] ss:$8 sm:$0x7] }
0x20a7   : > { %v8852_v63 = vpop.permute.xlu1 %4451 }
0x20a8   : > { %10615 = vst [vmem:[#allocation181_spill] sm:$0xff] %v8852_v63  ;;  %v4633_v63 = vmul.f32 %v4632_v1, %v10514_v52  ;;  %v7044_v1 = vmov 91  }
0x20ab   : > { %v8854_v28 = vpop.permute.xlu1 %4481 }
0x20ac   : > { %10616 = vst [vmem:[#allocation182_spill] sm:$0xff] %v8854_v28 }
0x20af   : > { %v8856_v27 = vpop.permute.xlu1 %4483 }
0x20b0   : > { %10617 = vst [vmem:[#allocation183_spill] sm:$0xff] %v8856_v27  ;;  %v4644_v27 = vrot.slane %v4633_v63, %v7322_v43 }
0x20b3   : > { %v8858_v30 = vpop.permute.xlu1 %4513 }
0x20b4   : > { %10618 = vst [vmem:[#allocation184_spill] sm:$0xff] %v8858_v30  ;;  %v4648_v30 = vrot.slane %v4633_v63, %v7325_v44 }
0x20b7   : > { %v8860_v14 = vpop.permute.xlu1 %4515 }
0x20b8   : > { %10619 = vst [vmem:[#allocation185_spill] sm:$0xff] %v8860_v14 }
0x20bb   : > { %v8862_v19 = vpop.permute.xlu1 %4545 }
0x20bc   : > { %10620 = vst [vmem:[#allocation186_spill] sm:$0xff] %v8862_v19 }
0x20bf   : > { %v8864_v58 = vpop.permute.xlu1 %4547 }
0x20c0   : > { %10621 = vst [vmem:[#allocation187_spill] sm:$0xff] %v8864_v58  ;;  %v4652_v58 = vrot.slane %v4633_v63, %v7396_v48 }
0x20c3   : > { %v8866_v26 = vpop.permute.xlu1 %4577 }
0x20c4   : > { %10622 = vst [vmem:[#allocation188_spill] sm:$0xff] %v8866_v26 }
0x20c7   : > { %v8868_v61 = vpop.permute.xlu1 %4579 }
0x20c8   : > { %10623 = vst [vmem:[#allocation189_spill] sm:$0xff] %v8868_v61 }
0x20cb   : > { %v8870_v38 = vpop.permute.xlu1 %4618 }
0x20cc   : > { %10624 = vst [vmem:[#allocation190_spill] sm:$0xff] %v8870_v38  ;;  %v4676_v38 = vld [vmem:[#allocation2 + $0x4a] ss:$8 sm:$0x7] }
0x20cf   : > { %v8873_v28 = vpop.permute.xlu1 %4620 }
0x20d0   : > { %10625 = vst [vmem:[#allocation191_spill] sm:$0xff] %v8873_v28  ;;  %v4677_v28 = vmul.f32 %v4676_v38, %v10514_v52  ;;  %v7045_v38 = vmov 92  }
0x20d2   : > { %v4692_v63 = vrot.slane %v4677_v28, %v7325_v44 }
0x20e0   : > { %v4638_v14 = vpop.permute.xlu1 %4637 }
0x20e1   : > { %v4656_v35 = vmul.f32 %v4644_v27, %v4638_v14  ;;  %v4657_v19 = vmul.f32 %v4648_v30, %v4638_v14  ;;  %v4658_v26 = vmul.f32 %v4652_v58, %v4638_v14  ;;  %v4688_v27 = vrot.slane %v4677_v28, %v7322_v43  ;;  %v4720_v58 = vld [vmem:[#allocation2 + $0x4b] ss:$8 sm:$0x7] }
0x20e3   : > { %4664 = vrot.lane.b32.xlu1 %v4657_v19, %s7010_s28  ;;  %4662 = vrot.lane.b32.xlu0 %v4656_v35, %s7010_s28  ;;  %v4696_v35 = vrot.slane %v4677_v28, %v7396_v48 }
0x20e7   : > { %4681 = vperm.xlu1 %6802, %v8813_v11   ;;  %4666 = vrot.lane.b32.xlu0 %v4658_v26, %s7010_s28  ;;  %v4721_v26 = vmul.f32 %v4720_v58, %v10514_v52 }
0x20e9   : > { %v4736_v28 = vrot.slane %v4721_v26, %v7325_v44 }
0x20eb   : > { %6803 = vset.pattern.permute.xlu1 %v7044_v1 }
0x2155   : > { %v8883_v61 = vpop.permute.xlu1 %4664 }
0x2156   : > { %10626 = vst [vmem:[#allocation192_spill] sm:$0xff] %v8883_v61 }
0x2166   : > { %v4682_v30 = vpop.permute.xlu1 %4681 }
0x2167   : > { %v4700_v19 = vmul.f32 %v4688_v27, %v4682_v30  ;;  %v4701_v21 = vmul.f32 %v4692_v63, %v4682_v30  ;;  %v4702_v14 = vmul.f32 %v4696_v35, %v4682_v30  ;;  %v4732_v27 = vrot.slane %v4721_v26, %v7322_v43 }
0x2168   : > { %v4740_v30 = vrot.slane %v4721_v26, %v7396_v48  ;;  %v7046_v35 = vmov 93  }
0x2169   : > { %4708 = vrot.lane.b32.xlu1 %v4701_v21, %s7010_s28  ;;  %4706 = vrot.lane.b32.xlu0 %v4700_v19, %s7010_s28 }
0x216d   : > { %4725 = vperm.xlu1 %6803, %v8813_v11   ;;  %4710 = vrot.lane.b32.xlu0 %v4702_v14, %s7010_s28  ;;  %v4764_v14 = vld [vmem:[#allocation2 + $0x4c] ss:$8 sm:$0x7] }
0x2171   : > { %6804 = vset.pattern.permute.xlu1 %v7045_v38  ;;  %v4765_v38 = vmul.f32 %v4764_v14, %v10514_v52 }
0x2173   : > { %v4780_v26 = vrot.slane %v4765_v38, %v7325_v44 }
0x21db   : > { %v8893_v1 = vpop.permute.xlu1 %4708 }
0x21dc   : > { %10627 = vst [vmem:[#allocation193_spill] sm:$0xff] %v8893_v1 }
0x21ec   : > { %v4726_v63 = vpop.permute.xlu1 %4725 }
0x21ed   : > { %v4744_v21 = vmul.f32 %v4732_v27, %v4726_v63  ;;  %v4745_v61 = vmul.f32 %v4736_v28, %v4726_v63  ;;  %v4746_v19 = vmul.f32 %v4740_v30, %v4726_v63  ;;  %v4776_v27 = vrot.slane %v4765_v38, %v7322_v43 }
0x21ee   : > { %v4784_v63 = vrot.slane %v4765_v38, %v7396_v48  ;;  %v7047_v30 = vmov 94  }
0x21ef   : > { %4752 = vrot.lane.b32.xlu1 %v4745_v61, %s7010_s28  ;;  %4750 = vrot.lane.b32.xlu0 %v4744_v21, %s7010_s28 }
0x21f3   : > { %4769 = vperm.xlu1 %6804, %v8813_v11   ;;  %4754 = vrot.lane.b32.xlu0 %v4746_v19, %s7010_s28  ;;  %v4808_v19 = vld [vmem:[#allocation2 + $0x4d] ss:$8 sm:$0x7] }
0x21f7   : > { %6805 = vset.pattern.permute.xlu1 %v7046_v35  ;;  %v4809_v35 = vmul.f32 %v4808_v19, %v10514_v52 }
0x21f9   : > { %v4824_v38 = vrot.slane %v4809_v35, %v7325_v44 }
0x2261   : > { %v8903_v58 = vpop.permute.xlu1 %4752 }
0x2262   : > { %10628 = vst [vmem:[#allocation194_spill] sm:$0xff] %v8903_v58 }
0x2272   : > { %v4770_v28 = vpop.permute.xlu1 %4769 }
0x2273   : > { %v4788_v61 = vmul.f32 %v4776_v27, %v4770_v28  ;;  %v4789_v1 = vmul.f32 %v4780_v26, %v4770_v28  ;;  %v4790_v21 = vmul.f32 %v4784_v63, %v4770_v28  ;;  %v4820_v27 = vrot.slane %v4809_v35, %v7322_v43 }
0x2274   : > { %v4828_v28 = vrot.slane %v4809_v35, %v7396_v48  ;;  %v7048_v63 = vmov 95  }
0x2275   : > { %4796 = vrot.lane.b32.xlu1 %v4789_v1, %s7010_s28  ;;  %4794 = vrot.lane.b32.xlu0 %v4788_v61, %s7010_s28 }
0x2279   : > { %4813 = vperm.xlu1 %6805, %v8813_v11   ;;  %4798 = vrot.lane.b32.xlu0 %v4790_v21, %s7010_s28  ;;  %v4852_v21 = vld [vmem:[#allocation2 + $0x4e] ss:$8 sm:$0x7] }
0x227d   : > { %6806 = vset.pattern.permute.xlu1 %v7047_v30  ;;  %v4853_v30 = vmul.f32 %v4852_v21, %v10514_v52 }
0x227f   : > { %v4868_v35 = vrot.slane %v4853_v30, %v7325_v44 }
0x22e7   : > { %v8913_v14 = vpop.permute.xlu1 %4796 }
0x22e8   : > { %10629 = vst [vmem:[#allocation195_spill] sm:$0xff] %v8913_v14 }
0x22f8   : > { %v4814_v26 = vpop.permute.xlu1 %4813 }
0x22f9   : > { %v4832_v1 = vmul.f32 %v4820_v27, %v4814_v26  ;;  %v4833_v58 = vmul.f32 %v4824_v38, %v4814_v26  ;;  %v4834_v61 = vmul.f32 %v4828_v28, %v4814_v26  ;;  %v4864_v27 = vrot.slane %v4853_v30, %v7322_v43 }
0x22fa   : > { %v4872_v26 = vrot.slane %v4853_v30, %v7396_v48  ;;  %v7049_v28 = vmov 96  }
0x22fb   : > { %4840 = vrot.lane.b32.xlu1 %v4833_v58, %s7010_s28  ;;  %4838 = vrot.lane.b32.xlu0 %v4832_v1, %s7010_s28 }
0x22fc   : > { %6808 = vset.pattern.permute.xlu0 %v7049_v28 }
0x22ff   : > { %4857 = vperm.xlu1 %6806, %v8813_v11   ;;  %4842 = vrot.lane.b32.xlu0 %v4834_v61, %s7010_s28  ;;  %v4896_v61 = vld [vmem:[#allocation2 + $0x4f] ss:$8 sm:$0x7] }
0x2303   : > { %6807 = vset.pattern.permute.xlu1 %v7048_v63  ;;  %v4897_v63 = vmul.f32 %v4896_v61, %v10514_v52  ;;  %v7051_v52 = vmov 97  }
0x2305   : > { %v4912_v30 = vrot.slane %v4897_v63, %v7325_v44 }
0x236d   : > { %v8923_v19 = vpop.permute.xlu1 %4840 }
0x236e   : > { %10630 = vst [vmem:[#allocation196_spill] sm:$0xff] %v8923_v19 }
0x237e   : > { %v4858_v38 = vpop.permute.xlu1 %4857 }
0x237f   : > { %v4876_v58 = vmul.f32 %v4864_v27, %v4858_v38  ;;  %v4877_v14 = vmul.f32 %v4868_v35, %v4858_v38  ;;  %v4878_v1 = vmul.f32 %v4872_v26, %v4858_v38  ;;  %v4908_v27 = vrot.slane %v4897_v63, %v7322_v43  ;;  %v8943_v26 = vpop.permute.xlu0 %4622 }
0x2380   : > { %v4916_v38 = vrot.slane %v4897_v63, %v7396_v48  ;;  %10632 = vst [vmem:[#allocation198_spill] sm:$0xff] %v8943_v26 }
0x2381   : > { %4884 = vrot.lane.b32.xlu1 %v4877_v14, %s7010_s28  ;;  %4882 = vrot.lane.b32.xlu0 %v4876_v58, %s7010_s28 }
0x2385   : > { %4901 = vperm.xlu1 %6807, %v8813_v11   ;;  %4886 = vrot.lane.b32.xlu0 %v4878_v1, %s7010_s28  ;;  %v8945_v1 = vpop.permute.xlu0 %4662 }
0x2386   : > { %10633 = vst [vmem:[#allocation199_spill] sm:$0xff] %v8945_v1 }
0x2389   : > { %6809 = vset.pattern.permute.xlu1 %v7051_v52  ;;  %v8947_v28 = vpop.permute.xlu0 %4666 }
0x238a   : > { %10634 = vst [vmem:[#allocation200_spill] sm:$0xff] %v8947_v28 }
0x238d   : > { %v8949_v61 = vpop.permute.xlu0 %4706 }
0x238e   : > { %10635 = vst [vmem:[#allocation201_spill] sm:$0xff] %v8949_v61 }
0x23f3   : > { %v8933_v21 = vpop.permute.xlu1 %4884 }
0x23f4   : > { %10631 = vst [vmem:[#allocation197_spill] sm:$0xff] %v8933_v21  ;;  %v4940_v21 = vld [vmem:[#allocation2 + $0x28] ss:$8 sm:$0x7] }
0x2404   : > { %v4902_v35 = vpop.permute.xlu1 %4901 }
0x2405   : > { %v4920_v14 = vmul.f32 %v4908_v27, %v4902_v35  ;;  %v4921_v19 = vmul.f32 %v4912_v30, %v4902_v35  ;;  %v4922_v58 = vmul.f32 %v4916_v38, %v4902_v35 }
0x2407   : > { %4928 = vrot.lane.b32.xlu1 %v4921_v19, %s7010_s28  ;;  %4926 = vrot.lane.b32.xlu0 %v4920_v14, %s7010_s28  ;;  %v8951_v19 = vpop.permute.xlu0 %4710 }
0x2408   : > { %10636 = vst [vmem:[#allocation202_spill] sm:$0xff] %v8951_v19 }
0x240b   : > { %4941 = vrot.lane.b32.xlu1 %v7718_v57, %s7050_s26  ;;  %4930 = vrot.lane.b32.xlu0 %v4922_v58, %s7010_s28  ;;  %v8953_v63 = vpop.permute.xlu0 %4750 }
0x240c   : > { %10637 = vst [vmem:[#allocation203_spill] sm:$0xff] %v8953_v63 }
0x240f   : > { %4951 = vperm.xlu0 %6808, %v8813_v11   ;;  %v8955_v27 = vpop.permute.xlu0 %4754 }
0x2410   : > { %10638 = vst [vmem:[#allocation204_spill] sm:$0xff] %v8955_v27 }
0x2413   : > { %v8957_v57 = vpop.permute.xlu0 %4794 }
0x2414   : > { %10639 = vst [vmem:[#allocation205_spill] sm:$0xff] %v8957_v57 }
0x2417   : > { %v8959_v30 = vpop.permute.xlu0 %4798 }
0x2418   : > { %10640 = vst [vmem:[#allocation206_spill] sm:$0xff] %v8959_v30 }
0x241b   : > { %v8961_v35 = vpop.permute.xlu0 %4838 }
0x241c   : > { %10641 = vst [vmem:[#allocation207_spill] sm:$0xff] %v8961_v35 }
0x241f   : > { %v8963_v14 = vpop.permute.xlu0 %4842 }
0x2420   : > { %10642 = vst [vmem:[#allocation208_spill] sm:$0xff] %v8963_v14 }
0x2423   : > { %v8967_v58 = vpop.permute.xlu0 %4882 }
0x2424   : > { %10644 = vst [vmem:[#allocation210_spill] sm:$0xff] %v8967_v58 }
0x2427   : > { %v8969_v28 = vpop.permute.xlu0 %4886 }
0x2428   : > { %10645 = vst [vmem:[#allocation211_spill] sm:$0xff] %v8969_v28 }
0x2479   : > { %v8965_v38 = vpop.permute.xlu1 %4928  ;;  %v8971_v26 = vpop.permute.xlu0 %4926 }
0x247a   : > { %10643 = vst [vmem:[#allocation209_spill] sm:$0xff] %v8965_v38  ;;  %10646 = vst [vmem:[#allocation212_spill] sm:$0xff] %v8971_v26 }
0x247d   : > { %v4942_v52 = vpop.permute.xlu1 %4941  ;;  %v8976_v57 = vpop.permute.xlu0 %4930 }
0x247e   : > { %v4943_v19 = vrot.slane %v4942_v52, 7  ;;  %10647 = vst [vmem:[#allocation213_spill] sm:$0xff] %v8976_v57  ;;  %v4991_v57 = vld [vmem:[#allocation2 + $0x29] ss:$8 sm:$0x7] }
0x2480   : > { %v8973_v27 = vsel %vm4944_vm10, %v4943_v19, %v4942_v52 }
0x2481   : > { %v4947_v30 = vmul.f32 %v8973_v27, %v4940_v21  ;;  %v7053_v21 = vmov 98  }
0x2483   : > { %v4958_v14 = vrot.slane %v4947_v30, %v7322_v43  ;;  %v4966_v38 = vrot.slane %v4947_v30, %v7396_v48  ;;  %v4962_v28 = vrot.slane %v4947_v30, %v7325_v44 }
0x248e   : > { %v4952_v35 = vpop.permute.xlu0 %4951 }
0x248f   : > { %v4970_v58 = vmul.f32 %v4958_v14, %v4952_v35  ;;  %v4972_v63 = vmul.f32 %v4966_v38, %v4952_v35  ;;  %v4971_v19 = vmul.f32 %v4962_v28, %v4952_v35  ;;  %v4992_v14 = vmul.f32 %v4991_v57, %v8973_v27 }
0x2490   : > { %v7054_v57 = vmov 99  }
0x2491   : > { %4980 = vrot.lane.b32.xlu0 %v4972_v63, %s7052_s7  ;;  %4976 = vrot.lane.b32.xlu1 %v4970_v58, %s7052_s7  ;;  %v5003_v30 = vrot.slane %v4992_v14, %v7322_v43  ;;  %v5007_v63 = vrot.slane %v4992_v14, %v7325_v44  ;;  %v5011_v35 = vrot.slane %v4992_v14, %v7396_v48 }
0x2495   : > { %4978 = vrot.lane.b32.xlu1 %v4971_v19, %s7052_s7 }
0x2499   : > { %4996 = vperm.xlu1 %6809, %v8813_v11  }
0x249d   : > { %6810 = vset.pattern.permute.xlu1 %v7053_v21  ;;  %v5035_v21 = vld [vmem:[#allocation2 + $0x2a] ss:$8 sm:$0x7] }
0x2503   : > { %v8985_v52 = vpop.permute.xlu1 %4976 }
0x2504   : > { %10648 = vst [vmem:[#allocation214_spill] sm:$0xff] %v8985_v52  ;;  %v5036_v52 = vmul.f32 %v5035_v21, %v8973_v27 }
0x2506   : > { %v5051_v14 = vrot.slane %v5036_v52, %v7325_v44 }
0x2507   : > { %v8988_v38 = vpop.permute.xlu1 %4978 }
0x2508   : > { %10649 = vst [vmem:[#allocation215_spill] sm:$0xff] %v8988_v38 }
0x2518   : > { %v4997_v26 = vpop.permute.xlu1 %4996 }
0x2519   : > { %v5015_v58 = vmul.f32 %v5003_v30, %v4997_v26  ;;  %v5016_v28 = vmul.f32 %v5007_v63, %v4997_v26  ;;  %v5017_v19 = vmul.f32 %v5011_v35, %v4997_v26  ;;  %v5047_v30 = vrot.slane %v5036_v52, %v7322_v43 }
0x251a   : > { %v5055_v26 = vrot.slane %v5036_v52, %v7396_v48  ;;  %v7055_v35 = vmov 100  }
0x251b   : > { %5023 = vrot.lane.b32.xlu1 %v5016_v28, %s7052_s7  ;;  %5021 = vrot.lane.b32.xlu0 %v5015_v58, %s7052_s7 }
0x251f   : > { %5040 = vperm.xlu1 %6810, %v8813_v11   ;;  %5025 = vrot.lane.b32.xlu0 %v5017_v19, %s7052_s7  ;;  %v5079_v19 = vld [vmem:[#allocation2 + $0x2b] ss:$8 sm:$0x7] }
0x2523   : > { %6811 = vset.pattern.permute.xlu1 %v7054_v57  ;;  %v5080_v57 = vmul.f32 %v5079_v19, %v8973_v27 }
0x2525   : > { %v5095_v52 = vrot.slane %v5080_v57, %v7325_v44 }
0x258d   : > { %v8998_v38 = vpop.permute.xlu1 %5023 }
0x258e   : > { %10650 = vst [vmem:[#allocation216_spill] sm:$0xff] %v8998_v38 }
0x259e   : > { %v5041_v63 = vpop.permute.xlu1 %5040 }
0x259f   : > { %v5059_v28 = vmul.f32 %v5047_v30, %v5041_v63  ;;  %v5060_v61 = vmul.f32 %v5051_v14, %v5041_v63  ;;  %v5061_v58 = vmul.f32 %v5055_v26, %v5041_v63  ;;  %v5091_v30 = vrot.slane %v5080_v57, %v7322_v43 }
0x25a0   : > { %v5099_v63 = vrot.slane %v5080_v57, %v7396_v48  ;;  %v7056_v26 = vmov 101  }
0x25a1   : > { %5067 = vrot.lane.b32.xlu1 %v5060_v61, %s7052_s7  ;;  %5065 = vrot.lane.b32.xlu0 %v5059_v28, %s7052_s7 }
0x25a5   : > { %5084 = vperm.xlu1 %6811, %v8813_v11   ;;  %5069 = vrot.lane.b32.xlu0 %v5061_v58, %s7052_s7  ;;  %v5123_v58 = vld [vmem:[#allocation2 + $0x2c] ss:$8 sm:$0x7] }
0x25a9   : > { %6812 = vset.pattern.permute.xlu1 %v7055_v35  ;;  %v5124_v35 = vmul.f32 %v5123_v58, %v8973_v27 }
0x25ab   : > { %v5139_v57 = vrot.slane %v5124_v35, %v7325_v44 }
0x2613   : > { %v9008_v21 = vpop.permute.xlu1 %5067 }
0x2614   : > { %10651 = vst [vmem:[#allocation217_spill] sm:$0xff] %v9008_v21 }
0x2624   : > { %v5085_v14 = vpop.permute.xlu1 %5084 }
0x2625   : > { %v5103_v61 = vmul.f32 %v5091_v30, %v5085_v14  ;;  %v5104_v38 = vmul.f32 %v5095_v52, %v5085_v14  ;;  %v5105_v28 = vmul.f32 %v5099_v63, %v5085_v14  ;;  %v5135_v30 = vrot.slane %v5124_v35, %v7322_v43 }
0x2626   : > { %v5143_v14 = vrot.slane %v5124_v35, %v7396_v48  ;;  %v7057_v63 = vmov 102  }
0x2627   : > { %5111 = vrot.lane.b32.xlu1 %v5104_v38, %s7052_s7  ;;  %5109 = vrot.lane.b32.xlu0 %v5103_v61, %s7052_s7 }
0x262b   : > { %5128 = vperm.xlu1 %6812, %v8813_v11   ;;  %5113 = vrot.lane.b32.xlu0 %v5105_v28, %s7052_s7  ;;  %v5167_v28 = vld [vmem:[#allocation2 + $0x2d] ss:$8 sm:$0x7] }
0x262f   : > { %6813 = vset.pattern.permute.xlu1 %v7056_v26  ;;  %v5168_v26 = vmul.f32 %v5167_v28, %v8973_v27 }
0x2631   : > { %v5183_v35 = vrot.slane %v5168_v26, %v7325_v44 }
0x2699   : > { %v9018_v19 = vpop.permute.xlu1 %5111 }
0x269a   : > { %10652 = vst [vmem:[#allocation218_spill] sm:$0xff] %v9018_v19 }
0x26aa   : > { %v5129_v52 = vpop.permute.xlu1 %5128 }
0x26ab   : > { %v5147_v38 = vmul.f32 %v5135_v30, %v5129_v52  ;;  %v5148_v21 = vmul.f32 %v5139_v57, %v5129_v52  ;;  %v5149_v61 = vmul.f32 %v5143_v14, %v5129_v52  ;;  %v5179_v30 = vrot.slane %v5168_v26, %v7322_v43 }
0x26ac   : > { %v5187_v52 = vrot.slane %v5168_v26, %v7396_v48  ;;  %v7058_v14 = vmov 103  }
0x26ad   : > { %5155 = vrot.lane.b32.xlu1 %v5148_v21, %s7052_s7  ;;  %5153 = vrot.lane.b32.xlu0 %v5147_v38, %s7052_s7 }
0x26b1   : > { %5172 = vperm.xlu1 %6813, %v8813_v11   ;;  %5157 = vrot.lane.b32.xlu0 %v5149_v61, %s7052_s7  ;;  %v5211_v61 = vld [vmem:[#allocation2 + $0x2e] ss:$8 sm:$0x7] }
0x26b5   : > { %6814 = vset.pattern.permute.xlu1 %v7057_v63  ;;  %v5212_v63 = vmul.f32 %v5211_v61, %v8973_v27 }
0x26b7   : > { %v5227_v26 = vrot.slane %v5212_v63, %v7325_v44 }
0x271f   : > { %v9028_v58 = vpop.permute.xlu1 %5155 }
0x2720   : > { %10653 = vst [vmem:[#allocation219_spill] sm:$0xff] %v9028_v58 }
0x2730   : > { %v5173_v57 = vpop.permute.xlu1 %5172 }
0x2731   : > { %v5191_v21 = vmul.f32 %v5179_v30, %v5173_v57  ;;  %v5192_v19 = vmul.f32 %v5183_v35, %v5173_v57  ;;  %v5193_v38 = vmul.f32 %v5187_v52, %v5173_v57  ;;  %v5223_v30 = vrot.slane %v5212_v63, %v7322_v43 }
0x2732   : > { %v5231_v57 = vrot.slane %v5212_v63, %v7396_v48  ;;  %v7059_v52 = vmov 104  }
0x2733   : > { %5199 = vrot.lane.b32.xlu1 %v5192_v19, %s7052_s7  ;;  %5197 = vrot.lane.b32.xlu0 %v5191_v21, %s7052_s7 }
0x2737   : > { %5216 = vperm.xlu1 %6814, %v8813_v11   ;;  %5201 = vrot.lane.b32.xlu0 %v5193_v38, %s7052_s7  ;;  %v5255_v38 = vld [vmem:[#allocation2 + $0x2f] ss:$8 sm:$0x7] }
0x273b   : > { %6815 = vset.pattern.permute.xlu1 %v7058_v14  ;;  %v5256_v14 = vmul.f32 %v5255_v38, %v8973_v27  ;;  %v7060_v27 = vmov 105  }
0x273d   : > { %v5271_v63 = vrot.slane %v5256_v14, %v7325_v44 }
0x27a5   : > { %v9038_v28 = vpop.permute.xlu1 %5199 }
0x27a6   : > { %10654 = vst [vmem:[#allocation220_spill] sm:$0xff] %v9038_v28 }
0x27b6   : > { %v5217_v35 = vpop.permute.xlu1 %5216 }
0x27b7   : > { %v5235_v19 = vmul.f32 %v5223_v30, %v5217_v35  ;;  %v5236_v58 = vmul.f32 %v5227_v26, %v5217_v35  ;;  %v5237_v21 = vmul.f32 %v5231_v57, %v5217_v35  ;;  %v5267_v30 = vrot.slane %v5256_v14, %v7322_v43 }
0x27b8   : > { %v5275_v35 = vrot.slane %v5256_v14, %v7396_v48  ;;  %v1225_v57 = vrot.slane %v7814_v47, 7 }
0x27b9   : > { %5243 = vrot.lane.b32.xlu1 %v5236_v58, %s7052_s7  ;;  %5241 = vrot.lane.b32.xlu0 %v5235_v19, %s7052_s7 }
0x27ba   : > { %v1226_v38 = vsel %vm1072_vm8, %v1225_v57, %v7814_v47  ;;  %v1320_v47 = vld [vmem:[#allocation2 + $0x63] ss:$8 sm:$0x7] }
0x27bd   : > { %5260 = vperm.xlu1 %6815, %v8813_v11   ;;  %5245 = vrot.lane.b32.xlu0 %v5237_v21, %s7052_s7  ;;  %v1205_v21 = vld [vmem:[#allocation2 + $0x60] ss:$8 sm:$0x7] }
0x27c1   : > { %6816 = vset.pattern.permute.xlu1 %v7059_v52  ;;  %v1258_v52 = vld [vmem:[#allocation2 + $0x61] ss:$8 sm:$0x7] }
0x27c2   : > { %v9062_v14 = vmul.f32 %v1258_v52, %v1226_v38 }
0x27c4   : > { %10657 = vst [vmem:[#allocation223_spill] sm:$0xff] %v9062_v14 }
0x282b   : > { %v9048_v61 = vpop.permute.xlu1 %5243 }
0x282c   : > { %10655 = vst [vmem:[#allocation221_spill] sm:$0xff] %v9048_v61  ;;  %v9080_v61 = vmul.f32 %v1320_v47, %v1226_v38 }
0x282e   : > { %10659 = vst [vmem:[#allocation225_spill] sm:$0xff] %v9080_v61 }
0x283c   : > { %v5261_v26 = vpop.permute.xlu1 %5260 }
0x283d   : > { %v5279_v58 = vmul.f32 %v5267_v30, %v5261_v26  ;;  %v5280_v28 = vmul.f32 %v5271_v63, %v5261_v26  ;;  %v5281_v19 = vmul.f32 %v5275_v35, %v5261_v26  ;;  %v9060_v30 = vmul.f32 %v1226_v38, %v1205_v21 }
0x283f   : > { %5287 = vrot.lane.b32.xlu1 %v5280_v28, %s7052_s7  ;;  %5285 = vrot.lane.b32.xlu0 %v5279_v58, %s7052_s7  ;;  %10656 = vst [vmem:[#allocation222_spill] sm:$0xff] %v9060_v30  ;;  %v1289_v28 = vld [vmem:[#allocation2 + $0x62] ss:$8 sm:$0x7]  ;;  %v1239_v63 = vrot.slane %v9060_v30, %v7322_v43  ;;  %v1243_v26 = vrot.slane %v9060_v30, %v7325_v44 }
0x2840   : > { %v1274_v58 = vrot.slane %v9062_v14, %v7325_v44  ;;  %v9072_v35 = vmul.f32 %v1289_v28, %v1226_v38 }
0x2841   : > { %v1252_v57 = vmul.f32 %v1243_v26, %v7826_v32 }
0x2842   : > { %10658 = vst [vmem:[#allocation224_spill] sm:$0xff] %v9072_v35  ;;  %v1283_v21 = vmul.f32 %v1274_v58, %v7816_v42  ;;  %v1301_v52 = vrot.slane %v9072_v35, %v7322_v43  ;;  %v1305_v30 = vrot.slane %v9072_v35, %v7325_v44  ;;  %v1336_v58 = vrot.slane %v9080_v61, %v7325_v44 }
0x2843   : > { %5301 = vperm.xlu1 %6816, %v8813_v11   ;;  %5289 = vrot.lane.b32.xlu0 %v5281_v19, %s7052_s7  ;;  %v1270_v11 = vrot.slane %v9062_v14, %v7322_v43  ;;  %v1251_v19 = vmul.f32 %v1239_v63, %v7826_v32  ;;  %v1351_v14 = vld [vmem:[#allocation2 + $0x64] ss:$8 sm:$0x7]  ;;  %v1332_v63 = vrot.slane %v9080_v61, %v7322_v43  ;;  %v1382_v32 = vld [vmem:[#allocation2 + $0x65] ss:$8 sm:$0x7] }
0x2844   : > { %v1286_v1 = vadd.f32 %v1283_v21, %v1252_v57  ;;  %v1313_v56 = vmul.f32 %v1301_v52, %v7840_v54  ;;  %v1314_v26 = vmul.f32 %v1305_v30, %v7840_v54  ;;  %v9098_v21 = vmul.f32 %v1382_v32, %v1226_v38  ;;  %v1413_v52 = vld [vmem:[#allocation2 + $0x66] ss:$8 sm:$0x7] }
0x2845   : > { %v1344_v35 = vmul.f32 %v1332_v63, %v7860_v23  ;;  %v9104_v63 = vmul.f32 %v1413_v52, %v1226_v38 }
0x2847   : > { %6817 = vset.pattern.permute.xlu1 %v7060_v27  ;;  %v1282_v27 = vmul.f32 %v1270_v11, %v7816_v42  ;;  %v9087_v11 = vmul.f32 %v1351_v14, %v1226_v38  ;;  %v1317_v42 = vadd.f32 %v1314_v26, %v1286_v1 }
0x2849   : > { %v1285_v28 = vadd.f32 %v1282_v27, %v1251_v19  ;;  %10660 = vst [vmem:[#allocation226_spill] sm:$0xff] %v9087_v11  ;;  %v1363_v19 = vrot.slane %v9087_v11, %v7322_v43  ;;  %v1345_v27 = vmul.f32 %v1336_v58, %v7860_v23  ;;  %v1367_v57 = vrot.slane %v9087_v11, %v7325_v44  ;;  %v1444_v11 = vld [vmem:[#allocation2 + $0x67] ss:$8 sm:$0x7] }
0x284a   : > { %v1398_v58 = vrot.slane %v9098_v21, %v7325_v44 }
0x284b   : > { %v1316_v47 = vadd.f32 %v1313_v56, %v1285_v28  ;;  %v1348_v30 = vadd.f32 %v1345_v27, %v1317_v42  ;;  %v1375_v61 = vmul.f32 %v1363_v19, %v7818_v2  ;;  %v1376_v56 = vmul.f32 %v1367_v57, %v7818_v2 }
0x284c   : > { %v1394_v28 = vrot.slane %v9098_v21, %v7322_v43  ;;  %v1407_v42 = vmul.f32 %v1398_v58, %v7864_v22  ;;  %v9112_v19 = vmul.f32 %v1444_v11, %v1226_v38  ;;  %v1429_v27 = vrot.slane %v9104_v63, %v7325_v44 }
0x284d   : > { %v1347_v14 = vadd.f32 %v1344_v35, %v1316_v47  ;;  %v1379_v26 = vadd.f32 %v1376_v56, %v1348_v30  ;;  %v1425_v47 = vrot.slane %v9104_v63, %v7322_v43  ;;  %v1507_v11 = vsel %vm498_vm4, %v7901_v55, %v8021_v4 }
0x284e   : > { %v1406_v32 = vmul.f32 %v1394_v28, %v7864_v22  ;;  %v1456_v52 = vrot.slane %v9112_v19, %v7322_v43  ;;  %v1508_v58 = vsel %vm498_vm4, %v8021_v4, %v7903_v10  ;;  %v1591_v55 = vsel %vm498_vm4, %v8025_v5, %v7909_v46 }
0x284f   : > { %v1378_v1 = vadd.f32 %v1375_v61, %v1347_v14  ;;  %v1410_v61 = vadd.f32 %v1407_v42, %v1379_v26  ;;  %v1437_v57 = vmul.f32 %v1425_v47, %v7866_v17  ;;  %v1438_v14 = vmul.f32 %v1429_v27, %v7866_v17 }
0x2850   : > { %v1468_v28 = vmul.f32 %v1456_v52, %v7868_v37  ;;  %v1549_v42 = vsel %vm498_vm4, %v7905_v18, %v7907_v13  ;;  %v1550_v47 = vsel %vm498_vm4, %v7907_v13, %v8023_v40  ;;  %v1592_v4 = vsel %vm498_vm4, %v7909_v46, %v8031_v51 }
0x2851   : > { %v1409_v35 = vadd.f32 %v1406_v32, %v1378_v1  ;;  %v1441_v56 = vadd.f32 %v1438_v14, %v1410_v61  ;;  %v1460_v1 = vrot.slane %v9112_v19, %v7325_v44  ;;  %v1633_v18 = vsel %vm498_vm4, %v8038_v45, %v7911_v16 }
0x2852   : > { %v1634_v13 = vsel %vm498_vm4, %v7911_v16, %v8041_v8  ;;  %v1675_v5 = vsel %vm498_vm4, %v8044_v34, %v7921_v59  ;;  %v1676_v46 = vsel %vm498_vm4, %v7921_v59, %v8046_v6  ;;  %v1717_v45 = vsel %vm498_vm4, %v8048_v39, %v7931_v53 }
0x2853   : > { %v1440_v30 = vadd.f32 %v1437_v57, %v1409_v35  ;;  %v1469_v38 = vmul.f32 %v1460_v1, %v7868_v37  ;;  %v1718_v16 = vsel %vm498_vm4, %v7931_v53, %v8050_v7  ;;  %v1759_v34 = vsel %vm498_vm4, %v8052_v33, %v7941_v29 }
0x2854   : > { %v1760_v59 = vsel %vm498_vm4, %v7941_v29, %v8054_v12  ;;  %v1801_v39 = vsel %vm498_vm4, %v8056_v24, %v7951_v60  ;;  %v1802_v53 = vsel %vm498_vm4, %v7951_v60, %v8058_v62  ;;  %v1842_v33 = vsel %vm498_vm4, %v8060_v9, %v7961_v41 }
0x2855   : > { %v1471_v26 = vadd.f32 %v1468_v28, %v1440_v30  ;;  %v1472_v32 = vadd.f32 %v1469_v38, %v1441_v56  ;;  %v1843_v29 = vsel %vm498_vm4, %v7961_v41, %v8062_v0  ;;  %v1883_v24 = vsel %vm498_vm4, %v8064_v49, %v7971_v36 }
0x2857   : > { %v1512_v35 = vadd.f32 %v1507_v11, %v1471_v26  ;;  %v1513_v61 = vadd.f32 %v1508_v58, %v1472_v32 }
0x2859   : > { %v1554_v27 = vadd.f32 %v1549_v42, %v1512_v35  ;;  %v1555_v57 = vadd.f32 %v1550_v47, %v1513_v61  ;;  %v10661_v47 = vld [vmem:[#allocation21_spill] sm:$0xff] }
0x285a   : > { %v1884_v60 = vsel %vm498_vm4, %v7971_v36, %v10661_v47 }
0x285b   : > { %v1596_v14 = vadd.f32 %v1591_v55, %v1554_v27  ;;  %v1597_v30 = vadd.f32 %v1592_v4, %v1555_v57  ;;  %v10662_v55 = vld [vmem:[#allocation11_spill] sm:$0xff]  ;;  %v10663_v27 = vld [vmem:[#allocation22_spill] sm:$0xff]  ;;  %v10664_v57 = vld [vmem:[#allocation24_spill] sm:$0xff] }
0x285c   : > { %v1924_v9 = vsel %vm498_vm4, %v10663_v27, %v10662_v55  ;;  %v1925_v41 = vsel %vm498_vm4, %v10662_v55, %v10664_v57  ;;  %v10678_v55 = vld [vmem:[#allocation18_spill] sm:$0xff] }
0x285d   : > { %v1638_v52 = vadd.f32 %v1633_v18, %v1596_v14  ;;  %v1639_v56 = vadd.f32 %v1634_v13, %v1597_v30  ;;  %v10665_v14 = vld [vmem:[#allocation20_spill] sm:$0xff] }
0x285e   : > { %v10666_v13 = vld [vmem:[#allocation28_spill] sm:$0xff] }
0x285f   : > { %v1680_v1 = vadd.f32 %v1675_v5, %v1638_v52  ;;  %v1681_v28 = vadd.f32 %v1676_v46, %v1639_v56  ;;  %v1965_v49 = vsel %vm498_vm4, %v10666_v13, %v10665_v14  ;;  %v10667_v5 = vld [vmem:[#allocation26_spill] sm:$0xff]  ;;  %v10668_v46 = vld [vmem:[#allocation12_spill] sm:$0xff]  ;;  %v10669_v56 = vld [vmem:[#allocation23_spill] sm:$0xff] }
0x2860   : > { %v1966_v36 = vsel %vm498_vm4, %v10665_v14, %v10667_v5  ;;  %v10680_v14 = vld [vmem:[#allocation34_spill] sm:$0xff]  ;;  %v10681_v13 = vld [vmem:[#allocation33_spill] sm:$0xff] }
0x2861   : > { %v1722_v38 = vadd.f32 %v1717_v45, %v1680_v1  ;;  %v1723_v11 = vadd.f32 %v1718_v16, %v1681_v28  ;;  %v2006_v45 = vsel %vm498_vm4, %v10669_v56, %v10668_v46  ;;  %v10670_v16 = vld [vmem:[#allocation30_spill] sm:$0xff]  ;;  %v10683_v56 = vld [vmem:[#allocation35_spill] sm:$0xff] }
0x2862   : > { %v2007_v28 = vsel %vm498_vm4, %v10668_v46, %v10670_v16 }
0x2863   : > { %v1764_v26 = vadd.f32 %v1759_v34, %v1722_v38  ;;  %v1765_v58 = vadd.f32 %v1760_v59, %v1723_v11  ;;  %v10671_v38 = vld [vmem:[#allocation14_spill] sm:$0xff]  ;;  %v10672_v59 = vld [vmem:[#allocation25_spill] sm:$0xff] }
0x2864   : > { %v2047_v11 = vsel %vm498_vm4, %v10672_v59, %v10671_v38 }
0x2865   : > { %v1806_v32 = vadd.f32 %v1801_v39, %v1764_v26  ;;  %v1807_v42 = vadd.f32 %v1802_v53, %v1765_v58  ;;  %v10673_v26 = vld [vmem:[#allocation27_spill] sm:$0xff] }
0x2866   : > { %v2048_v53 = vsel %vm498_vm4, %v10671_v38, %v10673_v26 }
0x2867   : > { %v1847_v35 = vadd.f32 %v1842_v33, %v1806_v32  ;;  %v1848_v61 = vadd.f32 %v1843_v29, %v1807_v42  ;;  %v10674_v33 = vld [vmem:[#allocation16_spill] sm:$0xff]  ;;  %v10675_v32 = vld [vmem:[#allocation29_spill] sm:$0xff] }
0x2868   : > { %v2088_v29 = vsel %vm498_vm4, %v10675_v32, %v10674_v33 }
0x2869   : > { %v1888_v4 = vadd.f32 %v1883_v24, %v1847_v35  ;;  %v1889_v18 = vadd.f32 %v1884_v60, %v1848_v61  ;;  %v10676_v24 = vld [vmem:[#allocation31_spill] sm:$0xff]  ;;  %v10677_v61 = vld [vmem:[#allocation32_spill] sm:$0xff] }
0x286a   : > { %v2089_v35 = vsel %vm498_vm4, %v10674_v33, %v10676_v24  ;;  %v2129_v27 = vsel %vm498_vm4, %v10678_v55, %v10677_v61  ;;  %v10688_v33 = vld [vmem:[#allocation45_spill] sm:$0xff]  ;;  %v10691_v55 = vld [vmem:[#allocation47_spill] sm:$0xff] }
0x286b   : > { %v1929_v30 = vadd.f32 %v1924_v9, %v1888_v4  ;;  %v1930_v52 = vadd.f32 %v1925_v41, %v1889_v18  ;;  %v10679_v4 = vld [vmem:[#allocation9_spill] sm:$0xff] }
0x286c   : > { %v2130_v41 = vsel %vm498_vm4, %v10677_v61, %v10679_v4 }
0x286d   : > { %v1970_v1 = vadd.f32 %v1965_v49, %v1929_v30  ;;  %v1971_v34 = vadd.f32 %v1966_v36, %v1930_v52  ;;  %v2179_v49 = vsel %vm2178_vm11, %v10681_v13, %v10680_v14  ;;  %v10682_v36 = vld [vmem:[#allocation41_spill] sm:$0xff] }
0x286e   : > { %v2180_v52 = vsel %vm2178_vm11, %v10680_v14, %v10682_v36 }
0x286f   : > { %v2011_v39 = vadd.f32 %v2006_v45, %v1970_v1  ;;  %v2012_v58 = vadd.f32 %v2007_v28, %v1971_v34  ;;  %v10684_v45 = vld [vmem:[#allocation42_spill] sm:$0xff]  ;;  %v10685_v34 = vld [vmem:[#allocation43_spill] sm:$0xff] }
0x2870   : > { %v2223_v1 = vsel %vm2178_vm11, %v10684_v45, %v10683_v56  ;;  %v2224_v38 = vsel %vm2178_vm11, %v10683_v56, %v10685_v34  ;;  %v10696_v56 = vld [vmem:[#allocation50_spill] sm:$0xff] }
0x2871   : > { %v2052_v42 = vadd.f32 %v2047_v11, %v2011_v39  ;;  %v2053_v60 = vadd.f32 %v2048_v53, %v2012_v58  ;;  %v10686_v11 = vld [vmem:[#allocation36_spill] sm:$0xff] }
0x2872   : > { %v10687_v39 = vld [vmem:[#allocation44_spill] sm:$0xff]  ;;  %v2268_v32 = vsel %vm2178_vm11, %v10686_v11, %v10688_v33 }
0x2873   : > { %v2093_v9 = vadd.f32 %v2088_v29, %v2052_v42  ;;  %v2094_v18 = vadd.f32 %v2089_v35, %v2053_v60  ;;  %v2267_v53 = vsel %vm2178_vm11, %v10687_v39, %v10686_v11  ;;  %v10689_v42 = vld [vmem:[#allocation37_spill] sm:$0xff]  ;;  %v10690_v35 = vld [vmem:[#allocation46_spill] sm:$0xff]  ;;  %v10698_v11 = vld [vmem:[#allocation40_spill] sm:$0xff] }
0x2874   : > { %v2311_v60 = vsel %vm2178_vm11, %v10690_v35, %v10689_v42  ;;  %v10699_v39 = vld [vmem:[#allocation53_spill] sm:$0xff]  ;;  %v10701_v35 = vld [vmem:[#allocation52_spill] sm:$0xff] }
0x2875   : > { %v2134_v30 = vadd.f32 %v2129_v27, %v2093_v9  ;;  %v2135_v46 = vadd.f32 %v2130_v41, %v2094_v18  ;;  %v2312_v27 = vsel %vm2178_vm11, %v10689_v42, %v10691_v55  ;;  %v10692_v41 = vld [vmem:[#allocation38_spill] sm:$0xff]  ;;  %v10693_v18 = vld [vmem:[#allocation48_spill] sm:$0xff] }
0x2876   : > { %v2355_v14 = vsel %vm2178_vm11, %v10693_v18, %v10692_v41 }
0x2877   : > { %v2184_v28 = vadd.f32 %v2179_v49, %v2134_v30  ;;  %v2185_v59 = vadd.f32 %v2180_v52, %v2135_v46  ;;  %v10694_v49 = vld [vmem:[#allocation49_spill] sm:$0xff]  ;;  %v10695_v46 = vld [vmem:[#allocation39_spill] sm:$0xff] }
0x2878   : > { %v2356_v30 = vsel %vm2178_vm11, %v10692_v41, %v10694_v49  ;;  %v2399_v45 = vsel %vm2178_vm11, %v10696_v56, %v10695_v46 }
0x2879   : > { %v2228_v58 = vadd.f32 %v2223_v1, %v2184_v28  ;;  %v2229_v29 = vadd.f32 %v2224_v38, %v2185_v59  ;;  %v10697_v28 = vld [vmem:[#allocation51_spill] sm:$0xff] }
0x287a   : > { %v2400_v38 = vsel %vm2178_vm11, %v10695_v46, %v10697_v28  ;;  %v10706_v46 = vld [vmem:[#allocation66_spill] sm:$0xff] }
0x287b   : > { %v2272_v61 = vadd.f32 %v2267_v53, %v2228_v58  ;;  %v2273_v9 = vadd.f32 %v2268_v32, %v2229_v29  ;;  %v2443_v53 = vsel %vm2178_vm11, %v10699_v39, %v10698_v11  ;;  %v10700_v32 = vld [vmem:[#allocation54_spill] sm:$0xff]  ;;  %v10709_v39 = vld [vmem:[#allocation68_spill] sm:$0xff] }
0x287c   : > { %v2444_v29 = vsel %vm2178_vm11, %v10698_v11, %v10700_v32 }
0x287d   : > { %v2316_v13 = vadd.f32 %v2311_v60, %v2272_v61  ;;  %v2317_v52 = vadd.f32 %v2312_v27, %v2273_v9  ;;  %v10702_v60 = vld [vmem:[#allocation55_spill] sm:$0xff]  ;;  %v10703_v9 = vld [vmem:[#allocation56_spill] sm:$0xff] }
0x287e   : > { %v2487_v61 = vsel %vm2178_vm11, %v10702_v60, %v10701_v35  ;;  %v2488_v41 = vsel %vm2178_vm11, %v10701_v35, %v10703_v9 }
0x287f   : > { %v2360_v1 = vadd.f32 %v2355_v14, %v2316_v13  ;;  %v2361_v59 = vadd.f32 %v2356_v30, %v2317_v52  ;;  %v10704_v14 = vld [vmem:[#allocation58_spill] sm:$0xff]  ;;  %v10705_v13 = vld [vmem:[#allocation57_spill] sm:$0xff] }
0x2880   : > { %v2536_v30 = vsel %vm697_vm7, %v10705_v13, %v10704_v14  ;;  %v2537_v56 = vsel %vm697_vm7, %v10704_v14, %v10706_v46  ;;  %v10714_v14 = vld [vmem:[#allocation71_spill] sm:$0xff]  ;;  %v10790_v46 = vld [vmem:[#allocation153_spill] sm:$0xff] }
0x2881   : > { %v2404_v58 = vadd.f32 %v2399_v45, %v2360_v1  ;;  %v2405_v42 = vadd.f32 %v2400_v38, %v2361_v59  ;;  %v10707_v1 = vld [vmem:[#allocation59_spill] sm:$0xff] }
0x2882   : > { %v10708_v38 = vld [vmem:[#allocation67_spill] sm:$0xff] }
0x2883   : > { %v2448_v27 = vadd.f32 %v2443_v53, %v2404_v58  ;;  %v2449_v18 = vadd.f32 %v2444_v29, %v2405_v42  ;;  %v2581_v59 = vsel %vm697_vm7, %v10708_v38, %v10707_v1  ;;  %v2582_v53 = vsel %vm697_vm7, %v10707_v1, %v10709_v39  ;;  %v10710_v29 = vld [vmem:[#allocation60_spill] sm:$0xff]  ;;  %v10711_v42 = vld [vmem:[#allocation69_spill] sm:$0xff] }
0x2884   : > { %v2626_v35 = vsel %vm697_vm7, %v10711_v42, %v10710_v29  ;;  %v10717_v38 = vld [vmem:[#allocation73_spill] sm:$0xff] }
0x2885   : > { %v2492_v52 = vadd.f32 %v2487_v61, %v2448_v27  ;;  %v2493_v45 = vadd.f32 %v2488_v41, %v2449_v18  ;;  %v10712_v61 = vld [vmem:[#allocation70_spill] sm:$0xff]  ;;  %v10713_v18 = vld [vmem:[#allocation61_spill] sm:$0xff] }
0x2886   : > { %v2627_v27 = vsel %vm697_vm7, %v10710_v29, %v10712_v61  ;;  %v2671_v13 = vsel %vm697_vm7, %v10714_v14, %v10713_v18  ;;  %v10720_v61 = vld [vmem:[#allocation75_spill] sm:$0xff] }
0x2887   : > { %v2541_v11 = vadd.f32 %v2536_v30, %v2492_v52  ;;  %v2542_v58 = vadd.f32 %v2537_v56, %v2493_v45  ;;  %v10715_v52 = vld [vmem:[#allocation72_spill] sm:$0xff]  ;;  %v10716_v45 = vld [vmem:[#allocation62_spill] sm:$0xff] }
0x2888   : > { %v2672_v1 = vsel %vm697_vm7, %v10713_v18, %v10715_v52  ;;  %v2716_v42 = vsel %vm697_vm7, %v10717_v38, %v10716_v45  ;;  %v10723_v52 = vld [vmem:[#allocation77_spill] sm:$0xff] }
0x2889   : > { %v2586_v60 = vadd.f32 %v2581_v59, %v2541_v11  ;;  %v2587_v41 = vadd.f32 %v2582_v53, %v2542_v58  ;;  %v10718_v11 = vld [vmem:[#allocation74_spill] sm:$0xff]  ;;  %v10719_v58 = vld [vmem:[#allocation63_spill] sm:$0xff] }
0x288a   : > { %v2717_v29 = vsel %vm697_vm7, %v10716_v45, %v10718_v11  ;;  %v2761_v14 = vsel %vm697_vm7, %v10720_v61, %v10719_v58  ;;  %v10726_v11 = vld [vmem:[#allocation79_spill] sm:$0xff] }
0x288b   : > { %v2631_v30 = vadd.f32 %v2626_v35, %v2586_v60  ;;  %v2632_v56 = vadd.f32 %v2627_v27, %v2587_v41  ;;  %v10721_v60 = vld [vmem:[#allocation76_spill] sm:$0xff] }
0x288c   : > { %v2762_v18 = vsel %vm697_vm7, %v10719_v58, %v10721_v60  ;;  %v10722_v41 = vld [vmem:[#allocation64_spill] sm:$0xff]  ;;  %v10728_v60 = vld [vmem:[#allocation81_spill] sm:$0xff] }
0x288d   : > { %v2676_v59 = vadd.f32 %v2671_v13, %v2631_v30  ;;  %v2677_v53 = vadd.f32 %v2672_v1, %v2632_v56  ;;  %v2806_v38 = vsel %vm697_vm7, %v10723_v52, %v10722_v41  ;;  %v10724_v30 = vld [vmem:[#allocation78_spill] sm:$0xff]  ;;  %v10725_v56 = vld [vmem:[#allocation65_spill] sm:$0xff]  ;;  %v2884_v52 = vsel %vm1072_vm8, %v10728_v60, %v8422_v25  ;;  %v10736_v25 = vld [vmem:[#allocation88_spill] sm:$0xff] }
0x288e   : > { %v2807_v45 = vsel %vm697_vm7, %v10722_v41, %v10724_v30  ;;  %v2851_v61 = vsel %vm697_vm7, %v10726_v11, %v10725_v56  ;;  %v10729_v41 = vld [vmem:[#allocation83_spill] sm:$0xff] }
0x288f   : > { %v2721_v35 = vadd.f32 %v2716_v42, %v2676_v59  ;;  %v2722_v27 = vadd.f32 %v2717_v29, %v2677_v53  ;;  %v10727_v59 = vld [vmem:[#allocation80_spill] sm:$0xff] }
0x2890   : > { %v2852_v58 = vsel %vm697_vm7, %v10725_v56, %v10727_v59  ;;  %v10741_v59 = vld [vmem:[#allocation95_spill] sm:$0xff] }
0x2891   : > { %v2766_v13 = vadd.f32 %v2761_v14, %v2721_v35  ;;  %v2767_v1 = vadd.f32 %v2762_v18, %v2722_v27  ;;  %v10730_v18 = vld [vmem:[#allocation82_spill] sm:$0xff] }
0x2892   : > { %v2916_v27 = vsel %vm1072_vm8, %v10730_v18, %v10729_v41 }
0x2893   : > { %v2811_v42 = vadd.f32 %v2806_v38, %v2766_v13  ;;  %v2812_v29 = vadd.f32 %v2807_v45, %v2767_v1  ;;  %v10731_v38 = vld [vmem:[#allocation85_spill] sm:$0xff]  ;;  %v10732_v13 = vld [vmem:[#allocation84_spill] sm:$0xff] }
0x2894   : > { %v2948_v56 = vsel %vm1072_vm8, %v10732_v13, %v10731_v38  ;;  %v10737_v38 = vld [vmem:[#allocation91_spill] sm:$0xff] }
0x2895   : > { %v2856_v53 = vadd.f32 %v2851_v61, %v2811_v42  ;;  %v2857_v14 = vadd.f32 %v2852_v58, %v2812_v29  ;;  %v10733_v61 = vld [vmem:[#allocation87_spill] sm:$0xff]  ;;  %v10734_v42 = vld [vmem:[#allocation86_spill] sm:$0xff] }
0x2896   : > { %v2980_v58 = vsel %vm1072_vm8, %v10734_v42, %v10733_v61 }
0x2897   : > { %v2888_v35 = vadd.f32 %v10728_v60, %v2856_v53  ;;  %v2889_v30 = vadd.f32 %v2884_v52, %v2857_v14  ;;  %v10735_v53 = vld [vmem:[#allocation89_spill] sm:$0xff] }
0x2898   : > { %v3012_v52 = vsel %vm1072_vm8, %v10736_v25, %v10735_v53 }
0x2899   : > { %v2920_v11 = vadd.f32 %v10730_v18, %v2888_v35  ;;  %v2921_v45 = vadd.f32 %v2916_v27, %v2889_v30  ;;  %v10738_v30 = vld [vmem:[#allocation90_spill] sm:$0xff] }
0x289a   : > { %v3044_v27 = vsel %vm1072_vm8, %v10738_v30, %v10737_v38  ;;  %v10742_v38 = vld [vmem:[#allocation94_spill] sm:$0xff] }
0x289b   : > { %v2952_v1 = vadd.f32 %v10732_v13, %v2920_v11  ;;  %v2953_v29 = vadd.f32 %v2948_v56, %v2921_v45  ;;  %v6842_v13 = vld [vmem:[#allocation2 + $0x8] ss:$8 sm:$0x7] }
0x289c   : > { %v5308_v61 = vrot.slane %v6842_v13, %v7322_v43  ;;  %v5312_v56 = vrot.slane %v6842_v13, %v7325_v44  ;;  %v5316_v39 = vrot.slane %v6842_v13, %v7396_v48 }
0x289d   : > { %v2984_v60 = vadd.f32 %v10734_v42, %v2952_v1  ;;  %v2985_v35 = vadd.f32 %v2980_v58, %v2953_v29  ;;  %v10739_v1 = vld [vmem:[#allocation93_spill] sm:$0xff]  ;;  %v10740_v42 = vld [vmem:[#allocation92_spill] sm:$0xff] }
0x289e   : > { %v3076_v53 = vsel %vm1072_vm8, %v10740_v42, %v10739_v1  ;;  %v10764_v1 = vld [vmem:[#allocation131_spill] sm:$0xff] }
0x289f   : > { %v3016_v18 = vadd.f32 %v10736_v25, %v2984_v60  ;;  %v3017_v11 = vadd.f32 %v3012_v52, %v2985_v35  ;;  %v3108_v52 = vsel %vm1072_vm8, %v10742_v38, %v10741_v59  ;;  %v10746_v59 = vld [vmem:[#allocation98_spill] sm:$0xff] }
0x28a1   : > { %v3048_v45 = vadd.f32 %v10738_v30, %v3016_v18  ;;  %v3049_v58 = vadd.f32 %v3044_v27, %v3017_v11  ;;  %v10743_v30 = vld [vmem:[#allocation97_spill] sm:$0xff]  ;;  %v10744_v27 = vld [vmem:[#allocation96_spill] sm:$0xff] }
0x28a3   : > { %v3080_v60 = vadd.f32 %v10740_v42, %v3048_v45  ;;  %v3081_v35 = vadd.f32 %v3076_v53, %v3049_v58  ;;  %v10745_v42 = vld [vmem:[#allocation99_spill] sm:$0xff]  ;;  %v9365_v58 = vld [vmem:[%s10128_s3] sm:$0xff] }
0x28a4   : > { %v3172_v53 = vsel %vm1072_vm8, %v10746_v59, %v10745_v42  ;;  %v10751_v42 = vld [vmem:[#allocation105_spill] sm:$0xff] }
0x28a5   : > { %v3112_v18 = vadd.f32 %v10742_v38, %v3080_v60  ;;  %v3113_v11 = vadd.f32 %v3108_v52, %v3081_v35  ;;  %v10749_v52 = vld [vmem:[#allocation103_spill] sm:$0xff]  ;;  %v10750_v35 = vld [vmem:[#allocation102_spill] sm:$0xff] }
0x28a7   : > { %v3144_v45 = vadd.f32 %v10744_v27, %v3112_v18  ;;  %v3236_v18 = vsel %vm1072_vm8, %v10750_v35, %v10749_v52 }
0x28a9   : > { %v3176_v38 = vadd.f32 %v10746_v59, %v3144_v45  ;;  %v10752_v59 = vld [vmem:[#allocation104_spill] sm:$0xff] }
0x28aa   : > { %v3268_v45 = vsel %vm1072_vm8, %v10752_v59, %v10751_v42  ;;  %v10758_v42 = vld [vmem:[#allocation110_spill] sm:$0xff] }
0x28b1   : > { %v9335_v14 = vpop.permute.xlu1 %5287 }
0x28c2   : > { %v5302_v41 = vpop.permute.xlu1 %5301 }
0x28c3   : > { %v5320_v29 = vmul.f32 %v5308_v61, %v5302_v41  ;;  %v5321_v25 = vmul.f32 %v5312_v56, %v5302_v41  ;;  %v3140_v61 = vsel %vm1072_vm8, %v10744_v27, %v10743_v30  ;;  %v5322_v56 = vmul.f32 %v5316_v39, %v5302_v41  ;;  %v10748_v39 = vld [vmem:[#allocation100_spill] sm:$0xff] }
0x28c4   : > { %v3145_v13 = vadd.f32 %v3140_v61, %v3113_v11  ;;  %v3208_v60 = vadd.f32 %v10748_v39, %v3176_v38  ;;  %v7062_v27 = vmov 106   ;;  %v7063_v11 = vmov 107   ;;  %v10754_v38 = vld [vmem:[#allocation106_spill] sm:$0xff] }
0x28c5   : > { %5328 = vrot.lane.b32.xlu1 %v5321_v25, %s7061_s6  ;;  %5326 = vrot.lane.b32.xlu0 %v5320_v29, %s7061_s6  ;;  %v10747_v29 = vld [vmem:[#allocation101_spill] sm:$0xff] }
0x28c6   : > { %v3204_v41 = vsel %vm1072_vm8, %v10748_v39, %v10747_v29  ;;  %v3177_v25 = vadd.f32 %v3172_v53, %v3145_v13  ;;  %6818 = vset.pattern.permute.xlu0 %v7062_v27  ;;  %v10753_v13 = vld [vmem:[#allocation107_spill] sm:$0xff]  ;;  %v10755_v27 = vld [vmem:[#allocation109_spill] sm:$0xff] }
0x28c7   : > { %v3300_v39 = vsel %vm1072_vm8, %v10754_v38, %v10753_v13  ;;  %v10760_v13 = vld [vmem:[#allocation112_spill] sm:$0xff] }
0x28c8   : > { %v3209_v61 = vadd.f32 %v3204_v41, %v3177_v25  ;;  %v10756_v41 = vld [vmem:[#allocation108_spill] sm:$0xff] }
0x28c9   : > { %5343 = vperm.xlu1 %6817, %v9365_v58   ;;  %5330 = vrot.lane.b32.xlu0 %v5322_v56, %s7061_s6  ;;  %v3240_v56 = vadd.f32 %v10750_v35, %v3208_v60  ;;  %v3332_v25 = vsel %vm1072_vm8, %v10756_v41, %v10755_v27  ;;  %v10757_v35 = vld [vmem:[#allocation111_spill] sm:$0xff]  ;;  %v10762_v27 = vld [vmem:[#allocation129_spill] sm:$0xff] }
0x28ca   : > { %v3241_v30 = vadd.f32 %v3236_v18, %v3209_v61  ;;  %v3364_v18 = vsel %vm1072_vm8, %v10758_v42, %v10757_v35  ;;  %v10766_v35 = vld [vmem:[#allocation134_spill] sm:$0xff] }
0x28cb   : > { %v3272_v53 = vadd.f32 %v10752_v59, %v3240_v56  ;;  %v10759_v59 = vld [vmem:[#allocation113_spill] sm:$0xff] }
0x28cc   : > { %v3273_v29 = vadd.f32 %v3268_v45, %v3241_v30  ;;  %v3408_v30 = vsel %vm3407_vm12, %v10760_v13, %v10759_v59  ;;  %v10768_v59 = vld [vmem:[#allocation136_spill] sm:$0xff] }
0x28cd   : > { %6819 = vset.pattern.permute.xlu1 %v7063_v11  ;;  %v3304_v52 = vadd.f32 %v10754_v38, %v3272_v53  ;;  %v10761_v38 = vld [vmem:[#allocation114_spill] sm:$0xff] }
0x28ce   : > { %v3305_v11 = vadd.f32 %v3300_v39, %v3273_v29  ;;  %v3452_v29 = vsel %vm3407_vm12, %v10762_v27, %v10761_v38  ;;  %v10770_v38 = vld [vmem:[#allocation138_spill] sm:$0xff] }
0x28cf   : > { %v3336_v60 = vadd.f32 %v10756_v41, %v3304_v52  ;;  %v10763_v41 = vld [vmem:[#allocation115_spill] sm:$0xff] }
0x28d0   : > { %v3337_v61 = vadd.f32 %v3332_v25, %v3305_v11  ;;  %v3496_v25 = vsel %vm3407_vm12, %v10764_v1, %v10763_v41  ;;  %v10772_v41 = vld [vmem:[#allocation140_spill] sm:$0xff] }
0x28d1   : > { %v3368_v56 = vadd.f32 %v10758_v42, %v3336_v60  ;;  %v10765_v60 = vld [vmem:[#allocation116_spill] sm:$0xff] }
0x28d2   : > { %v3369_v45 = vadd.f32 %v3364_v18, %v3337_v61  ;;  %v3540_v18 = vsel %vm3407_vm12, %v10766_v35, %v10765_v60  ;;  %v10774_v60 = vld [vmem:[#allocation142_spill] sm:$0xff] }
0x28d3   : > { %v3413_v53 = vadd.f32 %v10760_v13, %v3368_v56  ;;  %v10767_v56 = vld [vmem:[#allocation117_spill] sm:$0xff] }
0x28d4   : > { %v3414_v39 = vadd.f32 %v3408_v30, %v3369_v45  ;;  %v3584_v30 = vsel %vm3407_vm12, %v10768_v59, %v10767_v56 }
0x28d5   : > { %v3457_v52 = vadd.f32 %v10762_v27, %v3413_v53  ;;  %v10769_v53 = vld [vmem:[#allocation118_spill] sm:$0xff] }
0x28d6   : > { %v3458_v11 = vadd.f32 %v3452_v29, %v3414_v39  ;;  %v3628_v29 = vsel %vm3407_vm12, %v10770_v38, %v10769_v53  ;;  %v10782_v53 = vld [vmem:[#allocation148_spill] sm:$0xff] }
0x28d7   : > { %v3501_v42 = vadd.f32 %v10764_v1, %v3457_v52  ;;  %v10771_v52 = vld [vmem:[#allocation119_spill] sm:$0xff] }
0x28d8   : > { %v3502_v61 = vadd.f32 %v3496_v25, %v3458_v11  ;;  %v3672_v25 = vsel %vm3407_vm12, %v10772_v41, %v10771_v52  ;;  %v10778_v52 = vld [vmem:[#allocation122_spill] sm:$0xff] }
0x28d9   : > { %v3545_v13 = vadd.f32 %v10766_v35, %v3501_v42  ;;  %v10773_v42 = vld [vmem:[#allocation120_spill] sm:$0xff] }
0x28da   : > { %v3546_v45 = vadd.f32 %v3540_v18, %v3502_v61  ;;  %v3716_v18 = vsel %vm3407_vm12, %v10774_v60, %v10773_v42  ;;  %v10781_v42 = vld [vmem:[#allocation123_spill] sm:$0xff] }
0x28db   : > { %v3589_v27 = vadd.f32 %v10768_v59, %v3545_v13  ;;  %v10775_v59 = vld [vmem:[#allocation121_spill] sm:$0xff]  ;;  %v10776_v13 = vld [vmem:[#allocation144_spill] sm:$0xff] }
0x28dc   : > { %v3590_v39 = vadd.f32 %v3584_v30, %v3546_v45  ;;  %v3760_v56 = vsel %vm697_vm7, %v10776_v13, %v10775_v59  ;;  %v10777_v45 = vld [vmem:[#allocation145_spill] sm:$0xff]  ;;  %v3848_v13 = vsel %vm697_vm7, %v10782_v53, %v10781_v42 }
0x28dd   : > { %v3633_v1 = vadd.f32 %v10770_v38, %v3589_v27  ;;  %v3761_v38 = vsel %vm697_vm7, %v10775_v59, %v10777_v45  ;;  %v10785_v45 = vld [vmem:[#allocation150_spill] sm:$0xff] }
0x28de   : > { %v3634_v11 = vadd.f32 %v3628_v29, %v3590_v39  ;;  %v10779_v29 = vld [vmem:[#allocation146_spill] sm:$0xff] }
0x28df   : > { %v3677_v35 = vadd.f32 %v10772_v41, %v3633_v1  ;;  %v3804_v41 = vsel %vm697_vm7, %v10779_v29, %v10778_v52  ;;  %v10780_v1 = vld [vmem:[#allocation147_spill] sm:$0xff] }
0x28e0   : > { %v3678_v61 = vadd.f32 %v3672_v25, %v3634_v11  ;;  %v3805_v25 = vsel %vm697_vm7, %v10778_v52, %v10780_v1  ;;  %v10788_v1 = vld [vmem:[#allocation152_spill] sm:$0xff] }
0x28e1   : > { %v3721_v30 = vadd.f32 %v10774_v60, %v3677_v35  ;;  %v10783_v35 = vld [vmem:[#allocation149_spill] sm:$0xff] }
0x28e2   : > { %v3722_v27 = vadd.f32 %v3716_v18, %v3678_v61  ;;  %v3849_v59 = vsel %vm697_vm7, %v10781_v42, %v10783_v35  ;;  %v10784_v61 = vld [vmem:[#allocation124_spill] sm:$0xff]  ;;  %v10793_v35 = vld [vmem:[#allocation155_spill] sm:$0xff] }
0x28e3   : > { %v3765_v39 = vadd.f32 %v3760_v56, %v3721_v30  ;;  %v3892_v29 = vsel %vm697_vm7, %v10785_v45, %v10784_v61  ;;  %v10786_v30 = vld [vmem:[#allocation151_spill] sm:$0xff]  ;;  %v10792_v45 = vld [vmem:[#allocation154_spill] sm:$0xff] }
0x28e4   : > { %v3766_v11 = vadd.f32 %v3761_v38, %v3722_v27  ;;  %v3893_v52 = vsel %vm697_vm7, %v10784_v61, %v10786_v30  ;;  %v10787_v27 = vld [vmem:[#allocation125_spill] sm:$0xff]  ;;  %v10794_v61 = vld [vmem:[#allocation127_spill] sm:$0xff] }
0x28e5   : > { %v3809_v60 = vadd.f32 %v3804_v41, %v3765_v39  ;;  %v3936_v53 = vsel %vm697_vm7, %v10788_v1, %v10787_v27  ;;  %v9453_v41 = vpop.permute.xlu0 %4980  ;;  %v3937_v42 = vsel %vm697_vm7, %v10787_v27, %v10790_v46  ;;  %v10795_v1 = vld [vmem:[#allocation156_spill] sm:$0xff]  ;;  %v10796_v30 = vld [vmem:[#allocation157_spill] sm:$0xff]  ;;  %v10799_v46 = vld [vmem:[#allocation159_spill] sm:$0xff] }
0x28e6   : > { %v3810_v18 = vadd.f32 %v3805_v25, %v3766_v11  ;;  %10789 = vst [vmem:[#allocation21_spill] sm:$0xff] %v9453_v41  ;;  %v10791_v11 = vld [vmem:[#allocation126_spill] sm:$0xff]  ;;  %v4024_v41 = vsel %vm697_vm7, %v10795_v1, %v10794_v61  ;;  %v10797_v27 = vld [vmem:[#allocation133_spill] sm:$0xff]  ;;  %v10800_v1 = vld [vmem:[#allocation160_spill] sm:$0xff] }
0x28e7   : > { %v3853_v56 = vadd.f32 %v3848_v13, %v3809_v60  ;;  %v3980_v13 = vsel %vm697_vm7, %v10792_v45, %v10791_v11  ;;  %v10798_v45 = vld [vmem:[#allocation158_spill] sm:$0xff] }
0x28e8   : > { %v3854_v38 = vadd.f32 %v3849_v59, %v3810_v18  ;;  %v3981_v59 = vsel %vm697_vm7, %v10791_v11, %v10793_v35 }
0x28e9   : > { %v3897_v39 = vadd.f32 %v3892_v29, %v3853_v56  ;;  %v9467_v29 = vpop.permute.xlu0 %5021 }
0x28ea   : > { %v3898_v25 = vadd.f32 %v3893_v52, %v3854_v38  ;;  %v4025_v52 = vsel %vm697_vm7, %v10794_v61, %v10796_v30 }
0x28eb   : > { %v3941_v60 = vadd.f32 %v3936_v53, %v3897_v39  ;;  %v4068_v53 = vsel %vm697_vm7, %v10798_v45, %v10797_v27  ;;  %v10802_v45 = vld [vmem:[#allocation165_spill] sm:$0xff] }
0x28ec   : > { %v3942_v18 = vadd.f32 %v3937_v42, %v3898_v25  ;;  %v4069_v42 = vsel %vm697_vm7, %v10797_v27, %v10799_v46 }
0x28ed   : > { %v3985_v56 = vadd.f32 %v3980_v13, %v3941_v60  ;;  %v4101_v13 = vsel %vm1072_vm8, %v10800_v1, %v8795_v31  ;;  %v9481_v35 = vpop.permute.xlu0 %5025  ;;  %v10837_v31 = vld [vmem:[#allocation194_spill] sm:$0xff] }
0x28ee   : > { %v3986_v38 = vadd.f32 %v3981_v59, %v3942_v18  ;;  %10801 = vst [vmem:[#allocation11_spill] sm:$0xff] %v9481_v35  ;;  %v4133_v18 = vsel %vm1072_vm8, %v8799_v15, %v8803_v50  ;;  %v10826_v50 = vld [vmem:[#allocation187_spill] sm:$0xff] }
0x28ef   : > { %v4029_v39 = vadd.f32 %v4024_v41, %v3985_v56  ;;  %v4165_v56 = vsel %vm1072_vm8, %v8807_v20, %v8815_v3 }
0x28f0   : > { %v4030_v25 = vadd.f32 %v4025_v52, %v3986_v38 }
0x28f1   : > { %v4073_v11 = vadd.f32 %v4068_v53, %v4029_v39  ;;  %v9491_v38 = vpop.permute.xlu0 %5065  ;;  %v10803_v53 = vld [vmem:[#allocation164_spill] sm:$0xff] }
0x28f2   : > { %v4074_v60 = vadd.f32 %v4069_v42, %v4030_v25  ;;  %v4197_v39 = vsel %vm1072_vm8, %v10803_v53, %v10802_v45  ;;  %v10809_v45 = vld [vmem:[#allocation171_spill] sm:$0xff] }
0x28f3   : > { %v4105_v59 = vadd.f32 %v10800_v1, %v4073_v11  ;;  %v10804_v11 = vld [vmem:[#allocation167_spill] sm:$0xff]  ;;  %v10805_v1 = vld [vmem:[#allocation166_spill] sm:$0xff] }
0x28f4   : > { %v4106_v41 = vadd.f32 %v4101_v13, %v4074_v60 }
0x28f5   : > { %v4137_v61 = vadd.f32 %v8799_v15, %v4105_v59  ;;  %v4229_v15 = vsel %vm1072_vm8, %v10805_v1, %v10804_v11  ;;  %v10806_v59 = vld [vmem:[#allocation169_spill] sm:$0xff] }
0x28f6   : > { %v4138_v52 = vadd.f32 %v4133_v18, %v4106_v41  ;;  %v10807_v18 = vld [vmem:[#allocation168_spill] sm:$0xff]  ;;  %v10811_v11 = vld [vmem:[#allocation173_spill] sm:$0xff] }
0x28f7   : > { %v4169_v27 = vadd.f32 %v8807_v20, %v4137_v61  ;;  %v4261_v41 = vsel %vm1072_vm8, %v10807_v18, %v10806_v59  ;;  %v9505_v20 = vpop.permute.xlu0 %5069 }
0x28f8   : > { %v4170_v42 = vadd.f32 %v4165_v56, %v4138_v52  ;;  %10808 = vst [vmem:[#allocation22_spill] sm:$0xff] %v9505_v20  ;;  %v10810_v56 = vld [vmem:[#allocation170_spill] sm:$0xff] }
0x28f9   : > { %v4201_v25 = vadd.f32 %v10803_v53, %v4169_v27  ;;  %v4293_v52 = vsel %vm1072_vm8, %v10810_v56, %v10809_v45  ;;  %v10814_v20 = vld [vmem:[#allocation174_spill] sm:$0xff]  ;;  %v10815_v45 = vld [vmem:[#allocation177_spill] sm:$0xff] }
0x28fa   : > { %v4202_v13 = vadd.f32 %v4197_v39, %v4170_v42  ;;  %v10812_v39 = vld [vmem:[#allocation172_spill] sm:$0xff] }
0x28fb   : > { %v4233_v60 = vadd.f32 %v10805_v1, %v4201_v25  ;;  %v4325_v42 = vsel %vm1072_vm8, %v10812_v39, %v10811_v11  ;;  %v9515_v1 = vpop.permute.xlu0 %5109  ;;  %v10817_v11 = vld [vmem:[#allocation179_spill] sm:$0xff] }
0x28fc   : > { %v4234_v35 = vadd.f32 %v4229_v15, %v4202_v13  ;;  %v10813_v13 = vld [vmem:[#allocation175_spill] sm:$0xff] }
0x28fd   : > { %v4265_v61 = vadd.f32 %v10807_v18, %v4233_v60  ;;  %v4357_v60 = vsel %vm1072_vm8, %v10814_v20, %v10813_v13  ;;  %v10820_v13 = vld [vmem:[#allocation181_spill] sm:$0xff] }
0x28fe   : > { %v4266_v27 = vadd.f32 %v4261_v41, %v4234_v35  ;;  %v10816_v35 = vld [vmem:[#allocation176_spill] sm:$0xff] }
0x28ff   : > { %v4297_v53 = vadd.f32 %v10810_v56, %v4265_v61  ;;  %v4389_v41 = vsel %vm1072_vm8, %v10816_v35, %v10815_v45  ;;  %v10822_v45 = vld [vmem:[#allocation183_spill] sm:$0xff] }
0x2900   : > { %v4298_v25 = vadd.f32 %v4293_v52, %v4266_v27  ;;  %v10818_v52 = vld [vmem:[#allocation178_spill] sm:$0xff] }
0x2901   : > { %v4329_v15 = vadd.f32 %v10812_v39, %v4297_v53  ;;  %v4421_v27 = vsel %vm1072_vm8, %v10818_v52, %v10817_v11  ;;  %v9529_v53 = vpop.permute.xlu0 %5113 }
0x2902   : > { %v4330_v18 = vadd.f32 %v4325_v42, %v4298_v25  ;;  %10819 = vst [vmem:[#allocation24_spill] sm:$0xff] %v9529_v53  ;;  %v10821_v42 = vld [vmem:[#allocation180_spill] sm:$0xff] }
0x2903   : > { %v4361_v59 = vadd.f32 %v10814_v20, %v4329_v15  ;;  %v4453_v20 = vsel %vm1072_vm8, %v10821_v42, %v10820_v13  ;;  %v10827_v13 = vld [vmem:[#allocation186_spill] sm:$0xff] }
0x2904   : > { %v4362_v61 = vadd.f32 %v4357_v60, %v4330_v18  ;;  %v10823_v60 = vld [vmem:[#allocation182_spill] sm:$0xff] }
0x2905   : > { %v4393_v56 = vadd.f32 %v10816_v35, %v4361_v59  ;;  %v4485_v59 = vsel %vm1072_vm8, %v10823_v60, %v10822_v45  ;;  %v5154_v35 = vpop.permute.xlu0 %5153  ;;  %v10829_v45 = vld [vmem:[#allocation188_spill] sm:$0xff] }
0x2906   : > { %v4394_v3 = vadd.f32 %v4389_v41, %v4362_v61  ;;  %v10824_v41 = vld [vmem:[#allocation185_spill] sm:$0xff]  ;;  %v10825_v61 = vld [vmem:[#allocation184_spill] sm:$0xff] }
0x2907   : > { %v4425_v39 = vadd.f32 %v10818_v52, %v4393_v56  ;;  %v4517_v53 = vsel %vm1072_vm8, %v10825_v61, %v10824_v41  ;;  %v10831_v41 = vld [vmem:[#allocation191_spill] sm:$0xff] }
0x2908   : > { %v4426_v25 = vadd.f32 %v4421_v27, %v4394_v3  ;;  %v4549_v3 = vsel %vm1072_vm8, %v10827_v13, %v10826_v50  ;;  %v10833_v50 = vld [vmem:[#allocation192_spill] sm:$0xff] }
0x2909   : > { %v4457_v15 = vadd.f32 %v10821_v42, %v4425_v39  ;;  %v10828_v42 = vld [vmem:[#allocation189_spill] sm:$0xff] }
0x290a   : > { %v4458_v18 = vadd.f32 %v4453_v20, %v4426_v25  ;;  %v4581_v20 = vsel %vm1072_vm8, %v10829_v45, %v10828_v42 }
0x290b   : > { %v4489_v11 = vadd.f32 %v10823_v60, %v4457_v15  ;;  %v9551_v15 = vpop.permute.xlu0 %5157 }
0x290c   : > { %v4490_v56 = vadd.f32 %v4485_v59, %v4458_v18  ;;  %10830 = vst [vmem:[#allocation20_spill] sm:$0xff] %v9551_v15  ;;  %v10832_v59 = vld [vmem:[#allocation190_spill] sm:$0xff] }
0x290d   : > { %v4521_v52 = vadd.f32 %v10825_v61, %v4489_v11  ;;  %v4624_v11 = vsel %vm3407_vm12, %v10832_v59, %v10831_v41  ;;  %v10838_v41 = vld [vmem:[#allocation203_spill] sm:$0xff] }
0x290e   : > { %v4522_v27 = vadd.f32 %v4517_v53, %v4490_v56  ;;  %v10834_v53 = vld [vmem:[#allocation199_spill] sm:$0xff] }
0x290f   : > { %v4553_v39 = vadd.f32 %v10827_v13, %v4521_v52  ;;  %v4668_v13 = vsel %vm3407_vm12, %v10834_v53, %v10833_v50  ;;  %v5198_v52 = vpop.permute.xlu0 %5197  ;;  %v10840_v50 = vld [vmem:[#allocation205_spill] sm:$0xff] }
0x2910   : > { %v4554_v25 = vadd.f32 %v4549_v3, %v4522_v27  ;;  %v10835_v3 = vld [vmem:[#allocation193_spill] sm:$0xff] }
0x2911   : > { %v4585_v60 = vadd.f32 %v10829_v45, %v4553_v39  ;;  %v10836_v27 = vld [vmem:[#allocation201_spill] sm:$0xff] }
0x2912   : > { %v4586_v18 = vadd.f32 %v4581_v20, %v4554_v25  ;;  %v4712_v15 = vsel %vm3407_vm12, %v10836_v27, %v10835_v3  ;;  %v4756_v20 = vsel %vm3407_vm12, %v10838_v41, %v10837_v31  ;;  %v10842_v3 = vld [vmem:[#allocation196_spill] sm:$0xff]  ;;  %v10844_v31 = vld [vmem:[#allocation197_spill] sm:$0xff] }
0x2913   : > { %v4629_v61 = vadd.f32 %v10832_v59, %v4585_v60  ;;  %v10839_v59 = vld [vmem:[#allocation195_spill] sm:$0xff] }
0x2914   : > { %v4630_v56 = vadd.f32 %v4624_v11, %v4586_v18  ;;  %v4800_v11 = vsel %vm3407_vm12, %v10840_v50, %v10839_v59 }
0x2915   : > { %v4673_v42 = vadd.f32 %v10834_v53, %v4629_v61  ;;  %v9573_v61 = vpop.permute.xlu0 %5201 }
0x2916   : > { %v4674_v45 = vadd.f32 %v4668_v13, %v4630_v56  ;;  %10841 = vst [vmem:[#allocation28_spill] sm:$0xff] %v9573_v61  ;;  %v10843_v13 = vld [vmem:[#allocation207_spill] sm:$0xff]  ;;  %v10847_v61 = vld [vmem:[#allocation212_spill] sm:$0xff] }
0x2917   : > { %v4717_v39 = vadd.f32 %v10836_v27, %v4673_v42  ;;  %v4844_v42 = vsel %vm3407_vm12, %v10843_v13, %v10842_v3  ;;  %v10848_v3 = vld [vmem:[#allocation215_spill] sm:$0xff] }
0x2918   : > { %v4718_v25 = vadd.f32 %v4712_v15, %v4674_v45  ;;  %v10845_v15 = vld [vmem:[#allocation210_spill] sm:$0xff] }
0x2919   : > { %v4761_v60 = vadd.f32 %v10838_v41, %v4717_v39  ;;  %v4888_v41 = vsel %vm3407_vm12, %v10845_v15, %v10844_v31  ;;  %v5242_v39 = vpop.permute.xlu0 %5241  ;;  %v10850_v31 = vld [vmem:[#allocation216_spill] sm:$0xff] }
0x291a   : > { %v4762_v18 = vadd.f32 %v4756_v20, %v4718_v25  ;;  %v10846_v25 = vld [vmem:[#allocation209_spill] sm:$0xff] }
0x291b   : > { %v4805_v53 = vadd.f32 %v10840_v50, %v4761_v60  ;;  %v4932_v50 = vsel %vm3407_vm12, %v10847_v61, %v10846_v25  ;;  %v10852_v25 = vld [vmem:[#allocation217_spill] sm:$0xff] }
0x291c   : > { %v4806_v56 = vadd.f32 %v4800_v11, %v4762_v18  ;;  %v10849_v11 = vld [vmem:[#allocation214_spill] sm:$0xff] }
0x291d   : > { %v4849_v27 = vadd.f32 %v10843_v13, %v4805_v53  ;;  %v4983_v18 = vsel %vm4982_vm13, %v10849_v11, %v10848_v3 }
0x291e   : > { %v4850_v45 = vadd.f32 %v4844_v42, %v4806_v56  ;;  %v5027_v42 = vsel %vm4982_vm13, %v9467_v29, %v10850_v31 }
0x291f   : > { %v4893_v20 = vadd.f32 %v10845_v15, %v4849_v27  ;;  %v9595_v27 = vpop.permute.xlu0 %5245 }
0x2920   : > { %v4894_v60 = vadd.f32 %v4888_v41, %v4850_v45  ;;  %10851 = vst [vmem:[#allocation26_spill] sm:$0xff] %v9595_v27 }
0x2921   : > { %v4937_v59 = vadd.f32 %v10847_v61, %v4893_v20  ;;  %v5071_v61 = vsel %vm4982_vm13, %v9491_v38, %v10852_v25  ;;  %v10853_v20 = vld [vmem:[#allocation218_spill] sm:$0xff] }
0x2922   : > { %v4938_v53 = vadd.f32 %v4932_v50, %v4894_v60 }
0x2923   : > { %v4988_v13 = vadd.f32 %v10849_v11, %v4937_v59  ;;  %v5115_v59 = vsel %vm4982_vm13, %v9515_v1, %v10853_v20  ;;  %v5286_v60 = vpop.permute.xlu0 %5285 }
0x2924   : > { %v4989_v56 = vadd.f32 %v4983_v18, %v4938_v53  ;;  %v10854_v18 = vld [vmem:[#allocation219_spill] sm:$0xff] }
0x2925   : > { %v5032_v15 = vadd.f32 %v9467_v29, %v4988_v13  ;;  %v5159_v53 = vsel %vm4982_vm13, %v5154_v35, %v10854_v18  ;;  %v10855_v13 = vld [vmem:[#allocation220_spill] sm:$0xff] }
0x2926   : > { %v5033_v41 = vadd.f32 %v5027_v42, %v4989_v56  ;;  %v5203_v31 = vsel %vm4982_vm13, %v5198_v52, %v10855_v13  ;;  %v10856_v56 = vld [vmem:[#allocation221_spill] sm:$0xff] }
0x2927   : > { %v5076_v45 = vadd.f32 %v9491_v38, %v5032_v15  ;;  %v5247_v38 = vsel %vm4982_vm13, %v5242_v39, %v10856_v56  ;;  %v9612_v3 = vpop.permute.xlu0 %5289 }
0x2928   : > { %v5077_v50 = vadd.f32 %v5071_v61, %v5033_v41 }
0x2929   : > { %v5120_v11 = vadd.f32 %v9515_v1, %v5076_v45  ;;  %v5291_v1 = vsel %vm4982_vm13, %v5286_v60, %v9335_v14 }
0x292a   : > { %v5121_v27 = vadd.f32 %v5115_v59, %v5077_v50 }
0x292b   : > { %v5164_v29 = vadd.f32 %v5154_v35, %v5120_v11 }
0x292c   : > { %v5165_v25 = vadd.f32 %v5159_v53, %v5121_v27 }
0x292d   : > { %v5208_v42 = vadd.f32 %v5198_v52, %v5164_v29 }
0x292e   : > { %v5209_v15 = vadd.f32 %v5203_v31, %v5165_v25  ;;  %v9624_v31 = vld [vmem:[#allocation2 + $0x9] ss:$8 sm:$0x7] }
0x292f   : > { %v5252_v61 = vadd.f32 %v5242_v39, %v5208_v42  ;;  %v5350_v39 = vrot.slane %v9624_v31, %v7322_v43  ;;  %v5354_v25 = vrot.slane %v9624_v31, %v7325_v44  ;;  %v7064_v42 = vmov 108  }
0x2930   : > { %v5253_v41 = vadd.f32 %v5247_v38, %v5209_v15  ;;  %v7065_v38 = vmov 109   ;;  %v7066_v15 = vmov 110  }
0x2931   : > { %v5296_v45 = vadd.f32 %v5286_v60, %v5252_v61  ;;  %v7067_v61 = vmov 112  }
0x2932   : > { %v5297_v59 = vadd.f32 %v5291_v1, %v5253_v41  ;;  %v7068_v1 = vmov 111   ;;  %v7069_v41 = vmov 115  }
0x2937   : > { %v9616_v35 = vpop.permute.xlu1 %5328  ;;  %v5327_v50 = vpop.permute.xlu0 %5326 }
0x2938   : > { %v5333_v52 = vsel %vm5332_vm14, %v5327_v50, %v9616_v35  ;;  %v9620_v27 = vadd.f32 %v5327_v50, %v5296_v45  ;;  %v10857_v45 = vld [vmem:[#allocation222_spill] sm:$0xff]  ;;  %v10858_v50 = vld [vmem:[#allocation223_spill] sm:$0xff] }
0x2939   : > { %v9622_v11 = vadd.f32 %v5333_v52, %v5297_v59  ;;  %v1247_v59 = vrot.slane %v10857_v45, %v7396_v48  ;;  %v1278_v52 = vrot.slane %v10858_v50, %v7396_v48  ;;  %v7073_v45 = vmov 121  }
0x2948   : > { %v9630_v60 = vpop.permute.xlu1 %5343 }
0x2949   : > { %v5362_v53 = vmul.f32 %v5350_v39, %v9630_v60  ;;  %v5363_v29 = vmul.f32 %v5354_v25, %v9630_v60  ;;  %v7070_v39 = vmov 113   ;;  %v7071_v25 = vmov 118  }
0x294b   : > { %5370 = vrot.lane.b32.xlu1 %v5363_v29, %s7061_s6  ;;  %5368 = vrot.lane.b32.xlu0 %v5362_v53, %s7061_s6  ;;  %v10859_v53 = vld [vmem:[#allocation10_spill] sm:$0xff] }
0x294c   : > { %v1253_v29 = vmul.f32 %v1247_v59, %v10859_v53  ;;  %v7075_v53 = vmov 124  }
0x294f   : > { %5425 = vperm.xlu1 %6819, %v9365_v58   ;;  %5384 = vperm.xlu0 %6818, %v9365_v58  }
0x2953   : > { %6820 = vset.pattern.permute.xlu1 %v7064_v42  ;;  %6821 = vset.pattern.permute.xlu0 %v7065_v38  ;;  %v10860_v42 = vld [vmem:[#allocation19_spill] sm:$0xff] }
0x2954   : > { %5466 = vperm.xlu1 %6820, %v9365_v58   ;;  %5507 = vperm.xlu0 %6821, %v9365_v58   ;;  %v1284_v38 = vmul.f32 %v1278_v52, %v10860_v42  ;;  %v10862_v52 = vld [vmem:[#allocation225_spill] sm:$0xff] }
0x2956   : > { %v1287_v50 = vadd.f32 %v1284_v38, %v1253_v29  ;;  %v7076_v38 = vmov 117  }
0x2958   : > { %6822 = vset.pattern.permute.xlu1 %v7066_v15  ;;  %6824 = vset.pattern.permute.xlu0 %v7067_v61  ;;  %v9655_v15 = vld [vmem:[%s10128_s3] sm:$0xff]  ;;  %v10861_v61 = vld [vmem:[#allocation224_spill] sm:$0xff] }
0x2959   : > { %5548 = vperm.xlu1 %6822, %v9365_v58   ;;  %5630 = vperm.xlu0 %6824, %v9365_v58  }
0x295d   : > { %6823 = vset.pattern.permute.xlu1 %v7068_v1  ;;  %6827 = vset.pattern.permute.xlu0 %v7069_v41  ;;  %v1309_v1 = vrot.slane %v10861_v61, %v7396_v48  ;;  %v7072_v41 = vmov 114  }
0x295e   : > { %5589 = vperm.xlu1 %6823, %v9365_v58   ;;  %5753 = vperm.xlu0 %6827, %v9365_v58  }
0x295f   : > { %v1315_v59 = vmul.f32 %v1309_v1, %v7840_v54  ;;  %v7077_v54 = vmov 127  }
0x2961   : > { %v1318_v42 = vadd.f32 %v1315_v59, %v1287_v50  ;;  %v1402_v59 = vrot.slane %v9098_v21, %v7396_v48  ;;  %v1464_v21 = vrot.slane %v9112_v19, %v7396_v48 }
0x2962   : > { %6825 = vset.pattern.permute.xlu1 %v7070_v39  ;;  %6830 = vset.pattern.permute.xlu0 %v7071_v25  ;;  %v1340_v39 = vrot.slane %v10862_v52, %v7396_v48  ;;  %v7074_v25 = vmov 116   ;;  %v7078_v52 = vmov 119  }
0x2963   : > { %5671 = vperm.xlu1 %6825, %v9365_v58   ;;  %5876 = vperm.xlu0 %6830, %v9365_v58  }
0x2964   : > { %v1346_v61 = vmul.f32 %v1340_v39, %v7860_v23  ;;  %v10864_v23 = vmov 0   ;;  %v1408_v39 = vmul.f32 %v1402_v59, %v7864_v22 }
0x2966   : > { %v1349_v29 = vadd.f32 %v1346_v61, %v1318_v42  ;;  %v7079_v61 = vmov 120  }
0x2967   : > { %6826 = vset.pattern.permute.xlu1 %v7072_v41  ;;  %6833 = vset.pattern.permute.xlu0 %v7073_v45  ;;  %v10863_v41 = vld [vmem:[#allocation226_spill] sm:$0xff] }
0x2968   : > { %5712 = vperm.xlu1 %6826, %v9365_v58   ;;  %6005 = vperm.xlu0 %6833, %v9655_v15   ;;  %v1371_v45 = vrot.slane %v10863_v41, %v7396_v48  ;;  %v1470_v41 = vmul.f32 %v1464_v21, %v7868_v37 }
0x296a   : > { %v1377_v1 = vmul.f32 %v1371_v45, %v7818_v2  ;;  %v7080_v45 = vmov 122  }
0x296c   : > { %6828 = vset.pattern.permute.xlu1 %v7074_v25  ;;  %6836 = vset.pattern.permute.xlu0 %v7075_v53  ;;  %v1380_v50 = vadd.f32 %v1377_v1, %v1349_v29  ;;  %v1433_v53 = vrot.slane %v9104_v63, %v7396_v48  ;;  %v7081_v63 = vmov 123   ;;  %v7083_v1 = vmov 126  }
0x296d   : > { %5794 = vperm.xlu1 %6828, %v9365_v58   ;;  %6137 = vperm.xlu0 %6836, %v9655_v15  }
0x296e   : > { %v1411_v25 = vadd.f32 %v1408_v39, %v1380_v50  ;;  %v1439_v42 = vmul.f32 %v1433_v53, %v7866_v17  ;;  %v10866_v39 = vld [vmem:[#allocation68_spill] sm:$0xff]  ;;  %v9720_v53 = vpop.permute.xlu0 %5330 }
0x2970   : > { %v1442_v2 = vadd.f32 %v1439_v42, %v1411_v25  ;;  %v10867_v25 = vld [vmem:[#allocation70_spill] sm:$0xff] }
0x2971   : > { %6829 = vset.pattern.permute.xlu1 %v7076_v38  ;;  %6839 = vset.pattern.permute.xlu0 %v7077_v54  ;;  %v7082_v38 = vmov 125   ;;  %v10869_v42 = vld [vmem:[#allocation74_spill] sm:$0xff] }
0x2972   : > { %5835 = vperm.xlu1 %6829, %v9365_v58   ;;  %6269 = vperm.xlu0 %6839, %v9655_v15   ;;  %v1473_v22 = vadd.f32 %v1470_v41, %v1442_v2  ;;  %v10871_v41 = vld [vmem:[#allocation78_spill] sm:$0xff] }
0x2976   : > { %6831 = vset.pattern.permute.xlu1 %v7078_v52  ;;  %6841 = vset.pattern.permute.xlu0 %v10864_v23 }
0x2977   : > { %5917 = vperm.xlu1 %6831, %v9365_v58   ;;  %v1514_v58 = vadd.f32 %v7903_v10, %v1473_v22  ;;  %v5358_v10 = vrot.slane %v9624_v31, %v7396_v48  ;;  %v10872_v22 = vld [vmem:[#allocation80_spill] sm:$0xff] }
0x2979   : > { %v1556_v17 = vadd.f32 %v8023_v40, %v1514_v58 }
0x297b   : > { %6832 = vset.pattern.permute.xlu1 %v7079_v61  ;;  %v1598_v29 = vadd.f32 %v8031_v51, %v1556_v17  ;;  %v5364_v51 = vmul.f32 %v5358_v10, %v9630_v60 }
0x297c   : > { %5960 = vperm.xlu1 %6832, %v9655_v15  }
0x297d   : > { %v1640_v19 = vadd.f32 %v8041_v8, %v1598_v29  ;;  %v10874_v29 = vld [vmem:[#allocation83_spill] sm:$0xff] }
0x297f   : > { %v1682_v37 = vadd.f32 %v8046_v6, %v1640_v19  ;;  %v10875_v19 = vld [vmem:[#allocation85_spill] sm:$0xff] }
0x2980   : > { %6834 = vset.pattern.permute.xlu1 %v7080_v45 }
0x2981   : > { %6049 = vperm.xlu1 %6834, %v9655_v15   ;;  %v1724_v54 = vadd.f32 %v8050_v7, %v1682_v37 }
0x2983   : > { %v1766_v40 = vadd.f32 %v8054_v12, %v1724_v54  ;;  %v5382_v54 = vld [vmem:[#allocation2 + $0xa] ss:$8 sm:$0x7] }
0x2985   : > { %6835 = vset.pattern.permute.xlu1 %v7081_v63  ;;  %v1808_v50 = vadd.f32 %v8058_v62, %v1766_v40  ;;  %v10873_v63 = vld [vmem:[#allocation17_spill] sm:$0xff] }
0x2986   : > { %6093 = vperm.xlu1 %6835, %v9655_v15  }
0x2987   : > { %v1849_v8 = vadd.f32 %v8062_v0, %v1808_v50 }
0x2989   : > { %v1890_v6 = vadd.f32 %v10661_v47, %v1849_v8  ;;  %v10878_v8 = vld [vmem:[#allocation91_spill] sm:$0xff] }
0x298a   : > { %6837 = vset.pattern.permute.xlu1 %v7082_v38 }
0x298b   : > { %6181 = vperm.xlu1 %6837, %v9655_v15   ;;  %v1931_v7 = vadd.f32 %v10664_v57, %v1890_v6 }
0x298d   : > { %v1972_v31 = vadd.f32 %v10667_v5, %v1931_v7  ;;  %v5423_v7 = vld [vmem:[#allocation2 + $0xb] ss:$8 sm:$0x7] }
0x298f   : > { %6838 = vset.pattern.permute.xlu1 %v7083_v1  ;;  %v10876_v1 = vld [vmem:[#allocation87_spill] sm:$0xff] }
0x2990   : > { %6225 = vperm.xlu1 %6838, %v9655_v15   ;;  %v2013_v15 = vadd.f32 %v10670_v16, %v1972_v31 }
0x2992   : > { %v2054_v12 = vadd.f32 %v10673_v26, %v2013_v15 }
0x2994   : > { %5372 = vrot.lane.b32.xlu1 %v5364_v51, %s7061_s6  ;;  %v2095_v60 = vadd.f32 %v10676_v24, %v2054_v12  ;;  %v5391_v51 = vrot.slane %v5382_v54, %v7322_v43  ;;  %v10879_v12 = vld [vmem:[#allocation93_spill] sm:$0xff] }
0x2995   : > { %6840 = vset.pattern.permute.xlu1 %v10864_v23  ;;  %v10865_v23 = vld [vmem:[#allocation66_spill] sm:$0xff] }
0x2996   : > { %v2136_v62 = vadd.f32 %v10679_v4, %v2095_v60 }
0x2998   : > { %v2186_v59 = vadd.f32 %v10682_v36, %v2136_v62 }
0x299a   : > { %v2230_v0 = vadd.f32 %v10685_v34, %v2186_v59  ;;  %v10868_v34 = vld [vmem:[#allocation72_spill] sm:$0xff]  ;;  %v5399_v59 = vrot.slane %v5382_v54, %v7396_v48 }
0x299c   : > { %v2274_v52 = vadd.f32 %v10688_v33, %v2230_v0  ;;  %v5432_v0 = vrot.slane %v5423_v7, %v7322_v43 }
0x299e   : > { %v2318_v47 = vadd.f32 %v10691_v55, %v2274_v52  ;;  %v10880_v52 = vld [vmem:[#allocation95_spill] sm:$0xff] }
0x29a0   : > { %v2362_v57 = vadd.f32 %v10694_v49, %v2318_v47 }
0x29a2   : > { %v2406_v5 = vadd.f32 %v10697_v28, %v2362_v57 }
0x29a4   : > { %v2450_v16 = vadd.f32 %v10700_v32, %v2406_v5 }
0x29a6   : > { %v2494_v26 = vadd.f32 %v10703_v9, %v2450_v16  ;;  %v10870_v9 = vld [vmem:[#allocation76_spill] sm:$0xff]  ;;  %v10881_v16 = vld [vmem:[#allocation97_spill] sm:$0xff] }
0x29a8   : > { %v2543_v24 = vadd.f32 %v10865_v23, %v2494_v26  ;;  %v5436_v23 = vrot.slane %v5423_v7, %v7325_v44 }
0x29aa   : > { %v2588_v4 = vadd.f32 %v10866_v39, %v2543_v24  ;;  %v5440_v24 = vrot.slane %v5423_v7, %v7396_v48  ;;  %v5464_v39 = vld [vmem:[#allocation2 + $0xc] ss:$8 sm:$0x7] }
0x29ab   : > { %v10890_v7 = vld [vmem:[#allocation111_spill] sm:$0xff] }
0x29ac   : > { %v2633_v36 = vadd.f32 %v10867_v25, %v2588_v4  ;;  %v10882_v4 = vld [vmem:[#allocation99_spill] sm:$0xff] }
0x29ae   : > { %v2678_v33 = vadd.f32 %v10868_v34, %v2633_v36 }
0x29b0   : > { %v2723_v55 = vadd.f32 %v10869_v42, %v2678_v33  ;;  %v10883_v42 = vld [vmem:[#allocation101_spill] sm:$0xff] }
0x29b2   : > { %v2768_v2 = vadd.f32 %v10870_v9, %v2723_v55  ;;  %v10884_v9 = vld [vmem:[#allocation103_spill] sm:$0xff] }
0x29b4   : > { %v2813_v45 = vadd.f32 %v10871_v41, %v2768_v2 }
0x29b6   : > { %v2858_v58 = vadd.f32 %v10872_v22, %v2813_v45  ;;  %v5505_v45 = vld [vmem:[#allocation2 + $0xd] ss:$8 sm:$0x7] }
0x29b8   : > { %v2890_v17 = vadd.f32 %v10873_v63, %v2858_v58  ;;  %v10885_v58 = vld [vmem:[#allocation105_spill] sm:$0xff] }
0x29ba   : > { %v2922_v38 = vadd.f32 %v10874_v29, %v2890_v17  ;;  %v5481_v17 = vrot.slane %v5464_v39, %v7396_v48 }
0x29bc   : > { %v2954_v37 = vadd.f32 %v10875_v19, %v2922_v38  ;;  %v5514_v38 = vrot.slane %v5505_v45, %v7322_v43  ;;  %v10886_v19 = vld [vmem:[#allocation107_spill] sm:$0xff] }
0x29bd   : > { %v9724_v61 = vpop.permute.xlu1 %5370  ;;  %v5369_v49 = vpop.permute.xlu0 %5368 }
0x29be   : > { %v5374_v28 = vsel %vm5332_vm14, %v5369_v49, %v9724_v61  ;;  %v9729_v32 = vadd.f32 %v5369_v49, %v9620_v27  ;;  %v2986_v10 = vadd.f32 %v10876_v1, %v2954_v37  ;;  %v10877_v27 = vld [vmem:[#allocation89_spill] sm:$0xff]  ;;  %v5473_v49 = vrot.slane %v5464_v39, %v7322_v43 }
0x29bf   : > { %v9733_v21 = vadd.f32 %v5374_v28, %v9622_v11  ;;  %v5395_v11 = vrot.slane %v5382_v54, %v7325_v44  ;;  %v5477_v28 = vrot.slane %v5464_v39, %v7325_v44  ;;  %v5587_v39 = vld [vmem:[#allocation2 + $0xf] ss:$8 sm:$0x7] }
0x29c0   : > { %v3018_v40 = vadd.f32 %v10877_v27, %v2986_v10  ;;  %v10887_v10 = vld [vmem:[#allocation109_spill] sm:$0xff] }
0x29c2   : > { %v3050_v6 = vadd.f32 %v10878_v8, %v3018_v40  ;;  %v5518_v40 = vrot.slane %v5505_v45, %v7325_v44  ;;  %v5522_v8 = vrot.slane %v5505_v45, %v7396_v48 }
0x29c4   : > { %v3082_v60 = vadd.f32 %v10879_v12, %v3050_v6  ;;  %v5546_v6 = vld [vmem:[#allocation2 + $0xe] ss:$8 sm:$0x7] }
0x29c6   : > { %v3114_v47 = vadd.f32 %v10880_v52, %v3082_v60  ;;  %v10891_v60 = vld [vmem:[#allocation130_spill] sm:$0xff] }
0x29c8   : > { %v3146_v26 = vadd.f32 %v10881_v16, %v3114_v47  ;;  %v5555_v47 = vrot.slane %v5546_v6, %v7322_v43 }
0x29ca   : > { %v3178_v25 = vadd.f32 %v10882_v4, %v3146_v26  ;;  %v5559_v26 = vrot.slane %v5546_v6, %v7325_v44  ;;  %v10895_v4 = vld [vmem:[#allocation135_spill] sm:$0xff] }
0x29cc   : > { %v3210_v55 = vadd.f32 %v10883_v42, %v3178_v25  ;;  %v10896_v25 = vld [vmem:[#allocation116_spill] sm:$0xff]  ;;  %v5563_v42 = vrot.slane %v5546_v6, %v7396_v48 }
0x29ce   : > { %v5385_v50 = vpop.permute.xlu0 %5384  ;;  %v5426_v62 = vpop.permute.xlu1 %5425  ;;  %v3242_v2 = vadd.f32 %v10884_v9, %v3210_v55 }
0x29cf   : > { %v5403_v31 = vmul.f32 %v5391_v51, %v5385_v50  ;;  %v5404_v15 = vmul.f32 %v5395_v11, %v5385_v50  ;;  %v5405_v57 = vmul.f32 %v5399_v59, %v5385_v50  ;;  %v5444_v5 = vmul.f32 %v5432_v0, %v5426_v62  ;;  %v10888_v51 = vld [vmem:[#allocation128_spill] sm:$0xff]  ;;  %v10889_v11 = vld [vmem:[#allocation113_spill] sm:$0xff] }
0x29d0   : > { %v5445_v36 = vmul.f32 %v5436_v23, %v5426_v62  ;;  %v5446_v34 = vmul.f32 %v5440_v24, %v5426_v62  ;;  %v3274_v63 = vadd.f32 %v10885_v58, %v3242_v2  ;;  %v3409_v50 = vsel %vm3407_vm12, %v10889_v11, %v10888_v51  ;;  %v10892_v62 = vld [vmem:[#allocation114_spill] sm:$0xff]  ;;  %v10903_v51 = vld [vmem:[#allocation143_spill] sm:$0xff]  ;;  %v10904_v11 = vld [vmem:[#allocation120_spill] sm:$0xff] }
0x29d1   : > { %5409 = vrot.lane.b32.xlu1 %v5403_v31, %s7061_s6  ;;  %5411 = vrot.lane.b32.xlu0 %v5404_v15, %s7061_s6  ;;  %v3453_v59 = vsel %vm3407_vm12, %v10892_v62, %v10891_v60  ;;  %v5596_v2 = vrot.slane %v5587_v39, %v7322_v43  ;;  %v10900_v58 = vld [vmem:[#allocation118_spill] sm:$0xff]  ;;  %v5669_v62 = vld [vmem:[#allocation2 + $0x29] ss:$8 sm:$0x7] }
0x29d2   : > { %v3306_v37 = vadd.f32 %v10886_v19, %v3274_v63  ;;  %v10901_v19 = vld [vmem:[#allocation141_spill] sm:$0xff] }
0x29d3   : > { %v5467_v33 = vpop.permute.xlu1 %5466  ;;  %v5508_v29 = vpop.permute.xlu0 %5507 }
0x29d4   : > { %v5485_v41 = vmul.f32 %v5473_v49, %v5467_v33  ;;  %v5486_v22 = vmul.f32 %v5477_v28, %v5467_v33  ;;  %v5487_v54 = vmul.f32 %v5481_v17, %v5467_v33  ;;  %v5526_v1 = vmul.f32 %v5514_v38, %v5508_v29  ;;  %v10897_v49 = vld [vmem:[#allocation137_spill] sm:$0xff] }
0x29d5   : > { %5413 = vrot.lane.b32.xlu1 %v5405_v57, %s7061_s6  ;;  %5450 = vrot.lane.b32.xlu0 %v5444_v5, %s7061_s6  ;;  %v3338_v27 = vadd.f32 %v10887_v10, %v3306_v37  ;;  %v5527_v15 = vmul.f32 %v5518_v40, %v5508_v29  ;;  %v5528_v0 = vmul.f32 %v5522_v8, %v5508_v29  ;;  %v10893_v57 = vld [vmem:[#allocation132_spill] sm:$0xff]  ;;  %v10894_v5 = vld [vmem:[#allocation115_spill] sm:$0xff]  ;;  %v10898_v28 = vld [vmem:[#allocation117_spill] sm:$0xff] }
0x29d6   : > { %v3497_v16 = vsel %vm3407_vm12, %v10894_v5, %v10893_v57  ;;  %v3585_v9 = vsel %vm3407_vm12, %v10898_v28, %v10897_v49  ;;  %v5600_v38 = vrot.slane %v5587_v39, %v7325_v44  ;;  %v10902_v37 = vld [vmem:[#allocation119_spill] sm:$0xff]  ;;  %v5604_v10 = vrot.slane %v5587_v39, %v7396_v48  ;;  %v10907_v39 = vld [vmem:[#allocation149_spill] sm:$0xff] }
0x29d7   : > { %v3370_v31 = vadd.f32 %v10890_v7, %v3338_v27  ;;  %v5678_v5 = vrot.slane %v5669_v62, %v7322_v43 }
0x29d8   : > { %v5549_v12 = vpop.permute.xlu1 %5548  ;;  %v5631_v8 = vpop.permute.xlu0 %5630 }
0x29d9   : > { %5452 = vrot.lane.b32.xlu1 %v5445_v36, %s7061_s6  ;;  %5454 = vrot.lane.b32.xlu0 %v5446_v34, %s7061_s6  ;;  %v3415_v52 = vadd.f32 %v3409_v50, %v3370_v31  ;;  %v5567_v24 = vmul.f32 %v5555_v47, %v5549_v12  ;;  %v3541_v36 = vsel %vm3407_vm12, %v10896_v25, %v10895_v4 }
0x29da   : > { %v5568_v34 = vmul.f32 %v5559_v26, %v5549_v12  ;;  %v5569_v45 = vmul.f32 %v5563_v42, %v5549_v12  ;;  %v3717_v50 = vsel %vm3407_vm12, %v10904_v11, %v10903_v51  ;;  %v5682_v25 = vrot.slane %v5669_v62, %v7325_v44 }
0x29db   : > { %v3459_v23 = vadd.f32 %v3453_v59, %v3415_v52 }
0x29dd   : > { %5491 = vrot.lane.b32.xlu1 %v5485_v41, %s7061_s6  ;;  %5493 = vrot.lane.b32.xlu0 %v5486_v22, %s7061_s6  ;;  %v3503_v33 = vadd.f32 %v3497_v16, %v3459_v23  ;;  %v5590_v55 = vpop.permute.xlu1 %5589  ;;  %v10899_v22 = vld [vmem:[#allocation139_spill] sm:$0xff] }
0x29de   : > { %v3629_v63 = vsel %vm3407_vm12, %v10900_v58, %v10899_v22  ;;  %v5608_v17 = vmul.f32 %v5596_v2, %v5590_v55  ;;  %v5609_v40 = vmul.f32 %v5600_v38, %v5590_v55  ;;  %v5610_v6 = vmul.f32 %v5604_v10, %v5590_v55  ;;  %v10906_v16 = vld [vmem:[#allocation147_spill] sm:$0xff] }
0x29df   : > { %v3547_v41 = vadd.f32 %v3541_v36, %v3503_v33  ;;  %v5686_v36 = vrot.slane %v5669_v62, %v7396_v48  ;;  %v10908_v33 = vld [vmem:[#allocation151_spill] sm:$0xff] }
0x29e0   : > { %v10910_v22 = vld [vmem:[#allocation155_spill] sm:$0xff] }
0x29e1   : > { %5495 = vrot.lane.b32.xlu1 %v5487_v54, %s7061_s6  ;;  %5532 = vrot.lane.b32.xlu0 %v5526_v1, %s7061_s6  ;;  %v3591_v29 = vadd.f32 %v3585_v9, %v3547_v41  ;;  %v3673_v54 = vsel %vm3407_vm12, %v10902_v37, %v10901_v19  ;;  %v5628_v1 = vld [vmem:[#allocation2 + $0x28] ss:$8 sm:$0x7]  ;;  %v5754_v19 = vpop.permute.xlu0 %5753 }
0x29e2   : > { %v5637_v31 = vrot.slane %v5628_v1, %v7322_v43  ;;  %v5645_v47 = vrot.slane %v5628_v1, %v7396_v48  ;;  %v5672_v57 = vpop.permute.xlu1 %5671  ;;  %v10909_v9 = vld [vmem:[#allocation153_spill] sm:$0xff] }
0x29e3   : > { %v3635_v27 = vadd.f32 %v3629_v63, %v3591_v29  ;;  %v5691_v55 = vmul.f32 %v5682_v25, %v5672_v57  ;;  %v5692_v49 = vmul.f32 %v5686_v36, %v5672_v57  ;;  %v5751_v63 = vld [vmem:[#allocation2 + $0x2b] ss:$8 sm:$0x7] }
0x29e4   : > { %v5649_v60 = vmul.f32 %v5637_v31, %v5631_v8  ;;  %v5651_v23 = vmul.f32 %v5645_v47, %v5631_v8  ;;  %v5764_v11 = vrot.slane %v5751_v63, %v7325_v44  ;;  %v5833_v47 = vld [vmem:[#allocation2 + $0x2d] ss:$8 sm:$0x7] }
0x29e5   : > { %5534 = vrot.lane.b32.xlu1 %v5527_v15, %s7061_s6  ;;  %5536 = vrot.lane.b32.xlu0 %v5528_v0, %s7061_s6  ;;  %v3679_v7 = vadd.f32 %v3673_v54, %v3635_v27  ;;  %v5641_v15 = vrot.slane %v5628_v1, %v7325_v44  ;;  %v10905_v0 = vld [vmem:[#allocation145_spill] sm:$0xff]  ;;  %v5760_v54 = vrot.slane %v5751_v63, %v7322_v43 }
0x29e7   : > { %v3723_v12 = vadd.f32 %v3717_v50, %v3679_v7  ;;  %v5650_v59 = vmul.f32 %v5641_v15, %v5631_v8  ;;  %v5713_v28 = vpop.permute.xlu1 %5712  ;;  %v5772_v27 = vmul.f32 %v5760_v54, %v5754_v19  ;;  %v5792_v50 = vld [vmem:[#allocation2 + $0x2c] ss:$8 sm:$0x7]  ;;  %v10912_v8 = vld [vmem:[#allocation162_spill] sm:$0xff]  ;;  %v5773_v7 = vmul.f32 %v5764_v11, %v5754_v19 }
0x29e8   : > { %v5805_v62 = vrot.slane %v5792_v50, %v7325_v44  ;;  %v10922_v11 = vld [vmem:[#allocation181_spill] sm:$0xff] }
0x29e9   : > { %5573 = vrot.lane.b32.xlu1 %v5567_v24, %s7061_s6  ;;  %5575 = vrot.lane.b32.xlu0 %v5568_v34, %s7061_s6  ;;  %v3767_v52 = vadd.f32 %v10905_v0, %v3723_v12  ;;  %v5690_v24 = vmul.f32 %v5678_v5, %v5672_v57  ;;  %v5710_v34 = vld [vmem:[#allocation2 + $0x2a] ss:$8 sm:$0x7] }
0x29ea   : > { %v5719_v41 = vrot.slane %v5710_v34, %v7322_v43  ;;  %v5727_v37 = vrot.slane %v5710_v34, %v7396_v48  ;;  %v10913_v12 = vld [vmem:[#allocation163_spill] sm:$0xff] }
0x29eb   : > { %v3811_v26 = vadd.f32 %v10906_v16, %v3767_v52  ;;  %v10915_v5 = vld [vmem:[#allocation167_spill] sm:$0xff] }
0x29ec   : > { %v5733_v10 = vmul.f32 %v5727_v37, %v5713_v28  ;;  %v5795_v31 = vpop.permute.xlu1 %5794  ;;  %v5915_v37 = vld [vmem:[#allocation2 + $0x2f] ss:$8 sm:$0x7] }
0x29ed   : > { %5577 = vrot.lane.b32.xlu1 %v5569_v45, %s7061_s6  ;;  %5614 = vrot.lane.b32.xlu0 %v5608_v17, %s7061_s6  ;;  %v3855_v4 = vadd.f32 %v10907_v39, %v3811_v26  ;;  %v5723_v45 = vrot.slane %v5710_v34, %v7325_v44  ;;  %v5731_v17 = vmul.f32 %v5719_v41, %v5713_v28  ;;  %v10916_v39 = vld [vmem:[#allocation169_spill] sm:$0xff]  ;;  %v10917_v34 = vld [vmem:[#allocation171_spill] sm:$0xff]  ;;  %v5877_v41 = vpop.permute.xlu0 %5876 }
0x29ee   : > { %v5814_v57 = vmul.f32 %v5805_v62, %v5795_v31  ;;  %v5809_v26 = vrot.slane %v5792_v50, %v7396_v48 }
0x29ef   : > { %v3899_v42 = vadd.f32 %v10908_v33, %v3855_v4  ;;  %v5732_v29 = vmul.f32 %v5723_v45, %v5713_v28  ;;  %v10918_v28 = vld [vmem:[#allocation173_spill] sm:$0xff] }
0x29f0   : > { %v5815_v25 = vmul.f32 %v5809_v26, %v5795_v31  ;;  %v10928_v26 = vld [vmem:[#allocation191_spill] sm:$0xff] }
0x29f1   : > { %5616 = vrot.lane.b32.xlu1 %v5609_v40, %s7061_s6  ;;  %5618 = vrot.lane.b32.xlu0 %v5610_v6, %s7061_s6  ;;  %v3943_v2 = vadd.f32 %v10909_v9, %v3899_v42  ;;  %v10911_v40 = vld [vmem:[#allocation161_spill] sm:$0xff]  ;;  %v5846_v42 = vrot.slane %v5833_v47, %v7325_v44 }
0x29f3   : > { %v3987_v58 = vadd.f32 %v10910_v22, %v3943_v2  ;;  %v10919_v22 = vld [vmem:[#allocation175_spill] sm:$0xff] }
0x29f5   : > { %5655 = vrot.lane.b32.xlu1 %v5649_v60, %s7061_s6  ;;  %5657 = vrot.lane.b32.xlu0 %v5650_v59, %s7061_s6  ;;  %v4031_v38 = vadd.f32 %v10796_v30, %v3987_v58  ;;  %v5768_v30 = vrot.slane %v5751_v63, %v7396_v48  ;;  %v5801_v60 = vrot.slane %v5792_v50, %v7322_v43  ;;  %v10914_v59 = vld [vmem:[#allocation165_spill] sm:$0xff] }
0x29f7   : > { %v4075_v1 = vadd.f32 %v10799_v46, %v4031_v38  ;;  %v5774_v15 = vmul.f32 %v5768_v30, %v5754_v19  ;;  %v5813_v52 = vmul.f32 %v5801_v60, %v5795_v31  ;;  %v5928_v31 = vrot.slane %v5915_v37, %v7325_v44  ;;  %v6000_v60 = vld [vmem:[#allocation2 + $0x9] ss:$8 sm:$0x7] }
0x29f9   : > { %5659 = vrot.lane.b32.xlu1 %v5651_v23, %s7061_s6  ;;  %5696 = vrot.lane.b32.xlu0 %v5690_v24, %s7061_s6  ;;  %v4107_v51 = vadd.f32 %v10911_v40, %v4075_v1  ;;  %v5836_v23 = vpop.permute.xlu1 %5835  ;;  %v5842_v24 = vrot.slane %v5833_v47, %v7322_v43  ;;  %v10921_v1 = vld [vmem:[#allocation179_spill] sm:$0xff] }
0x29fa   : > { %v5855_v2 = vmul.f32 %v5846_v42, %v5836_v23  ;;  %v10932_v42 = vld [vmem:[#allocation192_spill] sm:$0xff] }
0x29fb   : > { %v4139_v6 = vadd.f32 %v10912_v8, %v4107_v51  ;;  %v5854_v36 = vmul.f32 %v5842_v24, %v5836_v23  ;;  %v5924_v51 = vrot.slane %v5915_v37, %v7322_v43  ;;  %v10929_v24 = vld [vmem:[#allocation13_spill] sm:$0xff] }
0x29fd   : > { %5698 = vrot.lane.b32.xlu1 %v5691_v55, %s7061_s6  ;;  %5700 = vrot.lane.b32.xlu0 %v5692_v49, %s7061_s6  ;;  %v4171_v46 = vadd.f32 %v10913_v12, %v4139_v6  ;;  %v5874_v55 = vld [vmem:[#allocation2 + $0x2e] ss:$8 sm:$0x7]  ;;  %v5850_v49 = vrot.slane %v5833_v47, %v7396_v48  ;;  %v5918_v40 = vpop.permute.xlu1 %5917 }
0x29fe   : > { %v5883_v63 = vrot.slane %v5874_v55, %v7322_v43  ;;  %v5936_v8 = vmul.f32 %v5924_v51, %v5918_v40  ;;  %v10923_v6 = vld [vmem:[#allocation183_spill] sm:$0xff]  ;;  %v10924_v12 = vld [vmem:[#allocation185_spill] sm:$0xff]  ;;  %v5937_v62 = vmul.f32 %v5928_v31, %v5918_v40  ;;  %v10937_v51 = vld [vmem:[#allocation206_spill] sm:$0xff] }
0x29ff   : > { %v4203_v0 = vadd.f32 %v10914_v59, %v4171_v46  ;;  %v5856_v45 = vmul.f32 %v5850_v49, %v5836_v23  ;;  %v10939_v31 = vld [vmem:[#allocation208_spill] sm:$0xff] }
0x2a00   : > { %v5895_v19 = vmul.f32 %v5883_v63, %v5877_v41  ;;  %v6044_v63 = vld [vmem:[#allocation2 + $0xa] ss:$8 sm:$0x7] }
0x2a01   : > { %5737 = vrot.lane.b32.xlu1 %v5731_v17, %s7061_s6  ;;  %5739 = vrot.lane.b32.xlu0 %v5732_v29, %s7061_s6  ;;  %v4235_v16 = vadd.f32 %v10915_v5, %v4203_v0  ;;  %v5887_v17 = vrot.slane %v5874_v55, %v7325_v44  ;;  %v10920_v29 = vld [vmem:[#allocation177_spill] sm:$0xff]  ;;  %v5961_v0 = vpop.permute.xlu1 %5960 }
0x2a03   : > { %v4267_v4 = vadd.f32 %v10916_v39, %v4235_v16  ;;  %v5896_v54 = vmul.f32 %v5887_v17, %v5877_v41  ;;  %v10927_v16 = vld [vmem:[#allocation198_spill] sm:$0xff]  ;;  %v6001_v39 = vmul.f32 %v6000_v60, %v10929_v24 }
0x2a04   : > { %v4625_v23 = vsel %vm3407_vm12, %v10928_v26, %v10927_v16 }
0x2a05   : > { %5741 = vrot.lane.b32.xlu1 %v5733_v10, %s7061_s6  ;;  %5778 = vrot.lane.b32.xlu0 %v5772_v27, %s7061_s6  ;;  %v4299_v33 = vadd.f32 %v10917_v34, %v4267_v4  ;;  %v5891_v27 = vrot.slane %v5874_v55, %v7396_v48 }
0x2a07   : > { %v4331_v9 = vadd.f32 %v10918_v28, %v4299_v33  ;;  %v5897_v50 = vmul.f32 %v5891_v27, %v5877_v41  ;;  %v10931_v33 = vld [vmem:[#allocation200_spill] sm:$0xff]  ;;  %v10933_v41 = vld [vmem:[#allocation202_spill] sm:$0xff]  ;;  %v6016_v27 = vrot.slane %v6001_v39, %v7325_v44 }
0x2a08   : > { %v4669_v55 = vsel %vm3407_vm12, %v10932_v42, %v10931_v33  ;;  %v10945_v33 = vld [vmem:[#allocation21_spill] sm:$0xff]  ;;  %v10946_v42 = vld [vmem:[#allocation215_spill] sm:$0xff] }
0x2a09   : > { %5780 = vrot.lane.b32.xlu1 %v5773_v7, %s7061_s6  ;;  %5782 = vrot.lane.b32.xlu0 %v5774_v15, %s7061_s6  ;;  %v4363_v58 = vadd.f32 %v10919_v22, %v4331_v9  ;;  %v5932_v15 = vrot.slane %v5915_v37, %v7396_v48  ;;  %v6006_v9 = vpop.permute.xlu0 %6005  ;;  %v10936_v37 = vld [vmem:[#allocation194_spill] sm:$0xff] }
0x2a0b   : > { %v4395_v38 = vadd.f32 %v10920_v29, %v4363_v58  ;;  %v5938_v59 = vmul.f32 %v5932_v15, %v5918_v40  ;;  %v6012_v58 = vrot.slane %v6001_v39, %v7322_v43  ;;  %v6045_v40 = vmul.f32 %v6044_v63, %v10929_v24  ;;  %v10940_v15 = vld [vmem:[#allocation196_spill] sm:$0xff] }
0x2a0d   : > { %5819 = vrot.lane.b32.xlu1 %v5813_v52, %s7061_s6  ;;  %5821 = vrot.lane.b32.xlu0 %v5814_v57, %s7061_s6  ;;  %v4427_v10 = vadd.f32 %v10921_v1, %v4395_v38  ;;  %v10925_v52 = vld [vmem:[#allocation187_spill] sm:$0xff]  ;;  %v6050_v38 = vpop.permute.xlu1 %6049  ;;  %v6024_v1 = vmul.f32 %v6012_v58, %v6006_v9 }
0x2a0e   : > { %v10926_v57 = vld [vmem:[#allocation15_spill] sm:$0xff] }
0x2a0f   : > { %v4459_v30 = vadd.f32 %v10922_v11, %v4427_v10  ;;  %v5967_v5 = vrot.slane %v10926_v57, %v7322_v43  ;;  %v5971_v4 = vrot.slane %v10926_v57, %v7325_v44  ;;  %v10938_v11 = vld [vmem:[#allocation195_spill] sm:$0xff] }
0x2a11   : > { %5823 = vrot.lane.b32.xlu1 %v5815_v25, %s7061_s6  ;;  %5860 = vrot.lane.b32.xlu0 %v5854_v36, %s7061_s6  ;;  %v4491_v7 = vadd.f32 %v10923_v6, %v4459_v30  ;;  %v10930_v25 = vld [vmem:[#allocation189_spill] sm:$0xff]  ;;  %v5979_v34 = vmul.f32 %v5967_v5, %v5961_v0  ;;  %v5980_v49 = vmul.f32 %v5971_v4, %v5961_v0 }
0x2a12   : > { %v4801_v30 = vsel %vm3407_vm12, %v10938_v11, %v10937_v51  ;;  %v6025_v6 = vmul.f32 %v6016_v27, %v6006_v9  ;;  %v10951_v51 = vld [vmem:[#allocation24_spill] sm:$0xff] }
0x2a13   : > { %v4523_v46 = vadd.f32 %v10924_v12, %v4491_v7  ;;  %v6088_v7 = vld [vmem:[#allocation2 + $0xb] ss:$8 sm:$0x7]  ;;  %v4845_v12 = vsel %vm3407_vm12, %v10940_v15, %v10939_v31  ;;  %v5116_v11 = vsel %vm4982_vm13, %v10853_v20, %v10951_v51 }
0x2a14   : > { %v6089_v5 = vmul.f32 %v6088_v7, %v10929_v24  ;;  %v10952_v31 = vld [vmem:[#allocation20_spill] sm:$0xff] }
0x2a15   : > { %5862 = vrot.lane.b32.xlu1 %v5855_v2, %s7061_s6  ;;  %5864 = vrot.lane.b32.xlu0 %v5856_v45, %s7061_s6  ;;  %v4555_v47 = vadd.f32 %v10925_v52, %v4523_v46  ;;  %v5975_v2 = vrot.slane %v10926_v57, %v7396_v48  ;;  %v10934_v45 = vld [vmem:[#allocation193_spill] sm:$0xff]  ;;  %v6060_v57 = vrot.slane %v6045_v40, %v7325_v44 }
0x2a16   : > { %v4713_v22 = vsel %vm3407_vm12, %v10934_v45, %v10933_v41  ;;  %v10942_v52 = vld [vmem:[#allocation197_spill] sm:$0xff]  ;;  %v10947_v45 = vld [vmem:[#allocation11_spill] sm:$0xff]  ;;  %v5160_v15 = vsel %vm4982_vm13, %v10854_v18, %v10952_v31 }
0x2a17   : > { %v4587_v36 = vadd.f32 %v10930_v25, %v4555_v47  ;;  %v5981_v29 = vmul.f32 %v5975_v2, %v5961_v0  ;;  %v10941_v0 = vld [vmem:[#allocation211_spill] sm:$0xff]  ;;  %v6069_v25 = vmul.f32 %v6060_v57, %v6050_v38  ;;  %v10954_v57 = vld [vmem:[#allocation26_spill] sm:$0xff] }
0x2a18   : > { %v4889_v47 = vsel %vm3407_vm12, %v10942_v52, %v10941_v0  ;;  %v5248_v18 = vsel %vm4982_vm13, %v10856_v56, %v10954_v57  ;;  %v5334_v56 = vsel %vm5332_vm14, %v9616_v35, %v9720_v53  ;;  %v6264_v35 = vld [vmem:[#allocation2 + $0xf] ss:$8 sm:$0x7] }
0x2a19   : > { %5901 = vrot.lane.b32.xlu1 %v5895_v19, %s7061_s6  ;;  %5903 = vrot.lane.b32.xlu0 %v5896_v54, %s7061_s6  ;;  %v4631_v28 = vadd.f32 %v4625_v23, %v4587_v36  ;;  %v10935_v19 = vld [vmem:[#allocation204_spill] sm:$0xff]  ;;  %v10943_v23 = vld [vmem:[#allocation213_spill] sm:$0xff] }
0x2a1a   : > { %v4757_v54 = vsel %vm3407_vm12, %v10936_v37, %v10935_v19  ;;  %v6104_v19 = vrot.slane %v6089_v5, %v7325_v44  ;;  %v10949_v37 = vld [vmem:[#allocation22_spill] sm:$0xff] }
0x2a1b   : > { %v4675_v17 = vadd.f32 %v4669_v55, %v4631_v28  ;;  %v4984_v55 = vsel %vm4982_vm13, %v10946_v42, %v10945_v33  ;;  %v6100_v28 = vrot.slane %v6089_v5, %v7322_v43 }
0x2a1d   : > { %5905 = vrot.lane.b32.xlu1 %v5897_v50, %s7061_s6  ;;  %5942 = vrot.lane.b32.xlu0 %v5936_v8, %s7061_s6  ;;  %v4719_v10 = vadd.f32 %v4713_v22, %v4675_v17  ;;  %v6020_v50 = vrot.slane %v6001_v39, %v7396_v48  ;;  %v10944_v39 = vld [vmem:[#allocation209_spill] sm:$0xff]  ;;  %v10948_v22 = vld [vmem:[#allocation216_spill] sm:$0xff] }
0x2a1e   : > { %v4933_v4 = vsel %vm3407_vm12, %v10944_v39, %v10943_v23  ;;  %v5028_v58 = vsel %vm4982_vm13, %v10948_v22, %v10947_v45  ;;  %v6220_v23 = vld [vmem:[#allocation2 + $0xe] ss:$8 sm:$0x7] }
0x2a1f   : > { %v4763_v8 = vadd.f32 %v4757_v54, %v4719_v10  ;;  %v6026_v46 = vmul.f32 %v6020_v50, %v6006_v9  ;;  %v10950_v54 = vld [vmem:[#allocation217_spill] sm:$0xff]  ;;  %v6108_v10 = vrot.slane %v6089_v5, %v7396_v48  ;;  %v6221_v42 = vmul.f32 %v6220_v23, %v10929_v24 }
0x2a21   : > { %5944 = vrot.lane.b32.xlu1 %v5937_v62, %s7061_s6  ;;  %5946 = vrot.lane.b32.xlu0 %v5938_v59, %s7061_s6  ;;  %v4807_v60 = vadd.f32 %v4801_v30, %v4763_v8  ;;  %v6056_v62 = vrot.slane %v6045_v40, %v7322_v43  ;;  %v6094_v59 = vpop.permute.xlu1 %6093  ;;  %v6138_v30 = vpop.permute.xlu0 %6137  ;;  %v6232_v53 = vrot.slane %v6221_v42, %v7322_v43  ;;  %s10080_s6 = scalar_lea.hbm %s10130_s5, %s6483_s25 }
0x2a22   : > { %v6112_v63 = vmul.f32 %v6100_v28, %v6094_v59  ;;  %v6113_v27 = vmul.f32 %v6104_v19, %v6094_v59  ;;  %v6114_v50 = vmul.f32 %v6108_v10, %v6094_v59  ;;  %v6265_v19 = vmul.f32 %v6264_v35, %v10929_v24 }
0x2a23   : > { %v4851_v16 = vadd.f32 %v4845_v12, %v4807_v60  ;;  %v6068_v26 = vmul.f32 %v6056_v62, %v6050_v38  ;;  %v10953_v62 = vld [vmem:[#allocation28_spill] sm:$0xff] }
0x2a24   : > { %v5204_v59 = vsel %vm4982_vm13, %v10855_v13, %v10953_v62  ;;  %v5292_v13 = vsel %vm4982_vm13, %v9335_v14, %v9612_v3 }
0x2a25   : > { %5985 = vrot.lane.b32.xlu1 %v5979_v34, %s7084_s17  ;;  %5987 = vrot.lane.b32.xlu0 %v5980_v49, %s7084_s17  ;;  %v4895_v36 = vadd.f32 %v4889_v47, %v4851_v16  ;;  %v6064_v34 = vrot.slane %v6045_v40, %v7396_v48  ;;  %v6132_v49 = vld [vmem:[#allocation2 + $0xc] ss:$8 sm:$0x7]  ;;  %v6182_v41 = vpop.permute.xlu1 %6181  ;;  %v6176_v40 = vld [vmem:[#allocation2 + $0xd] ss:$8 sm:$0x7] }
0x2a27   : > { %v4939_v9 = vadd.f32 %v4933_v4, %v4895_v36  ;;  %v6070_v2 = vmul.f32 %v6064_v34, %v6050_v38  ;;  %v6270_v4 = vpop.permute.xlu0 %6269 }
0x2a29   : > { %5989 = vrot.lane.b32.xlu1 %v5981_v29, %s7084_s17  ;;  %6030 = vrot.lane.b32.xlu0 %v6024_v1, %s7084_s17  ;;  %v4990_v17 = vadd.f32 %v4984_v55, %v4939_v9  ;;  %v6133_v29 = vmul.f32 %v6132_v49, %v10929_v24  ;;  %v5072_v1 = vsel %vm4982_vm13, %v10950_v54, %v10949_v37  ;;  %v6226_v7 = vpop.permute.xlu1 %6225 }
0x2a2a   : > { %v6236_v37 = vrot.slane %v6221_v42, %v7325_v44 }
0x2a2b   : > { %v5034_v38 = vadd.f32 %v5028_v58, %v4990_v17  ;;  %v6148_v12 = vrot.slane %v6133_v29, %v7325_v44  ;;  %v6152_v47 = vrot.slane %v6133_v29, %v7396_v48 }
0x2a2c   : > { %v6245_v10 = vmul.f32 %v6236_v37, %v6226_v7 }
0x2a2d   : > { %6032 = vrot.lane.b32.xlu1 %v6025_v6, %s7084_s17  ;;  %6034 = vrot.lane.b32.xlu0 %v6026_v46, %s7084_s17  ;;  %v5078_v8 = vadd.f32 %v5072_v1, %v5034_v38  ;;  %v6144_v6 = vrot.slane %v6133_v29, %v7322_v43  ;;  %v6177_v46 = vmul.f32 %v6176_v40, %v10929_v24  ;;  %v5373_v39 = vpop.permute.xlu1 %5372 }
0x2a2e   : > { %v6157_v0 = vmul.f32 %v6148_v12, %v6138_v30  ;;  %v5375_v28 = vsel %vm5332_vm14, %v9724_v61, %v5373_v39 }
0x2a2f   : > { %v5122_v60 = vadd.f32 %v5116_v11, %v5078_v8  ;;  %v6156_v20 = vmul.f32 %v6144_v6, %v6138_v30  ;;  %v6188_v5 = vrot.slane %v6177_v46, %v7322_v43  ;;  %v6192_v34 = vrot.slane %v6177_v46, %v7325_v44 }
0x2a30   : > { %v6196_v33 = vrot.slane %v6177_v46, %v7396_v48  ;;  %v6276_v11 = vrot.slane %v6265_v19, %v7322_v43  ;;  %v6284_v46 = vrot.slane %v6265_v19, %v7396_v48 }
0x2a31   : > { %6074 = vrot.lane.b32.xlu1 %v6068_v26, %s7084_s17  ;;  %6076 = vrot.lane.b32.xlu0 %v6069_v25, %s7084_s17  ;;  %v5166_v52 = vadd.f32 %v5160_v15, %v5122_v60  ;;  %v6158_v26 = vmul.f32 %v6152_v47, %v6138_v30  ;;  %v6200_v25 = vmul.f32 %v6188_v5, %v6182_v41 }
0x2a32   : > { %v6201_v49 = vmul.f32 %v6192_v34, %v6182_v41  ;;  %v6202_v3 = vmul.f32 %v6196_v33, %v6182_v41  ;;  %v6308_v41 = vld [vmem:[%s10129_s4] sm:$0xff]  ;;  %v6288_v6 = vmul.f32 %v6276_v11, %v6270_v4 }
0x2a33   : > { %v5210_v16 = vadd.f32 %v5204_v59, %v5166_v52 }
0x2a35   : > { %6078 = vrot.lane.b32.xlu1 %v6070_v2, %s7084_s17  ;;  %6118 = vrot.lane.b32.xlu0 %v6112_v63, %s7084_s17  ;;  %v5254_v36 = vadd.f32 %v5248_v18, %v5210_v16 }
0x2a37   : > { %v5298_v55 = vadd.f32 %v5292_v13, %v5254_v36 }
0x2a39   : > { %6120 = vrot.lane.b32.xlu1 %v6113_v27, %s7084_s17  ;;  %6122 = vrot.lane.b32.xlu0 %v6114_v50, %s7084_s17  ;;  %v5340_v45 = vadd.f32 %v5334_v56, %v5298_v55  ;;  %v6280_v50 = vrot.slane %v6265_v19, %v7325_v44 }
0x2a3b   : > { %v5381_v61 = vadd.f32 %v5375_v28, %v5340_v45  ;;  %v6289_v15 = vmul.f32 %v6280_v50, %v6270_v4 }
0x2a3d   : > { %6162 = vrot.lane.b32.xlu1 %v6156_v20, %s7084_s17  ;;  %6164 = vrot.lane.b32.xlu0 %v6157_v0, %s7084_s17  ;;  %v6290_v20 = vmul.f32 %v6284_v46, %v6270_v4 }
0x2a41   : > { %6166 = vrot.lane.b32.xlu1 %v6158_v26, %s7084_s17  ;;  %6206 = vrot.lane.b32.xlu0 %v6200_v25, %s7084_s17 }
0x2a43   : > { %v5410_v14 = vpop.permute.xlu1 %5409  ;;  %v5412_v2 = vpop.permute.xlu0 %5411 }
0x2a44   : > { %v5420_v9 = vadd.f32 %v5410_v14, %v9729_v32  ;;  %v5415_v22 = vsel %vm5332_vm14, %v5410_v14, %v5412_v2  ;;  %v6244_v32 = vmul.f32 %v6232_v53, %v6226_v7 }
0x2a45   : > { %6208 = vrot.lane.b32.xlu1 %v6201_v49, %s7084_s17  ;;  %v5421_v58 = vadd.f32 %v5415_v22, %v9733_v21  ;;  %6210 = vrot.lane.b32.xlu0 %v6202_v3, %s7084_s17  ;;  %v6240_v21 = vrot.slane %v6221_v42, %v7396_v48 }
0x2a47   : > { %v5414_v63 = vpop.permute.xlu1 %5413  ;;  %v5451_v29 = vpop.permute.xlu0 %5450  ;;  %v6246_v27 = vmul.f32 %v6240_v21, %v6226_v7 }
0x2a48   : > { %v5416_v17 = vsel %vm5332_vm14, %v5412_v2, %v5414_v63  ;;  %v5461_v1 = vadd.f32 %v5451_v29, %v5420_v9 }
0x2a49   : > { %v5422_v54 = vadd.f32 %v5416_v17, %v5381_v61  ;;  %6311 = vperm.xlu1 %6840, %v6308_v41   ;;  %6250 = vrot.lane.b32.xlu0 %v6244_v32, %s7084_s17 }
0x2a4b   : > { %v5453_v38 = vpop.permute.xlu1 %5452  ;;  %v5455_v51 = vpop.permute.xlu0 %5454 }
0x2a4c   : > { %v5456_v40 = vsel %vm5332_vm14, %v5451_v29, %v5453_v38  ;;  %v5457_v24 = vsel %vm5332_vm14, %v5453_v38, %v5455_v51 }
0x2a4d   : > { %v5462_v30 = vadd.f32 %v5456_v40, %v5421_v58  ;;  %6252 = vrot.lane.b32.xlu1 %v6245_v10, %s7084_s17  ;;  %v5463_v8 = vadd.f32 %v5457_v24, %v5422_v54  ;;  %6254 = vrot.lane.b32.xlu0 %v6246_v27, %s7084_s17 }
0x2a4f   : > { %v5492_v31 = vpop.permute.xlu1 %5491  ;;  %v5494_v7 = vpop.permute.xlu0 %5493 }
0x2a50   : > { %v5502_v12 = vadd.f32 %v5492_v31, %v5461_v1  ;;  %v5497_v60 = vsel %vm5332_vm14, %v5492_v31, %v5494_v7 }
0x2a51   : > { %6294 = vrot.lane.b32.xlu1 %v6288_v6, %s7084_s17  ;;  %v5503_v43 = vadd.f32 %v5497_v60, %v5462_v30  ;;  %6296 = vrot.lane.b32.xlu0 %v6289_v15, %s7084_s17 }
0x2a53   : > { %v5496_v62 = vpop.permute.xlu1 %5495  ;;  %v5533_v59 = vpop.permute.xlu0 %5532 }
0x2a54   : > { %v5498_v44 = vsel %vm5332_vm14, %v5494_v7, %v5496_v62  ;;  %v5543_v52 = vadd.f32 %v5533_v59, %v5502_v12 }
0x2a55   : > { %v5504_v0 = vadd.f32 %v5498_v44, %v5463_v8  ;;  %6298 = vrot.lane.b32.xlu1 %v6290_v20, %s7084_s17 }
0x2a57   : > { %v5535_v47 = vpop.permute.xlu1 %5534  ;;  %v5537_v48 = vpop.permute.xlu0 %5536 }
0x2a58   : > { %v5538_v57 = vsel %vm5332_vm14, %v5533_v59, %v5535_v47  ;;  %v5539_v5 = vsel %vm5332_vm14, %v5535_v47, %v5537_v48 }
0x2a59   : > { %v5544_v18 = vadd.f32 %v5538_v57, %v5503_v43  ;;  %v5545_v16 = vadd.f32 %v5539_v5, %v5504_v0 }
0x2a5b   : > { %v5574_v26 = vpop.permute.xlu1 %5573  ;;  %v5576_v39 = vpop.permute.xlu0 %5575 }
0x2a5c   : > { %v5584_v23 = vadd.f32 %v5574_v26, %v5543_v52  ;;  %v5579_v13 = vsel %vm5332_vm14, %v5574_v26, %v5576_v39 }
0x2a5d   : > { %v5585_v4 = vadd.f32 %v5579_v13, %v5544_v18 }
0x2a5f   : > { %v5578_v25 = vpop.permute.xlu1 %5577  ;;  %v5615_v34 = vpop.permute.xlu0 %5614 }
0x2a60   : > { %v5580_v36 = vsel %vm5332_vm14, %v5576_v39, %v5578_v25  ;;  %v5625_v33 = vadd.f32 %v5615_v34, %v5584_v23 }
0x2a61   : > { %v5586_v56 = vadd.f32 %v5580_v36, %v5545_v16 }
0x2a63   : > { %v5617_v42 = vpop.permute.xlu1 %5616  ;;  %v5619_v49 = vpop.permute.xlu0 %5618 }
0x2a64   : > { %v5620_v55 = vsel %vm5332_vm14, %v5615_v34, %v5617_v42  ;;  %v5621_v3 = vsel %vm5332_vm14, %v5617_v42, %v5619_v49 }
0x2a65   : > { %v5626_v14 = vadd.f32 %v5620_v55, %v5585_v4  ;;  %v5627_v28 = vadd.f32 %v5621_v3, %v5586_v56 }
0x2a67   : > { %v5656_v9 = vpop.permute.xlu1 %5655  ;;  %v5658_v2 = vpop.permute.xlu0 %5657 }
0x2a68   : > { %v5661_v62 = vsel %vm5332_vm14, %v5656_v9, %v5658_v2  ;;  %v5666_v0 = vadd.f32 %v5656_v9, %v5625_v33 }
0x2a69   : > { %v5667_v47 = vadd.f32 %v5661_v62, %v5626_v14 }
0x2a6b   : > { %v5660_v45 = vpop.permute.xlu1 %5659  ;;  %v5697_v35 = vpop.permute.xlu0 %5696 }
0x2a6c   : > { %v5662_v22 = vsel %vm5332_vm14, %v5658_v2, %v5660_v45  ;;  %v5707_v57 = vadd.f32 %v5697_v35, %v5666_v0 }
0x2a6d   : > { %v5668_v53 = vadd.f32 %v5662_v22, %v5627_v28 }
0x2a6f   : > { %v5699_v58 = vpop.permute.xlu1 %5698  ;;  %v5701_v41 = vpop.permute.xlu0 %5700 }
0x2a70   : > { %v5702_v52 = vsel %vm5332_vm14, %v5697_v35, %v5699_v58  ;;  %v5703_v5 = vsel %vm5332_vm14, %v5699_v58, %v5701_v41 }
0x2a71   : > { %v5708_v18 = vadd.f32 %v5702_v52, %v5667_v47  ;;  %v5709_v34 = vadd.f32 %v5703_v5, %v5668_v53 }
0x2a73   : > { %v5738_v61 = vpop.permute.xlu1 %5737  ;;  %v5740_v63 = vpop.permute.xlu0 %5739 }
0x2a74   : > { %v5743_v48 = vsel %vm5332_vm14, %v5738_v61, %v5740_v63  ;;  %v5748_v16 = vadd.f32 %v5738_v61, %v5707_v57 }
0x2a75   : > { %v5749_v23 = vadd.f32 %v5743_v48, %v5708_v18 }
0x2a77   : > { %v5742_v32 = vpop.permute.xlu1 %5741  ;;  %v5779_v17 = vpop.permute.xlu0 %5778 }
0x2a78   : > { %v5744_v4 = vsel %vm5332_vm14, %v5740_v63, %v5742_v32  ;;  %v5789_v25 = vadd.f32 %v5779_v17, %v5748_v16 }
0x2a79   : > { %v5750_v49 = vadd.f32 %v5744_v4, %v5709_v34 }
0x2a7b   : > { %v5781_v29 = vpop.permute.xlu1 %5780  ;;  %v5783_v19 = vpop.permute.xlu0 %5782 }
0x2a7c   : > { %v5784_v26 = vsel %vm5332_vm14, %v5779_v17, %v5781_v29  ;;  %v5785_v33 = vsel %vm5332_vm14, %v5781_v29, %v5783_v19 }
0x2a7d   : > { %v5790_v56 = vadd.f32 %v5784_v26, %v5749_v23  ;;  %v5791_v2 = vadd.f32 %v5785_v33, %v5750_v49 }
0x2a7f   : > { %v5820_v37 = vpop.permute.xlu1 %5819  ;;  %v5822_v54 = vpop.permute.xlu0 %5821 }
0x2a80   : > { %v5825_v36 = vsel %vm5332_vm14, %v5820_v37, %v5822_v54  ;;  %v5830_v42 = vadd.f32 %v5820_v37, %v5789_v25 }
0x2a81   : > { %v5831_v14 = vadd.f32 %v5825_v36, %v5790_v56 }
0x2a83   : > { %v5824_v1 = vpop.permute.xlu1 %5823  ;;  %v5861_v21 = vpop.permute.xlu0 %5860 }
0x2a84   : > { %v5826_v3 = vsel %vm5332_vm14, %v5822_v54, %v5824_v1  ;;  %v5871_v28 = vadd.f32 %v5861_v21, %v5830_v42 }
0x2a85   : > { %v5832_v61 = vadd.f32 %v5826_v3, %v5791_v2 }
0x2a87   : > { %v5863_v10 = vpop.permute.xlu1 %5862  ;;  %v5865_v38 = vpop.permute.xlu0 %5864 }
0x2a88   : > { %v5866_v55 = vsel %vm5332_vm14, %v5861_v21, %v5863_v10  ;;  %v5867_v53 = vsel %vm5332_vm14, %v5863_v10, %v5865_v38 }
0x2a89   : > { %v5872_v45 = vadd.f32 %v5866_v55, %v5831_v14  ;;  %v5873_v19 = vadd.f32 %v5867_v53, %v5832_v61 }
0x2a8b   : > { %v5902_v27 = vpop.permute.xlu1 %5901  ;;  %v5904_v40 = vpop.permute.xlu0 %5903 }
0x2a8c   : > { %v5907_v9 = vsel %vm5332_vm14, %v5902_v27, %v5904_v40  ;;  %v5912_v58 = vadd.f32 %v5902_v27, %v5871_v28 }
0x2a8d   : > { %v5913_v63 = vadd.f32 %v5907_v9, %v5872_v45 }
0x2a8f   : > { %v5906_v51 = vpop.permute.xlu1 %5905  ;;  %v5943_v11 = vpop.permute.xlu0 %5942 }
0x2a90   : > { %v5908_v32 = vsel %vm5332_vm14, %v5904_v40, %v5906_v51  ;;  %v5953_v17 = vadd.f32 %v5943_v11, %v5912_v58 }
0x2a91   : > { %v5914_v62 = vadd.f32 %v5908_v32, %v5873_v19 }
0x2a93   : > { %v5945_v30 = vpop.permute.xlu1 %5944  ;;  %v5947_v24 = vpop.permute.xlu0 %5946 }
0x2a94   : > { %v5948_v41 = vsel %vm5332_vm14, %v5943_v11, %v5945_v30  ;;  %v5949_v54 = vsel %vm5332_vm14, %v5945_v30, %v5947_v24 }
0x2a95   : > { %v5954_v37 = vadd.f32 %v5948_v41, %v5913_v63  ;;  %v5955_v51 = vadd.f32 %v5949_v54, %v5914_v62 }
0x2a97   : > { %v5986_v50 = vpop.permute.xlu1 %5985  ;;  %v5988_v8 = vpop.permute.xlu0 %5987 }
0x2a98   : > { %v5992_v29 = vsel %vm5991_vm15, %v5986_v50, %v5988_v8  ;;  %v5997_v1 = vadd.f32 %v5986_v50, %v5953_v17 }
0x2a99   : > { %v5998_v10 = vadd.f32 %v5992_v29, %v5954_v37 }
0x2a9b   : > { %v5990_v6 = vpop.permute.xlu1 %5989  ;;  %v6031_v31 = vpop.permute.xlu0 %6030 }
0x2a9c   : > { %v5993_v0 = vsel %vm5991_vm15, %v5988_v8, %v5990_v6  ;;  %v6041_v52 = vadd.f32 %v6031_v31, %v5997_v1 }
0x2a9d   : > { %v5999_v50 = vadd.f32 %v5993_v0, %v5955_v51 }
0x2a9f   : > { %v10014_v15 = vpop.permute.xlu1 %6032  ;;  %v6035_v12 = vpop.permute.xlu0 %6034 }
0x2aa0   : > { %v6036_v21 = vsel %vm5991_vm15, %v6031_v31, %v10014_v15  ;;  %v6037_v47 = vsel %vm5991_vm15, %v10014_v15, %v6035_v12 }
0x2aa1   : > { %v6042_v11 = vadd.f32 %v6036_v21, %v5998_v10  ;;  %v6043_v18 = vadd.f32 %v6037_v47, %v5999_v50 }
0x2aa3   : > { %v10016_v7 = vpop.permute.xlu0 %6076  ;;  %v6075_v46 = vpop.permute.xlu1 %6074 }
0x2aa4   : > { %v6080_v40 = vsel %vm5991_vm15, %v6075_v46, %v10016_v7  ;;  %v6085_v30 = vadd.f32 %v6075_v46, %v6041_v52 }
0x2aa5   : > { %v6086_v57 = vadd.f32 %v6080_v40, %v6042_v11 }
0x2aa7   : > { %v10018_v60 = vpop.permute.xlu0 %6118  ;;  %v10020_v43 = vpop.permute.xlu1 %6078 }
0x2aa8   : > { %v6081_v8 = vsel %vm5991_vm15, %v10016_v7, %v10020_v43  ;;  %v6129_v6 = vadd.f32 %v10018_v60, %v6085_v30 }
0x2aa9   : > { %v6087_v26 = vadd.f32 %v6081_v8, %v6043_v18 }
0x2aab   : > { %v10022_v20 = vpop.permute.xlu0 %6122  ;;  %v10025_v44 = vpop.permute.xlu1 %6120 }
0x2aac   : > { %v6124_v24 = vsel %vm5991_vm15, %v10018_v60, %v10025_v44  ;;  %v6125_v12 = vsel %vm5991_vm15, %v10025_v44, %v10022_v20 }
0x2aad   : > { %v6130_v5 = vadd.f32 %v6124_v24, %v6086_v57  ;;  %v6131_v25 = vadd.f32 %v6125_v12, %v6087_v26 }
0x2aaf   : > { %v10027_v59 = vpop.permute.xlu0 %6164  ;;  %v6163_v39 = vpop.permute.xlu1 %6162 }
0x2ab0   : > { %v6168_v31 = vsel %vm5991_vm15, %v6163_v39, %v10027_v59  ;;  %v6173_v46 = vadd.f32 %v6163_v39, %v6129_v6 }
0x2ab1   : > { %v6174_v23 = vadd.f32 %v6168_v31, %v6130_v5 }
0x2ab3   : > { %v6207_v13 = vpop.permute.xlu0 %6206  ;;  %v6167_v22 = vpop.permute.xlu1 %6166 }
0x2ab4   : > { %v6169_v7 = vsel %vm5991_vm15, %v10027_v59, %v6167_v22  ;;  %v6217_v60 = vadd.f32 %v6207_v13, %v6173_v46 }
0x2ab5   : > { %v6175_v33 = vadd.f32 %v6169_v7, %v6131_v25 }
0x2ab7   : > { %v6211_v35 = vpop.permute.xlu0 %6210  ;;  %v6209_v38 = vpop.permute.xlu1 %6208 }
0x2ab8   : > { %v6212_v16 = vsel %vm5991_vm15, %v6207_v13, %v6209_v38  ;;  %v6213_v34 = vsel %vm5991_vm15, %v6209_v38, %v6211_v35 }
0x2ab9   : > { %v6218_v36 = vadd.f32 %v6212_v16, %v6174_v23  ;;  %v6219_v14 = vadd.f32 %v6213_v34, %v6175_v33 }
0x2abb   : > { %v6251_v27 = vpop.permute.xlu0 %6250 }
0x2abc   : > { %v6261_v56 = vadd.f32 %v6251_v27, %v6217_v60 }
0x2abf   : > { %v6255_v15 = vpop.permute.xlu0 %6254 }
0x2ac3   : > { %v6297_v42 = vpop.permute.xlu0 %6296 }
0x2ac8   : > { %v6312_v48 = vpop.permute.xlu1 %6311 }
0x2acc   : > { %v6253_v4 = vpop.permute.xlu1 %6252 }
0x2acd   : > { %v6256_v43 = vsel %vm5991_vm15, %v6251_v27, %v6253_v4  ;;  %v6257_v39 = vsel %vm5991_vm15, %v6253_v4, %v6255_v15 }
0x2ace   : > { %v6262_v20 = vadd.f32 %v6256_v43, %v6218_v36  ;;  %v6263_v3 = vadd.f32 %v6257_v39, %v6219_v14 }
0x2ad0   : > { %v6295_v44 = vpop.permute.xlu1 %6294 }
0x2ad1   : > { %v6300_v55 = vsel %vm5991_vm15, %v6295_v44, %v6297_v42  ;;  %v6305_v49 = vadd.f32 %v6295_v44, %v6261_v56 }
0x2ad2   : > { %v6306_v59 = vadd.f32 %v6300_v55, %v6262_v20 }
0x2ad3   : > { %v6314_v13 = vadd.f32 %v6312_v48, %v6305_v49 }
0x2ad4   : > { %v6315_v28 = vadd.f32 %v6312_v48, %v6306_v59  ;;  %v6299_v9 = vpop.permute.xlu1 %6298 }
0x2ad5   : > { %v6301_v2 = vsel %vm5991_vm15, %v6297_v42, %v6299_v9  ;;  %6320 = vrot.lane.b32.xlu0 %v6314_v13, %s6951_s14 }
0x2ad6   : > { %v6307_v45 = vadd.f32 %v6301_v2, %v6263_v3  ;;  %6322 = vrot.lane.b32.xlu1 %v6315_v28, %s6951_s14 }
0x2ad8   : > { %v6316_v22 = vadd.f32 %v6312_v48, %v6307_v45 }
0x2ada   : > { %6324 = vrot.lane.b32.xlu0 %v6316_v22, %s6951_s14  ;;  %s6333_s14 = scalar_lea.sflag [#allocation5], %s7215_s13 }
0x2b47   : > { %v6321_v35 = vpop.permute.xlu0 %6320 }
0x2b48   : > { %v6323_v53 = vpop.permute.xlu1 %6322 }
0x2b49   : > { %v6326_v58 = vsel %vm335_vm2, %v6321_v35, %v6323_v53 }
0x2b4a   : > { %6330 = vst [vmem:[%s240_s12] sm:$0xff] %v6326_v58 }
0x2b4c   : > { %v6325_v41 = vpop.permute.xlu0 %6324 }
0x2b4d   : > { %v6327_v61 = vsel %vm335_vm2, %v6323_v53, %v6325_v41 }
0x2b4e   : > { %6331 = vst [vmem:[%s240_s12 + $0x8] sm:$0xff] %v6327_v61 }
0x2b4f   : > { %6887 = shalt.err (!%p6884_p4)
}
0x2b50   : > { %s6888_s13 = scalar_lea.hbm %s10080_s6, 256  ;;  %s6892_s23 = scalar_lea.hbm %s10130_s5, 512 }
0x2b51   : > { %p6889_p7 = scmp.ne.s32.totalorder %s10080_s6, %s6888_s13  ;;  %p6893_p0 = scmp.lt.u32.totalorder %s10080_s6, %s10130_s5 }
0x2b52   : > { %p6894_p1 = scmp.lt.u32.totalorder %s6892_s23, %s6888_s13  ;;  %p6896_p6 = scmp.lt.u32.totalorder %s6888_s13, %s10080_s6 }
0x2b53   : > { %p6890_p8 = pnand %p6889_p7, %p10955_p11 }
0x2b54   : > { %p6895_p3 = por %p6894_p1, %p6893_p0 }
0x2b55   : > { %p6891_p9 = pneg %p6890_p8 }
0x2b56   : > { %p6897_p12 = por %p6896_p6, %p6895_p3 }
0x2b58   : > { %p6898_p13 = pnand %p6897_p12, %p6891_p9 }
0x2b5a   : > { %6901 = shalt.err (!%p6898_p13)
}
0x2b5b   : > { %6489 = dma.vmem_to_hbm [thread:$0]  (%p10955_p11), %s10082_s15, 256, %s10080_s6, %s6333_s14  }
0x2b5c PF: > { %s6359_s12 = sand.u32 1, %s6928_s18   ;;  %p10956_p5 = scmp.ne.s32.totalorder %s10361_s30, 0 }
0x2b5d   : > { %p10957_p10 = scmp.ge.s32.totalorder %s6940_s21, 2  ;;  %s6360_s25 = scalar_lea.sflag [#allocation5], %s6359_s12 }
0x2b5f   : > { %p6496_p2 = pnand %p10957_p10, %p10956_p5 }
0x2b61   : > { %6923 = dma.done.wait (!%p6496_p2), %s6360_s25, 256  }
0x2b62   : > { %6925 = vsyncadd (!%p6496_p2), %s6360_s25, 4294967040  ;;  %p18_p4 = scmp.ge.s32.totalorder %s7141_s24, 4   ;;  %s10958_s18 = smov %s6932_s19 }
0x2b63   : > { %s10959_s19 = smov %s6936_s20  ;;  %s10960_s20 = smov %s7153_s27 }
0x2b64   : > { %s10961_s21 = smov %s7141_s24  ;;  %20 = sbr.rel (!%p18_p4) target bundleno = 5 (0x5), region = 147 }
0x2b6b   :  { %6365 = vsyncpa [#allocation4], 1 }
0x2b6c   :  { %6367 = vsyncpa [#allocation4 + $0x1], 1 }
0x2b6d   :  { %6368 = vsyncpa [#allocation5], 1 }
0x2b6e   :  { %6370 = vsyncpa [#allocation5 + $0x1], 1 }

</bundles_post_ra>
